<compile_context>
chip_gen: v7x
topology: tpu7x:2x2x1
jax: 0.10.0
libtpu: 0.0.40
codegen_flags: <defaults>
</compile_context>

<pallas_src>
import functools

import jax
import jax.numpy as jnp
from jax.experimental import pallas as pl
from jax.experimental.pallas import tpu as pltpu


# ----------------------------------------------------------------------------
# Fused kernel: T_CHUNK forward-Euler sub-steps per grid iteration.
#   t_ref    : SMEM (TS+1,) f32   [t0, t1[0], ..., t1[TS-1]]     (scalar prefetch)
#   ic_ref   : (C, N)              initial condition, lane-packed batch (N = BB*H*W)
#   mask_ref : (9, 1, N) f32       boundary masks per 3x3 tap (precomputed on host)
#   w1_ref   : (9, HID, C)         conv1 weights, one (Cout, Cin) tile per tap
#   b1_ref   : (HID, 1)
#   w2_ref   : (9, C, HID)         conv2 weights, one (Cout, Cin) tile per tap
#   b2_ref   : (C, 1)
#   out_ref  : (T_CHUNK*C, N)      states for this time chunk (lane-dense slab)
#   state_ref: VMEM scratch (C, N) f32, persistent across the time-chunk grid axis
# ----------------------------------------------------------------------------
def _parcv2_euler_kernel(t_ref, ic_ref, mask_ref, w1_ref, b1_ref, w2_ref, b2_ref,
                         out_ref, state_ref, *, W, C, T_CHUNK):
    N = state_ref.shape[1]
    chunk = pl.program_id(1)

    # (Re)load the initial condition into the persistent VMEM state at chunk == 0.
    @pl.when(chunk == 0)
    def _():
        state_ref[...] = ic_ref[...].astype(jnp.float32)

    offsets = [(oy, ox) for oy in (-1, 0, 1) for ox in (-1, 0, 1)]
    shifts = [(-(oy * W + ox)) % N for oy, ox in offsets]      # static python ints

    # Hoisted loop-invariant loads (masks, per-tap weight tiles, biases): small
    # live set, loaded once per grid iteration instead of once per tap/sub-step.
    masks = [mask_ref[tap] for tap in range(9)]                # each (1, N)
    w1_taps = [w1_ref[tap] for tap in range(9)]                # each (HID, C)
    w2_taps = [w2_ref[tap] for tap in range(9)]                # each (C, HID)
    b1 = b1_ref[...]
    b2 = b2_ref[...]

    def conv3x3(x, w_taps, b):
        # 3x3 'same' cross-correlation as 9 tap-accumulated MXU matmuls:
        # acc += dot(w[tap], mask[tap] * roll(x, tap)).  No im2col materialization;
        # the live set per conv is ~a dozen vregs.
        acc = None
        for tap in range(9):
            shift = shifts[tap]
            rolled = pltpu.roll(x, shift, 1) if shift else x   # XLU lane rotate
            tapped = rolled * masks[tap]                       # zero 'same' padding
            contrib = jnp.dot(w_taps[tap], tapped,
                              preferred_element_type=jnp.float32)
            acc = contrib if acc is None else acc + contrib
        return acc + b

    state = state_ref[...]                                     # (C, N) f32
    for j in range(T_CHUNK):                                   # statically unrolled
        t_idx = chunk * T_CHUNK + j
        dt = t_ref[t_idx + 1] - t_ref[t_idx]
        h = jnp.maximum(conv3x3(state, w1_taps, b1), 0.0)      # conv1 + bias + ReLU
        deriv = conv3x3(h, w2_taps, b2)                        # conv2 + bias
        state = state + dt * deriv                             # forward Euler
        out_ref[pl.ds(j * C, C), :] = state.astype(out_ref.dtype)
    state_ref[...] = state                                     # persist across chunks


# ----------------------------------------------------------------------------
# Differentiator: holds the conv parameters pre-reshaped for the fused kernel.
# ----------------------------------------------------------------------------
class ConvDifferentiator:
    """F(x) = Conv3x3(ReLU(Conv3x3(x))) with zero 'same' padding (cross-correlation,
    matching torch.nn.Conv2d(padding=1)).  Weights are stored per-tap: (9, Cout, Cin),
    tap index = ky*3 + kx."""

    def __init__(self, w1, b1, w2, b2):
        # w1: (3, 3, Cin, HID), w2: (3, 3, HID, Cout)   (HWIO layout)
        _, _, self.C, self.HID = w1.shape
        self.Cout = w2.shape[3]
        self.w1_taps = jnp.transpose(w1, (0, 1, 3, 2)).reshape(
            9, self.HID, self.C).astype(jnp.float32)
        self.b1_col = jnp.reshape(b1, (self.HID, 1)).astype(jnp.float32)
        self.w2_taps = jnp.transpose(w2, (0, 1, 3, 2)).reshape(
            9, self.Cout, self.HID).astype(jnp.float32)
        self.b2_col = jnp.reshape(b2, (self.Cout, 1)).astype(jnp.float32)


# ----------------------------------------------------------------------------
# Integrator: forward Euler over t1, fully fused with the differentiator into
# one pallas_call.  Returns (ts, B, C, H, W).
#   batch_blocks: number of lane-packed batch blocks (leading "parallel" grid axis).
#                 1 = whole batch on lanes (best on single-TC v5e/v6e);
#                 2 = split across v7x's two TensorCores.
# ----------------------------------------------------------------------------
def fused_euler_integrator(differentiator, ic, t0, t1, *, batch_blocks=1):
    C, HID = differentiator.C, differentiator.HID
    assert differentiator.Cout == C, "differentiator must map state -> state"

    B, Cin, H, W = ic.shape
    assert Cin == C
    HW = H * W
    TS = int(t1.shape[0])

    NB = batch_blocks
    assert B % NB == 0, "batch must divide evenly into batch_blocks"
    BB = B // NB
    N = BB * HW                                  # lane extent per batch block

    # Time-chunk: unroll several Euler sub-steps per grid iteration.
    T_CHUNK = max(d for d in (1, 2, 4) if TS % d == 0)
    NC = TS // T_CHUNK

    # Layout boundary: NCHW -> (C, B*HW), lane index = b*HW + y*W + x.
    ic_pack = jnp.transpose(ic.reshape(B, C, HW), (1, 0, 2)).reshape(
        C, B * HW).astype(jnp.float32)

    # Boundary masks, tiled with period HW (valid for lane-packed batches since
    # every cross-image roll wrap is an out-of-bounds position the mask zeroes).
    pos = jnp.arange(N, dtype=jnp.int32) % HW
    yy = pos // W
    xx = pos % W
    mask_rows = []
    for oy in (-1, 0, 1):
        for ox in (-1, 0, 1):
            mask_rows.append((yy + oy >= 0) & (yy + oy < H)
                             & (xx + ox >= 0) & (xx + ox < W))
    masks = jnp.stack(mask_rows).astype(jnp.float32).reshape(9, 1, N)

    t_all = jnp.concatenate(
        [jnp.reshape(jnp.asarray(t0, jnp.float32), (1,)),
         jnp.asarray(t1, jnp.float32)])                          # (TS+1,)

    kernel = functools.partial(_parcv2_euler_kernel, W=W, C=C, T_CHUNK=T_CHUNK)

    out = pl.pallas_call(
        kernel,
        out_shape=jax.ShapeDtypeStruct((TS * C, B * HW), jnp.float32),
        grid_spec=pltpu.PrefetchScalarGridSpec(
            num_scalar_prefetch=1,
            grid=(NB, NC),
            in_specs=[
                pl.BlockSpec((C, N), lambda b, c, tref: (0, b)),
                pl.BlockSpec((9, 1, N), lambda b, c, tref: (0, 0, 0)),
                pl.BlockSpec((9, HID, C), lambda b, c, tref: (0, 0, 0)),
                pl.BlockSpec((HID, 1), lambda b, c, tref: (0, 0)),
                pl.BlockSpec((9, C, HID), lambda b, c, tref: (0, 0, 0)),
                pl.BlockSpec((C, 1), lambda b, c, tref: (0, 0)),
            ],
            out_specs=pl.BlockSpec((T_CHUNK * C, N), lambda b, c, tref: (c, b)),
            scratch_shapes=[pltpu.VMEM((C, N), jnp.float32)],
        ),
        compiler_params=pltpu.CompilerParams(
            dimension_semantics=("parallel", "arbitrary")),
    )(t_all, ic_pack, masks,
      differentiator.w1_taps, differentiator.b1_col,
      differentiator.w2_taps, differentiator.b2_col)

    # (TS*C, B*HW) -> (TS, C, B, H, W) -> (TS, B, C, H, W)
    return jnp.transpose(out.reshape(TS, C, B, H, W), (0, 2, 1, 3, 4))


# ----------------------------------------------------------------------------
# PARCv2: same composition as the PyTorch module.
# ----------------------------------------------------------------------------
class PARCv2:
    def __init__(self, differentiator, integrator, loss):
        self.differentiator = differentiator
        self.integrator = integrator
        self.loss = loss

    def forward(self, ic, t0, t1):
        return self.integrator(self.differentiator, ic, t0, t1)

    __call__ = forward


# ----------------------------------------------------------------------------
# Pure-JAX reference (conv 'SAME' + explicit Euler) for numerical validation.
# ----------------------------------------------------------------------------
def _reference_euler(ic, t0, t1, w1, b1, w2, b2):
    def deriv_fn(x):
        dn1 = jax.lax.conv_dimension_numbers(x.shape, w1.shape,
                                             ('NCHW', 'HWIO', 'NCHW'))
        h = jax.lax.conv_general_dilated(x, w1, (1, 1), 'SAME',
                                         dimension_numbers=dn1)
        h = jnp.maximum(h + b1.reshape(1, -1, 1, 1), 0.0)
        dn2 = jax.lax.conv_dimension_numbers(h.shape, w2.shape,
                                             ('NCHW', 'HWIO', 'NCHW'))
        d = jax.lax.conv_general_dilated(h, w2, (1, 1), 'SAME',
                                         dimension_numbers=dn2)
        return d + b2.reshape(1, -1, 1, 1)

    outs = []
    state = ic
    t_prev = t0
    for i in range(int(t1.shape[0])):
        dt = t1[i] - t_prev
        state = state + dt * deriv_fn(state)
        outs.append(state)
        t_prev = t1[i]
    return jnp.stack(outs)


if __name__ == "__main__":
    B, C, H, W, HID, TS = 2, 4, 16, 16, 32, 8

    key = jax.random.PRNGKey(0)
    k_ic, k_w1, k_w2, k_b1, k_b2 = jax.random.split(key, 5)

    ic = jax.random.normal(k_ic, (B, C, H, W), dtype=jnp.float32)
    w1 = 0.1 * jax.random.normal(k_w1, (3, 3, C, HID), dtype=jnp.float32)
    b1 = 0.05 * jax.random.normal(k_b1, (HID,), dtype=jnp.float32)
    w2 = 0.1 * jax.random.normal(k_w2, (3, 3, HID, C), dtype=jnp.float32)
    b2 = 0.05 * jax.random.normal(k_b2, (C,), dtype=jnp.float32)

    differentiator = ConvDifferentiator(w1, b1, w2, b2)
    model = PARCv2(differentiator, fused_euler_integrator,
                   loss=lambda a, b: jnp.mean((a - b) ** 2))

    t0 = jnp.float32(0.0)
    t1 = jnp.linspace(0.1, 0.8, TS, dtype=jnp.float32)

    fwd = jax.jit(model.forward)
    res = fwd(ic, t0, t1)
    jax.block_until_ready(res)

    assert res.shape == (TS, B, C, H, W), res.shape
    assert res.dtype == jnp.float32

    # Numerical check against the pure-JAX reference.
    ref = _reference_euler(ic, t0, t1, w1, b1, w2, b2)
    jax.block_until_ready(ref)
    max_err = float(jnp.max(jnp.abs(res - ref)))
    assert max_err < 1e-4, f"max abs error vs reference: {max_err}"

    print("KERNEL_OK")
</pallas_src>

<mosaic_0001>
module attributes {stable_mosaic.version = 11 : i64} {
  func.func @_parcv2_euler_kernel(%arg0: i32, %arg1: i32, %arg2: memref<9xf32, #tpu.memory_space<smem>>, %arg3: memref<4x512xf32, #tpu.memory_space<vmem>>, %arg4: memref<9x1x512xf32, #tpu.memory_space<vmem>>, %arg5: memref<9x32x4xf32, #tpu.memory_space<vmem>>, %arg6: memref<32x1xf32, #tpu.memory_space<vmem>>, %arg7: memref<9x4x32xf32, #tpu.memory_space<vmem>>, %arg8: memref<4x1xf32, #tpu.memory_space<vmem>>, %arg9: memref<16x512xf32, #tpu.memory_space<vmem>>, %arg10: memref<4x512xf32, #tpu.memory_space<vmem>>) attributes {dimension_semantics = [#tpu.dimension_semantics<parallel>, #tpu.dimension_semantics<arbitrary>], iteration_bounds = array<i64: 1, 2>, scalar_prefetch = 1 : i64, scratch_operands = 1 : i64, tpu.core_type = #tpu.core_type<tc>, window_params = [{transform_indices = @transform_0, window_bounds = array<i64: 4, 512>}, {pipeline_mode = #tpu.pipeline_mode<synchronous>, transform_indices = @transform_1, window_bounds = array<i64: 9, 1, 512>}, {pipeline_mode = #tpu.pipeline_mode<synchronous>, transform_indices = @transform_2, window_bounds = array<i64: 9, 32, 4>}, {pipeline_mode = #tpu.pipeline_mode<synchronous>, transform_indices = @transform_3, window_bounds = array<i64: 32, 1>}, {pipeline_mode = #tpu.pipeline_mode<synchronous>, transform_indices = @transform_4, window_bounds = array<i64: 9, 4, 32>}, {pipeline_mode = #tpu.pipeline_mode<synchronous>, transform_indices = @transform_5, window_bounds = array<i64: 4, 1>}, {transform_indices = @transform_6, window_bounds = array<i64: 16, 512>}]} {
    %c0_i32 = arith.constant 0 : i32
    %0 = arith.cmpi eq, %arg1, %c0_i32 : i32
    %1 = arith.extui %0 : i1 to i32
    %c0_i32_0 = arith.constant 0 : i32
    %2 = arith.cmpi ne, %1, %c0_i32_0 : i32
    scf.if %2 {
      %c0_228 = arith.constant 0 : index
      %c0_229 = arith.constant 0 : index
      %477 = vector.load %arg3[%c0_228, %c0_229] : memref<4x512xf32, #tpu.memory_space<vmem>>, vector<4x512xf32>
      %c0_230 = arith.constant 0 : index
      %c0_231 = arith.constant 0 : index
      %478 = vector.load %arg10[%c0_230, %c0_231] : memref<4x512xf32, #tpu.memory_space<vmem>>, vector<4x512xf32>
      tpu.vector_store %arg10[%c0_230, %c0_231], %477 {strides = array<i32>} : memref<4x512xf32, #tpu.memory_space<vmem>>, vector<4x512xf32>,
    } else {
    }
    %c0 = arith.constant 0 : index
    %c0_1 = arith.constant 0 : index
    %c0_2 = arith.constant 0 : index
    %3 = vector.load %arg4[%c0, %c0_1, %c0_2] : memref<9x1x512xf32, #tpu.memory_space<vmem>>, vector<1x1x512xf32>
    %4 = vector.shape_cast %3 : vector<1x1x512xf32> to vector<1x512xf32>
    %c1 = arith.constant 1 : index
    %c0_3 = arith.constant 0 : index
    %c0_4 = arith.constant 0 : index
    %5 = vector.load %arg4[%c1, %c0_3, %c0_4] : memref<9x1x512xf32, #tpu.memory_space<vmem>>, vector<1x1x512xf32>
    %6 = vector.shape_cast %5 : vector<1x1x512xf32> to vector<1x512xf32>
    %c2 = arith.constant 2 : index
    %c0_5 = arith.constant 0 : index
    %c0_6 = arith.constant 0 : index
    %7 = vector.load %arg4[%c2, %c0_5, %c0_6] : memref<9x1x512xf32, #tpu.memory_space<vmem>>, vector<1x1x512xf32>
    %8 = vector.shape_cast %7 : vector<1x1x512xf32> to vector<1x512xf32>
    %c3 = arith.constant 3 : index
    %c0_7 = arith.constant 0 : index
    %c0_8 = arith.constant 0 : index
    %9 = vector.load %arg4[%c3, %c0_7, %c0_8] : memref<9x1x512xf32, #tpu.memory_space<vmem>>, vector<1x1x512xf32>
    %10 = vector.shape_cast %9 : vector<1x1x512xf32> to vector<1x512xf32>
    %c4 = arith.constant 4 : index
    %c0_9 = arith.constant 0 : index
    %c0_10 = arith.constant 0 : index
    %11 = vector.load %arg4[%c4, %c0_9, %c0_10] : memref<9x1x512xf32, #tpu.memory_space<vmem>>, vector<1x1x512xf32>
    %12 = vector.shape_cast %11 : vector<1x1x512xf32> to vector<1x512xf32>
    %c5 = arith.constant 5 : index
    %c0_11 = arith.constant 0 : index
    %c0_12 = arith.constant 0 : index
    %13 = vector.load %arg4[%c5, %c0_11, %c0_12] : memref<9x1x512xf32, #tpu.memory_space<vmem>>, vector<1x1x512xf32>
    %14 = vector.shape_cast %13 : vector<1x1x512xf32> to vector<1x512xf32>
    %c6 = arith.constant 6 : index
    %c0_13 = arith.constant 0 : index
    %c0_14 = arith.constant 0 : index
    %15 = vector.load %arg4[%c6, %c0_13, %c0_14] : memref<9x1x512xf32, #tpu.memory_space<vmem>>, vector<1x1x512xf32>
    %16 = vector.shape_cast %15 : vector<1x1x512xf32> to vector<1x512xf32>
    %c7 = arith.constant 7 : index
    %c0_15 = arith.constant 0 : index
    %c0_16 = arith.constant 0 : index
    %17 = vector.load %arg4[%c7, %c0_15, %c0_16] : memref<9x1x512xf32, #tpu.memory_space<vmem>>, vector<1x1x512xf32>
    %18 = vector.shape_cast %17 : vector<1x1x512xf32> to vector<1x512xf32>
    %c8 = arith.constant 8 : index
    %c0_17 = arith.constant 0 : index
    %c0_18 = arith.constant 0 : index
    %19 = vector.load %arg4[%c8, %c0_17, %c0_18] : memref<9x1x512xf32, #tpu.memory_space<vmem>>, vector<1x1x512xf32>
    %20 = vector.shape_cast %19 : vector<1x1x512xf32> to vector<1x512xf32>
    %c0_19 = arith.constant 0 : index
    %c0_20 = arith.constant 0 : index
    %c0_21 = arith.constant 0 : index
    %21 = vector.load %arg5[%c0_19, %c0_20, %c0_21] : memref<9x32x4xf32, #tpu.memory_space<vmem>>, vector<1x32x4xf32>
    %22 = vector.shape_cast %21 : vector<1x32x4xf32> to vector<32x4xf32>
    %c1_22 = arith.constant 1 : index
    %c0_23 = arith.constant 0 : index
    %c0_24 = arith.constant 0 : index
    %23 = vector.load %arg5[%c1_22, %c0_23, %c0_24] : memref<9x32x4xf32, #tpu.memory_space<vmem>>, vector<1x32x4xf32>
    %24 = vector.shape_cast %23 : vector<1x32x4xf32> to vector<32x4xf32>
    %c2_25 = arith.constant 2 : index
    %c0_26 = arith.constant 0 : index
    %c0_27 = arith.constant 0 : index
    %25 = vector.load %arg5[%c2_25, %c0_26, %c0_27] : memref<9x32x4xf32, #tpu.memory_space<vmem>>, vector<1x32x4xf32>
    %26 = vector.shape_cast %25 : vector<1x32x4xf32> to vector<32x4xf32>
    %c3_28 = arith.constant 3 : index
    %c0_29 = arith.constant 0 : index
    %c0_30 = arith.constant 0 : index
    %27 = vector.load %arg5[%c3_28, %c0_29, %c0_30] : memref<9x32x4xf32, #tpu.memory_space<vmem>>, vector<1x32x4xf32>
    %28 = vector.shape_cast %27 : vector<1x32x4xf32> to vector<32x4xf32>
    %c4_31 = arith.constant 4 : index
    %c0_32 = arith.constant 0 : index
    %c0_33 = arith.constant 0 : index
    %29 = vector.load %arg5[%c4_31, %c0_32, %c0_33] : memref<9x32x4xf32, #tpu.memory_space<vmem>>, vector<1x32x4xf32>
    %30 = vector.shape_cast %29 : vector<1x32x4xf32> to vector<32x4xf32>
    %c5_34 = arith.constant 5 : index
    %c0_35 = arith.constant 0 : index
    %c0_36 = arith.constant 0 : index
    %31 = vector.load %arg5[%c5_34, %c0_35, %c0_36] : memref<9x32x4xf32, #tpu.memory_space<vmem>>, vector<1x32x4xf32>
    %32 = vector.shape_cast %31 : vector<1x32x4xf32> to vector<32x4xf32>
    %c6_37 = arith.constant 6 : index
    %c0_38 = arith.constant 0 : index
    %c0_39 = arith.constant 0 : index
    %33 = vector.load %arg5[%c6_37, %c0_38, %c0_39] : memref<9x32x4xf32, #tpu.memory_space<vmem>>, vector<1x32x4xf32>
    %34 = vector.shape_cast %33 : vector<1x32x4xf32> to vector<32x4xf32>
    %c7_40 = arith.constant 7 : index
    %c0_41 = arith.constant 0 : index
    %c0_42 = arith.constant 0 : index
    %35 = vector.load %arg5[%c7_40, %c0_41, %c0_42] : memref<9x32x4xf32, #tpu.memory_space<vmem>>, vector<1x32x4xf32>
    %36 = vector.shape_cast %35 : vector<1x32x4xf32> to vector<32x4xf32>
    %c8_43 = arith.constant 8 : index
    %c0_44 = arith.constant 0 : index
    %c0_45 = arith.constant 0 : index
    %37 = vector.load %arg5[%c8_43, %c0_44, %c0_45] : memref<9x32x4xf32, #tpu.memory_space<vmem>>, vector<1x32x4xf32>
    %38 = vector.shape_cast %37 : vector<1x32x4xf32> to vector<32x4xf32>
    %c0_46 = arith.constant 0 : index
    %c0_47 = arith.constant 0 : index
    %c0_48 = arith.constant 0 : index
    %39 = vector.load %arg7[%c0_46, %c0_47, %c0_48] : memref<9x4x32xf32, #tpu.memory_space<vmem>>, vector<1x4x32xf32>
    %40 = vector.shape_cast %39 : vector<1x4x32xf32> to vector<4x32xf32>
    %c1_49 = arith.constant 1 : index
    %c0_50 = arith.constant 0 : index
    %c0_51 = arith.constant 0 : index
    %41 = vector.load %arg7[%c1_49, %c0_50, %c0_51] : memref<9x4x32xf32, #tpu.memory_space<vmem>>, vector<1x4x32xf32>
    %42 = vector.shape_cast %41 : vector<1x4x32xf32> to vector<4x32xf32>
    %c2_52 = arith.constant 2 : index
    %c0_53 = arith.constant 0 : index
    %c0_54 = arith.constant 0 : index
    %43 = vector.load %arg7[%c2_52, %c0_53, %c0_54] : memref<9x4x32xf32, #tpu.memory_space<vmem>>, vector<1x4x32xf32>
    %44 = vector.shape_cast %43 : vector<1x4x32xf32> to vector<4x32xf32>
    %c3_55 = arith.constant 3 : index
    %c0_56 = arith.constant 0 : index
    %c0_57 = arith.constant 0 : index
    %45 = vector.load %arg7[%c3_55, %c0_56, %c0_57] : memref<9x4x32xf32, #tpu.memory_space<vmem>>, vector<1x4x32xf32>
    %46 = vector.shape_cast %45 : vector<1x4x32xf32> to vector<4x32xf32>
    %c4_58 = arith.constant 4 : index
    %c0_59 = arith.constant 0 : index
    %c0_60 = arith.constant 0 : index
    %47 = vector.load %arg7[%c4_58, %c0_59, %c0_60] : memref<9x4x32xf32, #tpu.memory_space<vmem>>, vector<1x4x32xf32>
    %48 = vector.shape_cast %47 : vector<1x4x32xf32> to vector<4x32xf32>
    %c5_61 = arith.constant 5 : index
    %c0_62 = arith.constant 0 : index
    %c0_63 = arith.constant 0 : index
    %49 = vector.load %arg7[%c5_61, %c0_62, %c0_63] : memref<9x4x32xf32, #tpu.memory_space<vmem>>, vector<1x4x32xf32>
    %50 = vector.shape_cast %49 : vector<1x4x32xf32> to vector<4x32xf32>
    %c6_64 = arith.constant 6 : index
    %c0_65 = arith.constant 0 : index
    %c0_66 = arith.constant 0 : index
    %51 = vector.load %arg7[%c6_64, %c0_65, %c0_66] : memref<9x4x32xf32, #tpu.memory_space<vmem>>, vector<1x4x32xf32>
    %52 = vector.shape_cast %51 : vector<1x4x32xf32> to vector<4x32xf32>
    %c7_67 = arith.constant 7 : index
    %c0_68 = arith.constant 0 : index
    %c0_69 = arith.constant 0 : index
    %53 = vector.load %arg7[%c7_67, %c0_68, %c0_69] : memref<9x4x32xf32, #tpu.memory_space<vmem>>, vector<1x4x32xf32>
    %54 = vector.shape_cast %53 : vector<1x4x32xf32> to vector<4x32xf32>
    %c8_70 = arith.constant 8 : index
    %c0_71 = arith.constant 0 : index
    %c0_72 = arith.constant 0 : index
    %55 = vector.load %arg7[%c8_70, %c0_71, %c0_72] : memref<9x4x32xf32, #tpu.memory_space<vmem>>, vector<1x4x32xf32>
    %56 = vector.shape_cast %55 : vector<1x4x32xf32> to vector<4x32xf32>
    %c0_73 = arith.constant 0 : index
    %c0_74 = arith.constant 0 : index
    %57 = vector.load %arg6[%c0_73, %c0_74] : memref<32x1xf32, #tpu.memory_space<vmem>>, vector<32x1xf32>
    %c0_75 = arith.constant 0 : index
    %c0_76 = arith.constant 0 : index
    %58 = vector.load %arg8[%c0_75, %c0_76] : memref<4x1xf32, #tpu.memory_space<vmem>>, vector<4x1xf32>
    %c0_77 = arith.constant 0 : index
    %c0_78 = arith.constant 0 : index
    %59 = vector.load %arg10[%c0_77, %c0_78] : memref<4x512xf32, #tpu.memory_space<vmem>>, vector<4x512xf32>
    %c4_i32 = arith.constant 4 : i32
    %60 = arith.muli %arg1, %c4_i32 : i32
    %c0_i32_79 = arith.constant 0 : i32
    %61 = arith.addi %60, %c0_i32_79 : i32
    %c1_i32 = arith.constant 1 : i32
    %62 = arith.addi %61, %c1_i32 : i32
    %63 = arith.index_cast %62 : i32 to index
    %64 = memref.load %arg2[%63] : memref<9xf32, #tpu.memory_space<smem>>
    %65 = arith.index_cast %61 : i32 to index
    %66 = memref.load %arg2[%65] : memref<9xf32, #tpu.memory_space<smem>>
    %67 = arith.subf %64, %66 : f32
    %c17_i32 = arith.constant 17 : i32
    %68 = tpu.dynamic_rotate %59 by %c17_i32 dim 1 : vector<4x512xf32>, i32 -> vector<4x512xf32>
    %69 = vector.broadcast %4 : vector<1x512xf32> to vector<4x512xf32>
    %70 = arith.mulf %68, %69 : vector<4x512xf32>
    %cst = arith.constant dense<0.000000e+00> : vector<32x512xf32>
    %71 = tpu.matmul %22, %70, %cst {dimension_numbers = #tpu.dot_dimension_numbers<[1], [0], [0], [1], [0, 0, 1, 1], [], []>} : vector<32x4xf32>, vector<4x512xf32>, vector<32x512xf32> -> vector<32x512xf32>
    %c16_i32 = arith.constant 16 : i32
    %72 = tpu.dynamic_rotate %59 by %c16_i32 dim 1 : vector<4x512xf32>, i32 -> vector<4x512xf32>
    %73 = vector.broadcast %6 : vector<1x512xf32> to vector<4x512xf32>
    %74 = arith.mulf %72, %73 : vector<4x512xf32>
    %cst_80 = arith.constant dense<0.000000e+00> : vector<32x512xf32>
    %75 = tpu.matmul %24, %74, %cst_80 {dimension_numbers = #tpu.dot_dimension_numbers<[1], [0], [0], [1], [0, 0, 1, 1], [], []>} : vector<32x4xf32>, vector<4x512xf32>, vector<32x512xf32> -> vector<32x512xf32>
    %76 = arith.addf %71, %75 : vector<32x512xf32>
    %c15_i32 = arith.constant 15 : i32
    %77 = tpu.dynamic_rotate %59 by %c15_i32 dim 1 : vector<4x512xf32>, i32 -> vector<4x512xf32>
    %78 = vector.broadcast %8 : vector<1x512xf32> to vector<4x512xf32>
    %79 = arith.mulf %77, %78 : vector<4x512xf32>
    %cst_81 = arith.constant dense<0.000000e+00> : vector<32x512xf32>
    %80 = tpu.matmul %26, %79, %cst_81 {dimension_numbers = #tpu.dot_dimension_numbers<[1], [0], [0], [1], [0, 0, 1, 1], [], []>} : vector<32x4xf32>, vector<4x512xf32>, vector<32x512xf32> -> vector<32x512xf32>
    %81 = arith.addf %76, %80 : vector<32x512xf32>
    %c1_i32_82 = arith.constant 1 : i32
    %82 = tpu.dynamic_rotate %59 by %c1_i32_82 dim 1 : vector<4x512xf32>, i32 -> vector<4x512xf32>
    %83 = vector.broadcast %10 : vector<1x512xf32> to vector<4x512xf32>
    %84 = arith.mulf %82, %83 : vector<4x512xf32>
    %cst_83 = arith.constant dense<0.000000e+00> : vector<32x512xf32>
    %85 = tpu.matmul %28, %84, %cst_83 {dimension_numbers = #tpu.dot_dimension_numbers<[1], [0], [0], [1], [0, 0, 1, 1], [], []>} : vector<32x4xf32>, vector<4x512xf32>, vector<32x512xf32> -> vector<32x512xf32>
    %86 = arith.addf %81, %85 : vector<32x512xf32>
    %87 = vector.broadcast %12 : vector<1x512xf32> to vector<4x512xf32>
    %88 = arith.mulf %59, %87 : vector<4x512xf32>
    %cst_84 = arith.constant dense<0.000000e+00> : vector<32x512xf32>
    %89 = tpu.matmul %30, %88, %cst_84 {dimension_numbers = #tpu.dot_dimension_numbers<[1], [0], [0], [1], [0, 0, 1, 1], [], []>} : vector<32x4xf32>, vector<4x512xf32>, vector<32x512xf32> -> vector<32x512xf32>
    %90 = arith.addf %86, %89 : vector<32x512xf32>
    %c511_i32 = arith.constant 511 : i32
    %91 = tpu.dynamic_rotate %59 by %c511_i32 dim 1 : vector<4x512xf32>, i32 -> vector<4x512xf32>
    %92 = vector.broadcast %14 : vector<1x512xf32> to vector<4x512xf32>
    %93 = arith.mulf %91, %92 : vector<4x512xf32>
    %cst_85 = arith.constant dense<0.000000e+00> : vector<32x512xf32>
    %94 = tpu.matmul %32, %93, %cst_85 {dimension_numbers = #tpu.dot_dimension_numbers<[1], [0], [0], [1], [0, 0, 1, 1], [], []>} : vector<32x4xf32>, vector<4x512xf32>, vector<32x512xf32> -> vector<32x512xf32>
    %95 = arith.addf %90, %94 : vector<32x512xf32>
    %c497_i32 = arith.constant 497 : i32
    %96 = tpu.dynamic_rotate %59 by %c497_i32 dim 1 : vector<4x512xf32>, i32 -> vector<4x512xf32>
    %97 = vector.broadcast %16 : vector<1x512xf32> to vector<4x512xf32>
    %98 = arith.mulf %96, %97 : vector<4x512xf32>
    %cst_86 = arith.constant dense<0.000000e+00> : vector<32x512xf32>
    %99 = tpu.matmul %34, %98, %cst_86 {dimension_numbers = #tpu.dot_dimension_numbers<[1], [0], [0], [1], [0, 0, 1, 1], [], []>} : vector<32x4xf32>, vector<4x512xf32>, vector<32x512xf32> -> vector<32x512xf32>
    %100 = arith.addf %95, %99 : vector<32x512xf32>
    %c496_i32 = arith.constant 496 : i32
    %101 = tpu.dynamic_rotate %59 by %c496_i32 dim 1 : vector<4x512xf32>, i32 -> vector<4x512xf32>
    %102 = vector.broadcast %18 : vector<1x512xf32> to vector<4x512xf32>
    %103 = arith.mulf %101, %102 : vector<4x512xf32>
    %cst_87 = arith.constant dense<0.000000e+00> : vector<32x512xf32>
    %104 = tpu.matmul %36, %103, %cst_87 {dimension_numbers = #tpu.dot_dimension_numbers<[1], [0], [0], [1], [0, 0, 1, 1], [], []>} : vector<32x4xf32>, vector<4x512xf32>, vector<32x512xf32> -> vector<32x512xf32>
    %105 = arith.addf %100, %104 : vector<32x512xf32>
    %c495_i32 = arith.constant 495 : i32
    %106 = tpu.dynamic_rotate %59 by %c495_i32 dim 1 : vector<4x512xf32>, i32 -> vector<4x512xf32>
    %107 = vector.broadcast %20 : vector<1x512xf32> to vector<4x512xf32>
    %108 = arith.mulf %106, %107 : vector<4x512xf32>
    %cst_88 = arith.constant dense<0.000000e+00> : vector<32x512xf32>
    %109 = tpu.matmul %38, %108, %cst_88 {dimension_numbers = #tpu.dot_dimension_numbers<[1], [0], [0], [1], [0, 0, 1, 1], [], []>} : vector<32x4xf32>, vector<4x512xf32>, vector<32x512xf32> -> vector<32x512xf32>
    %110 = arith.addf %105, %109 : vector<32x512xf32>
    %111 = vector.broadcast %57 : vector<32x1xf32> to vector<32x512xf32>
    %112 = arith.addf %110, %111 : vector<32x512xf32>
    %cst_89 = arith.constant 0.000000e+00 : f32
    %113 = vector.broadcast %cst_89 : f32 to vector<32x512xf32>
    %114 = arith.maximumf %112, %113 : vector<32x512xf32>
    %c17_i32_90 = arith.constant 17 : i32
    %115 = tpu.dynamic_rotate %114 by %c17_i32_90 dim 1 : vector<32x512xf32>, i32 -> vector<32x512xf32>
    %116 = vector.broadcast %4 : vector<1x512xf32> to vector<32x512xf32>
    %117 = arith.mulf %115, %116 : vector<32x512xf32>
    %cst_91 = arith.constant dense<0.000000e+00> : vector<4x512xf32>
    %118 = tpu.matmul %40, %117, %cst_91 {dimension_numbers = #tpu.dot_dimension_numbers<[1], [0], [0], [1], [0, 0, 1, 1], [], []>} : vector<4x32xf32>, vector<32x512xf32>, vector<4x512xf32> -> vector<4x512xf32>
    %c16_i32_92 = arith.constant 16 : i32
    %119 = tpu.dynamic_rotate %114 by %c16_i32_92 dim 1 : vector<32x512xf32>, i32 -> vector<32x512xf32>
    %120 = vector.broadcast %6 : vector<1x512xf32> to vector<32x512xf32>
    %121 = arith.mulf %119, %120 : vector<32x512xf32>
    %cst_93 = arith.constant dense<0.000000e+00> : vector<4x512xf32>
    %122 = tpu.matmul %42, %121, %cst_93 {dimension_numbers = #tpu.dot_dimension_numbers<[1], [0], [0], [1], [0, 0, 1, 1], [], []>} : vector<4x32xf32>, vector<32x512xf32>, vector<4x512xf32> -> vector<4x512xf32>
    %123 = arith.addf %118, %122 : vector<4x512xf32>
    %c15_i32_94 = arith.constant 15 : i32
    %124 = tpu.dynamic_rotate %114 by %c15_i32_94 dim 1 : vector<32x512xf32>, i32 -> vector<32x512xf32>
    %125 = vector.broadcast %8 : vector<1x512xf32> to vector<32x512xf32>
    %126 = arith.mulf %124, %125 : vector<32x512xf32>
    %cst_95 = arith.constant dense<0.000000e+00> : vector<4x512xf32>
    %127 = tpu.matmul %44, %126, %cst_95 {dimension_numbers = #tpu.dot_dimension_numbers<[1], [0], [0], [1], [0, 0, 1, 1], [], []>} : vector<4x32xf32>, vector<32x512xf32>, vector<4x512xf32> -> vector<4x512xf32>
    %128 = arith.addf %123, %127 : vector<4x512xf32>
    %c1_i32_96 = arith.constant 1 : i32
    %129 = tpu.dynamic_rotate %114 by %c1_i32_96 dim 1 : vector<32x512xf32>, i32 -> vector<32x512xf32>
    %130 = vector.broadcast %10 : vector<1x512xf32> to vector<32x512xf32>
    %131 = arith.mulf %129, %130 : vector<32x512xf32>
    %cst_97 = arith.constant dense<0.000000e+00> : vector<4x512xf32>
    %132 = tpu.matmul %46, %131, %cst_97 {dimension_numbers = #tpu.dot_dimension_numbers<[1], [0], [0], [1], [0, 0, 1, 1], [], []>} : vector<4x32xf32>, vector<32x512xf32>, vector<4x512xf32> -> vector<4x512xf32>
    %133 = arith.addf %128, %132 : vector<4x512xf32>
    %134 = vector.broadcast %12 : vector<1x512xf32> to vector<32x512xf32>
    %135 = arith.mulf %114, %134 : vector<32x512xf32>
    %cst_98 = arith.constant dense<0.000000e+00> : vector<4x512xf32>
    %136 = tpu.matmul %48, %135, %cst_98 {dimension_numbers = #tpu.dot_dimension_numbers<[1], [0], [0], [1], [0, 0, 1, 1], [], []>} : vector<4x32xf32>, vector<32x512xf32>, vector<4x512xf32> -> vector<4x512xf32>
    %137 = arith.addf %133, %136 : vector<4x512xf32>
    %c511_i32_99 = arith.constant 511 : i32
    %138 = tpu.dynamic_rotate %114 by %c511_i32_99 dim 1 : vector<32x512xf32>, i32 -> vector<32x512xf32>
    %139 = vector.broadcast %14 : vector<1x512xf32> to vector<32x512xf32>
    %140 = arith.mulf %138, %139 : vector<32x512xf32>
    %cst_100 = arith.constant dense<0.000000e+00> : vector<4x512xf32>
    %141 = tpu.matmul %50, %140, %cst_100 {dimension_numbers = #tpu.dot_dimension_numbers<[1], [0], [0], [1], [0, 0, 1, 1], [], []>} : vector<4x32xf32>, vector<32x512xf32>, vector<4x512xf32> -> vector<4x512xf32>
    %142 = arith.addf %137, %141 : vector<4x512xf32>
    %c497_i32_101 = arith.constant 497 : i32
    %143 = tpu.dynamic_rotate %114 by %c497_i32_101 dim 1 : vector<32x512xf32>, i32 -> vector<32x512xf32>
    %144 = vector.broadcast %16 : vector<1x512xf32> to vector<32x512xf32>
    %145 = arith.mulf %143, %144 : vector<32x512xf32>
    %cst_102 = arith.constant dense<0.000000e+00> : vector<4x512xf32>
    %146 = tpu.matmul %52, %145, %cst_102 {dimension_numbers = #tpu.dot_dimension_numbers<[1], [0], [0], [1], [0, 0, 1, 1], [], []>} : vector<4x32xf32>, vector<32x512xf32>, vector<4x512xf32> -> vector<4x512xf32>
    %147 = arith.addf %142, %146 : vector<4x512xf32>
    %c496_i32_103 = arith.constant 496 : i32
    %148 = tpu.dynamic_rotate %114 by %c496_i32_103 dim 1 : vector<32x512xf32>, i32 -> vector<32x512xf32>
    %149 = vector.broadcast %18 : vector<1x512xf32> to vector<32x512xf32>
    %150 = arith.mulf %148, %149 : vector<32x512xf32>
    %cst_104 = arith.constant dense<0.000000e+00> : vector<4x512xf32>
    %151 = tpu.matmul %54, %150, %cst_104 {dimension_numbers = #tpu.dot_dimension_numbers<[1], [0], [0], [1], [0, 0, 1, 1], [], []>} : vector<4x32xf32>, vector<32x512xf32>, vector<4x512xf32> -> vector<4x512xf32>
    %152 = arith.addf %147, %151 : vector<4x512xf32>
    %c495_i32_105 = arith.constant 495 : i32
    %153 = tpu.dynamic_rotate %114 by %c495_i32_105 dim 1 : vector<32x512xf32>, i32 -> vector<32x512xf32>
    %154 = vector.broadcast %20 : vector<1x512xf32> to vector<32x512xf32>
    %155 = arith.mulf %153, %154 : vector<32x512xf32>
    %cst_106 = arith.constant dense<0.000000e+00> : vector<4x512xf32>
    %156 = tpu.matmul %56, %155, %cst_106 {dimension_numbers = #tpu.dot_dimension_numbers<[1], [0], [0], [1], [0, 0, 1, 1], [], []>} : vector<4x32xf32>, vector<32x512xf32>, vector<4x512xf32> -> vector<4x512xf32>
    %157 = arith.addf %152, %156 : vector<4x512xf32>
    %158 = vector.broadcast %58 : vector<4x1xf32> to vector<4x512xf32>
    %159 = arith.addf %157, %158 : vector<4x512xf32>
    %160 = vector.broadcast %67 : f32 to vector<4x512xf32>
    %161 = arith.mulf %160, %159 : vector<4x512xf32>
    %162 = arith.addf %59, %161 : vector<4x512xf32>
    %c0_107 = arith.constant 0 : index
    %c0_108 = arith.constant 0 : index
    %163 = vector.load %arg9[%c0_107, %c0_108] : memref<16x512xf32, #tpu.memory_space<vmem>>, vector<4x512xf32>
    tpu.vector_store %arg9[%c0_107, %c0_108], %162 {strides = array<i32>} : memref<16x512xf32, #tpu.memory_space<vmem>>, vector<4x512xf32>,
    %c4_i32_109 = arith.constant 4 : i32
    %164 = arith.muli %arg1, %c4_i32_109 : i32
    %c1_i32_110 = arith.constant 1 : i32
    %165 = arith.addi %164, %c1_i32_110 : i32
    %c1_i32_111 = arith.constant 1 : i32
    %166 = arith.addi %165, %c1_i32_111 : i32
    %167 = arith.index_cast %166 : i32 to index
    %168 = memref.load %arg2[%167] : memref<9xf32, #tpu.memory_space<smem>>
    %169 = arith.index_cast %165 : i32 to index
    %170 = memref.load %arg2[%169] : memref<9xf32, #tpu.memory_space<smem>>
    %171 = arith.subf %168, %170 : f32
    %c17_i32_112 = arith.constant 17 : i32
    %172 = tpu.dynamic_rotate %162 by %c17_i32_112 dim 1 : vector<4x512xf32>, i32 -> vector<4x512xf32>
    %173 = vector.broadcast %4 : vector<1x512xf32> to vector<4x512xf32>
    %174 = arith.mulf %172, %173 : vector<4x512xf32>
    %cst_113 = arith.constant dense<0.000000e+00> : vector<32x512xf32>
    %175 = tpu.matmul %22, %174, %cst_113 {dimension_numbers = #tpu.dot_dimension_numbers<[1], [0], [0], [1], [0, 0, 1, 1], [], []>} : vector<32x4xf32>, vector<4x512xf32>, vector<32x512xf32> -> vector<32x512xf32>
    %c16_i32_114 = arith.constant 16 : i32
    %176 = tpu.dynamic_rotate %162 by %c16_i32_114 dim 1 : vector<4x512xf32>, i32 -> vector<4x512xf32>
    %177 = vector.broadcast %6 : vector<1x512xf32> to vector<4x512xf32>
    %178 = arith.mulf %176, %177 : vector<4x512xf32>
    %cst_115 = arith.constant dense<0.000000e+00> : vector<32x512xf32>
    %179 = tpu.matmul %24, %178, %cst_115 {dimension_numbers = #tpu.dot_dimension_numbers<[1], [0], [0], [1], [0, 0, 1, 1], [], []>} : vector<32x4xf32>, vector<4x512xf32>, vector<32x512xf32> -> vector<32x512xf32>
    %180 = arith.addf %175, %179 : vector<32x512xf32>
    %c15_i32_116 = arith.constant 15 : i32
    %181 = tpu.dynamic_rotate %162 by %c15_i32_116 dim 1 : vector<4x512xf32>, i32 -> vector<4x512xf32>
    %182 = vector.broadcast %8 : vector<1x512xf32> to vector<4x512xf32>
    %183 = arith.mulf %181, %182 : vector<4x512xf32>
    %cst_117 = arith.constant dense<0.000000e+00> : vector<32x512xf32>
    %184 = tpu.matmul %26, %183, %cst_117 {dimension_numbers = #tpu.dot_dimension_numbers<[1], [0], [0], [1], [0, 0, 1, 1], [], []>} : vector<32x4xf32>, vector<4x512xf32>, vector<32x512xf32> -> vector<32x512xf32>
    %185 = arith.addf %180, %184 : vector<32x512xf32>
    %c1_i32_118 = arith.constant 1 : i32
    %186 = tpu.dynamic_rotate %162 by %c1_i32_118 dim 1 : vector<4x512xf32>, i32 -> vector<4x512xf32>
    %187 = vector.broadcast %10 : vector<1x512xf32> to vector<4x512xf32>
    %188 = arith.mulf %186, %187 : vector<4x512xf32>
    %cst_119 = arith.constant dense<0.000000e+00> : vector<32x512xf32>
    %189 = tpu.matmul %28, %188, %cst_119 {dimension_numbers = #tpu.dot_dimension_numbers<[1], [0], [0], [1], [0, 0, 1, 1], [], []>} : vector<32x4xf32>, vector<4x512xf32>, vector<32x512xf32> -> vector<32x512xf32>
    %190 = arith.addf %185, %189 : vector<32x512xf32>
    %191 = vector.broadcast %12 : vector<1x512xf32> to vector<4x512xf32>
    %192 = arith.mulf %162, %191 : vector<4x512xf32>
    %cst_120 = arith.constant dense<0.000000e+00> : vector<32x512xf32>
    %193 = tpu.matmul %30, %192, %cst_120 {dimension_numbers = #tpu.dot_dimension_numbers<[1], [0], [0], [1], [0, 0, 1, 1], [], []>} : vector<32x4xf32>, vector<4x512xf32>, vector<32x512xf32> -> vector<32x512xf32>
    %194 = arith.addf %190, %193 : vector<32x512xf32>
    %c511_i32_121 = arith.constant 511 : i32
    %195 = tpu.dynamic_rotate %162 by %c511_i32_121 dim 1 : vector<4x512xf32>, i32 -> vector<4x512xf32>
    %196 = vector.broadcast %14 : vector<1x512xf32> to vector<4x512xf32>
    %197 = arith.mulf %195, %196 : vector<4x512xf32>
    %cst_122 = arith.constant dense<0.000000e+00> : vector<32x512xf32>
    %198 = tpu.matmul %32, %197, %cst_122 {dimension_numbers = #tpu.dot_dimension_numbers<[1], [0], [0], [1], [0, 0, 1, 1], [], []>} : vector<32x4xf32>, vector<4x512xf32>, vector<32x512xf32> -> vector<32x512xf32>
    %199 = arith.addf %194, %198 : vector<32x512xf32>
    %c497_i32_123 = arith.constant 497 : i32
    %200 = tpu.dynamic_rotate %162 by %c497_i32_123 dim 1 : vector<4x512xf32>, i32 -> vector<4x512xf32>
    %201 = vector.broadcast %16 : vector<1x512xf32> to vector<4x512xf32>
    %202 = arith.mulf %200, %201 : vector<4x512xf32>
    %cst_124 = arith.constant dense<0.000000e+00> : vector<32x512xf32>
    %203 = tpu.matmul %34, %202, %cst_124 {dimension_numbers = #tpu.dot_dimension_numbers<[1], [0], [0], [1], [0, 0, 1, 1], [], []>} : vector<32x4xf32>, vector<4x512xf32>, vector<32x512xf32> -> vector<32x512xf32>
    %204 = arith.addf %199, %203 : vector<32x512xf32>
    %c496_i32_125 = arith.constant 496 : i32
    %205 = tpu.dynamic_rotate %162 by %c496_i32_125 dim 1 : vector<4x512xf32>, i32 -> vector<4x512xf32>
    %206 = vector.broadcast %18 : vector<1x512xf32> to vector<4x512xf32>
    %207 = arith.mulf %205, %206 : vector<4x512xf32>
    %cst_126 = arith.constant dense<0.000000e+00> : vector<32x512xf32>
    %208 = tpu.matmul %36, %207, %cst_126 {dimension_numbers = #tpu.dot_dimension_numbers<[1], [0], [0], [1], [0, 0, 1, 1], [], []>} : vector<32x4xf32>, vector<4x512xf32>, vector<32x512xf32> -> vector<32x512xf32>
    %209 = arith.addf %204, %208 : vector<32x512xf32>
    %c495_i32_127 = arith.constant 495 : i32
    %210 = tpu.dynamic_rotate %162 by %c495_i32_127 dim 1 : vector<4x512xf32>, i32 -> vector<4x512xf32>
    %211 = vector.broadcast %20 : vector<1x512xf32> to vector<4x512xf32>
    %212 = arith.mulf %210, %211 : vector<4x512xf32>
    %cst_128 = arith.constant dense<0.000000e+00> : vector<32x512xf32>
    %213 = tpu.matmul %38, %212, %cst_128 {dimension_numbers = #tpu.dot_dimension_numbers<[1], [0], [0], [1], [0, 0, 1, 1], [], []>} : vector<32x4xf32>, vector<4x512xf32>, vector<32x512xf32> -> vector<32x512xf32>
    %214 = arith.addf %209, %213 : vector<32x512xf32>
    %215 = vector.broadcast %57 : vector<32x1xf32> to vector<32x512xf32>
    %216 = arith.addf %214, %215 : vector<32x512xf32>
    %cst_129 = arith.constant 0.000000e+00 : f32
    %217 = vector.broadcast %cst_129 : f32 to vector<32x512xf32>
    %218 = arith.maximumf %216, %217 : vector<32x512xf32>
    %c17_i32_130 = arith.constant 17 : i32
    %219 = tpu.dynamic_rotate %218 by %c17_i32_130 dim 1 : vector<32x512xf32>, i32 -> vector<32x512xf32>
    %220 = vector.broadcast %4 : vector<1x512xf32> to vector<32x512xf32>
    %221 = arith.mulf %219, %220 : vector<32x512xf32>
    %cst_131 = arith.constant dense<0.000000e+00> : vector<4x512xf32>
    %222 = tpu.matmul %40, %221, %cst_131 {dimension_numbers = #tpu.dot_dimension_numbers<[1], [0], [0], [1], [0, 0, 1, 1], [], []>} : vector<4x32xf32>, vector<32x512xf32>, vector<4x512xf32> -> vector<4x512xf32>
    %c16_i32_132 = arith.constant 16 : i32
    %223 = tpu.dynamic_rotate %218 by %c16_i32_132 dim 1 : vector<32x512xf32>, i32 -> vector<32x512xf32>
    %224 = vector.broadcast %6 : vector<1x512xf32> to vector<32x512xf32>
    %225 = arith.mulf %223, %224 : vector<32x512xf32>
    %cst_133 = arith.constant dense<0.000000e+00> : vector<4x512xf32>
    %226 = tpu.matmul %42, %225, %cst_133 {dimension_numbers = #tpu.dot_dimension_numbers<[1], [0], [0], [1], [0, 0, 1, 1], [], []>} : vector<4x32xf32>, vector<32x512xf32>, vector<4x512xf32> -> vector<4x512xf32>
    %227 = arith.addf %222, %226 : vector<4x512xf32>
    %c15_i32_134 = arith.constant 15 : i32
    %228 = tpu.dynamic_rotate %218 by %c15_i32_134 dim 1 : vector<32x512xf32>, i32 -> vector<32x512xf32>
    %229 = vector.broadcast %8 : vector<1x512xf32> to vector<32x512xf32>
    %230 = arith.mulf %228, %229 : vector<32x512xf32>
    %cst_135 = arith.constant dense<0.000000e+00> : vector<4x512xf32>
    %231 = tpu.matmul %44, %230, %cst_135 {dimension_numbers = #tpu.dot_dimension_numbers<[1], [0], [0], [1], [0, 0, 1, 1], [], []>} : vector<4x32xf32>, vector<32x512xf32>, vector<4x512xf32> -> vector<4x512xf32>
    %232 = arith.addf %227, %231 : vector<4x512xf32>
    %c1_i32_136 = arith.constant 1 : i32
    %233 = tpu.dynamic_rotate %218 by %c1_i32_136 dim 1 : vector<32x512xf32>, i32 -> vector<32x512xf32>
    %234 = vector.broadcast %10 : vector<1x512xf32> to vector<32x512xf32>
    %235 = arith.mulf %233, %234 : vector<32x512xf32>
    %cst_137 = arith.constant dense<0.000000e+00> : vector<4x512xf32>
    %236 = tpu.matmul %46, %235, %cst_137 {dimension_numbers = #tpu.dot_dimension_numbers<[1], [0], [0], [1], [0, 0, 1, 1], [], []>} : vector<4x32xf32>, vector<32x512xf32>, vector<4x512xf32> -> vector<4x512xf32>
    %237 = arith.addf %232, %236 : vector<4x512xf32>
    %238 = vector.broadcast %12 : vector<1x512xf32> to vector<32x512xf32>
    %239 = arith.mulf %218, %238 : vector<32x512xf32>
    %cst_138 = arith.constant dense<0.000000e+00> : vector<4x512xf32>
    %240 = tpu.matmul %48, %239, %cst_138 {dimension_numbers = #tpu.dot_dimension_numbers<[1], [0], [0], [1], [0, 0, 1, 1], [], []>} : vector<4x32xf32>, vector<32x512xf32>, vector<4x512xf32> -> vector<4x512xf32>
    %241 = arith.addf %237, %240 : vector<4x512xf32>
    %c511_i32_139 = arith.constant 511 : i32
    %242 = tpu.dynamic_rotate %218 by %c511_i32_139 dim 1 : vector<32x512xf32>, i32 -> vector<32x512xf32>
    %243 = vector.broadcast %14 : vector<1x512xf32> to vector<32x512xf32>
    %244 = arith.mulf %242, %243 : vector<32x512xf32>
    %cst_140 = arith.constant dense<0.000000e+00> : vector<4x512xf32>
    %245 = tpu.matmul %50, %244, %cst_140 {dimension_numbers = #tpu.dot_dimension_numbers<[1], [0], [0], [1], [0, 0, 1, 1], [], []>} : vector<4x32xf32>, vector<32x512xf32>, vector<4x512xf32> -> vector<4x512xf32>
    %246 = arith.addf %241, %245 : vector<4x512xf32>
    %c497_i32_141 = arith.constant 497 : i32
    %247 = tpu.dynamic_rotate %218 by %c497_i32_141 dim 1 : vector<32x512xf32>, i32 -> vector<32x512xf32>
    %248 = vector.broadcast %16 : vector<1x512xf32> to vector<32x512xf32>
    %249 = arith.mulf %247, %248 : vector<32x512xf32>
    %cst_142 = arith.constant dense<0.000000e+00> : vector<4x512xf32>
    %250 = tpu.matmul %52, %249, %cst_142 {dimension_numbers = #tpu.dot_dimension_numbers<[1], [0], [0], [1], [0, 0, 1, 1], [], []>} : vector<4x32xf32>, vector<32x512xf32>, vector<4x512xf32> -> vector<4x512xf32>
    %251 = arith.addf %246, %250 : vector<4x512xf32>
    %c496_i32_143 = arith.constant 496 : i32
    %252 = tpu.dynamic_rotate %218 by %c496_i32_143 dim 1 : vector<32x512xf32>, i32 -> vector<32x512xf32>
    %253 = vector.broadcast %18 : vector<1x512xf32> to vector<32x512xf32>
    %254 = arith.mulf %252, %253 : vector<32x512xf32>
    %cst_144 = arith.constant dense<0.000000e+00> : vector<4x512xf32>
    %255 = tpu.matmul %54, %254, %cst_144 {dimension_numbers = #tpu.dot_dimension_numbers<[1], [0], [0], [1], [0, 0, 1, 1], [], []>} : vector<4x32xf32>, vector<32x512xf32>, vector<4x512xf32> -> vector<4x512xf32>
    %256 = arith.addf %251, %255 : vector<4x512xf32>
    %c495_i32_145 = arith.constant 495 : i32
    %257 = tpu.dynamic_rotate %218 by %c495_i32_145 dim 1 : vector<32x512xf32>, i32 -> vector<32x512xf32>
    %258 = vector.broadcast %20 : vector<1x512xf32> to vector<32x512xf32>
    %259 = arith.mulf %257, %258 : vector<32x512xf32>
    %cst_146 = arith.constant dense<0.000000e+00> : vector<4x512xf32>
    %260 = tpu.matmul %56, %259, %cst_146 {dimension_numbers = #tpu.dot_dimension_numbers<[1], [0], [0], [1], [0, 0, 1, 1], [], []>} : vector<4x32xf32>, vector<32x512xf32>, vector<4x512xf32> -> vector<4x512xf32>
    %261 = arith.addf %256, %260 : vector<4x512xf32>
    %262 = vector.broadcast %58 : vector<4x1xf32> to vector<4x512xf32>
    %263 = arith.addf %261, %262 : vector<4x512xf32>
    %264 = vector.broadcast %171 : f32 to vector<4x512xf32>
    %265 = arith.mulf %264, %263 : vector<4x512xf32>
    %266 = arith.addf %162, %265 : vector<4x512xf32>
    %c4_147 = arith.constant 4 : index
    %c0_148 = arith.constant 0 : index
    %267 = vector.load %arg9[%c4_147, %c0_148] : memref<16x512xf32, #tpu.memory_space<vmem>>, vector<4x512xf32>
    tpu.vector_store %arg9[%c4_147, %c0_148], %266 {strides = array<i32>} : memref<16x512xf32, #tpu.memory_space<vmem>>, vector<4x512xf32>,
    %c4_i32_149 = arith.constant 4 : i32
    %268 = arith.muli %arg1, %c4_i32_149 : i32
    %c2_i32 = arith.constant 2 : i32
    %269 = arith.addi %268, %c2_i32 : i32
    %c1_i32_150 = arith.constant 1 : i32
    %270 = arith.addi %269, %c1_i32_150 : i32
    %271 = arith.index_cast %270 : i32 to index
    %272 = memref.load %arg2[%271] : memref<9xf32, #tpu.memory_space<smem>>
    %273 = arith.index_cast %269 : i32 to index
    %274 = memref.load %arg2[%273] : memref<9xf32, #tpu.memory_space<smem>>
    %275 = arith.subf %272, %274 : f32
    %c17_i32_151 = arith.constant 17 : i32
    %276 = tpu.dynamic_rotate %266 by %c17_i32_151 dim 1 : vector<4x512xf32>, i32 -> vector<4x512xf32>
    %277 = vector.broadcast %4 : vector<1x512xf32> to vector<4x512xf32>
    %278 = arith.mulf %276, %277 : vector<4x512xf32>
    %cst_152 = arith.constant dense<0.000000e+00> : vector<32x512xf32>
    %279 = tpu.matmul %22, %278, %cst_152 {dimension_numbers = #tpu.dot_dimension_numbers<[1], [0], [0], [1], [0, 0, 1, 1], [], []>} : vector<32x4xf32>, vector<4x512xf32>, vector<32x512xf32> -> vector<32x512xf32>
    %c16_i32_153 = arith.constant 16 : i32
    %280 = tpu.dynamic_rotate %266 by %c16_i32_153 dim 1 : vector<4x512xf32>, i32 -> vector<4x512xf32>
    %281 = vector.broadcast %6 : vector<1x512xf32> to vector<4x512xf32>
    %282 = arith.mulf %280, %281 : vector<4x512xf32>
    %cst_154 = arith.constant dense<0.000000e+00> : vector<32x512xf32>
    %283 = tpu.matmul %24, %282, %cst_154 {dimension_numbers = #tpu.dot_dimension_numbers<[1], [0], [0], [1], [0, 0, 1, 1], [], []>} : vector<32x4xf32>, vector<4x512xf32>, vector<32x512xf32> -> vector<32x512xf32>
    %284 = arith.addf %279, %283 : vector<32x512xf32>
    %c15_i32_155 = arith.constant 15 : i32
    %285 = tpu.dynamic_rotate %266 by %c15_i32_155 dim 1 : vector<4x512xf32>, i32 -> vector<4x512xf32>
    %286 = vector.broadcast %8 : vector<1x512xf32> to vector<4x512xf32>
    %287 = arith.mulf %285, %286 : vector<4x512xf32>
    %cst_156 = arith.constant dense<0.000000e+00> : vector<32x512xf32>
    %288 = tpu.matmul %26, %287, %cst_156 {dimension_numbers = #tpu.dot_dimension_numbers<[1], [0], [0], [1], [0, 0, 1, 1], [], []>} : vector<32x4xf32>, vector<4x512xf32>, vector<32x512xf32> -> vector<32x512xf32>
    %289 = arith.addf %284, %288 : vector<32x512xf32>
    %c1_i32_157 = arith.constant 1 : i32
    %290 = tpu.dynamic_rotate %266 by %c1_i32_157 dim 1 : vector<4x512xf32>, i32 -> vector<4x512xf32>
    %291 = vector.broadcast %10 : vector<1x512xf32> to vector<4x512xf32>
    %292 = arith.mulf %290, %291 : vector<4x512xf32>
    %cst_158 = arith.constant dense<0.000000e+00> : vector<32x512xf32>
    %293 = tpu.matmul %28, %292, %cst_158 {dimension_numbers = #tpu.dot_dimension_numbers<[1], [0], [0], [1], [0, 0, 1, 1], [], []>} : vector<32x4xf32>, vector<4x512xf32>, vector<32x512xf32> -> vector<32x512xf32>
    %294 = arith.addf %289, %293 : vector<32x512xf32>
    %295 = vector.broadcast %12 : vector<1x512xf32> to vector<4x512xf32>
    %296 = arith.mulf %266, %295 : vector<4x512xf32>
    %cst_159 = arith.constant dense<0.000000e+00> : vector<32x512xf32>
    %297 = tpu.matmul %30, %296, %cst_159 {dimension_numbers = #tpu.dot_dimension_numbers<[1], [0], [0], [1], [0, 0, 1, 1], [], []>} : vector<32x4xf32>, vector<4x512xf32>, vector<32x512xf32> -> vector<32x512xf32>
    %298 = arith.addf %294, %297 : vector<32x512xf32>
    %c511_i32_160 = arith.constant 511 : i32
    %299 = tpu.dynamic_rotate %266 by %c511_i32_160 dim 1 : vector<4x512xf32>, i32 -> vector<4x512xf32>
    %300 = vector.broadcast %14 : vector<1x512xf32> to vector<4x512xf32>
    %301 = arith.mulf %299, %300 : vector<4x512xf32>
    %cst_161 = arith.constant dense<0.000000e+00> : vector<32x512xf32>
    %302 = tpu.matmul %32, %301, %cst_161 {dimension_numbers = #tpu.dot_dimension_numbers<[1], [0], [0], [1], [0, 0, 1, 1], [], []>} : vector<32x4xf32>, vector<4x512xf32>, vector<32x512xf32> -> vector<32x512xf32>
    %303 = arith.addf %298, %302 : vector<32x512xf32>
    %c497_i32_162 = arith.constant 497 : i32
    %304 = tpu.dynamic_rotate %266 by %c497_i32_162 dim 1 : vector<4x512xf32>, i32 -> vector<4x512xf32>
    %305 = vector.broadcast %16 : vector<1x512xf32> to vector<4x512xf32>
    %306 = arith.mulf %304, %305 : vector<4x512xf32>
    %cst_163 = arith.constant dense<0.000000e+00> : vector<32x512xf32>
    %307 = tpu.matmul %34, %306, %cst_163 {dimension_numbers = #tpu.dot_dimension_numbers<[1], [0], [0], [1], [0, 0, 1, 1], [], []>} : vector<32x4xf32>, vector<4x512xf32>, vector<32x512xf32> -> vector<32x512xf32>
    %308 = arith.addf %303, %307 : vector<32x512xf32>
    %c496_i32_164 = arith.constant 496 : i32
    %309 = tpu.dynamic_rotate %266 by %c496_i32_164 dim 1 : vector<4x512xf32>, i32 -> vector<4x512xf32>
    %310 = vector.broadcast %18 : vector<1x512xf32> to vector<4x512xf32>
    %311 = arith.mulf %309, %310 : vector<4x512xf32>
    %cst_165 = arith.constant dense<0.000000e+00> : vector<32x512xf32>
    %312 = tpu.matmul %36, %311, %cst_165 {dimension_numbers = #tpu.dot_dimension_numbers<[1], [0], [0], [1], [0, 0, 1, 1], [], []>} : vector<32x4xf32>, vector<4x512xf32>, vector<32x512xf32> -> vector<32x512xf32>
    %313 = arith.addf %308, %312 : vector<32x512xf32>
    %c495_i32_166 = arith.constant 495 : i32
    %314 = tpu.dynamic_rotate %266 by %c495_i32_166 dim 1 : vector<4x512xf32>, i32 -> vector<4x512xf32>
    %315 = vector.broadcast %20 : vector<1x512xf32> to vector<4x512xf32>
    %316 = arith.mulf %314, %315 : vector<4x512xf32>
    %cst_167 = arith.constant dense<0.000000e+00> : vector<32x512xf32>
    %317 = tpu.matmul %38, %316, %cst_167 {dimension_numbers = #tpu.dot_dimension_numbers<[1], [0], [0], [1], [0, 0, 1, 1], [], []>} : vector<32x4xf32>, vector<4x512xf32>, vector<32x512xf32> -> vector<32x512xf32>
    %318 = arith.addf %313, %317 : vector<32x512xf32>
    %319 = vector.broadcast %57 : vector<32x1xf32> to vector<32x512xf32>
    %320 = arith.addf %318, %319 : vector<32x512xf32>
    %cst_168 = arith.constant 0.000000e+00 : f32
    %321 = vector.broadcast %cst_168 : f32 to vector<32x512xf32>
    %322 = arith.maximumf %320, %321 : vector<32x512xf32>
    %c17_i32_169 = arith.constant 17 : i32
    %323 = tpu.dynamic_rotate %322 by %c17_i32_169 dim 1 : vector<32x512xf32>, i32 -> vector<32x512xf32>
    %324 = vector.broadcast %4 : vector<1x512xf32> to vector<32x512xf32>
    %325 = arith.mulf %323, %324 : vector<32x512xf32>
    %cst_170 = arith.constant dense<0.000000e+00> : vector<4x512xf32>
    %326 = tpu.matmul %40, %325, %cst_170 {dimension_numbers = #tpu.dot_dimension_numbers<[1], [0], [0], [1], [0, 0, 1, 1], [], []>} : vector<4x32xf32>, vector<32x512xf32>, vector<4x512xf32> -> vector<4x512xf32>
    %c16_i32_171 = arith.constant 16 : i32
    %327 = tpu.dynamic_rotate %322 by %c16_i32_171 dim 1 : vector<32x512xf32>, i32 -> vector<32x512xf32>
    %328 = vector.broadcast %6 : vector<1x512xf32> to vector<32x512xf32>
    %329 = arith.mulf %327, %328 : vector<32x512xf32>
    %cst_172 = arith.constant dense<0.000000e+00> : vector<4x512xf32>
    %330 = tpu.matmul %42, %329, %cst_172 {dimension_numbers = #tpu.dot_dimension_numbers<[1], [0], [0], [1], [0, 0, 1, 1], [], []>} : vector<4x32xf32>, vector<32x512xf32>, vector<4x512xf32> -> vector<4x512xf32>
    %331 = arith.addf %326, %330 : vector<4x512xf32>
    %c15_i32_173 = arith.constant 15 : i32
    %332 = tpu.dynamic_rotate %322 by %c15_i32_173 dim 1 : vector<32x512xf32>, i32 -> vector<32x512xf32>
    %333 = vector.broadcast %8 : vector<1x512xf32> to vector<32x512xf32>
    %334 = arith.mulf %332, %333 : vector<32x512xf32>
    %cst_174 = arith.constant dense<0.000000e+00> : vector<4x512xf32>
    %335 = tpu.matmul %44, %334, %cst_174 {dimension_numbers = #tpu.dot_dimension_numbers<[1], [0], [0], [1], [0, 0, 1, 1], [], []>} : vector<4x32xf32>, vector<32x512xf32>, vector<4x512xf32> -> vector<4x512xf32>
    %336 = arith.addf %331, %335 : vector<4x512xf32>
    %c1_i32_175 = arith.constant 1 : i32
    %337 = tpu.dynamic_rotate %322 by %c1_i32_175 dim 1 : vector<32x512xf32>, i32 -> vector<32x512xf32>
    %338 = vector.broadcast %10 : vector<1x512xf32> to vector<32x512xf32>
    %339 = arith.mulf %337, %338 : vector<32x512xf32>
    %cst_176 = arith.constant dense<0.000000e+00> : vector<4x512xf32>
    %340 = tpu.matmul %46, %339, %cst_176 {dimension_numbers = #tpu.dot_dimension_numbers<[1], [0], [0], [1], [0, 0, 1, 1], [], []>} : vector<4x32xf32>, vector<32x512xf32>, vector<4x512xf32> -> vector<4x512xf32>
    %341 = arith.addf %336, %340 : vector<4x512xf32>
    %342 = vector.broadcast %12 : vector<1x512xf32> to vector<32x512xf32>
    %343 = arith.mulf %322, %342 : vector<32x512xf32>
    %cst_177 = arith.constant dense<0.000000e+00> : vector<4x512xf32>
    %344 = tpu.matmul %48, %343, %cst_177 {dimension_numbers = #tpu.dot_dimension_numbers<[1], [0], [0], [1], [0, 0, 1, 1], [], []>} : vector<4x32xf32>, vector<32x512xf32>, vector<4x512xf32> -> vector<4x512xf32>
    %345 = arith.addf %341, %344 : vector<4x512xf32>
    %c511_i32_178 = arith.constant 511 : i32
    %346 = tpu.dynamic_rotate %322 by %c511_i32_178 dim 1 : vector<32x512xf32>, i32 -> vector<32x512xf32>
    %347 = vector.broadcast %14 : vector<1x512xf32> to vector<32x512xf32>
    %348 = arith.mulf %346, %347 : vector<32x512xf32>
    %cst_179 = arith.constant dense<0.000000e+00> : vector<4x512xf32>
    %349 = tpu.matmul %50, %348, %cst_179 {dimension_numbers = #tpu.dot_dimension_numbers<[1], [0], [0], [1], [0, 0, 1, 1], [], []>} : vector<4x32xf32>, vector<32x512xf32>, vector<4x512xf32> -> vector<4x512xf32>
    %350 = arith.addf %345, %349 : vector<4x512xf32>
    %c497_i32_180 = arith.constant 497 : i32
    %351 = tpu.dynamic_rotate %322 by %c497_i32_180 dim 1 : vector<32x512xf32>, i32 -> vector<32x512xf32>
    %352 = vector.broadcast %16 : vector<1x512xf32> to vector<32x512xf32>
    %353 = arith.mulf %351, %352 : vector<32x512xf32>
    %cst_181 = arith.constant dense<0.000000e+00> : vector<4x512xf32>
    %354 = tpu.matmul %52, %353, %cst_181 {dimension_numbers = #tpu.dot_dimension_numbers<[1], [0], [0], [1], [0, 0, 1, 1], [], []>} : vector<4x32xf32>, vector<32x512xf32>, vector<4x512xf32> -> vector<4x512xf32>
    %355 = arith.addf %350, %354 : vector<4x512xf32>
    %c496_i32_182 = arith.constant 496 : i32
    %356 = tpu.dynamic_rotate %322 by %c496_i32_182 dim 1 : vector<32x512xf32>, i32 -> vector<32x512xf32>
    %357 = vector.broadcast %18 : vector<1x512xf32> to vector<32x512xf32>
    %358 = arith.mulf %356, %357 : vector<32x512xf32>
    %cst_183 = arith.constant dense<0.000000e+00> : vector<4x512xf32>
    %359 = tpu.matmul %54, %358, %cst_183 {dimension_numbers = #tpu.dot_dimension_numbers<[1], [0], [0], [1], [0, 0, 1, 1], [], []>} : vector<4x32xf32>, vector<32x512xf32>, vector<4x512xf32> -> vector<4x512xf32>
    %360 = arith.addf %355, %359 : vector<4x512xf32>
    %c495_i32_184 = arith.constant 495 : i32
    %361 = tpu.dynamic_rotate %322 by %c495_i32_184 dim 1 : vector<32x512xf32>, i32 -> vector<32x512xf32>
    %362 = vector.broadcast %20 : vector<1x512xf32> to vector<32x512xf32>
    %363 = arith.mulf %361, %362 : vector<32x512xf32>
    %cst_185 = arith.constant dense<0.000000e+00> : vector<4x512xf32>
    %364 = tpu.matmul %56, %363, %cst_185 {dimension_numbers = #tpu.dot_dimension_numbers<[1], [0], [0], [1], [0, 0, 1, 1], [], []>} : vector<4x32xf32>, vector<32x512xf32>, vector<4x512xf32> -> vector<4x512xf32>
    %365 = arith.addf %360, %364 : vector<4x512xf32>
    %366 = vector.broadcast %58 : vector<4x1xf32> to vector<4x512xf32>
    %367 = arith.addf %365, %366 : vector<4x512xf32>
    %368 = vector.broadcast %275 : f32 to vector<4x512xf32>
    %369 = arith.mulf %368, %367 : vector<4x512xf32>
    %370 = arith.addf %266, %369 : vector<4x512xf32>
    %c8_186 = arith.constant 8 : index
    %c0_187 = arith.constant 0 : index
    %371 = vector.load %arg9[%c8_186, %c0_187] : memref<16x512xf32, #tpu.memory_space<vmem>>, vector<4x512xf32>
    tpu.vector_store %arg9[%c8_186, %c0_187], %370 {strides = array<i32>} : memref<16x512xf32, #tpu.memory_space<vmem>>, vector<4x512xf32>,
    %c4_i32_188 = arith.constant 4 : i32
    %372 = arith.muli %arg1, %c4_i32_188 : i32
    %c3_i32 = arith.constant 3 : i32
    %373 = arith.addi %372, %c3_i32 : i32
    %c1_i32_189 = arith.constant 1 : i32
    %374 = arith.addi %373, %c1_i32_189 : i32
    %375 = arith.index_cast %374 : i32 to index
    %376 = memref.load %arg2[%375] : memref<9xf32, #tpu.memory_space<smem>>
    %377 = arith.index_cast %373 : i32 to index
    %378 = memref.load %arg2[%377] : memref<9xf32, #tpu.memory_space<smem>>
    %379 = arith.subf %376, %378 : f32
    %c17_i32_190 = arith.constant 17 : i32
    %380 = tpu.dynamic_rotate %370 by %c17_i32_190 dim 1 : vector<4x512xf32>, i32 -> vector<4x512xf32>
    %381 = vector.broadcast %4 : vector<1x512xf32> to vector<4x512xf32>
    %382 = arith.mulf %380, %381 : vector<4x512xf32>
    %cst_191 = arith.constant dense<0.000000e+00> : vector<32x512xf32>
    %383 = tpu.matmul %22, %382, %cst_191 {dimension_numbers = #tpu.dot_dimension_numbers<[1], [0], [0], [1], [0, 0, 1, 1], [], []>} : vector<32x4xf32>, vector<4x512xf32>, vector<32x512xf32> -> vector<32x512xf32>
    %c16_i32_192 = arith.constant 16 : i32
    %384 = tpu.dynamic_rotate %370 by %c16_i32_192 dim 1 : vector<4x512xf32>, i32 -> vector<4x512xf32>
    %385 = vector.broadcast %6 : vector<1x512xf32> to vector<4x512xf32>
    %386 = arith.mulf %384, %385 : vector<4x512xf32>
    %cst_193 = arith.constant dense<0.000000e+00> : vector<32x512xf32>
    %387 = tpu.matmul %24, %386, %cst_193 {dimension_numbers = #tpu.dot_dimension_numbers<[1], [0], [0], [1], [0, 0, 1, 1], [], []>} : vector<32x4xf32>, vector<4x512xf32>, vector<32x512xf32> -> vector<32x512xf32>
    %388 = arith.addf %383, %387 : vector<32x512xf32>
    %c15_i32_194 = arith.constant 15 : i32
    %389 = tpu.dynamic_rotate %370 by %c15_i32_194 dim 1 : vector<4x512xf32>, i32 -> vector<4x512xf32>
    %390 = vector.broadcast %8 : vector<1x512xf32> to vector<4x512xf32>
    %391 = arith.mulf %389, %390 : vector<4x512xf32>
    %cst_195 = arith.constant dense<0.000000e+00> : vector<32x512xf32>
    %392 = tpu.matmul %26, %391, %cst_195 {dimension_numbers = #tpu.dot_dimension_numbers<[1], [0], [0], [1], [0, 0, 1, 1], [], []>} : vector<32x4xf32>, vector<4x512xf32>, vector<32x512xf32> -> vector<32x512xf32>
    %393 = arith.addf %388, %392 : vector<32x512xf32>
    %c1_i32_196 = arith.constant 1 : i32
    %394 = tpu.dynamic_rotate %370 by %c1_i32_196 dim 1 : vector<4x512xf32>, i32 -> vector<4x512xf32>
    %395 = vector.broadcast %10 : vector<1x512xf32> to vector<4x512xf32>
    %396 = arith.mulf %394, %395 : vector<4x512xf32>
    %cst_197 = arith.constant dense<0.000000e+00> : vector<32x512xf32>
    %397 = tpu.matmul %28, %396, %cst_197 {dimension_numbers = #tpu.dot_dimension_numbers<[1], [0], [0], [1], [0, 0, 1, 1], [], []>} : vector<32x4xf32>, vector<4x512xf32>, vector<32x512xf32> -> vector<32x512xf32>
    %398 = arith.addf %393, %397 : vector<32x512xf32>
    %399 = vector.broadcast %12 : vector<1x512xf32> to vector<4x512xf32>
    %400 = arith.mulf %370, %399 : vector<4x512xf32>
    %cst_198 = arith.constant dense<0.000000e+00> : vector<32x512xf32>
    %401 = tpu.matmul %30, %400, %cst_198 {dimension_numbers = #tpu.dot_dimension_numbers<[1], [0], [0], [1], [0, 0, 1, 1], [], []>} : vector<32x4xf32>, vector<4x512xf32>, vector<32x512xf32> -> vector<32x512xf32>
    %402 = arith.addf %398, %401 : vector<32x512xf32>
    %c511_i32_199 = arith.constant 511 : i32
    %403 = tpu.dynamic_rotate %370 by %c511_i32_199 dim 1 : vector<4x512xf32>, i32 -> vector<4x512xf32>
    %404 = vector.broadcast %14 : vector<1x512xf32> to vector<4x512xf32>
    %405 = arith.mulf %403, %404 : vector<4x512xf32>
    %cst_200 = arith.constant dense<0.000000e+00> : vector<32x512xf32>
    %406 = tpu.matmul %32, %405, %cst_200 {dimension_numbers = #tpu.dot_dimension_numbers<[1], [0], [0], [1], [0, 0, 1, 1], [], []>} : vector<32x4xf32>, vector<4x512xf32>, vector<32x512xf32> -> vector<32x512xf32>
    %407 = arith.addf %402, %406 : vector<32x512xf32>
    %c497_i32_201 = arith.constant 497 : i32
    %408 = tpu.dynamic_rotate %370 by %c497_i32_201 dim 1 : vector<4x512xf32>, i32 -> vector<4x512xf32>
    %409 = vector.broadcast %16 : vector<1x512xf32> to vector<4x512xf32>
    %410 = arith.mulf %408, %409 : vector<4x512xf32>
    %cst_202 = arith.constant dense<0.000000e+00> : vector<32x512xf32>
    %411 = tpu.matmul %34, %410, %cst_202 {dimension_numbers = #tpu.dot_dimension_numbers<[1], [0], [0], [1], [0, 0, 1, 1], [], []>} : vector<32x4xf32>, vector<4x512xf32>, vector<32x512xf32> -> vector<32x512xf32>
    %412 = arith.addf %407, %411 : vector<32x512xf32>
    %c496_i32_203 = arith.constant 496 : i32
    %413 = tpu.dynamic_rotate %370 by %c496_i32_203 dim 1 : vector<4x512xf32>, i32 -> vector<4x512xf32>
    %414 = vector.broadcast %18 : vector<1x512xf32> to vector<4x512xf32>
    %415 = arith.mulf %413, %414 : vector<4x512xf32>
    %cst_204 = arith.constant dense<0.000000e+00> : vector<32x512xf32>
    %416 = tpu.matmul %36, %415, %cst_204 {dimension_numbers = #tpu.dot_dimension_numbers<[1], [0], [0], [1], [0, 0, 1, 1], [], []>} : vector<32x4xf32>, vector<4x512xf32>, vector<32x512xf32> -> vector<32x512xf32>
    %417 = arith.addf %412, %416 : vector<32x512xf32>
    %c495_i32_205 = arith.constant 495 : i32
    %418 = tpu.dynamic_rotate %370 by %c495_i32_205 dim 1 : vector<4x512xf32>, i32 -> vector<4x512xf32>
    %419 = vector.broadcast %20 : vector<1x512xf32> to vector<4x512xf32>
    %420 = arith.mulf %418, %419 : vector<4x512xf32>
    %cst_206 = arith.constant dense<0.000000e+00> : vector<32x512xf32>
    %421 = tpu.matmul %38, %420, %cst_206 {dimension_numbers = #tpu.dot_dimension_numbers<[1], [0], [0], [1], [0, 0, 1, 1], [], []>} : vector<32x4xf32>, vector<4x512xf32>, vector<32x512xf32> -> vector<32x512xf32>
    %422 = arith.addf %417, %421 : vector<32x512xf32>
    %423 = vector.broadcast %57 : vector<32x1xf32> to vector<32x512xf32>
    %424 = arith.addf %422, %423 : vector<32x512xf32>
    %cst_207 = arith.constant 0.000000e+00 : f32
    %425 = vector.broadcast %cst_207 : f32 to vector<32x512xf32>
    %426 = arith.maximumf %424, %425 : vector<32x512xf32>
    %c17_i32_208 = arith.constant 17 : i32
    %427 = tpu.dynamic_rotate %426 by %c17_i32_208 dim 1 : vector<32x512xf32>, i32 -> vector<32x512xf32>
    %428 = vector.broadcast %4 : vector<1x512xf32> to vector<32x512xf32>
    %429 = arith.mulf %427, %428 : vector<32x512xf32>
    %cst_209 = arith.constant dense<0.000000e+00> : vector<4x512xf32>
    %430 = tpu.matmul %40, %429, %cst_209 {dimension_numbers = #tpu.dot_dimension_numbers<[1], [0], [0], [1], [0, 0, 1, 1], [], []>} : vector<4x32xf32>, vector<32x512xf32>, vector<4x512xf32> -> vector<4x512xf32>
    %c16_i32_210 = arith.constant 16 : i32
    %431 = tpu.dynamic_rotate %426 by %c16_i32_210 dim 1 : vector<32x512xf32>, i32 -> vector<32x512xf32>
    %432 = vector.broadcast %6 : vector<1x512xf32> to vector<32x512xf32>
    %433 = arith.mulf %431, %432 : vector<32x512xf32>
    %cst_211 = arith.constant dense<0.000000e+00> : vector<4x512xf32>
    %434 = tpu.matmul %42, %433, %cst_211 {dimension_numbers = #tpu.dot_dimension_numbers<[1], [0], [0], [1], [0, 0, 1, 1], [], []>} : vector<4x32xf32>, vector<32x512xf32>, vector<4x512xf32> -> vector<4x512xf32>
    %435 = arith.addf %430, %434 : vector<4x512xf32>
    %c15_i32_212 = arith.constant 15 : i32
    %436 = tpu.dynamic_rotate %426 by %c15_i32_212 dim 1 : vector<32x512xf32>, i32 -> vector<32x512xf32>
    %437 = vector.broadcast %8 : vector<1x512xf32> to vector<32x512xf32>
    %438 = arith.mulf %436, %437 : vector<32x512xf32>
    %cst_213 = arith.constant dense<0.000000e+00> : vector<4x512xf32>
    %439 = tpu.matmul %44, %438, %cst_213 {dimension_numbers = #tpu.dot_dimension_numbers<[1], [0], [0], [1], [0, 0, 1, 1], [], []>} : vector<4x32xf32>, vector<32x512xf32>, vector<4x512xf32> -> vector<4x512xf32>
    %440 = arith.addf %435, %439 : vector<4x512xf32>
    %c1_i32_214 = arith.constant 1 : i32
    %441 = tpu.dynamic_rotate %426 by %c1_i32_214 dim 1 : vector<32x512xf32>, i32 -> vector<32x512xf32>
    %442 = vector.broadcast %10 : vector<1x512xf32> to vector<32x512xf32>
    %443 = arith.mulf %441, %442 : vector<32x512xf32>
    %cst_215 = arith.constant dense<0.000000e+00> : vector<4x512xf32>
    %444 = tpu.matmul %46, %443, %cst_215 {dimension_numbers = #tpu.dot_dimension_numbers<[1], [0], [0], [1], [0, 0, 1, 1], [], []>} : vector<4x32xf32>, vector<32x512xf32>, vector<4x512xf32> -> vector<4x512xf32>
    %445 = arith.addf %440, %444 : vector<4x512xf32>
    %446 = vector.broadcast %12 : vector<1x512xf32> to vector<32x512xf32>
    %447 = arith.mulf %426, %446 : vector<32x512xf32>
    %cst_216 = arith.constant dense<0.000000e+00> : vector<4x512xf32>
    %448 = tpu.matmul %48, %447, %cst_216 {dimension_numbers = #tpu.dot_dimension_numbers<[1], [0], [0], [1], [0, 0, 1, 1], [], []>} : vector<4x32xf32>, vector<32x512xf32>, vector<4x512xf32> -> vector<4x512xf32>
    %449 = arith.addf %445, %448 : vector<4x512xf32>
    %c511_i32_217 = arith.constant 511 : i32
    %450 = tpu.dynamic_rotate %426 by %c511_i32_217 dim 1 : vector<32x512xf32>, i32 -> vector<32x512xf32>
    %451 = vector.broadcast %14 : vector<1x512xf32> to vector<32x512xf32>
    %452 = arith.mulf %450, %451 : vector<32x512xf32>
    %cst_218 = arith.constant dense<0.000000e+00> : vector<4x512xf32>
    %453 = tpu.matmul %50, %452, %cst_218 {dimension_numbers = #tpu.dot_dimension_numbers<[1], [0], [0], [1], [0, 0, 1, 1], [], []>} : vector<4x32xf32>, vector<32x512xf32>, vector<4x512xf32> -> vector<4x512xf32>
    %454 = arith.addf %449, %453 : vector<4x512xf32>
    %c497_i32_219 = arith.constant 497 : i32
    %455 = tpu.dynamic_rotate %426 by %c497_i32_219 dim 1 : vector<32x512xf32>, i32 -> vector<32x512xf32>
    %456 = vector.broadcast %16 : vector<1x512xf32> to vector<32x512xf32>
    %457 = arith.mulf %455, %456 : vector<32x512xf32>
    %cst_220 = arith.constant dense<0.000000e+00> : vector<4x512xf32>
    %458 = tpu.matmul %52, %457, %cst_220 {dimension_numbers = #tpu.dot_dimension_numbers<[1], [0], [0], [1], [0, 0, 1, 1], [], []>} : vector<4x32xf32>, vector<32x512xf32>, vector<4x512xf32> -> vector<4x512xf32>
    %459 = arith.addf %454, %458 : vector<4x512xf32>
    %c496_i32_221 = arith.constant 496 : i32
    %460 = tpu.dynamic_rotate %426 by %c496_i32_221 dim 1 : vector<32x512xf32>, i32 -> vector<32x512xf32>
    %461 = vector.broadcast %18 : vector<1x512xf32> to vector<32x512xf32>
    %462 = arith.mulf %460, %461 : vector<32x512xf32>
    %cst_222 = arith.constant dense<0.000000e+00> : vector<4x512xf32>
    %463 = tpu.matmul %54, %462, %cst_222 {dimension_numbers = #tpu.dot_dimension_numbers<[1], [0], [0], [1], [0, 0, 1, 1], [], []>} : vector<4x32xf32>, vector<32x512xf32>, vector<4x512xf32> -> vector<4x512xf32>
    %464 = arith.addf %459, %463 : vector<4x512xf32>
    %c495_i32_223 = arith.constant 495 : i32
    %465 = tpu.dynamic_rotate %426 by %c495_i32_223 dim 1 : vector<32x512xf32>, i32 -> vector<32x512xf32>
    %466 = vector.broadcast %20 : vector<1x512xf32> to vector<32x512xf32>
    %467 = arith.mulf %465, %466 : vector<32x512xf32>
    %cst_224 = arith.constant dense<0.000000e+00> : vector<4x512xf32>
    %468 = tpu.matmul %56, %467, %cst_224 {dimension_numbers = #tpu.dot_dimension_numbers<[1], [0], [0], [1], [0, 0, 1, 1], [], []>} : vector<4x32xf32>, vector<32x512xf32>, vector<4x512xf32> -> vector<4x512xf32>
    %469 = arith.addf %464, %468 : vector<4x512xf32>
    %470 = vector.broadcast %58 : vector<4x1xf32> to vector<4x512xf32>
    %471 = arith.addf %469, %470 : vector<4x512xf32>
    %472 = vector.broadcast %379 : f32 to vector<4x512xf32>
    %473 = arith.mulf %472, %471 : vector<4x512xf32>
    %474 = arith.addf %370, %473 : vector<4x512xf32>
    %c12 = arith.constant 12 : index
    %c0_225 = arith.constant 0 : index
    %475 = vector.load %arg9[%c12, %c0_225] : memref<16x512xf32, #tpu.memory_space<vmem>>, vector<4x512xf32>
    tpu.vector_store %arg9[%c12, %c0_225], %474 {strides = array<i32>} : memref<16x512xf32, #tpu.memory_space<vmem>>, vector<4x512xf32>,
    %c0_226 = arith.constant 0 : index
    %c0_227 = arith.constant 0 : index
    %476 = vector.load %arg10[%c0_226, %c0_227] : memref<4x512xf32, #tpu.memory_space<vmem>>, vector<4x512xf32>
    tpu.vector_store %arg10[%c0_226, %c0_227], %474 {strides = array<i32>} : memref<4x512xf32, #tpu.memory_space<vmem>>, vector<4x512xf32>,
    return
  }
  func.func @transform_0(%arg0: i32, %arg1: i32, %arg2: memref<9xf32, #tpu.memory_space<smem>>) -> (i32, i32) {
    %c0_i32 = arith.constant 0 : i32
    %c0_i32_0 = arith.constant 0 : i32
    return %c0_i32, %arg0 : i32, i32
  }
  func.func @transform_1(%arg0: i32, %arg1: i32, %arg2: memref<9xf32, #tpu.memory_space<smem>>) -> (i32, i32, i32) {
    %c0_i32 = arith.constant 0 : i32
    %c0_i32_0 = arith.constant 0 : i32
    %c0_i32_1 = arith.constant 0 : i32
    %c0_i32_2 = arith.constant 0 : i32
    return %c0_i32, %c0_i32_0, %c0_i32_1 : i32, i32, i32
  }
  func.func @transform_2(%arg0: i32, %arg1: i32, %arg2: memref<9xf32, #tpu.memory_space<smem>>) -> (i32, i32, i32) {
    %c0_i32 = arith.constant 0 : i32
    %c0_i32_0 = arith.constant 0 : i32
    %c0_i32_1 = arith.constant 0 : i32
    %c0_i32_2 = arith.constant 0 : i32
    return %c0_i32, %c0_i32_0, %c0_i32_1 : i32, i32, i32
  }
  func.func @transform_3(%arg0: i32, %arg1: i32, %arg2: memref<9xf32, #tpu.memory_space<smem>>) -> (i32, i32) {
    %c0_i32 = arith.constant 0 : i32
    %c0_i32_0 = arith.constant 0 : i32
    %c0_i32_1 = arith.constant 0 : i32
    return %c0_i32, %c0_i32_0 : i32, i32
  }
  func.func @transform_4(%arg0: i32, %arg1: i32, %arg2: memref<9xf32, #tpu.memory_space<smem>>) -> (i32, i32, i32) {
    %c0_i32 = arith.constant 0 : i32
    %c0_i32_0 = arith.constant 0 : i32
    %c0_i32_1 = arith.constant 0 : i32
    %c0_i32_2 = arith.constant 0 : i32
    return %c0_i32, %c0_i32_0, %c0_i32_1 : i32, i32, i32
  }
  func.func @transform_5(%arg0: i32, %arg1: i32, %arg2: memref<9xf32, #tpu.memory_space<smem>>) -> (i32, i32) {
    %c0_i32 = arith.constant 0 : i32
    %c0_i32_0 = arith.constant 0 : i32
    %c0_i32_1 = arith.constant 0 : i32
    return %c0_i32, %c0_i32_0 : i32, i32
  }
  func.func @transform_6(%arg0: i32, %arg1: i32, %arg2: memref<9xf32, #tpu.memory_space<smem>>) -> (i32, i32) {
    %c0_i32 = arith.constant 0 : i32
    return %arg1, %arg0 : i32, i32
  }
}

</mosaic_0001>

<bundles_post_ra>
// kernel: forward.1
= control target key start
LH: loop header
LB: loop body
LE: loop exit
PB: predicated region body
PF: predicated region fallthrough
CT: control target
= control target key end

     0   :  { %s25896_s0 = inlined_call_operand.vmem [shape: f32[9], index: 0, kind: input, shape index: {}]   ;;  %s25897_s1 = inlined_call_operand.vmem [shape: f32[4,512], index: 1, kind: input, shape index: {}]   ;;  %s25898_s2 = inlined_call_operand.vmem [shape: f32[9,1,512], index: 2, kind: input, shape index: {}]   ;;  %s25899_s3 = inlined_call_operand.vmem [shape: f32[9,32,4], index: 3, kind: input, shape index: {}]   ;;  %s25900_s4 = inlined_call_operand.vmem [shape: f32[32,1], index: 4, kind: input, shape index: {}]   ;;  %s25901_s5 = inlined_call_operand.vmem [shape: f32[9,4,32], index: 5, kind: input, shape index: {}]   ;;  %s25902_s6 = inlined_call_operand.vmem [shape: f32[4,1], index: 6, kind: input, shape index: {}]   ;;  %s25903_s7 = inlined_call_operand.vmem [shape: f32[32,512], index: 7, kind: output, shape index: {}]  }
   0x1   :  { %s12_s26 = sshll.u32 %s25896_s0, 4  ;;  %s13_s26 = int_to_ptr.vmem [resolvable:$true] %s12_s26 }
   0x2   :  { %s18207_s27 = scalar_lea.vmem %s13_s26, 16  ;;  %p18212_p1 = scmp.lt.s32.totalorder %s13_s26, %s13_s26 }
   0x3   :  { %p18208_p0 = scmp.ne.s32.totalorder %s13_s26, %s18207_s27  ;;  %p18213_p2 = scmp.lt.s32.totalorder %s18207_s27, %s18207_s27 }
   0x5   :  { %p18214_p3 = por %p18213_p2, %p18212_p1 }
   0x7   :  { %p18215_p4 = pnand %p18214_p3, %p18208_p0 }
   0x9   :  { %18218 = shalt.err (!%p18215_p4)  }
   0xa   :  { %s18245_s28 = smov [#allocation4]  }
   0xb   :  { %15 = dma.vmem_to_smem %s13_s26, 16, %s18245_s28, [#allocation3] }
   0xc   :  { %18231 = dma.done.wait [#allocation3], 16 }
   0xd   :  { %18232 = vsyncadd [#allocation3], 4294967280 }
   0xe   :  { %17 = sfence }
   0xf   :  { %s18299_s29 = smov 0   ;;  %s18301_s30 = smov 0  }
  0x10   :  { %s18303_s8 = smov 0  }
  0x11 LB: > { %s32_s0 = sadd.s32 1, %s18239_s30  ;;  %p16254_p5 = scmp.ge.s32.totalorder %s18243_s8, 1  ;;  %s18243_s8 = sphi %s18303_s8, %s23_s8   ;;  %s18239_s30 = sphi %s18301_s30, %s27383_s30   ;;  %s18235_s29 = sphi %s18299_s29, %s27382_s29  }
  0x12   : > { %p33_p6 = scmp.ge.s32.totalorder %s32_s0, 2  ;;  %p234_p7 = scmp.lt.s32.totalorder %s18243_s8, 3 }
  0x14   : > { %s27385_s0 = smov (%p33_p6, %s32_s0), 0  ;;  %p235_p8 = pnand %p16254_p5, %p234_p7 }
  0x16   : > { %238 = sbr.rel (%p235_p8) target bundleno = 4341 (0x10f5), region = 44 }
  0x1d   : > { %s16255_s9 = sshll.u32 %s18235_s29, 1  ;;  %p16258_p10 = scmp.ne.s32.totalorder %s18235_s29, 0 }
  0x1e   : > { %p277_p9 = scmp.lt.s32.totalorder %s16255_s9, 3  ;;  %v291_v0 = vld [vmem:[%s25897_s1] sm:$0xff] (!%p16258_p10)  ;;  %v292_v1 = vld [vmem:[%s25897_s1 + $0x8] sm:$0xff] (!%p16258_p10) }
  0x1f   : > { %290 = sbr.rel (%p16258_p10) target bundleno = 38 (0x26), region = 48  ;;  %293 = vst [vmem:[#allocation2] sm:$0xff] (!%p16258_p10), %v291_v0  ;;  %294 = vst [vmem:[#allocation2 + $0x8] sm:$0xff] (!%p16258_p10), %v292_v1 }
  0x20   : > { %s27387_s9 = smov (!%p277_p9, %s16255_s9), 3 }
  0x21   : > { %s16814_s10 = sshll.u32 %s27387_s9, 5 }
  0x22   : > { %s18323_s13 = scalar_lea.vmem %s25903_s7, %s16814_s10 }
  0x26 PF: > { %v18332_v2 = vld [vmem:[#allocation2 + $0x8] sm:$0xff]  ;;  %v18334_v3 = vld [vmem:[#allocation2] sm:$0xff]  ;;  %s18246_s18 = smov 16   ;;  %v25904_v6 = vmov 0.0   ;;  %s18248_s19 = smov 17   ;;  %v399_v7 = vlaneseq  ;;  %vm482_vm2 = vcmask 1043456  }
  0x27   : > { %435 = vrot.lane.b32.xlu1 %v18332_v2, %s18246_s18  ;;  %431 = vrot.lane.b32.xlu0 %v18334_v3, %s18246_s18  ;;  %v388_v4 = vcombine.high %v18332_v2, %v18332_v2  ;;  %v387_v5 = vcombine.high %v18334_v3, %v18334_v3  ;;  %s18249_s20 = smov 15   ;;  %s18250_s21 = smov 1   ;;  %v16259_v14 = vld [vmem:[%s25898_s2 + $0x4] sm:$0xf]  ;;  %v295_v17 = vld [vmem:[%s25898_s2] sm:$0xf] }
  0x28   : > { %559 = vmatprep.mubr.f32.mxu0 %v25904_v6  ;;  %648 = vmatprep.mubr.f32.mxu1 %v25904_v6  ;;  %s18251_s22 = smov 127   ;;  %s18252_s23 = smov 113   ;;  %v408_v8 = vshrl.u32 %v399_v7, 7  ;;  %v18390_v9 = vand.u32 127, %v399_v7  ;;  %v16267_v33 = vld [vmem:[%s25899_s3 + $0x20] sm:$0xff]  ;;  %vm469_vm3 = vcmask 31744  }
  0x29   : > { %s18253_s24 = smov 112   ;;  %s18254_s25 = smov 111   ;;  %v16260_v41 = vld [vmem:[%s25898_s2 + $0x8] sm:$0xf]  ;;  %v16269_v52 = vld [vmem:[%s25899_s3 + $0x30] sm:$0xff]  ;;  %v16270_v58 = vld [vmem:[%s25899_s3 + $0x38] sm:$0xff] }
  0x2a   : > { %v18392_v10 = vsub.s32 1, %v408_v8  ;;  %v18394_v11 = vsub.s32 3, %v408_v8  ;;  %v18396_v12 = vsub.s32 0, %v408_v8  ;;  %v18398_v13 = vsub.s32 2, %v408_v8  ;;  %v16268_v42 = vld [vmem:[%s25899_s3 + $0x28] sm:$0xff]  ;;  %s20387_s15 = sshll.u32 %s18235_s29, 2 }
  0x2b   : > { %437 = vrot.lane.b32.xlu1 %v388_v4, %s18246_s18  ;;  %433 = vrot.lane.b32.xlu0 %v387_v5, %s18246_s18  ;;  %vm439_vm0 = vcmp.lt.s32.totalorder %v18390_v9, 16  ;;  %vm401_vm1 = vcmp.lt.s32.totalorder %v18390_v9, 17  ;;  %vm883_vm4 = vcmp.lt.s32.totalorder %v18390_v9, 15  ;;  %v18504_v59 = vld [vmem:[%s25898_s2 + $0xc] sm:$0xf]  ;;  %vm1139_vm5 = vcmp.lt.s32.totalorder %v18390_v9, 1 }
  0x2c   : > { %v18408_v18 = vrot.slane %v16259_v14, %v18392_v10  ;;  %v18411_v19 = vrot.slane %v16259_v14, %v18394_v11  ;;  %v18414_v20 = vrot.slane %v16259_v14, %v18396_v12  ;;  %v18417_v21 = vrot.slane %v16259_v14, %v18398_v13  ;;  %v374_v8 = vld [vmem:[%s25900_s4 + $0x8] sm:$0xff]  ;;  %v312_v14 = vld [vmem:[%s25899_s3] sm:$0xff]  ;;  %s381_s16 = sadd.s32 1, %s20387_s15  ;;  %s383_s26 = sld [smem:[#allocation4 + %s20387_s15]] }
  0x2d   : > { %v18421_v24 = vrot.slane %v295_v17, %v18392_v10  ;;  %v18445_v37 = vrot.slane %v295_v17, %v18394_v11  ;;  %v18451_v39 = vrot.slane %v295_v17, %v18396_v12  ;;  %v18454_v40 = vrot.slane %v295_v17, %v18398_v13  ;;  %s382_s17 = sld [smem:[#allocation4 + %s381_s16]]  ;;  %s4604_s29 = sadd.s32 2, %s20387_s15 }
  0x2e   : > { %26432 = vst [vmem:[#allocation6_spill] sm:$0xff] %v18408_v18  ;;  %26433 = vst [vmem:[#allocation7_spill] sm:$0xff] %v18411_v19  ;;  %v18472_v48 = vrot.slane %v16260_v41, %v18392_v10  ;;  %v18494_v57 = vrot.slane %v16260_v41, %v18394_v11  ;;  %v18507_v61 = vrot.slane %v16260_v41, %v18396_v12  ;;  %vm1636_vm6 = vcmp.lt.s32.totalorder %v18390_v9, 127  ;;  %s4605_s28 = sld [smem:[#allocation4 + %s4604_s29]] }
  0x2f   : > { %393 = vrot.lane.b32.xlu1 %v387_v5, %s18248_s19  ;;  %391 = vrot.lane.b32.xlu0 %v18334_v3, %s18248_s19  ;;  %26434 = vst [vmem:[#allocation8_spill] sm:$0xff] %v18414_v20  ;;  %26435 = vst [vmem:[#allocation9_spill] sm:$0xff] %v18417_v21  ;;  %v18510_v63 = vrot.slane %v16260_v41, %v18398_v13  ;;  %v18525_v7 = vrot.slane %v18504_v59, %v18392_v10  ;;  %v375_v41 = vld [vmem:[%s25900_s4 + $0x10] sm:$0xff]  ;;  %vm1892_vm7 = vcmp.lt.s32.totalorder %v18390_v9, 113  ;;  %vm2832_vm10 = vcmask 261120   ;;  %s4606_s9 = sld [smem:[#allocation4 + %s381_s16]] }
  0x30   : > { %26436 = vst [vmem:[#allocation10_spill] sm:$0xff] %v18421_v24  ;;  %26437 = vst [vmem:[#allocation11_spill] sm:$0xff] %v18445_v37  ;;  %vm2148_vm8 = vcmp.lt.s32.totalorder %v18390_v9, 112  ;;  %vm2404_vm9 = vcmp.lt.s32.totalorder %v18390_v9, 111  ;;  %s8455_s16 = sadd.s32 3, %s20387_s15  ;;  %s8457_s12 = sld [smem:[#allocation4 + %s4604_s29]] }
  0x31   : > { %26438 = vst [vmem:[#allocation12_spill] sm:$0xff] %v18451_v39  ;;  %26439 = vst [vmem:[#allocation13_spill] sm:$0xff] %v18454_v40  ;;  %s8456_s11 = sld [smem:[#allocation4 + %s8455_s16]] }
  0x32   : > { %26440 = vst [vmem:[#allocation14_spill] sm:$0xff] %v18472_v48  ;;  %26441 = vst [vmem:[#allocation15_spill] sm:$0xff] %v18494_v57 }
  0x33   : > { %397 = vrot.lane.b32.xlu1 %v388_v4, %s18248_s19  ;;  %395 = vrot.lane.b32.xlu0 %v18332_v2, %s18248_s19  ;;  %26442 = vst [vmem:[#allocation16_spill] sm:$0xff] %v18507_v61  ;;  %26443 = vst [vmem:[#allocation17_spill] sm:$0xff] %v18510_v63  ;;  %s384_s27 = ssub.f32 %s382_s17, %s383_s26 }
  0x34   : > { %26444 = vst [vmem:[#allocation18_spill] sm:$0xff] %v18525_v7 }
  0x35   : > { %s4607_s10 = ssub.f32 %s4605_s28, %s4606_s9 }
  0x37   : > { %877 = vrot.lane.b32.xlu1 %v387_v5, %s18249_s20  ;;  %875 = vrot.lane.b32.xlu0 %v18334_v3, %s18249_s20  ;;  %s8458_s14 = ssub.f32 %s8456_s11, %s8457_s12 }
  0x3b   : > { %881 = vrot.lane.b32.xlu1 %v388_v4, %s18249_s20  ;;  %879 = vrot.lane.b32.xlu0 %v18332_v2, %s18249_s20 }
  0x3f   : > { %1133 = vrot.lane.b32.xlu1 %v387_v5, %s18250_s21  ;;  %1131 = vrot.lane.b32.xlu0 %v18334_v3, %s18250_s21 }
  0x43   : > { %1137 = vrot.lane.b32.xlu1 %v388_v4, %s18250_s21  ;;  %1135 = vrot.lane.b32.xlu0 %v18332_v2, %s18250_s21 }
  0x47   : > { %1628 = vrot.lane.b32.xlu0 %v18334_v3, %s18251_s22  ;;  %1630 = vrot.lane.b32.xlu1 %v387_v5, %s18251_s22 }
  0x4b   : > { %1632 = vrot.lane.b32.xlu0 %v18332_v2, %s18251_s22  ;;  %1634 = vrot.lane.b32.xlu1 %v388_v4, %s18251_s22 }
  0x4f   : > { %1884 = vrot.lane.b32.xlu0 %v18334_v3, %s18252_s23  ;;  %1886 = vrot.lane.b32.xlu1 %v387_v5, %s18252_s23 }
  0x53   : > { %1888 = vrot.lane.b32.xlu0 %v18332_v2, %s18252_s23  ;;  %1890 = vrot.lane.b32.xlu1 %v388_v4, %s18252_s23 }
  0x57   : > { %2140 = vrot.lane.b32.xlu0 %v18334_v3, %s18253_s24  ;;  %2142 = vrot.lane.b32.xlu1 %v387_v5, %s18253_s24 }
  0x5b   : > { %2144 = vrot.lane.b32.xlu0 %v18332_v2, %s18253_s24  ;;  %2146 = vrot.lane.b32.xlu1 %v388_v4, %s18253_s24 }
  0x5f   : > { %2396 = vrot.lane.b32.xlu0 %v18334_v3, %s18254_s25  ;;  %2398 = vrot.lane.b32.xlu1 %v387_v5, %s18254_s25 }
  0x63   : > { %2400 = vrot.lane.b32.xlu0 %v18332_v2, %s18254_s25  ;;  %2402 = vrot.lane.b32.xlu1 %v388_v4, %s18254_s25 }
  0x99   : > { %v436_v15 = vpop.permute.xlu1 %435  ;;  %v432_v16 = vpop.permute.xlu0 %431 }
  0x9d   : > { %v438_v22 = vpop.permute.xlu1 %437  ;;  %v434_v23 = vpop.permute.xlu0 %433 }
  0x9e   : > { %v443_v25 = vsel %vm439_vm0, %v438_v22, %v432_v16  ;;  %v441_v26 = vsel %vm439_vm0, %v434_v23, %v436_v15  ;;  %v442_v27 = vsel %vm439_vm0, %v432_v16, %v434_v23  ;;  %v440_v28 = vsel %vm439_vm0, %v436_v15, %v438_v22 }
  0x9f   : > { %v466_v29 = vmul.f32 %v18408_v18, %v442_v27  ;;  %v468_v30 = vmul.f32 %v18411_v19, %v440_v28  ;;  %v465_v31 = vmul.f32 %v18414_v20, %v443_v25  ;;  %v467_v32 = vmul.f32 %v18417_v21, %v441_v26  ;;  %v16262_v26 = vld [vmem:[%s25898_s2 + $0x10] sm:$0xf] }
  0xa0   : > { %v18255_v23 = vmov 0   ;;  %v18548_v28 = vrot.slane %v18504_v59, %v18394_v11 }
  0xa1   : > { %v394_v34 = vpop.permute.xlu1 %393  ;;  %v392_v35 = vpop.permute.xlu0 %391  ;;  %16308 = vmatprep.subr.msk.mxu0 %vm482_vm2, %v466_v29  ;;  %16314 = vmatprep.subr.msk.mxu1 %vm482_vm2, %v468_v30  ;;  %v373_v29 = vld [vmem:[%s25900_s4] sm:$0xff]  ;;  %v313_v30 = vld [vmem:[%s25899_s3 + $0x8] sm:$0xff] }
  0xa2   : > { %v404_v36 = vsel %vm401_vm1, %v392_v35, %v394_v34  ;;  %16309 = vmatpush1.msk.msra.mxu0 %vm482_vm2, %v465_v31  ;;  %16315 = vmatpush1.msk.msra.mxu1 %vm482_vm2, %v467_v32  ;;  %26445 = vst [vmem:[#allocation19_spill] sm:$0xff] %v18548_v28 }
  0xa3   : > { %v428_v38 = vmul.f32 %v18421_v24, %v404_v36  ;;  %16310 = vmatmul.mubr.msk.f32.vlgmr.msra.gmra.mrb[0].mxu0 %vm469_vm3, %v16267_v33  ;;  %16316 = vmatmul.mubr.msk.f32.vlgmr.msra.gmra.mrb[0].mxu1 %vm469_vm3, %v16267_v33  ;;  %v18561_v33 = vrot.slane %v16262_v26, %v18396_v12  ;;  %v18570_v36 = vrot.slane %v16262_v26, %v18398_v13 }
  0xa4   : > { %565 = vmatprep.mubr.f32.mxu0 %v25904_v6  ;;  %654 = vmatprep.mubr.f32.mxu1 %v25904_v6 }
  0xa5   : > { %v398_v43 = vpop.permute.xlu1 %397  ;;  %v396_v44 = vpop.permute.xlu0 %395  ;;  %16320 = vmatprep.subr.msk.mxu0 %vm482_vm2, %v428_v38  ;;  %18067 = vset.pattern.permute.xlu1 %v18255_v23  ;;  %26446 = vst [vmem:[#allocation20_spill] sm:$0xff] %v18561_v33  ;;  %26448 = vst [vmem:[#allocation22_spill] sm:$0xff] %v18570_v36  ;;  %v18573_v38 = vrot.slane %v16262_v26, %v18394_v11 }
  0xa6   : > { %v405_v45 = vsel %vm401_vm1, %v398_v43, %v392_v35  ;;  %v402_v46 = vsel %vm401_vm1, %v396_v44, %v398_v43  ;;  %v403_v47 = vsel %vm401_vm1, %v394_v34, %v396_v44  ;;  %18066 = vset.pattern.permute.xlu0 %v18255_v23  ;;  %2659 = vperm.xlu1 %18067, %v374_v8   ;;  %v376_v43 = vld [vmem:[%s25900_s4 + $0x18] sm:$0xff]  ;;  %v314_v44 = vld [vmem:[%s25899_s3 + $0x10] sm:$0xff] }
  0xa7   : > { %v427_v49 = vmul.f32 %v18451_v39, %v405_v45  ;;  %v429_v50 = vmul.f32 %v18454_v40, %v403_v47  ;;  %v430_v51 = vmul.f32 %v18445_v37, %v402_v46  ;;  %16311 = vmatmul.mubr.msk.f32.gmra.mrb[2].mxu0 %vm469_vm3, %v16268_v42  ;;  %16317 = vmatmul.mubr.msk.f32.gmra.mrb[2].mxu1 %vm469_vm3, %v16268_v42  ;;  %v315_v47 = vld [vmem:[%s25899_s3 + $0x18] sm:$0xff] }
  0xa8   : > { %571 = vmatprep.mubr.f32.mxu0 %v25904_v6  ;;  %660 = vmatprep.mubr.f32.mxu1 %v25904_v6  ;;  %v18564_v34 = vrot.slane %v16262_v26, %v18392_v10  ;;  %26449 = vst [vmem:[#allocation23_spill] sm:$0xff] %v18573_v38  ;;  %v18596_v46 = vcombine.low %v18570_v36, %v18573_v38  ;;  %v16276_v26 = vld [vmem:[%s25899_s3 + $0x68] sm:$0xff] }
  0xa9   : > { %16321 = vmatpush1.msk.msra.mxu0 %vm482_vm2, %v427_v49  ;;  %16326 = vmatprep.subr.msk.mxu1 %vm482_vm2, %v430_v51  ;;  %v878_v53 = vpop.permute.xlu1 %877  ;;  %v876_v54 = vpop.permute.xlu0 %875  ;;  %v18607_v49 = vrot.slane %v18504_v59, %v18396_v12 }
  0xaa   : > { %16327 = vmatpush1.msk.msra.mxu1 %vm482_vm2, %v429_v50  ;;  %v886_v55 = vsel %vm883_vm4, %v876_v54, %v878_v53  ;;  %26447 = vst [vmem:[#allocation21_spill] sm:$0xff] %v18564_v34  ;;  %2654 = vperm.xlu0 %18066, %v373_v29   ;;  %v18592_v45 = vcombine.low %v18561_v33, %v18564_v34  ;;  %26451 = vst [vmem:[#allocation25_spill] sm:$0xff] %v18596_v46 }
  0xab   : > { %16312 = vmatmul.mubr.msk.f32.gmra.mrb[4].mxu0 %vm469_vm3, %v16269_v52  ;;  %16318 = vmatmul.mubr.msk.f32.gmra.mrb[4].mxu1 %vm469_vm3, %v16269_v52  ;;  %v910_v56 = vmul.f32 %v18472_v48, %v886_v55  ;;  %26452 = vst [vmem:[#allocation26_spill] sm:$0xff] %v18607_v49  ;;  %v18611_v50 = vrot.slane %v18504_v59, %v18398_v13  ;;  %v16271_v55 = vld [vmem:[%s25899_s3 + $0x40] sm:$0xff] }
  0xac   : > { %577 = vmatprep.mubr.f32.mxu0 %v25904_v6  ;;  %666 = vmatprep.mubr.f32.mxu1 %v25904_v6  ;;  %26450 = vst [vmem:[#allocation24_spill] sm:$0xff] %v18592_v45 }
  0xad   : > { %v882_v60 = vpop.permute.xlu1 %881  ;;  %v880_v62 = vpop.permute.xlu0 %879  ;;  %16332 = vmatprep.subr.msk.mxu0 %vm482_vm2, %v910_v56  ;;  %2664 = vperm.xlu1 %18067, %v375_v41   ;;  %26453 = vst [vmem:[#allocation27_spill] sm:$0xff] %v18611_v50 }
  0xae   : > { %v887_v0 = vsel %vm883_vm4, %v882_v60, %v876_v54  ;;  %v884_v1 = vsel %vm883_vm4, %v880_v62, %v882_v60  ;;  %v885_v4 = vsel %vm883_vm4, %v878_v53, %v880_v62  ;;  %2669 = vperm.xlu0 %18066, %v376_v43   ;;  %v1408_v53 = vmul.f32 %v18592_v45, %v18334_v3 }
  0xaf   : > { %16313 = vmatmul.mubr.msk.f32.gmra.mrb[6].mxu0 %vm469_vm3, %v16270_v58  ;;  %16319 = vmatmul.mubr.msk.f32.gmra.mrb[6].mxu1 %vm469_vm3, %v16270_v58  ;;  %v912_v5 = vmul.f32 %v18494_v57, %v884_v1  ;;  %v909_v15 = vmul.f32 %v18507_v61, %v887_v0  ;;  %v911_v16 = vmul.f32 %v18510_v63, %v885_v4  ;;  %v16273_v0 = vld [vmem:[%s25899_s3 + $0x50] sm:$0xff]  ;;  %v16274_v4 = vld [vmem:[%s25899_s3 + $0x58] sm:$0xff] }
  0xb0   : > { %761 = vmatprep.mubr.f32.mxu0 %v25904_v6  ;;  %850 = vmatprep.mubr.f32.mxu1 %v25904_v6  ;;  %v1409_v54 = vmul.f32 %v18596_v46, %v18332_v2  ;;  %v1412_v3 = vcombine.high %v1408_v53, %v1408_v53  ;;  %v16272_v2 = vld [vmem:[%s25899_s3 + $0x48] sm:$0xff]  ;;  %v16263_v1 = vld [vmem:[%s25898_s2 + $0x14] sm:$0xf] }
  0xb1   : > { %16338 = vmatprep.subr.msk.mxu1 %vm482_vm2, %v912_v5  ;;  %v1134_v17 = vpop.permute.xlu1 %1133  ;;  %v1132_v22 = vpop.permute.xlu0 %1131 }
  0xb2   : > { %v1142_v25 = vsel %vm1139_vm5, %v1132_v22, %v1134_v17  ;;  %v1413_v59 = vcombine.high %v1409_v54, %v1409_v54 }
  0xb3   : > { %16322 = vmatmul.mubr.msk.f32.vlgmr.msra.gmra.mrb[0].mxu0 %vm469_vm3, %v312_v14  ;;  %16328 = vmatmul.mubr.msk.f32.vlgmr.msra.gmra.mrb[0].mxu1 %vm469_vm3, %v312_v14  ;;  %v1166_v27 = vmul.f32 %v18525_v7, %v1142_v25  ;;  %v18660_v14 = vrot.slane %v16263_v1, %v18392_v10 }
  0xb4   : > { %767 = vmatprep.mubr.f32.mxu0 %v25904_v6  ;;  %856 = vmatprep.mubr.f32.mxu1 %v25904_v6 }
  0xb5   : > { %16339 = vmatpush1.msk.msra.mxu1 %vm482_vm2, %v911_v16  ;;  %16333 = vmatpush1.msk.msra.mxu0 %vm482_vm2, %v909_v15  ;;  %v1138_v31 = vpop.permute.xlu1 %1137  ;;  %v1136_v32 = vpop.permute.xlu0 %1135  ;;  %26454 = vst [vmem:[#allocation28_spill] sm:$0xff] %v18660_v14  ;;  %v18663_v15 = vrot.slane %v16263_v1, %v18394_v11 }
  0xb6   : > { %v1140_v35 = vsel %vm1139_vm5, %v1136_v32, %v1138_v31  ;;  %16344 = vmatprep.subr.msk.mxu0 %vm482_vm2, %v1166_v27  ;;  %v1143_v51 = vsel %vm1139_vm5, %v1138_v31, %v1132_v22  ;;  %v1141_v52 = vsel %vm1139_vm5, %v1134_v17, %v1136_v32  ;;  %v16275_v22 = vld [vmem:[%s25899_s3 + $0x60] sm:$0xff]  ;;  %v16264_v31 = vld [vmem:[%s25898_s2 + $0x18] sm:$0xf]  ;;  %v18703_v32 = vrot.slane %v16263_v1, %v18396_v12 }
  0xb7   : > { %16323 = vmatmul.mubr.msk.f32.gmra.mrb[2].mxu0 %vm469_vm3, %v313_v30  ;;  %16329 = vmatmul.mubr.msk.f32.gmra.mrb[2].mxu1 %vm469_vm3, %v313_v30  ;;  %v1168_v42 = vmul.f32 %v18548_v28, %v1140_v35  ;;  %v1165_v56 = vmul.f32 %v18607_v49, %v1143_v51  ;;  %v1167_v58 = vmul.f32 %v18611_v50, %v1141_v52  ;;  %v16277_v30 = vld [vmem:[%s25899_s3 + $0x70] sm:$0xff]  ;;  %v16278_v35 = vld [vmem:[%s25899_s3 + $0x78] sm:$0xff] }
  0xb8   : > { %773 = vmatprep.mubr.f32.mxu0 %v25904_v6  ;;  %862 = vmatprep.mubr.f32.mxu1 %v25904_v6  ;;  %26455 = vst [vmem:[#allocation29_spill] sm:$0xff] %v18663_v15  ;;  %26456 = vst [vmem:[#allocation30_spill] sm:$0xff] %v18703_v32  ;;  %v18718_v51 = vrot.slane %v16264_v31, %v18392_v10  ;;  %v18721_v52 = vrot.slane %v16264_v31, %v18394_v11 }
  0xb9   : > { %16350 = vmatprep.subr.msk.mxu1 %vm482_vm2, %v1168_v42  ;;  %v1629_v60 = vpop.permute.xlu0 %1628  ;;  %v1631_v62 = vpop.permute.xlu1 %1630 }
  0xba   : > { %v1639_v43 = vsel %vm1636_vm6, %v1629_v60, %v1631_v62  ;;  %26458 = vst [vmem:[#allocation32_spill] sm:$0xff] %v18718_v51  ;;  %26459 = vst [vmem:[#allocation33_spill] sm:$0xff] %v18721_v52 }
  0xbb   : > { %16324 = vmatmul.mubr.msk.f32.gmra.mrb[4].mxu0 %vm469_vm3, %v314_v44  ;;  %16330 = vmatmul.mubr.msk.f32.gmra.mrb[4].mxu1 %vm469_vm3, %v314_v44  ;;  %v18713_v44 = vrot.slane %v16263_v1, %v18398_v13  ;;  %v16265_v1 = vld [vmem:[%s25898_s2 + $0x1c] sm:$0xf] }
  0xbc   : > { %779 = vmatprep.mubr.f32.mxu0 %v25904_v6  ;;  %868 = vmatprep.mubr.f32.mxu1 %v25904_v6 }
  0xbd   : > { %v1633_v5 = vpop.permute.xlu0 %1632  ;;  %v1635_v8 = vpop.permute.xlu1 %1634  ;;  %26457 = vst [vmem:[#allocation31_spill] sm:$0xff] %v18713_v44 }
  0xbe   : > { %v1638_v16 = vsel %vm1636_vm6, %v1631_v62, %v1633_v5  ;;  %v1640_v17 = vsel %vm1636_vm6, %v1635_v8, %v1629_v60 }
  0xbf   : > { %16325 = vmatmul.mubr.msk.f32.gmra.mrb[6].mxu0 %vm469_vm3, %v315_v47  ;;  %16331 = vmatmul.mubr.msk.f32.gmra.mrb[6].mxu1 %vm469_vm3, %v315_v47  ;;  %v1663_v23 = vmul.f32 %v18660_v14, %v1638_v16  ;;  %v1665_v25 = vmul.f32 %v18663_v15, %v1640_v17  ;;  %v1637_v47 = vsel %vm1636_vm6, %v1633_v5, %v1635_v8  ;;  %v16282_v5 = vld [vmem:[%s25899_s3 + $0x98] sm:$0xff] }
  0xc0   : > { %1001 = vmatprep.mubr.f32.mxu0 %v25904_v6  ;;  %1090 = vmatprep.mubr.f32.mxu1 %v25904_v6 }
  0xc1   : > { %v1885_v27 = vpop.permute.xlu0 %1884  ;;  %v1887_v29 = vpop.permute.xlu1 %1886 }
  0xc2   : > { %v1895_v17 = vsel %vm1892_vm7, %v1885_v27, %v1887_v29 }
  0xc3   : > { %16334 = vmatmul.mubr.msk.f32.vlgmr.msra.gmra.mrb[0].mxu0 %vm469_vm3, %v16271_v55  ;;  %16340 = vmatmul.mubr.msk.f32.vlgmr.msra.gmra.mrb[0].mxu1 %vm469_vm3, %v16271_v55  ;;  %v1662_v55 = vmul.f32 %v18703_v32, %v1639_v43  ;;  %v16284_v43 = vld [vmem:[%s25899_s3 + $0xa8] sm:$0xff] }
  0xc4   : > { %1007 = vmatprep.mubr.f32.mxu0 %v25904_v6  ;;  %1096 = vmatprep.mubr.f32.mxu1 %v25904_v6 }
  0xc5   : > { %16351 = vmatpush1.msk.msra.mxu1 %vm482_vm2, %v1167_v58  ;;  %16345 = vmatpush1.msk.msra.mxu0 %vm482_vm2, %v1165_v56  ;;  %v1889_v41 = vpop.permute.xlu0 %1888  ;;  %v1891_v42 = vpop.permute.xlu1 %1890  ;;  %v16279_v56 = vld [vmem:[%s25899_s3 + $0x80] sm:$0xff]  ;;  %v1664_v58 = vmul.f32 %v18713_v44, %v1637_v47 }
  0xc6   : > { %16356 = vmatprep.subr.msk.mxu0 %vm482_vm2, %v1412_v3  ;;  %16362 = vmatprep.subr.msk.mxu1 %vm482_vm2, %v1413_v59 }
  0xc7   : > { %16335 = vmatmul.mubr.msk.f32.gmra.mrb[2].mxu0 %vm469_vm3, %v16272_v2  ;;  %16341 = vmatmul.mubr.msk.f32.gmra.mrb[2].mxu1 %vm469_vm3, %v16272_v2  ;;  %v16280_v2 = vld [vmem:[%s25899_s3 + $0x88] sm:$0xff] }
  0xc8   : > { %1013 = vmatprep.mubr.f32.mxu0 %v25904_v6  ;;  %1102 = vmatprep.mubr.f32.mxu1 %v25904_v6 }
  0xc9   : > { %v2141_v60 = vpop.permute.xlu0 %2140  ;;  %v2143_v62 = vpop.permute.xlu1 %2142 }
  0xcb   : > { %16336 = vmatmul.mubr.msk.f32.gmra.mrb[4].mxu0 %vm469_vm3, %v16273_v0  ;;  %16342 = vmatmul.mubr.msk.f32.gmra.mrb[4].mxu1 %vm469_vm3, %v16273_v0  ;;  %v16281_v0 = vld [vmem:[%s25899_s3 + $0x90] sm:$0xff] }
  0xcc   : > { %1019 = vmatprep.mubr.f32.mxu0 %v25904_v6  ;;  %1108 = vmatprep.mubr.f32.mxu1 %v25904_v6 }
  0xcd   : > { %v2145_v8 = vpop.permute.xlu0 %2144  ;;  %v2147_v16 = vpop.permute.xlu1 %2146 }
  0xcf   : > { %16337 = vmatmul.mubr.msk.f32.gmra.mrb[6].mxu0 %vm469_vm3, %v16274_v4  ;;  %16343 = vmatmul.mubr.msk.f32.gmra.mrb[6].mxu1 %vm469_vm3, %v16274_v4  ;;  %v18763_v4 = vrot.slane %v16264_v31, %v18396_v12 }
  0xd0   : > { %1257 = vmatprep.mubr.f32.mxu0 %v25904_v6  ;;  %1346 = vmatprep.mubr.f32.mxu1 %v25904_v6 }
  0xd1   : > { %26460 = vst [vmem:[#allocation34_spill] sm:$0xff] %v18763_v4  ;;  %v2397_v47 = vpop.permute.xlu0 %2396 }
  0xd3   : > { %16346 = vmatmul.mubr.msk.f32.vlgmr.msra.gmra.mrb[0].mxu0 %vm469_vm3, %v16275_v22  ;;  %16352 = vmatmul.mubr.msk.f32.vlgmr.msra.gmra.mrb[0].mxu1 %vm469_vm3, %v16275_v22  ;;  %v18773_v22 = vrot.slane %v16264_v31, %v18398_v13  ;;  %v16283_v31 = vld [vmem:[%s25899_s3 + $0xa0] sm:$0xff] }
  0xd4   : > { %1263 = vmatprep.mubr.f32.mxu0 %v25904_v6  ;;  %1352 = vmatprep.mubr.f32.mxu1 %v25904_v6 }
  0xd5   : > { %16357 = vmatpush1.msk.msra.mxu0 %vm482_vm2, %v1408_v53  ;;  %16363 = vmatpush1.msk.msra.mxu1 %vm482_vm2, %v1409_v54  ;;  %v1894_v53 = vsel %vm1892_vm7, %v1887_v29, %v1889_v41  ;;  %v1896_v54 = vsel %vm1892_vm7, %v1891_v42, %v1885_v27  ;;  %26461 = vst [vmem:[#allocation35_spill] sm:$0xff] %v18773_v22 }
  0xd6   : > { %16368 = vmatprep.subr.msk.mxu0 %vm482_vm2, %v1663_v23  ;;  %16374 = vmatprep.subr.msk.mxu1 %vm482_vm2, %v1665_v25  ;;  %v1919_v3 = vmul.f32 %v18718_v51, %v1894_v53  ;;  %v1921_v59 = vmul.f32 %v18721_v52, %v1896_v54  ;;  %v1893_v23 = vsel %vm1892_vm7, %v1889_v41, %v1891_v42  ;;  %v2399_v53 = vpop.permute.xlu1 %2398  ;;  %v16285_v54 = vld [vmem:[%s25899_s3 + $0xb0] sm:$0xff] }
  0xd7   : > { %16347 = vmatmul.mubr.msk.f32.gmra.mrb[2].mxu0 %vm469_vm3, %v16276_v26  ;;  %16353 = vmatmul.mubr.msk.f32.gmra.mrb[2].mxu1 %vm469_vm3, %v16276_v26  ;;  %v18778_v25 = vrot.slane %v16265_v1, %v18392_v10  ;;  %v18781_v26 = vrot.slane %v16265_v1, %v18394_v11  ;;  %v2152_v27 = vsel %vm2148_vm8, %v2147_v16, %v2141_v60 }
  0xd8   : > { %1269 = vmatprep.mubr.f32.mxu0 %v25904_v6  ;;  %1358 = vmatprep.mubr.f32.mxu1 %v25904_v6  ;;  %v1918_v29 = vmul.f32 %v18763_v4, %v1895_v17 }
  0xd9   : > { %26462 = vst [vmem:[#allocation36_spill] sm:$0xff] %v18778_v25  ;;  %26463 = vst [vmem:[#allocation37_spill] sm:$0xff] %v18781_v26  ;;  %v2177_v42 = vmul.f32 %v18781_v26, %v2152_v27  ;;  %v16289_v27 = vld [vmem:[%s25899_s3 + $0xd0] sm:$0xff] }
  0xdb   : > { %16348 = vmatmul.mubr.msk.f32.gmra.mrb[4].mxu0 %vm469_vm3, %v16277_v30  ;;  %16354 = vmatmul.mubr.msk.f32.gmra.mrb[4].mxu1 %vm469_vm3, %v16277_v30  ;;  %v2150_v30 = vsel %vm2148_vm8, %v2143_v62, %v2145_v8 }
  0xdc   : > { %1275 = vmatprep.mubr.f32.mxu0 %v25904_v6  ;;  %1364 = vmatprep.mubr.f32.mxu1 %v25904_v6  ;;  %v2175_v41 = vmul.f32 %v18778_v25, %v2150_v30 }
  0xdf   : > { %16349 = vmatmul.mubr.msk.f32.gmra.mrb[6].mxu0 %vm469_vm3, %v16278_v35  ;;  %16355 = vmatmul.mubr.msk.f32.gmra.mrb[6].mxu1 %vm469_vm3, %v16278_v35  ;;  %v1920_v35 = vmul.f32 %v18773_v22, %v1893_v23 }
  0xe0   : > { %1498 = vmatprep.mubr.f32.mxu0 %v25904_v6  ;;  %1587 = vmatprep.mubr.f32.mxu1 %v25904_v6 }
  0xe3   : > { %16358 = vmatmul.mubr.msk.f32.vlgmr.msra.gmra.mrb[0].mxu0 %vm469_vm3, %v16279_v56  ;;  %16364 = vmatmul.mubr.msk.f32.vlgmr.msra.gmra.mrb[0].mxu1 %vm469_vm3, %v16279_v56  ;;  %v18823_v56 = vrot.slane %v16265_v1, %v18396_v12 }
  0xe4   : > { %16369 = vmatpush1.msk.msra.mxu0 %vm482_vm2, %v1662_v55  ;;  %1504 = vmatprep.mubr.f32.mxu0 %v25904_v6  ;;  %v16266_v55 = vld [vmem:[%s25898_s2 + $0x20] sm:$0xf] }
  0xe5   : > { %1593 = vmatprep.mubr.f32.mxu1 %v25904_v6  ;;  %16375 = vmatpush1.msk.msra.mxu1 %vm482_vm2, %v1664_v58  ;;  %26464 = vst [vmem:[#allocation38_spill] sm:$0xff] %v18823_v56  ;;  %v16286_v58 = vld [vmem:[%s25899_s3 + $0xb8] sm:$0xff]  ;;  %v18838_v17 = vrot.slane %v16266_v55, %v18392_v10  ;;  %v18841_v23 = vrot.slane %v16266_v55, %v18394_v11  ;;  %v16287_v10 = vld [vmem:[%s25899_s3 + $0xc0] sm:$0xff] }
  0xe6   : > { %16380 = vmatprep.subr.msk.mxu0 %vm482_vm2, %v1919_v3  ;;  %16386 = vmatprep.subr.msk.mxu1 %vm482_vm2, %v1921_v59  ;;  %v2401_v3 = vpop.permute.xlu0 %2400  ;;  %v2403_v59 = vpop.permute.xlu1 %2402 }
  0xe7   : > { %16359 = vmatmul.mubr.msk.f32.gmra.mrb[2].mxu0 %vm469_vm3, %v16280_v2  ;;  %16365 = vmatmul.mubr.msk.f32.gmra.mrb[2].mxu1 %vm469_vm3, %v16280_v2  ;;  %v2151_v2 = vsel %vm2148_vm8, %v2141_v60, %v2143_v62  ;;  %26466 = vst [vmem:[#allocation40_spill] sm:$0xff] %v18838_v17  ;;  %26467 = vst [vmem:[#allocation41_spill] sm:$0xff] %v18841_v23  ;;  %v2406_v30 = vsel %vm2404_vm9, %v2399_v53, %v2401_v3 }
  0xe8   : > { %1510 = vmatprep.mubr.f32.mxu0 %v25904_v6  ;;  %1599 = vmatprep.mubr.f32.mxu1 %v25904_v6  ;;  %v2408_v60 = vsel %vm2404_vm9, %v2403_v59, %v2397_v47  ;;  %v2174_v62 = vmul.f32 %v18823_v56, %v2151_v2 }
  0xeb   : > { %16360 = vmatmul.mubr.msk.f32.gmra.mrb[4].mxu0 %vm469_vm3, %v16281_v0  ;;  %16366 = vmatmul.mubr.msk.f32.gmra.mrb[4].mxu1 %vm469_vm3, %v16281_v0  ;;  %v18833_v0 = vrot.slane %v16265_v1, %v18398_v13  ;;  %v2431_v1 = vmul.f32 %v18838_v17, %v2406_v30 }
  0xec   : > { %1516 = vmatprep.mubr.f32.mxu0 %v25904_v6  ;;  %1605 = vmatprep.mubr.f32.mxu1 %v25904_v6 }
  0xed   : > { %26465 = vst [vmem:[#allocation39_spill] sm:$0xff] %v18833_v0 }
  0xef   : > { %16361 = vmatmul.mubr.msk.f32.gmra.mrb[6].mxu0 %vm469_vm3, %v16282_v5  ;;  %16367 = vmatmul.mubr.msk.f32.gmra.mrb[6].mxu1 %vm469_vm3, %v16282_v5  ;;  %v2149_v5 = vsel %vm2148_vm8, %v2145_v8, %v2147_v16  ;;  %v2433_v8 = vmul.f32 %v18841_v23, %v2408_v60  ;;  %v16288_v16 = vld [vmem:[%s25899_s3 + $0xc8] sm:$0xff] }
  0xf0   : > { %1754 = vmatprep.mubr.f32.mxu0 %v25904_v6  ;;  %1843 = vmatprep.mubr.f32.mxu1 %v25904_v6  ;;  %v2176_v11 = vmul.f32 %v18833_v0, %v2149_v5 }
  0xf3   : > { %16370 = vmatmul.mubr.msk.f32.vlgmr.msra.gmra.mrb[0].mxu0 %vm469_vm3, %v16283_v31  ;;  %16376 = vmatmul.mubr.msk.f32.vlgmr.msra.gmra.mrb[0].mxu1 %vm469_vm3, %v16283_v31  ;;  %v16290_v31 = vld [vmem:[%s25899_s3 + $0xd8] sm:$0xff] }
  0xf4   : > { %16381 = vmatpush1.msk.msra.mxu0 %vm482_vm2, %v1918_v29  ;;  %1760 = vmatprep.mubr.f32.mxu0 %v25904_v6  ;;  %v18879_v29 = vrot.slane %v16266_v55, %v18396_v12 }
  0xf5   : > { %1849 = vmatprep.mubr.f32.mxu1 %v25904_v6  ;;  %16387 = vmatpush1.msk.msra.mxu1 %vm482_vm2, %v1920_v35  ;;  %v2407_v35 = vsel %vm2404_vm9, %v2397_v47, %v2399_v53  ;;  %v16292_v47 = vld [vmem:[%s25899_s3 + $0xe8] sm:$0xff]  ;;  %v16293_v53 = vld [vmem:[%s25899_s3 + $0xf0] sm:$0xff] }
  0xf6   : > { %16392 = vmatprep.subr.msk.mxu0 %vm482_vm2, %v2175_v41  ;;  %16398 = vmatprep.subr.msk.mxu1 %vm482_vm2, %v2177_v42  ;;  %26468 = vst [vmem:[#allocation42_spill] sm:$0xff] %v18879_v29  ;;  %v18889_v41 = vrot.slane %v16266_v55, %v18398_v13  ;;  %v2405_v42 = vsel %vm2404_vm9, %v2401_v3, %v2403_v59  ;;  %v16295_v55 = vld [vmem:[%s25899_s3 + $0x100] sm:$0xff]  ;;  %v16297_v3 = vld [vmem:[%s25899_s3 + $0x110] sm:$0xff]  ;;  %v16298_v59 = vld [vmem:[%s25899_s3 + $0x118] sm:$0xff] }
  0xf7   : > { %16371 = vmatmul.mubr.msk.f32.gmra.mrb[2].mxu0 %vm469_vm3, %v16284_v43  ;;  %16377 = vmatmul.mubr.msk.f32.gmra.mrb[2].mxu1 %vm469_vm3, %v16284_v43  ;;  %v2430_v12 = vmul.f32 %v18879_v29, %v2407_v35  ;;  %v16291_v43 = vld [vmem:[%s25899_s3 + $0xe0] sm:$0xff] }
  0xf8   : > { %1766 = vmatprep.mubr.f32.mxu0 %v25904_v6  ;;  %1855 = vmatprep.mubr.f32.mxu1 %v25904_v6  ;;  %26469 = vst [vmem:[#allocation43_spill] sm:$0xff] %v18889_v41  ;;  %v2432_v13 = vmul.f32 %v18889_v41, %v2405_v42 }
  0xfb   : > { %16372 = vmatmul.mubr.msk.f32.gmra.mrb[4].mxu0 %vm469_vm3, %v16285_v54  ;;  %16378 = vmatmul.mubr.msk.f32.gmra.mrb[4].mxu1 %vm469_vm3, %v16285_v54  ;;  %v16294_v54 = vld [vmem:[%s25899_s3 + $0xf8] sm:$0xff] }
  0xfc   : > { %1772 = vmatprep.mubr.f32.mxu0 %v25904_v6  ;;  %1861 = vmatprep.mubr.f32.mxu1 %v25904_v6 }
  0xff   : > { %16373 = vmatmul.mubr.msk.f32.gmra.mrb[6].mxu0 %vm469_vm3, %v16286_v58  ;;  %16379 = vmatmul.mubr.msk.f32.gmra.mrb[6].mxu1 %vm469_vm3, %v16286_v58  ;;  %v16296_v58 = vld [vmem:[%s25899_s3 + $0x108] sm:$0xff] }
 0x100   : > { %2010 = vmatprep.mubr.f32.mxu0 %v25904_v6  ;;  %2099 = vmatprep.mubr.f32.mxu1 %v25904_v6 }
 0x103   : > { %16382 = vmatmul.mubr.msk.f32.vlgmr.msra.gmra.mrb[0].mxu0 %vm469_vm3, %v16287_v10  ;;  %16388 = vmatmul.mubr.msk.f32.vlgmr.msra.gmra.mrb[0].mxu1 %vm469_vm3, %v16287_v10 }
 0x104   : > { %16393 = vmatpush1.msk.msra.mxu0 %vm482_vm2, %v2174_v62  ;;  %2016 = vmatprep.mubr.f32.mxu0 %v25904_v6 }
 0x105   : > { %2105 = vmatprep.mubr.f32.mxu1 %v25904_v6  ;;  %16399 = vmatpush1.msk.msra.mxu1 %vm482_vm2, %v2176_v11 }
 0x106   : > { %16404 = vmatprep.subr.msk.mxu0 %vm482_vm2, %v2431_v1  ;;  %16410 = vmatprep.subr.msk.mxu1 %vm482_vm2, %v2433_v8 }
 0x107   : > { %16383 = vmatmul.mubr.msk.f32.gmra.mrb[2].mxu0 %vm469_vm3, %v16288_v16  ;;  %16389 = vmatmul.mubr.msk.f32.gmra.mrb[2].mxu1 %vm469_vm3, %v16288_v16 }
 0x108   : > { %2022 = vmatprep.mubr.f32.mxu0 %v25904_v6  ;;  %2111 = vmatprep.mubr.f32.mxu1 %v25904_v6 }
 0x10b   : > { %16384 = vmatmul.mubr.msk.f32.gmra.mrb[4].mxu0 %vm469_vm3, %v16289_v27  ;;  %16390 = vmatmul.mubr.msk.f32.gmra.mrb[4].mxu1 %vm469_vm3, %v16289_v27 }
 0x10c   : > { %2028 = vmatprep.mubr.f32.mxu0 %v25904_v6  ;;  %2117 = vmatprep.mubr.f32.mxu1 %v25904_v6 }
 0x10f   : > { %16385 = vmatmul.mubr.msk.f32.gmra.mrb[6].mxu0 %vm469_vm3, %v16290_v31  ;;  %16391 = vmatmul.mubr.msk.f32.gmra.mrb[6].mxu1 %vm469_vm3, %v16290_v31 }
 0x110   : > { %2266 = vmatprep.mubr.f32.mxu0 %v25904_v6  ;;  %2355 = vmatprep.mubr.f32.mxu1 %v25904_v6 }
 0x113   : > { %16394 = vmatmul.mubr.msk.f32.vlgmr.msra.gmra.mrb[0].mxu0 %vm469_vm3, %v16291_v43  ;;  %16400 = vmatmul.mubr.msk.f32.vlgmr.msra.gmra.mrb[0].mxu1 %vm469_vm3, %v16291_v43 }
 0x114   : > { %16405 = vmatpush1.msk.msra.mxu0 %vm482_vm2, %v2430_v12  ;;  %2272 = vmatprep.mubr.f32.mxu0 %v25904_v6 }
 0x115   : > { %2361 = vmatprep.mubr.f32.mxu1 %v25904_v6  ;;  %16411 = vmatpush1.msk.msra.mxu1 %vm482_vm2, %v2432_v13 }
 0x117   : > { %16395 = vmatmul.mubr.msk.f32.gmra.mrb[2].mxu0 %vm469_vm3, %v16292_v47  ;;  %16401 = vmatmul.mubr.msk.f32.gmra.mrb[2].mxu1 %vm469_vm3, %v16292_v47 }
 0x118   : > { %2278 = vmatprep.mubr.f32.mxu0 %v25904_v6  ;;  %2367 = vmatprep.mubr.f32.mxu1 %v25904_v6 }
 0x11b   : > { %16396 = vmatmul.mubr.msk.f32.gmra.mrb[4].mxu0 %vm469_vm3, %v16293_v53  ;;  %16402 = vmatmul.mubr.msk.f32.gmra.mrb[4].mxu1 %vm469_vm3, %v16293_v53 }
 0x11c   : > { %2284 = vmatprep.mubr.f32.mxu0 %v25904_v6  ;;  %2373 = vmatprep.mubr.f32.mxu1 %v25904_v6 }
 0x11f   : > { %16397 = vmatmul.mubr.msk.f32.gmra.mrb[6].mxu0 %vm469_vm3, %v16294_v54  ;;  %16403 = vmatmul.mubr.msk.f32.gmra.mrb[6].mxu1 %vm469_vm3, %v16294_v54 }
 0x120   : > { %2522 = vmatprep.mubr.f32.mxu0 %v25904_v6  ;;  %2611 = vmatprep.mubr.f32.mxu1 %v25904_v6 }
 0x123   : > { %16406 = vmatmul.mubr.msk.f32.vlgmr.msra.gmra.mrb[0].mxu0 %vm469_vm3, %v16295_v55  ;;  %16412 = vmatmul.mubr.msk.f32.vlgmr.msra.gmra.mrb[0].mxu1 %vm469_vm3, %v16295_v55 }
 0x124   : > { %2528 = vmatprep.mubr.f32.mxu0 %v25904_v6  ;;  %2617 = vmatprep.mubr.f32.mxu1 %v25904_v6 }
 0x125   : > { %v18960_v11 = vpop.permute.xlu1 %2659 }
 0x126   : > { %26471 = vst [vmem:[#allocation45_spill] sm:$0xff] %v18960_v11 }
 0x127   : > { %16407 = vmatmul.mubr.msk.f32.gmra.mrb[2].mxu0 %vm469_vm3, %v16296_v58  ;;  %16413 = vmatmul.mubr.msk.f32.gmra.mrb[2].mxu1 %vm469_vm3, %v16296_v58 }
 0x128   : > { %2534 = vmatprep.mubr.f32.mxu0 %v25904_v6  ;;  %2623 = vmatprep.mubr.f32.mxu1 %v25904_v6 }
 0x129   : > { %v18957_v2 = vpop.permute.xlu0 %2654 }
 0x12a   : > { %26470 = vst [vmem:[#allocation44_spill] sm:$0xff] %v18957_v2 }
 0x12b   : > { %16408 = vmatmul.mubr.msk.f32.gmra.mrb[4].mxu0 %vm469_vm3, %v16297_v3  ;;  %16414 = vmatmul.mubr.msk.f32.gmra.mrb[4].mxu1 %vm469_vm3, %v16297_v3 }
 0x12c   : > { %2540 = vmatprep.mubr.f32.mxu0 %v25904_v6  ;;  %2629 = vmatprep.mubr.f32.mxu1 %v25904_v6 }
 0x12f   : > { %16409 = vmatmul.mubr.msk.f32.gmra.mrb[6].mxu0 %vm469_vm3, %v16298_v59  ;;  %16415 = vmatmul.mubr.msk.f32.gmra.mrb[6].mxu1 %vm469_vm3, %v16298_v59 }
 0x130   : > { %2900 = vmatprep.mubr.f32.mxu0 %v25904_v6  ;;  %2971 = vmatprep.mubr.f32.mxu1 %v25904_v6 }
 0x1f6   : > { %v2524_v5 = vpop.f32.mrb[0].mxu0  ;;  %v2613_v30 = vpop.f32.mrb[0].mxu1 }
 0x1f7   : > { %v2672_v60 = vadd.f32 %v18957_v2, %v2524_v5  ;;  %v2526_v62 = vpop.f32.mrb[1].mxu0  ;;  %v2615_v10 = vpop.f32.mrb[1].mxu1  ;;  %v2674_v8 = vadd.f32 %v18957_v2, %v2613_v30 }
 0x1f8   : > { %v2675_v6 = vadd.f32 %v18957_v2, %v2615_v10 }
 0x1f9   : > { %v2688_v1 = vmax.f32 %v2672_v60, 0.0  ;;  %v2690_v43 = vmax.f32 %v2674_v8, 0.0 }
 0x1fa   : > { %v2530_v16 = vpop.f32.mrb[2].mxu0  ;;  %v2619_v27 = vpop.f32.mrb[2].mxu1 }
 0x1fb   : > { %v2676_v31 = vadd.f32 %v18960_v11, %v2530_v16  ;;  %v2678_v35 = vadd.f32 %v18960_v11, %v2619_v27  ;;  %v2621_v42 = vpop.f32.mrb[3].mxu1  ;;  %2768 = vrot.lane.b32.xlu1 %v2688_v1, %s18246_s18  ;;  %v2532_v12 = vpop.f32.mrb[3].mxu0  ;;  %v18977_v3 = vmul.f32 %v2688_v1, %v18561_v33  ;;  %v18985_v30 = vmul.f32 %v2690_v43, %v18570_v36 }
 0x1fc   : > { %v2677_v46 = vadd.f32 %v18960_v11, %v2532_v12  ;;  %v2679_v45 = vadd.f32 %v18960_v11, %v2621_v42 }
 0x1fd   : > { %v2692_v13 = vmax.f32 %v2676_v31, 0.0  ;;  %v2694_v47 = vmax.f32 %v2678_v35, 0.0  ;;  %26472 = vst [vmem:[#allocation46_spill] sm:$0xff] %v18977_v3  ;;  %26474 = vst [vmem:[#allocation48_spill] sm:$0xff] %v18985_v30  ;;  %v2673_v35 = vadd.f32 %v18957_v2, %v2526_v62 }
 0x1fe   : > { %v18966_v53 = vpop.f32.mrb[4].mxu0  ;;  %v18968_v54 = vpop.f32.mrb[4].mxu1  ;;  %v19039_v62 = vmax.f32 %v2677_v46, 0.0  ;;  %v19045_v10 = vmax.f32 %v2679_v45, 0.0 }
 0x1ff   : > { %v18970_v55 = vpop.f32.mrb[5].mxu1  ;;  %2784 = vrot.lane.b32.xlu1 %v2690_v43, %s18246_s18  ;;  %2770 = vrot.lane.b32.xlu0 %v2692_v13, %s18246_s18  ;;  %v18974_v58 = vpop.f32.mrb[5].mxu0  ;;  %v18980_v59 = vmul.f32 %v2692_v13, %v18561_v33  ;;  %v18988_v60 = vmul.f32 %v2694_v47, %v18570_v36  ;;  %v19029_v5 = vmax.f32 %v2673_v35, 0.0 }
 0x200   : > { %v19093_v45 = vpop.permute.xlu0 %2669 }
 0x201   : > { %26473 = vst [vmem:[#allocation47_spill] sm:$0xff] %v18980_v59  ;;  %26475 = vst [vmem:[#allocation49_spill] sm:$0xff] %v18988_v60 }
 0x202   : > { %v18990_v8 = vpop.f32.mrb[6].mxu0  ;;  %v18992_v16 = vpop.f32.mrb[6].mxu1  ;;  %26477 = vst [vmem:[#allocation51_spill] sm:$0xff] %v19093_v45 }
 0x203   : > { %v18994_v27 = vpop.f32.mrb[7].mxu1  ;;  %2704 = vrot.lane.b32.xlu1 %v2688_v1, %s18248_s19  ;;  %2786 = vrot.lane.b32.xlu0 %v2694_v47, %s18246_s18  ;;  %v18998_v31 = vpop.f32.mrb[7].mxu0  ;;  %v2684_v2 = vadd.f32 %v19093_v45, %v18990_v8 }
 0x207   : > { %2720 = vrot.lane.b32.xlu1 %v2690_v43, %s18248_s19  ;;  %2706 = vrot.lane.b32.xlu0 %v2692_v13, %s18248_s19 }
 0x20b   : > { %3123 = vrot.lane.b32.xlu1 %v2688_v1, %s18249_s20  ;;  %2722 = vrot.lane.b32.xlu0 %v2694_v47, %s18248_s19 }
 0x20f   : > { %3139 = vrot.lane.b32.xlu1 %v2690_v43, %s18249_s20  ;;  %3125 = vrot.lane.b32.xlu0 %v2692_v13, %s18249_s20 }
 0x213   : > { %3336 = vrot.lane.b32.xlu1 %v2688_v1, %s18250_s21  ;;  %3141 = vrot.lane.b32.xlu0 %v2694_v47, %s18249_s20 }
 0x217   : > { %3352 = vrot.lane.b32.xlu1 %v2690_v43, %s18250_s21  ;;  %3338 = vrot.lane.b32.xlu0 %v2692_v13, %s18250_s21 }
 0x21b   : > { %3718 = vrot.lane.b32.xlu1 %v2688_v1, %s18251_s22  ;;  %3354 = vrot.lane.b32.xlu0 %v2694_v47, %s18250_s21 }
 0x21f   : > { %3734 = vrot.lane.b32.xlu1 %v2690_v43, %s18251_s22  ;;  %3720 = vrot.lane.b32.xlu0 %v2692_v13, %s18251_s22 }
 0x223   : > { %3931 = vrot.lane.b32.xlu1 %v2688_v1, %s18252_s23  ;;  %3736 = vrot.lane.b32.xlu0 %v2694_v47, %s18251_s22 }
 0x227   : > { %3947 = vrot.lane.b32.xlu1 %v2690_v43, %s18252_s23  ;;  %3933 = vrot.lane.b32.xlu0 %v2692_v13, %s18252_s23 }
 0x22b   : > { %4144 = vrot.lane.b32.xlu1 %v2688_v1, %s18253_s24  ;;  %3949 = vrot.lane.b32.xlu0 %v2694_v47, %s18252_s23 }
 0x22f   : > { %4160 = vrot.lane.b32.xlu1 %v2690_v43, %s18253_s24  ;;  %4146 = vrot.lane.b32.xlu0 %v2692_v13, %s18253_s24 }
 0x233   : > { %4357 = vrot.lane.b32.xlu1 %v2688_v1, %s18254_s25  ;;  %4162 = vrot.lane.b32.xlu0 %v2694_v47, %s18253_s24  ;;  %v19036_v1 = vmax.f32 %v2675_v6, 0.0  ;;  %v19087_v6 = vpop.permute.xlu1 %2664 }
 0x234   : > { %26476 = vst [vmem:[#allocation50_spill] sm:$0xff] %v19087_v6  ;;  %v2682_v11 = vadd.f32 %v19087_v6, %v18968_v54  ;;  %v2686_v54 = vadd.f32 %v19093_v45, %v18992_v16 }
 0x236   : > { %v19133_v41 = vmax.f32 %v2682_v11, 0.0  ;;  %v19147_v29 = vmax.f32 %v2686_v54, 0.0 }
 0x237   : > { %4373 = vrot.lane.b32.xlu1 %v2690_v43, %s18254_s25  ;;  %4359 = vrot.lane.b32.xlu0 %v2692_v13, %s18254_s25  ;;  %v2680_v43 = vadd.f32 %v19087_v6, %v18966_v53 }
 0x239   : > { %v19119_v35 = vmax.f32 %v2680_v43, 0.0  ;;  %v19135_v43 = vmax.f32 %v2684_v2, 0.0 }
 0x23b   : > { %2776 = vrot.lane.b32.xlu1 %v19029_v5, %s18246_s18  ;;  %4375 = vrot.lane.b32.xlu0 %v2694_v47, %s18254_s25 }
 0x23f   : > { %2792 = vrot.lane.b32.xlu1 %v19036_v1, %s18246_s18  ;;  %2778 = vrot.lane.b32.xlu0 %v19039_v62, %s18246_s18 }
 0x243   : > { %2712 = vrot.lane.b32.xlu1 %v19029_v5, %s18248_s19  ;;  %2794 = vrot.lane.b32.xlu0 %v19045_v10, %s18246_s18 }
 0x247   : > { %2728 = vrot.lane.b32.xlu1 %v19036_v1, %s18248_s19  ;;  %2714 = vrot.lane.b32.xlu0 %v19039_v62, %s18248_s19 }
 0x24b   : > { %3131 = vrot.lane.b32.xlu1 %v19029_v5, %s18249_s20  ;;  %2730 = vrot.lane.b32.xlu0 %v19045_v10, %s18248_s19 }
 0x24f   : > { %3147 = vrot.lane.b32.xlu1 %v19036_v1, %s18249_s20  ;;  %3133 = vrot.lane.b32.xlu0 %v19039_v62, %s18249_s20 }
 0x253   : > { %3344 = vrot.lane.b32.xlu1 %v19029_v5, %s18250_s21  ;;  %3149 = vrot.lane.b32.xlu0 %v19045_v10, %s18249_s20 }
 0x257   : > { %3360 = vrot.lane.b32.xlu1 %v19036_v1, %s18250_s21  ;;  %3346 = vrot.lane.b32.xlu0 %v19039_v62, %s18250_s21 }
 0x25b   : > { %3726 = vrot.lane.b32.xlu1 %v19029_v5, %s18251_s22  ;;  %3362 = vrot.lane.b32.xlu0 %v19045_v10, %s18250_s21 }
 0x25f   : > { %3742 = vrot.lane.b32.xlu1 %v19036_v1, %s18251_s22  ;;  %3728 = vrot.lane.b32.xlu0 %v19039_v62, %s18251_s22 }
 0x263   : > { %3939 = vrot.lane.b32.xlu1 %v19029_v5, %s18252_s23  ;;  %3744 = vrot.lane.b32.xlu0 %v19045_v10, %s18251_s22 }
 0x267   : > { %3955 = vrot.lane.b32.xlu1 %v19036_v1, %s18252_s23  ;;  %3941 = vrot.lane.b32.xlu0 %v19039_v62, %s18252_s23 }
 0x26b   : > { %4152 = vrot.lane.b32.xlu1 %v19029_v5, %s18253_s24  ;;  %3957 = vrot.lane.b32.xlu0 %v19045_v10, %s18252_s23 }
 0x26d   : > { %v19095_v46 = vpop.permute.xlu1 %2768 }
 0x26f   : > { %4168 = vrot.lane.b32.xlu1 %v19036_v1, %s18253_s24  ;;  %4154 = vrot.lane.b32.xlu0 %v19039_v62, %s18253_s24 }
 0x271   : > { %v19101_v42 = vpop.permute.xlu1 %2784  ;;  %v19103_v12 = vpop.permute.xlu0 %2770 }
 0x273   : > { %4365 = vrot.lane.b32.xlu1 %v19029_v5, %s18254_s25  ;;  %4170 = vrot.lane.b32.xlu0 %v19045_v10, %s18253_s24 }
 0x275   : > { %v19111_v13 = vpop.permute.xlu1 %2704  ;;  %v19113_v47 = vpop.permute.xlu0 %2786 }
 0x277   : > { %4381 = vrot.lane.b32.xlu1 %v19036_v1, %s18254_s25  ;;  %4367 = vrot.lane.b32.xlu0 %v19039_v62, %s18254_s25 }
 0x279   : > { %v19125_v23 = vpop.permute.xlu1 %2720  ;;  %v19127_v53 = vpop.permute.xlu0 %2706 }
 0x27b   : > { %4383 = vrot.lane.b32.xlu0 %v19045_v10, %s18254_s25  ;;  %2772 = vrot.lane.b32.xlu1 %v19119_v35, %s18246_s18 }
 0x27d   : > { %v19139_v17 = vpop.permute.xlu1 %3123  ;;  %v19141_v8 = vpop.permute.xlu0 %2722 }
 0x27f   : > { %2788 = vrot.lane.b32.xlu1 %v19133_v41, %s18246_s18  ;;  %2774 = vrot.lane.b32.xlu0 %v19135_v43, %s18246_s18 }
 0x281   : > { %v19149_v26 = vpop.permute.xlu1 %3139  ;;  %v19151_v11 = vpop.permute.xlu0 %3125 }
 0x283   : > { %2708 = vrot.lane.b32.xlu1 %v19119_v35, %s18248_s19  ;;  %2790 = vrot.lane.b32.xlu0 %v19147_v29, %s18246_s18 }
 0x285   : > { %v19157_v2 = vpop.permute.xlu1 %3336  ;;  %v19159_v16 = vpop.permute.xlu0 %3141 }
 0x287   : > { %2724 = vrot.lane.b32.xlu1 %v19133_v41, %s18248_s19  ;;  %2710 = vrot.lane.b32.xlu0 %v19135_v43, %s18248_s19 }
 0x289   : > { %v19165_v54 = vpop.permute.xlu1 %3352  ;;  %v19167_v0 = vpop.permute.xlu0 %3338 }
 0x28b   : > { %3127 = vrot.lane.b32.xlu1 %v19119_v35, %s18249_s20  ;;  %2726 = vrot.lane.b32.xlu0 %v19147_v29, %s18248_s19 }
 0x28d   : > { %v19173_v30 = vpop.permute.xlu1 %3718  ;;  %v19175_v60 = vpop.permute.xlu0 %3354 }
 0x28e   : > { %26478 = vst [vmem:[#allocation52_spill] sm:$0xff] %v19173_v30 }
 0x28f   : > { %3143 = vrot.lane.b32.xlu1 %v19133_v41, %s18249_s20  ;;  %3129 = vrot.lane.b32.xlu0 %v19135_v43, %s18249_s20 }
 0x291   : > { %v19181_v3 = vpop.permute.xlu1 %3734  ;;  %v19183_v59 = vpop.permute.xlu0 %3720 }
 0x292   : > { %26479 = vst [vmem:[#allocation53_spill] sm:$0xff] %v19181_v3  ;;  %26480 = vst [vmem:[#allocation54_spill] sm:$0xff] %v19183_v59 }
 0x293   : > { %3340 = vrot.lane.b32.xlu1 %v19119_v35, %s18250_s21  ;;  %3145 = vrot.lane.b32.xlu0 %v19147_v29, %s18249_s20 }
 0x295   : > { %v19189_v25 = vpop.permute.xlu1 %3931  ;;  %v19191_v56 = vpop.permute.xlu0 %3736 }
 0x296   : > { %26481 = vst [vmem:[#allocation55_spill] sm:$0xff] %v19189_v25  ;;  %26482 = vst [vmem:[#allocation56_spill] sm:$0xff] %v19191_v56 }
 0x297   : > { %3356 = vrot.lane.b32.xlu1 %v19133_v41, %s18250_s21  ;;  %3342 = vrot.lane.b32.xlu0 %v19135_v43, %s18250_s21 }
 0x299   : > { %v19197_v52 = vpop.permute.xlu1 %3947  ;;  %v19199_v22 = vpop.permute.xlu0 %3933 }
 0x29a   : > { %26483 = vst [vmem:[#allocation57_spill] sm:$0xff] %v19197_v52  ;;  %26484 = vst [vmem:[#allocation58_spill] sm:$0xff] %v19199_v22 }
 0x29b   : > { %3722 = vrot.lane.b32.xlu1 %v19119_v35, %s18251_s22  ;;  %3358 = vrot.lane.b32.xlu0 %v19147_v29, %s18250_s21 }
 0x29d   : > { %v19205_v51 = vpop.permute.xlu1 %4144  ;;  %v19207_v4 = vpop.permute.xlu0 %3949 }
 0x29e   : > { %26485 = vst [vmem:[#allocation59_spill] sm:$0xff] %v19205_v51  ;;  %26486 = vst [vmem:[#allocation60_spill] sm:$0xff] %v19207_v4 }
 0x29f   : > { %3738 = vrot.lane.b32.xlu1 %v19133_v41, %s18251_s22  ;;  %3724 = vrot.lane.b32.xlu0 %v19135_v43, %s18251_s22 }
 0x2a1   : > { %v19213_v25 = vpop.permute.xlu1 %4160  ;;  %v19215_v52 = vpop.permute.xlu0 %4146 }
 0x2a2   : > { %26487 = vst [vmem:[#allocation61_spill] sm:$0xff] %v19213_v25  ;;  %26488 = vst [vmem:[#allocation62_spill] sm:$0xff] %v19215_v52 }
 0x2a3   : > { %3935 = vrot.lane.b32.xlu1 %v19119_v35, %s18252_s23  ;;  %3740 = vrot.lane.b32.xlu0 %v19147_v29, %s18251_s22 }
 0x2a5   : > { %v19221_v22 = vpop.permute.xlu1 %4357  ;;  %v19223_v51 = vpop.permute.xlu0 %4162 }
 0x2a6   : > { %26489 = vst [vmem:[#allocation63_spill] sm:$0xff] %v19221_v22  ;;  %26490 = vst [vmem:[#allocation64_spill] sm:$0xff] %v19223_v51  ;;  %v2681_v22 = vadd.f32 %v19087_v6, %v18974_v58  ;;  %v2685_v58 = vadd.f32 %v19093_v45, %v18998_v31  ;;  %v2687_v31 = vadd.f32 %v19093_v45, %v18994_v27 }
 0x2a7   : > { %3951 = vrot.lane.b32.xlu1 %v19133_v41, %s18252_s23  ;;  %3937 = vrot.lane.b32.xlu0 %v19135_v43, %s18252_s23 }
 0x2a8   : > { %v19250_v15 = vmax.f32 %v2681_v22, 0.0 }
 0x2a9   : > { %v19229_v4 = vpop.permute.xlu1 %4373  ;;  %v19231_v25 = vpop.permute.xlu0 %4359 }
 0x2aa   : > { %26491 = vst [vmem:[#allocation65_spill] sm:$0xff] %v19229_v4  ;;  %26492 = vst [vmem:[#allocation66_spill] sm:$0xff] %v19231_v25  ;;  %v2683_v4 = vadd.f32 %v19087_v6, %v18970_v55 }
 0x2ab   : > { %4148 = vrot.lane.b32.xlu1 %v19119_v35, %s18253_s24  ;;  %3953 = vrot.lane.b32.xlu0 %v19147_v29, %s18252_s23 }
 0x2ad   : > { %v2777_v51 = vpop.permute.xlu1 %2776  ;;  %v19239_v52 = vpop.permute.xlu0 %4375 }
 0x2ae   : > { %26493 = vst [vmem:[#allocation67_spill] sm:$0xff] %v19239_v52  ;;  %v2808_v25 = vsel %vm439_vm0, %v19095_v46, %v2777_v51 }
 0x2af   : > { %4164 = vrot.lane.b32.xlu1 %v19133_v41, %s18253_s24  ;;  %4150 = vrot.lane.b32.xlu0 %v19135_v43, %s18253_s24  ;;  %v2817_v59 = vmul.f32 %v2808_v25, %v18408_v18  ;;  %v19272_v25 = vmax.f32 %v2683_v4, 0.0 }
 0x2b1   : > { %v2793_v44 = vpop.permute.xlu1 %2792  ;;  %v2779_v52 = vpop.permute.xlu0 %2778 }
 0x2b2   : > { %v2809_v56 = vsel %vm439_vm0, %v19103_v12, %v2779_v52  ;;  %v2812_v14 = vsel %vm439_vm0, %v2793_v44, %v19095_v46  ;;  %v2800_v22 = vsel %vm439_vm0, %v19101_v42, %v2793_v44  ;;  %v2805_v55 = vsel %vm439_vm0, %v2779_v52, %v19113_v47 }
 0x2b3   : > { %v2821_v32 = vmul.f32 %v2809_v56, %v18408_v18  ;;  %2780 = vrot.lane.b32.xlu1 %v19250_v15, %s18246_s18  ;;  %4166 = vrot.lane.b32.xlu0 %v19147_v29, %s18253_s24  ;;  %v19276_v56 = vmax.f32 %v2685_v58, 0.0  ;;  %v2804_v44 = vsel %vm439_vm0, %v2777_v51, %v19101_v42  ;;  %v2816_v52 = vmul.f32 %v2812_v14, %v18414_v20 }
 0x2b4   : > { %v2819_v58 = vmul.f32 %v2800_v22, %v18411_v19  ;;  %v2822_v45 = vmul.f32 %v2805_v55, %v18417_v21  ;;  %v2818_v14 = vmul.f32 %v2804_v44, %v18417_v21 }
 0x2b5   : > { %v19278_v46 = vpop.permute.xlu1 %2712  ;;  %v2795_v6 = vpop.permute.xlu0 %2794  ;;  %v16815_v30 = vpack.c.bf16 %v2821_v32, %v2817_v59 }
 0x2b6   : > { %v2801_v4 = vsel %vm439_vm0, %v19113_v47, %v2795_v6  ;;  %v2813_v27 = vsel %vm439_vm0, %v2795_v6, %v19103_v12  ;;  %v19303_v47 = vmax.f32 %v2687_v31, 0.0  ;;  %v16825_v22 = vpack.c.bf16 %v2822_v45, %v2818_v14 }
 0x2b7   : > { %v2820_v32 = vmul.f32 %v2813_v27, %v18414_v20  ;;  %v2823_v59 = vmul.f32 %v2801_v4, %v18411_v19  ;;  %16816 = vmatprep.subr.bf16.mxu0 %v16815_v30  ;;  %2796 = vrot.lane.b32.xlu1 %v19272_v25, %s18246_s18  ;;  %v377_v20 = vld [vmem:[%s25902_s6] sm:$0xf] }
 0x2b8   : > { %2782 = vrot.lane.b32.xlu0 %v19276_v56, %s18246_s18 }
 0x2b9   : > { %v16817_v51 = vpack.c.bf16 %v2820_v32, %v2816_v52  ;;  %v19299_v42 = vpop.permute.xlu1 %2728  ;;  %v19301_v6 = vpop.permute.xlu0 %2714  ;;  %v16823_v12 = vpack.c.bf16 %v2823_v59, %v2819_v58 }
 0x2bb   : > { %16818 = vmatpush1.bf16.msra.mxu0 %v16817_v51  ;;  %16824 = vmatprep.subr.bf16.mxu1 %v16823_v12 }
 0x2bc   : > { %2716 = vrot.lane.b32.xlu1 %v19250_v15, %s18248_s19  ;;  %2798 = vrot.lane.b32.xlu0 %v19303_v47, %s18246_s18 }
 0x2bd   : > { %16826 = vmatpush1.bf16.msra.mxu1 %v16825_v22  ;;  %v19309_v30 = vpop.permute.xlu1 %3131  ;;  %v19311_v55 = vpop.permute.xlu0 %2730 }
 0x2c0   : > { %2732 = vrot.lane.b32.xlu1 %v19272_v25, %s18248_s19  ;;  %2718 = vrot.lane.b32.xlu0 %v19276_v56, %s18248_s19 }
 0x2c1   : > { %v19317_v45 = vpop.permute.xlu1 %3147  ;;  %v19319_v31 = vpop.permute.xlu0 %3133 }
 0x2c4   : > { %3135 = vrot.lane.b32.xlu1 %v19250_v15, %s18249_s20  ;;  %2734 = vrot.lane.b32.xlu0 %v19303_v47, %s18248_s19 }
 0x2c5   : > { %v19325_v44 = vpop.permute.xlu1 %3344  ;;  %v19327_v52 = vpop.permute.xlu0 %3149 }
 0x2c8   : > { %3151 = vrot.lane.b32.xlu1 %v19272_v25, %s18249_s20  ;;  %3137 = vrot.lane.b32.xlu0 %v19276_v56, %s18249_s20 }
 0x2c9   : > { %v19333_v4 = vpop.permute.xlu1 %3360  ;;  %v19335_v27 = vpop.permute.xlu0 %3346 }
 0x2cc   : > { %3348 = vrot.lane.b32.xlu1 %v19250_v15, %s18250_s21  ;;  %3153 = vrot.lane.b32.xlu0 %v19303_v47, %s18249_s20 }
 0x2cd   : > { %v19341_v58 = vpop.permute.xlu1 %3726  ;;  %v19343_v32 = vpop.permute.xlu0 %3362 }
 0x2ce   : > { %26494 = vst [vmem:[#allocation68_spill] sm:$0xff] %v19341_v58  ;;  %26495 = vst [vmem:[#allocation69_spill] sm:$0xff] %v19343_v32 }
 0x2d0   : > { %3364 = vrot.lane.b32.xlu1 %v19272_v25, %s18250_s21  ;;  %3350 = vrot.lane.b32.xlu0 %v19276_v56, %s18250_s21 }
 0x2d1   : > { %v19349_v59 = vpop.permute.xlu1 %3742  ;;  %v19351_v14 = vpop.permute.xlu0 %3728 }
 0x2d2   : > { %26496 = vst [vmem:[#allocation70_spill] sm:$0xff] %v19349_v59  ;;  %26497 = vst [vmem:[#allocation71_spill] sm:$0xff] %v19351_v14 }
 0x2d4   : > { %4361 = vrot.lane.b32.xlu1 %v19119_v35, %s18254_s25  ;;  %3366 = vrot.lane.b32.xlu0 %v19303_v47, %s18250_s21 }
 0x2d5   : > { %v19357_v51 = vpop.permute.xlu1 %3939  ;;  %v19359_v12 = vpop.permute.xlu0 %3744 }
 0x2d6   : > { %26498 = vst [vmem:[#allocation72_spill] sm:$0xff] %v19357_v51  ;;  %26499 = vst [vmem:[#allocation73_spill] sm:$0xff] %v19359_v12 }
 0x2d8   : > { %3730 = vrot.lane.b32.xlu1 %v19250_v15, %s18251_s22  ;;  %4363 = vrot.lane.b32.xlu0 %v19135_v43, %s18254_s25 }
 0x2d9   : > { %v19365_v22 = vpop.permute.xlu1 %3955  ;;  %v19367_v59 = vpop.permute.xlu0 %3941 }
 0x2da   : > { %26500 = vst [vmem:[#allocation74_spill] sm:$0xff] %v19365_v22  ;;  %26501 = vst [vmem:[#allocation75_spill] sm:$0xff] %v19367_v59 }
 0x2dc   : > { %3746 = vrot.lane.b32.xlu1 %v19272_v25, %s18251_s22  ;;  %4379 = vrot.lane.b32.xlu0 %v19147_v29, %s18254_s25 }
 0x2dd   : > { %v19373_v14 = vpop.permute.xlu1 %4152  ;;  %v19375_v51 = vpop.permute.xlu0 %3957 }
 0x2de   : > { %26502 = vst [vmem:[#allocation76_spill] sm:$0xff] %v19373_v14  ;;  %26503 = vst [vmem:[#allocation77_spill] sm:$0xff] %v19375_v51 }
 0x2e0   : > { %3943 = vrot.lane.b32.xlu1 %v19250_v15, %s18252_s23  ;;  %3732 = vrot.lane.b32.xlu0 %v19276_v56, %s18251_s22 }
 0x2e1   : > { %v19381_v12 = vpop.permute.xlu1 %4168  ;;  %v19383_v22 = vpop.permute.xlu0 %4154 }
 0x2e2   : > { %26504 = vst [vmem:[#allocation78_spill] sm:$0xff] %v19381_v12  ;;  %26505 = vst [vmem:[#allocation79_spill] sm:$0xff] %v19383_v22 }
 0x2e4   : > { %3959 = vrot.lane.b32.xlu1 %v19272_v25, %s18252_s23  ;;  %3748 = vrot.lane.b32.xlu0 %v19303_v47, %s18251_s22 }
 0x2e5   : > { %v19389_v59 = vpop.permute.xlu1 %4365  ;;  %v19391_v14 = vpop.permute.xlu0 %4170 }
 0x2e6   : > { %26506 = vst [vmem:[#allocation80_spill] sm:$0xff] %v19389_v59  ;;  %26507 = vst [vmem:[#allocation81_spill] sm:$0xff] %v19391_v14 }
 0x2e8   : > { %4156 = vrot.lane.b32.xlu1 %v19250_v15, %s18253_s24  ;;  %3945 = vrot.lane.b32.xlu0 %v19276_v56, %s18252_s23 }
 0x2e9   : > { %v19397_v51 = vpop.permute.xlu1 %4381  ;;  %v19399_v12 = vpop.permute.xlu0 %4367 }
 0x2ea   : > { %26508 = vst [vmem:[#allocation82_spill] sm:$0xff] %v19397_v51  ;;  %26509 = vst [vmem:[#allocation83_spill] sm:$0xff] %v19399_v12 }
 0x2ec   : > { %4172 = vrot.lane.b32.xlu1 %v19272_v25, %s18253_s24  ;;  %3961 = vrot.lane.b32.xlu0 %v19303_v47, %s18252_s23 }
 0x2ed   : > { %v19405_v22 = vpop.permute.xlu0 %4383  ;;  %v19407_v59 = vpop.permute.xlu1 %2772 }
 0x2ee   : > { %26510 = vst [vmem:[#allocation84_spill] sm:$0xff] %v19405_v22 }
 0x2f0   : > { %4369 = vrot.lane.b32.xlu1 %v19250_v15, %s18254_s25  ;;  %4158 = vrot.lane.b32.xlu0 %v19276_v56, %s18253_s24 }
 0x2f1   : > { %v19413_v14 = vpop.permute.xlu1 %2788  ;;  %v19415_v51 = vpop.permute.xlu0 %2774 }
 0x2f2   : > { %26511 = vst [vmem:[#allocation85_spill] sm:$0xff] %v19413_v14 }
 0x2f4   : > { %4377 = vrot.lane.b32.xlu1 %v19133_v41, %s18254_s25  ;;  %4174 = vrot.lane.b32.xlu0 %v19303_v47, %s18253_s24 }
 0x2f5   : > { %v19421_v12 = vpop.permute.xlu1 %2708  ;;  %v19423_v22 = vpop.permute.xlu0 %2790 }
 0x2f6   : > { %26512 = vst [vmem:[#allocation86_spill] sm:$0xff] %v19421_v12  ;;  %26513 = vst [vmem:[#allocation87_spill] sm:$0xff] %v19423_v22 }
 0x2f8   : > { %4385 = vrot.lane.b32.xlu1 %v19272_v25, %s18254_s25  ;;  %4371 = vrot.lane.b32.xlu0 %v19276_v56, %s18254_s25 }
 0x2f9   : > { %v19429_v19 = vpop.permute.xlu1 %2724  ;;  %v19431_v21 = vpop.permute.xlu0 %2710 }
 0x2fa   : > { %26514 = vst [vmem:[#allocation88_spill] sm:$0xff] %v19429_v19  ;;  %26515 = vst [vmem:[#allocation89_spill] sm:$0xff] %v19431_v21 }
 0x2fc   : > { %4572 = vperm.xlu1 %18067, %v377_v20   ;;  %4387 = vrot.lane.b32.xlu0 %v19303_v47, %s18254_s25 }
 0x2fd   : > { %v19438_v12 = vpop.permute.xlu1 %3127  ;;  %v19440_v14 = vpop.permute.xlu0 %2726 }
 0x2fe   : > { %26516 = vst [vmem:[#allocation90_spill] sm:$0xff] %v19438_v12  ;;  %26517 = vst [vmem:[#allocation91_spill] sm:$0xff] %v19440_v14 }
 0x301   : > { %v19442_v58 = vpop.permute.xlu1 %3143  ;;  %v19444_v3 = vpop.permute.xlu0 %3129 }
 0x302   : > { %26518 = vst [vmem:[#allocation92_spill] sm:$0xff] %v19442_v58 }
 0x305   : > { %v19446_v22 = vpop.permute.xlu1 %3340  ;;  %v19448_v19 = vpop.permute.xlu0 %3145 }
 0x306   : > { %26519 = vst [vmem:[#allocation93_spill] sm:$0xff] %v19446_v22  ;;  %v19468_v22 = vmul.f32 %v19039_v62, %v18564_v34  ;;  %v19488_v62 = vmul.f32 %v19135_v43, %v18561_v33 }
 0x308   : > { %26527 = vst [vmem:[#allocation101_spill] sm:$0xff] %v19468_v22  ;;  %26533 = vst [vmem:[#allocation107_spill] sm:$0xff] %v19488_v62  ;;  %v26559_v22 = vld [vmem:[#allocation86_spill] sm:$0xff] }
 0x309   : > { %v19450_v21 = vpop.permute.xlu1 %3356  ;;  %v19452_v28 = vpop.permute.xlu0 %3342 }
 0x30a   : > { %26520 = vst [vmem:[#allocation94_spill] sm:$0xff] %v19450_v21  ;;  %26521 = vst [vmem:[#allocation95_spill] sm:$0xff] %v19452_v28  ;;  %v19472_v21 = vmul.f32 %v19045_v10, %v18573_v38  ;;  %v19492_v10 = vmul.f32 %v19147_v29, %v18570_v36  ;;  %v19512_v29 = vmul.f32 %v19303_v47, %v18573_v38 }
 0x30b   : > { %v19532_v47 = vmul.f32 %v19250_v15, %v18564_v34 }
 0x30c   : > { %26528 = vst [vmem:[#allocation102_spill] sm:$0xff] %v19472_v21  ;;  %26534 = vst [vmem:[#allocation108_spill] sm:$0xff] %v19492_v10  ;;  %v26556_v21 = vld [vmem:[#allocation8_spill] sm:$0xff] }
 0x30d   : > { %v19454_v20 = vpop.permute.xlu1 %3722  ;;  %v19456_v18 = vpop.permute.xlu0 %3358  ;;  %26538 = vst [vmem:[#allocation112_spill] sm:$0xff] %v19512_v29  ;;  %26541 = vst [vmem:[#allocation115_spill] sm:$0xff] %v19532_v47  ;;  %v26553_v29 = vld [vmem:[#allocation68_spill] sm:$0xff] }
 0x30e   : > { %26522 = vst [vmem:[#allocation96_spill] sm:$0xff] %v19454_v20 }
 0x311   : > { %v19458_v32 = vpop.permute.xlu1 %3738  ;;  %v19460_v12 = vpop.permute.xlu0 %3724 }
 0x312   : > { %26523 = vst [vmem:[#allocation97_spill] sm:$0xff] %v19458_v32  ;;  %26524 = vst [vmem:[#allocation98_spill] sm:$0xff] %v19460_v12  ;;  %v19480_v32 = vmul.f32 %v19029_v5, %v18564_v34  ;;  %v19500_v5 = vmul.f32 %v19276_v56, %v18564_v34  ;;  %v19520_v56 = vmul.f32 %v19133_v41, %v18570_v36 }
 0x313   : > { %v2745_v41 = vsel %vm401_vm1, %v19127_v53, %v19301_v6  ;;  %v2749_v36 = vsel %vm401_vm1, %v19311_v55, %v19127_v53 }
 0x314   : > { %26531 = vst [vmem:[#allocation105_spill] sm:$0xff] %v19480_v32  ;;  %26535 = vst [vmem:[#allocation109_spill] sm:$0xff] %v19500_v5 }
 0x315   : > { %v19462_v14 = vpop.permute.xlu1 %3935  ;;  %v19464_v58 = vpop.permute.xlu0 %3740  ;;  %26540 = vst [vmem:[#allocation114_spill] sm:$0xff] %v19520_v56 }
 0x316   : > { %26525 = vst [vmem:[#allocation99_spill] sm:$0xff] %v19462_v14  ;;  %26526 = vst [vmem:[#allocation100_spill] sm:$0xff] %v19464_v58  ;;  %v19484_v14 = vmul.f32 %v19036_v1, %v18573_v38  ;;  %v2741_v1 = vsel %vm401_vm1, %v19301_v6, %v19141_v8  ;;  %v2748_v6 = vsel %vm401_vm1, %v19299_v42, %v19111_v13 }
 0x318   : > { %26532 = vst [vmem:[#allocation106_spill] sm:$0xff] %v19484_v14 }
 0x319   : > { %v19474_v28 = vpop.permute.xlu1 %3951  ;;  %v19476_v20 = vpop.permute.xlu0 %3937 }
 0x31a   : > { %26529 = vst [vmem:[#allocation103_spill] sm:$0xff] %v19474_v28  ;;  %26530 = vst [vmem:[#allocation104_spill] sm:$0xff] %v19476_v20  ;;  %v19516_v20 = vmul.f32 %v19119_v35, %v18561_v33  ;;  %v2740_v28 = vsel %vm401_vm1, %v19278_v46, %v19125_v23  ;;  %v19536_v35 = vmul.f32 %v19272_v25, %v18573_v38 }
 0x31b   : > { %v2736_v25 = vsel %vm401_vm1, %v19125_v23, %v19299_v42  ;;  %v19559_v38 = vmul.f32 %v2741_v1, %v18454_v40  ;;  %v19567_v15 = vmul.f32 %v2740_v28, %v18454_v40  ;;  %v2737_v23 = vsel %vm401_vm1, %v19141_v8, %v19311_v55 }
 0x31c   : > { %26539 = vst [vmem:[#allocation113_spill] sm:$0xff] %v19516_v20  ;;  %26542 = vst [vmem:[#allocation116_spill] sm:$0xff] %v19536_v35  ;;  %v19580_v1 = vmul.f32 %v2745_v41, %v18421_v24  ;;  %v3160_v28 = vsel %vm883_vm4, %v19319_v31, %v19159_v16  ;;  %v3164_v8 = vsel %vm883_vm4, %v19151_v11, %v19319_v31 }
 0x31d   : > { %v19506_v43 = vpop.permute.xlu1 %4148  ;;  %v19508_v12 = vpop.permute.xlu0 %3953  ;;  %v19594_v55 = vmul.f32 %v2748_v6, %v18451_v39  ;;  %v19597_v42 = vmul.f32 %v2736_v25, %v18445_v37  ;;  %v3163_v41 = vsel %vm883_vm4, %v19139_v17, %v19309_v30  ;;  %v19610_v31 = vmul.f32 %v2737_v23, %v18445_v37 }
 0x31e   : > { %26536 = vst [vmem:[#allocation110_spill] sm:$0xff] %v19506_v43  ;;  %26537 = vst [vmem:[#allocation111_spill] sm:$0xff] %v19508_v12  ;;  %v2744_v43 = vsel %vm401_vm1, %v19111_v13, %v19278_v46  ;;  %v3156_v25 = vsel %vm883_vm4, %v19159_v16, %v19327_v52  ;;  %v3168_v6 = vsel %vm883_vm4, %v19327_v52, %v19151_v11 }
 0x31f   : > { %v19564_v46 = vmul.f32 %v2744_v43, %v18421_v24  ;;  %v19583_v43 = vmul.f32 %v2749_v36, %v18451_v39  ;;  %v3159_v36 = vsel %vm883_vm4, %v19309_v30, %v19149_v26  ;;  %v3155_v30 = vsel %vm883_vm4, %v19149_v26, %v19317_v45 }
 0x320   : > { %v3167_v23 = vsel %vm883_vm4, %v19317_v45, %v19139_v17  ;;  %v19629_v53 = vmul.f32 %v3164_v8, %v18472_v48  ;;  %v19632_v16 = vmul.f32 %v3160_v28, %v18510_v63  ;;  %v19638_v11 = vmul.f32 %v3159_v36, %v18510_v63 }
 0x321   : > { %v19573_v34 = vpop.permute.xlu1 %4164  ;;  %v19575_v13 = vpop.permute.xlu0 %4150  ;;  %v3376_v45 = vsel %vm1139_vm5, %v19157_v2, %v19325_v44  ;;  %v19651_v28 = vmul.f32 %v3168_v6, %v18507_v61  ;;  %v19654_v8 = vmul.f32 %v3156_v25, %v18494_v57  ;;  %v3373_v36 = vsel %vm1139_vm5, %v19335_v27, %v19175_v60 }
 0x322   : > { %26543 = vst [vmem:[#allocation117_spill] sm:$0xff] %v19573_v34  ;;  %26544 = vst [vmem:[#allocation118_spill] sm:$0xff] %v19575_v13  ;;  %v19635_v13 = vmul.f32 %v3163_v41, %v18472_v48  ;;  %v19661_v41 = vmul.f32 %v3167_v23, %v18507_v61  ;;  %v19664_v26 = vmul.f32 %v3155_v30, %v18494_v57 }
 0x323   : > { %v3372_v6 = vsel %vm1139_vm5, %v19325_v44, %v19165_v54  ;;  %v3380_v23 = vsel %vm1139_vm5, %v19333_v4, %v19157_v2  ;;  %v19684_v44 = vmul.f32 %v3376_v45, %v18525_v7  ;;  %v3368_v17 = vsel %vm1139_vm5, %v19165_v54, %v19333_v4  ;;  %v26550_v45 = vld [vmem:[#allocation19_spill] sm:$0xff] }
 0x324   : > { %v3377_v2 = vsel %vm1139_vm5, %v19167_v0, %v19335_v27  ;;  %v19695_v25 = vmul.f32 %v3373_v36, %v18611_v50  ;;  %v19708_v27 = vmul.f32 %v3380_v23, %v18607_v49  ;;  %v26548_v36 = vld [vmem:[#allocation69_spill] sm:$0xff]  ;;  %v19717_v62 = vmul.f32 %v3368_v17, %v26550_v45  ;;  %v26551_v4 = vld [vmem:[#allocation87_spill] sm:$0xff] }
 0x325   : > { %v2781_v33 = vpop.permute.xlu1 %2780  ;;  %v19642_v52 = vpop.permute.xlu0 %4166  ;;  %v3381_v56 = vsel %vm1139_vm5, %v26548_v36, %v19167_v0  ;;  %v19720_v58 = vmul.f32 %v3377_v2, %v18525_v7 }
 0x326   : > { %26545 = vst [vmem:[#allocation119_spill] sm:$0xff] %v19642_v52  ;;  %v2810_v30 = vsel %vm439_vm0, %v19407_v59, %v2781_v33  ;;  %26546 = vst [vmem:[#allocation120_spill] sm:$0xff] %v19695_v25  ;;  %v19698_v52 = vmul.f32 %v3372_v6, %v18611_v50  ;;  %v26549_v6 = vld [vmem:[#allocation6_spill] sm:$0xff]  ;;  %v19746_v0 = vmul.f32 %v3381_v56, %v18607_v49  ;;  %v26558_v56 = vld [vmem:[#allocation7_spill] sm:$0xff] }
 0x327   : > { %v2825_v10 = vmul.f32 %v2810_v30, %v26549_v6  ;;  %v26552_v30 = vld [vmem:[#allocation53_spill] sm:$0xff] }
 0x328   : > { %26547 = vst [vmem:[#allocation121_spill] sm:$0xff] %v19698_v52  ;;  %v3754_v17 = vsel %vm1636_vm6, %v26553_v29, %v26552_v30 }
 0x329   : > { %v2797_v34 = vpop.permute.xlu1 %2796 }
 0x32a   : > { %v2783_v12 = vpop.permute.xlu0 %2782  ;;  %v2814_v23 = vsel %vm439_vm0, %v2797_v34, %v19407_v59  ;;  %v26555_v59 = vld [vmem:[#allocation52_spill] sm:$0xff] }
 0x32b   : > { %v2811_v54 = vsel %vm439_vm0, %v19415_v51, %v2783_v12  ;;  %v2807_v35 = vsel %vm439_vm0, %v2783_v12, %v26551_v4  ;;  %v3758_v5 = vsel %vm1636_vm6, %v26555_v59, %v26553_v29  ;;  %v3369_v12 = vsel %vm1139_vm5, %v19175_v60, %v26548_v36 }
 0x32c   : > { %v2829_v20 = vmul.f32 %v2811_v54, %v26549_v6  ;;  %v26554_v54 = vld [vmem:[#allocation85_spill] sm:$0xff] }
 0x32d   : > { %v2802_v2 = vsel %vm439_vm0, %v26554_v54, %v2797_v34  ;;  %v2806_v14 = vsel %vm439_vm0, %v2781_v33, %v26554_v54 }
 0x32e   : > { %v2717_v6 = vpop.permute.xlu1 %2716  ;;  %v16819_v47 = vpack.c.bf16 %v2829_v20, %v2825_v10  ;;  %v2799_v34 = vpop.permute.xlu0 %2798  ;;  %v2824_v20 = vmul.f32 %v2814_v23, %v26556_v21  ;;  %v26557_v10 = vld [vmem:[#allocation9_spill] sm:$0xff]  ;;  %v2827_v36 = vmul.f32 %v2802_v2, %v26558_v56  ;;  %v26561_v2 = vld [vmem:[#allocation28_spill] sm:$0xff] }
 0x32f   : > { %v2830_v32 = vmul.f32 %v2807_v35, %v26557_v10  ;;  %v2803_v29 = vsel %vm439_vm0, %v26551_v4, %v2799_v34  ;;  %v2815_v60 = vsel %vm439_vm0, %v2799_v34, %v19415_v51  ;;  %v2746_v33 = vsel %vm401_vm1, %v26559_v22, %v2717_v6  ;;  %v26560_v35 = vld [vmem:[#allocation30_spill] sm:$0xff] }
 0x330   : > { %16820 = vmatprep.subr.bf16.mxu0 %v16819_v47  ;;  %v2828_v54 = vmul.f32 %v2815_v60, %v26556_v21  ;;  %v2831_v23 = vmul.f32 %v2803_v29, %v26558_v56  ;;  %v19766_v52 = vmul.f32 %v3758_v5, %v26560_v35  ;;  %v19769_v4 = vmul.f32 %v3369_v12, %v26550_v45  ;;  %v26562_v12 = vld [vmem:[#allocation89_spill] sm:$0xff]  ;;  %v26564_v45 = vld [vmem:[#allocation91_spill] sm:$0xff] }
 0x331   : > { %v2826_v25 = vmul.f32 %v2806_v14, %v26557_v10  ;;  %v19775_v34 = vmul.f32 %v3754_v17, %v26561_v2  ;;  %v16865_v60 = vpack.c.bf16 %v19746_v0, %v19708_v27  ;;  %v2761_v50 = vmul.f32 %v2746_v33, %v18421_v24  ;;  %v26563_v10 = vld [vmem:[#allocation88_spill] sm:$0xff]  ;;  %v26601_v27 = vld [vmem:[#allocation77_spill] sm:$0xff] }
 0x332   : > { %v2733_v51 = vpop.permute.xlu1 %2732  ;;  %v16821_v21 = vpack.c.bf16 %v2828_v54, %v2824_v20  ;;  %v2719_v29 = vpop.permute.xlu0 %2718  ;;  %v16827_v56 = vpack.c.bf16 %v2831_v23, %v2827_v36  ;;  %v16871_v54 = vpack.c.bf16 %v19769_v4, %v19717_v62  ;;  %v26567_v23 = vld [vmem:[#allocation71_spill] sm:$0xff] }
 0x333   : > { %v16829_v5 = vpack.c.bf16 %v2830_v32, %v2826_v25  ;;  %v2750_v14 = vsel %vm401_vm1, %v2733_v51, %v26559_v22  ;;  %v2747_v47 = vsel %vm401_vm1, %v26562_v12, %v2719_v29  ;;  %v2738_v17 = vsel %vm401_vm1, %v26563_v10, %v2733_v51  ;;  %v16299_v22 = vld [vmem:[%s25901_s5 + $0x4] sm:$0xf]  ;;  %v26565_v25 = vld [vmem:[#allocation70_spill] sm:$0xff] }
 0x334   : > { %v2743_v20 = vsel %vm401_vm1, %v2719_v29, %v26564_v45  ;;  %v2765_v32 = vmul.f32 %v2747_v47, %v18421_v24  ;;  %16822 = vmatpush1.bf16.msra.mxu0 %v16821_v21  ;;  %16828 = vmatprep.subr.bf16.mxu1 %v16827_v56  ;;  %v3750_v36 = vsel %vm1636_vm6, %v26552_v30, %v26565_v25  ;;  %v26568_v51 = vld [vmem:[#allocation54_spill] sm:$0xff] }
 0x335   : > { %v3762_v33 = vsel %vm1636_vm6, %v26565_v25, %v26555_v59  ;;  %16830 = vmatpush1.bf16.msra.mxu1 %v16829_v5  ;;  %v26566_v21 = vpack.c.bf16 %v19580_v1, %v19564_v46  ;;  %v3759_v47 = vsel %vm1636_vm6, %v26568_v51, %v26567_v23  ;;  %v2742_v30 = vsel %vm401_vm1, %v2717_v6, %v26563_v10  ;;  %v26570_v10 = vld [vmem:[#allocation90_spill] sm:$0xff] }
 0x336   : > { %v3136_v56 = vpop.permute.xlu1 %3135  ;;  %v2760_v59 = vmul.f32 %v2750_v14, %v18451_v39  ;;  %v26569_v29 = vpack.c.bf16 %v19610_v31, %v19597_v42  ;;  %v2735_v46 = vpop.permute.xlu0 %2734  ;;  %v16835_v1 = vpack.c.bf16 %v2765_v32, %v2761_v50  ;;  %v2763_v5 = vmul.f32 %v2738_v17, %v18445_v37 }
 0x337   : > { %16832 = vmatprep.subr.bf16.mxu0 %v26566_v21  ;;  %v2766_v25 = vmul.f32 %v2743_v20, %v18454_v40  ;;  %v2739_v21 = vsel %vm401_vm1, %v26564_v45, %v2735_v46  ;;  %v2751_v6 = vsel %vm401_vm1, %v2735_v46, %v26562_v12  ;;  %16416 = vmatmul.mubr.msk.f32.vlgmr.msra.gmra.mrb[8].mxu0 %vm2832_vm10, %v16299_v22  ;;  %v26572_v45 = vld [vmem:[#allocation56_spill] sm:$0xff] }
 0x338   : > { %16840 = vmatprep.subr.bf16.mxu1 %v26569_v29  ;;  %v3165_v42 = vsel %vm883_vm4, %v26570_v10, %v3136_v56  ;;  %v2764_v50 = vmul.f32 %v2751_v6, %v18451_v39  ;;  %v2767_v31 = vmul.f32 %v2739_v21, %v18445_v37  ;;  %16417 = vmatmul.mubr.msk.f32.vlgmr.msra.gmra.mrb[8].mxu1 %vm2832_vm10, %v16299_v22  ;;  %v26574_v29 = vld [vmem:[#allocation31_spill] sm:$0xff] }
 0x339   : > { %v26571_v14 = vpack.c.bf16 %v19583_v43, %v19594_v55  ;;  %v3755_v12 = vsel %vm1636_vm6, %v26567_v23, %v26572_v45  ;;  %v19843_v17 = vmul.f32 %v3759_v47, %v26560_v35  ;;  %v2762_v20 = vmul.f32 %v2742_v30, %v18454_v40  ;;  %v26575_v43 = vld [vmem:[#allocation29_spill] sm:$0xff]  ;;  %v26642_v40 = vld [vmem:[#allocation80_spill] sm:$0xff] }
 0x33a   : > { %v26573_v32 = vpack.c.bf16 %v19559_v38, %v19567_v15  ;;  %v3152_v22 = vpop.permute.xlu1 %3151  ;;  %v19850_v46 = vmul.f32 %v3750_v36, %v26574_v29  ;;  %v19853_v55 = vmul.f32 %v3762_v33, %v26575_v43  ;;  %v16837_v21 = vpack.c.bf16 %v2764_v50, %v2760_v59  ;;  %v3138_v6 = vpop.permute.xlu0 %3137  ;;  %v26577_v36 = vld [vmem:[#allocation92_spill] sm:$0xff]  ;;  %v26579_v50 = vld [vmem:[#allocation55_spill] sm:$0xff] }
 0x33b   : > { %16834 = vmatpush1.bf16.msra.mxu0 %v26571_v14  ;;  %v16843_v23 = vpack.c.bf16 %v2767_v31, %v2763_v5  ;;  %v26576_v14 = vmov 0.0   ;;  %v16845_v47 = vpack.c.bf16 %v2766_v25, %v2762_v20  ;;  %v3180_v30 = vmul.f32 %v3165_v42, %v18472_v48  ;;  %v356_v5 = vld [vmem:[%s25901_s5] sm:$0xf] }
 0x33c   : > { %16836 = vmatprep.subr.bf16.mxu0 %v16835_v1  ;;  %16842 = vmatpush1.bf16.msra.mxu1 %v26573_v32  ;;  %v3169_v38 = vsel %vm883_vm4, %v3152_v22, %v26570_v10  ;;  %v3166_v15 = vsel %vm883_vm4, %v19444_v3, %v3138_v6  ;;  %v3157_v33 = vsel %vm883_vm4, %v26577_v36, %v3152_v22  ;;  %v26578_v42 = vld [vmem:[#allocation72_spill] sm:$0xff]  ;;  %v26581_v22 = vld [vmem:[#allocation73_spill] sm:$0xff] }
 0x33d   : > { %3045 = vmatprep.mubr.f32.mxu0 %v26576_v14  ;;  %3116 = vmatprep.mubr.f32.mxu1 %v26576_v14  ;;  %v3162_v59 = vsel %vm883_vm4, %v3138_v6, %v19448_v19  ;;  %v3184_v1 = vmul.f32 %v3166_v15, %v18472_v48  ;;  %v19875_v25 = vmul.f32 %v3755_v12, %v26561_v2  ;;  %v26641_v48 = vld [vmem:[#allocation65_spill] sm:$0xff] }
 0x33e   : > { %16844 = vmatprep.subr.bf16.mxu1 %v16843_v23  ;;  %v3971_v31 = vsel %vm1892_vm7, %v26579_v50, %v26578_v42  ;;  %v26580_v20 = vpack.c.bf16 %v19629_v53, %v19635_v13  ;;  %v3349_v32 = vpop.permute.xlu1 %3348  ;;  %v3751_v12 = vsel %vm1636_vm6, %v26572_v45, %v26581_v22  ;;  %v3179_v6 = vmul.f32 %v3169_v38, %v18507_v61  ;;  %v26583_v38 = vld [vmem:[#allocation93_spill] sm:$0xff] }
 0x33f   : > { %16838 = vmatpush1.bf16.msra.mxu0 %v16837_v21  ;;  %v3161_v21 = vsel %vm883_vm4, %v3136_v56, %v26577_v36  ;;  %v26582_v23 = vpack.c.bf16 %v19654_v8, %v19664_v26  ;;  %v16851_v15 = vpack.c.bf16 %v3184_v1, %v3180_v30  ;;  %v3182_v53 = vmul.f32 %v3157_v33, %v18494_v57 }
 0x340   : > { %16846 = vmatpush1.bf16.msra.mxu1 %v16845_v47  ;;  %16848 = vmatprep.subr.bf16.mxu0 %v26580_v20  ;;  %v3154_v47 = vpop.permute.xlu0 %3153  ;;  %v3185_v13 = vmul.f32 %v3162_v59, %v18510_v63  ;;  %v3378_v26 = vsel %vm1139_vm5, %v26583_v38, %v3349_v32  ;;  %v26584_v36 = vpack.c.bf16 %v19651_v28, %v19661_v41 }
 0x341   : > { %16856 = vmatprep.subr.bf16.mxu1 %v26582_v23  ;;  %v3158_v45 = vsel %vm883_vm4, %v19448_v19, %v3154_v47  ;;  %v3170_v56 = vsel %vm883_vm4, %v3154_v47, %v19444_v3  ;;  %v26585_v19 = vld [vmem:[#allocation57_spill] sm:$0xff]  ;;  %v3181_v33 = vmul.f32 %v3161_v21, %v18510_v63  ;;  %v26586_v59 = vpack.c.bf16 %v19632_v16, %v19638_v11  ;;  %v26587_v23 = vld [vmem:[#allocation34_spill] sm:$0xff] }
 0x342   : > { %16418 = vmatmul.mubr.msk.f32.vlgmr.msra.gmra.mrb[8].mxu0 %vm2832_vm10, %v356_v5  ;;  %v3183_v8 = vmul.f32 %v3170_v56, %v18507_v61  ;;  %v3186_v30 = vmul.f32 %v3158_v45, %v18494_v57  ;;  %v3967_v3 = vsel %vm1892_vm7, %v26578_v42, %v26585_v19  ;;  %v3365_v1 = vpop.permute.xlu1 %3364  ;;  %v3763_v28 = vsel %vm1636_vm6, %v26581_v22, %v26568_v51  ;;  %v26590_v56 = vld [vmem:[#allocation94_spill] sm:$0xff]  ;;  %v26638_v57 = vld [vmem:[#allocation107_spill] sm:$0xff]  ;;  %v26639_v61 = vld [vmem:[#allocation113_spill] sm:$0xff] }
 0x343   : > { %16419 = vmatmul.mubr.msk.f32.vlgmr.msra.gmra.mrb[8].mxu1 %vm2832_vm10, %v356_v5  ;;  %16850 = vmatpush1.bf16.msra.mxu0 %v26584_v36  ;;  %v19930_v41 = vmul.f32 %v3751_v12, %v26574_v29  ;;  %v19934_v16 = vmul.f32 %v3971_v31, %v26587_v23  ;;  %v16861_v11 = vpack.c.bf16 %v3185_v13, %v3181_v33  ;;  %v16300_v12 = vld [vmem:[%s25901_s5 + $0x8] sm:$0xf]  ;;  %v26592_v36 = vld [vmem:[#allocation75_spill] sm:$0xff] }
 0x344   : > { %16852 = vmatprep.subr.bf16.mxu0 %v16851_v15  ;;  %16858 = vmatpush1.bf16.msra.mxu1 %v26586_v59  ;;  %v16853_v42 = vpack.c.bf16 %v3183_v8, %v3179_v6  ;;  %v3351_v20 = vpop.permute.xlu0 %3350  ;;  %v16859_v21 = vpack.c.bf16 %v3186_v30, %v3182_v53  ;;  %v3393_v47 = vmul.f32 %v3378_v26, %v18525_v7  ;;  %v26588_v15 = vld [vmem:[#allocation95_spill] sm:$0xff]  ;;  %v26589_v6 = vld [vmem:[#allocation32_spill] sm:$0xff]  ;;  %v26615_v30 = vld [vmem:[#allocation106_spill] sm:$0xff] }
 0x345   : > { %3254 = vmatprep.mubr.f32.mxu0 %v26576_v14  ;;  %v3379_v45 = vsel %vm1139_vm5, %v26588_v15, %v3351_v20  ;;  %3325 = vmatprep.mubr.f32.mxu1 %v26576_v14  ;;  %v3382_v51 = vsel %vm1139_vm5, %v3365_v1, %v26583_v38  ;;  %v3375_v22 = vsel %vm1139_vm5, %v3351_v20, %v19456_v18  ;;  %v26626_v5 = vld [vmem:[#allocation49_spill] sm:$0xff] }
 0x346   : > { %v3397_v31 = vmul.f32 %v3379_v45, %v18525_v7  ;;  %16860 = vmatprep.subr.bf16.mxu1 %v16859_v21  ;;  %v19952_v53 = vmul.f32 %v3967_v3, %v26589_v6  ;;  %v19955_v13 = vmul.f32 %v3763_v28, %v26575_v43  ;;  %v3370_v38 = vsel %vm1139_vm5, %v26590_v56, %v3365_v1  ;;  %v19963_v8 = vpop.permute.xlu1 %4361  ;;  %v26593_v3 = vld [vmem:[#allocation58_spill] sm:$0xff]  ;;  %v26594_v28 = vld [vmem:[#allocation27_spill] sm:$0xff]  ;;  %v26631_v7 = vld [vmem:[#allocation112_spill] sm:$0xff] }
 0x347   : > { %16854 = vmatpush1.bf16.msra.mxu0 %v16853_v42  ;;  %v26591_v26 = vpack.c.bf16 %v19720_v58, %v19684_v44  ;;  %v3972_v33 = vsel %vm1892_vm7, %v26593_v3, %v26592_v36  ;;  %v3374_v59 = vsel %vm1139_vm5, %v3349_v32, %v26590_v56  ;;  %v3392_v1 = vmul.f32 %v3382_v51, %v18607_v49  ;;  %v26595_v32 = vld [vmem:[#allocation19_spill] sm:$0xff]  ;;  %v26598_v51 = vld [vmem:[#allocation120_spill] sm:$0xff] }
 0x348   : > { %16862 = vmatpush1.bf16.msra.mxu1 %v16861_v11  ;;  %v3367_v58 = vpop.permute.xlu0 %3366  ;;  %v16867_v44 = vpack.c.bf16 %v3397_v31, %v3393_v47  ;;  %v3398_v42 = vmul.f32 %v3375_v22, %v26594_v28  ;;  %v3395_v11 = vmul.f32 %v3370_v38, %v26595_v32  ;;  %v26597_v47 = vld [vmem:[#allocation60_spill] sm:$0xff]  ;;  %v3394_v45 = vmul.f32 %v3374_v59, %v26594_v28  ;;  %v26599_v22 = vld [vmem:[#allocation121_spill] sm:$0xff]  ;;  %v26602_v59 = vld [vmem:[#allocation79_spill] sm:$0xff] }
 0x349   : > { %16864 = vmatprep.subr.bf16.mxu0 %v26591_v26  ;;  %16872 = vmatprep.subr.bf16.mxu1 %v16871_v54  ;;  %v3371_v20 = vsel %vm1139_vm5, %v19456_v18, %v3367_v58  ;;  %v3383_v21 = vsel %vm1139_vm5, %v3367_v58, %v26588_v15  ;;  %v26596_v54 = vld [vmem:[#allocation74_spill] sm:$0xff]  ;;  %v3968_v15 = vsel %vm1892_vm7, %v26592_v36, %v26597_v47 }
 0x34a   : > { %16420 = vmatmul.mubr.msk.f32.vlgmr.msra.gmra.mrb[8].mxu0 %vm2832_vm10, %v16300_v12  ;;  %v3396_v62 = vmul.f32 %v3383_v21, %v18607_v49  ;;  %v3399_v4 = vmul.f32 %v3371_v20, %v26595_v32  ;;  %v3963_v18 = vsel %vm1892_vm7, %v26585_v19, %v26596_v54  ;;  %v26600_v31 = vpack.c.bf16 %v26598_v51, %v26599_v22  ;;  %v26603_v58 = vld [vmem:[#allocation62_spill] sm:$0xff]  ;;  %v26604_v20 = vld [vmem:[#allocation61_spill] sm:$0xff]  ;;  %v26605_v21 = vld [vmem:[#allocation76_spill] sm:$0xff] }
 0x34b   : > { %16421 = vmatmul.mubr.msk.f32.vlgmr.msra.gmra.mrb[8].mxu1 %vm2832_vm10, %v16300_v12  ;;  %16866 = vmatpush1.bf16.msra.mxu0 %v16865_v60  ;;  %v3731_v12 = vpop.permute.xlu1 %3730  ;;  %v3964_v0 = vsel %vm1892_vm7, %v26597_v47, %v26601_v27  ;;  %v3976_v60 = vsel %vm1892_vm7, %v26601_v27, %v26593_v3  ;;  %v3975_v26 = vsel %vm1892_vm7, %v26596_v54, %v26579_v50  ;;  %v26606_v50 = vld [vmem:[#allocation64_spill] sm:$0xff]  ;;  %v26608_v54 = vld [vmem:[#allocation35_spill] sm:$0xff]  ;;  %v26610_v51 = vld [vmem:[#allocation101_spill] sm:$0xff] }
 0x34c   : > { %16868 = vmatprep.subr.bf16.mxu0 %v16867_v44  ;;  %16874 = vmatpush1.bf16.msra.mxu1 %v26600_v31  ;;  %v16869_v19 = vpack.c.bf16 %v3396_v62, %v3392_v1  ;;  %v20013_v56 = vpop.permute.xlu0 %4363  ;;  %v16875_v38 = vpack.c.bf16 %v3399_v4, %v3395_v11  ;;  %v20021_v36 = vmul.f32 %v3972_v33, %v26587_v23  ;;  %v26607_v62 = vld [vmem:[#allocation59_spill] sm:$0xff]  ;;  %v26611_v22 = vld [vmem:[#allocation105_spill] sm:$0xff] }
 0x34d   : > { %3467 = vmatprep.mubr.f32.mxu0 %v26576_v14  ;;  %v4185_v44 = vsel %vm2148_vm8, %v26603_v58, %v26602_v59  ;;  %v16877_v3 = vpack.c.bf16 %v3398_v42, %v3394_v45  ;;  %3538 = vmatprep.mubr.f32.mxu1 %v26576_v14  ;;  %v20029_v1 = vmul.f32 %v3968_v15, %v26589_v6  ;;  %v16301_v42 = vld [vmem:[%s25901_s5 + $0xc] sm:$0xf] }
 0x34e   : > { %v4180_v11 = vsel %vm2148_vm8, %v26605_v21, %v26604_v20  ;;  %v4181_v33 = vsel %vm2148_vm8, %v26602_v59, %v26606_v50  ;;  %16876 = vmatprep.subr.bf16.mxu1 %v16875_v38  ;;  %v4184_v4 = vsel %vm2148_vm8, %v26607_v62, %v26605_v21  ;;  %v20047_v47 = vmul.f32 %v3964_v0, %v26608_v54  ;;  %v26609_v15 = vld [vmem:[#allocation33_spill] sm:$0xff]  ;;  %v26613_v59 = vld [vmem:[#allocation38_spill] sm:$0xff] }
 0x34f   : > { %16870 = vmatpush1.bf16.msra.mxu0 %v16869_v19  ;;  %v20050_v45 = vmul.f32 %v3976_v60, %v26609_v15  ;;  %v26612_v31 = vpack.c.bf16 %v26610_v51, %v26611_v22  ;;  %v3747_v27 = vpop.permute.xlu1 %3746  ;;  %v20056_v19 = vmul.f32 %v3963_v18, %v26608_v54  ;;  %v20059_v38 = vmul.f32 %v3975_v26, %v26609_v15  ;;  %v26614_v0 = vld [vmem:[#allocation102_spill] sm:$0xff]  ;;  %v26619_v22 = vld [vmem:[#allocation47_spill] sm:$0xff] }
 0x350   : > { %16878 = vmatpush1.bf16.msra.mxu1 %v16877_v3  ;;  %v20062_v21 = vmul.f32 %v4185_v44, %v26613_v59  ;;  %v26616_v10 = vpack.c.bf16 %v26614_v0, %v26615_v30  ;;  %v20067_v60 = vpop.permute.xlu0 %4379  ;;  %v16903_v3 = vpack.c.bf16 %v19955_v13, %v19853_v55  ;;  %v26617_v18 = vld [vmem:[#allocation78_spill] sm:$0xff]  ;;  %v26618_v30 = vld [vmem:[#allocation36_spill] sm:$0xff]  ;;  %v20086_v55 = vmul.f32 %v4184_v4, %v26613_v59  ;;  %v26622_v0 = vld [vmem:[#allocation97_spill] sm:$0xff] }
 0x351   : > { %16880 = vmatprep.subr.bf16.mxu0 %v26612_v31  ;;  %v4176_v26 = vsel %vm2148_vm8, %v26604_v20, %v26617_v18  ;;  %v4188_v44 = vsel %vm2148_vm8, %v26617_v18, %v26607_v62  ;;  %v20089_v13 = vmul.f32 %v4180_v11, %v26618_v30  ;;  %v26620_v20 = vld [vmem:[#allocation46_spill] sm:$0xff]  ;;  %v3756_v4 = vsel %vm1636_vm6, %v3731_v12, %v26622_v0  ;;  %v26623_v18 = vld [vmem:[#allocation109_spill] sm:$0xff]  ;;  %v26624_v51 = vld [vmem:[#allocation115_spill] sm:$0xff] }
 0x352   : > { %16888 = vmatprep.subr.bf16.mxu1 %v26616_v10  ;;  %v20082_v10 = vmul.f32 %v4181_v33, %v26618_v30  ;;  %16422 = vmatmul.mubr.msk.f32.vlgmr.msra.gmra.mrb[8].mxu0 %vm2832_vm10, %v16301_v42  ;;  %v26621_v31 = vpack.c.bf16 %v26619_v22, %v26620_v20  ;;  %v26625_v11 = vpack.c.bf16 %v26623_v18, %v26624_v51  ;;  %v26630_v33 = vld [vmem:[#allocation37_spill] sm:$0xff]  ;;  %v26632_v51 = vld [vmem:[#allocation116_spill] sm:$0xff] }
 0x353   : > { %16423 = vmatmul.mubr.msk.f32.vlgmr.msra.gmra.mrb[8].mxu1 %vm2832_vm10, %v16301_v42  ;;  %v26627_v42 = vld [vmem:[#allocation48_spill] sm:$0xff]  ;;  %v3944_v22 = vpop.permute.xlu1 %3943  ;;  %v20114_v49 = vmul.f32 %v4188_v44, %v26630_v33  ;;  %v26633_v18 = vpack.c.bf16 %v26631_v7, %v26632_v51  ;;  %3636 = vmatprep.mubr.f32.mxu0 %v26576_v14  ;;  %v3775_v20 = vmul.f32 %v3756_v4, %v26561_v2  ;;  %v16302_v7 = vld [vmem:[%s25901_s5 + $0x10] sm:$0xf]  ;;  %v26643_v4 = vld [vmem:[#allocation63_spill] sm:$0xff] }
 0x354   : > { %16882 = vmatpush1.bf16.msra.mxu0 %v26621_v31  ;;  %v26628_v28 = vpack.c.bf16 %v26626_v5, %v26627_v42  ;;  %v26629_v31 = vld [vmem:[#allocation39_spill] sm:$0xff]  ;;  %v26634_v5 = vld [vmem:[#allocation81_spill] sm:$0xff]  ;;  %v26636_v42 = vld [vmem:[#allocation98_spill] sm:$0xff]  ;;  %3707 = vmatprep.mubr.f32.mxu1 %v26576_v14 }
 0x355   : > { %16884 = vmatprep.subr.bf16.mxu0 %v26625_v11  ;;  %v20111_v62 = vmul.f32 %v4176_v26, %v26629_v31  ;;  %v3733_v11 = vpop.permute.xlu0 %3732  ;;  %v26635_v26 = vld [vmem:[#allocation100_spill] sm:$0xff]  ;;  %v4189_v39 = vsel %vm2148_vm8, %v26634_v5, %v26603_v58  ;;  %v26648_v58 = vpack.c.bf16 %v19843_v17, %v19766_v52 }
 0x356   : > { %16890 = vmatpush1.bf16.msra.mxu1 %v26628_v28  ;;  %v4177_v28 = vsel %vm2148_vm8, %v26606_v50, %v26634_v5  ;;  %v3757_v44 = vsel %vm1636_vm6, %v3733_v11, %v26635_v26  ;;  %v3761_v32 = vsel %vm1636_vm6, %v26636_v42, %v3733_v11  ;;  %v26637_v51 = vld [vmem:[#allocation96_spill] sm:$0xff]  ;;  %v3752_v50 = vsel %vm1636_vm6, %v26622_v0, %v3747_v27 }
 0x357   : > { %16892 = vmatprep.subr.bf16.mxu1 %v26633_v18  ;;  %v3760_v18 = vsel %vm1636_vm6, %v26637_v51, %v3731_v12  ;;  %v3779_v63 = vmul.f32 %v3757_v44, %v26561_v2  ;;  %v26640_v11 = vpack.c.bf16 %v26638_v57, %v26639_v61  ;;  %v4393_v12 = vsel %vm2404_vm9, %v26642_v40, %v26641_v48  ;;  %v26644_v57 = vld [vmem:[#allocation108_spill] sm:$0xff]  ;;  %v26645_v61 = vld [vmem:[#allocation114_spill] sm:$0xff]  ;;  %v3960_v37 = vpop.permute.xlu1 %3959 }
 0x358   : > { %v4397_v0 = vsel %vm2404_vm9, %v26643_v4, %v26642_v40  ;;  %v3764_v44 = vsel %vm1636_vm6, %v3747_v27, %v26637_v51  ;;  %v26647_v2 = vpack.c.bf16 %v19875_v25, %v19775_v34  ;;  %v20171_v40 = vmul.f32 %v4177_v28, %v26629_v31  ;;  %v26650_v28 = vld [vmem:[#allocation103_spill] sm:$0xff] }
 0x359   : > { %16886 = vmatpush1.bf16.msra.mxu0 %v26640_v11  ;;  %v26646_v11 = vpack.c.bf16 %v26644_v57, %v26645_v61  ;;  %v3778_v24 = vmul.f32 %v3761_v32, %v26560_v35  ;;  %v3749_v27 = vpop.permute.xlu0 %3748  ;;  %v16899_v51 = vpack.c.bf16 %v3779_v63, %v3775_v20  ;;  %v3774_v57 = vmul.f32 %v3760_v18, %v26560_v35  ;;  %v26652_v18 = vld [vmem:[#allocation40_spill] sm:$0xff] }
 0x35a   : > { %16896 = vmatprep.subr.bf16.mxu0 %v26647_v2  ;;  %v3776_v61 = vmul.f32 %v3752_v50, %v26574_v29  ;;  %v3753_v2 = vsel %vm1636_vm6, %v26635_v26, %v3749_v27  ;;  %v3765_v34 = vsel %vm1636_vm6, %v3749_v27, %v26636_v42  ;;  %v3777_v25 = vmul.f32 %v3764_v44, %v26575_v43 }
 0x35b   : > { %16894 = vmatpush1.bf16.msra.mxu1 %v26646_v11  ;;  %v3780_v32 = vmul.f32 %v3753_v2, %v26574_v29  ;;  %v3781_v63 = vmul.f32 %v3765_v34, %v26575_v43  ;;  %v20194_v5 = vmul.f32 %v4189_v39, %v26630_v33  ;;  %v3969_v26 = vsel %vm1892_vm7, %v3944_v22, %v26650_v28  ;;  %v26653_v11 = vld [vmem:[#allocation99_spill] sm:$0xff]  ;;  %v26656_v2 = vld [vmem:[#allocation82_spill] sm:$0xff] }
 0x35c   : > { %16904 = vmatprep.subr.bf16.mxu1 %v16903_v3  ;;  %16424 = vmatmul.mubr.msk.f32.vlgmr.msra.gmra.mrb[8].mxu0 %vm2832_vm10, %v16302_v7  ;;  %v26649_v3 = vld [vmem:[#allocation42_spill] sm:$0xff]  ;;  %v26651_v42 = vpack.c.bf16 %v19930_v41, %v19850_v46  ;;  %v20203_v50 = vmul.f32 %v4393_v12, %v26652_v18  ;;  %v16901_v52 = vpack.c.bf16 %v3778_v24, %v3774_v57  ;;  %v26655_v41 = vld [vmem:[#allocation104_spill] sm:$0xff] }
 0x35d   : > { %16898 = vmatpush1.bf16.msra.mxu0 %v26648_v58  ;;  %v20191_v20 = vmul.f32 %v4397_v0, %v26649_v3  ;;  %v16909_v17 = vpack.c.bf16 %v3780_v32, %v3776_v61  ;;  %v3946_v0 = vpop.permute.xlu0 %3945  ;;  %v16907_v44 = vpack.c.bf16 %v3781_v63, %v3777_v25  ;;  %3849 = vmatprep.mubr.f32.mxu0 %v26576_v14 }
 0x35e   : > { %16425 = vmatmul.mubr.msk.f32.vlgmr.msra.gmra.mrb[8].mxu1 %vm2832_vm10, %v16302_v7  ;;  %16900 = vmatprep.subr.bf16.mxu0 %v16899_v51  ;;  %v4157_v7 = vpop.permute.xlu1 %4156  ;;  %v16937_v39 = vpack.c.bf16 %v20171_v40, %v20111_v62  ;;  %v3973_v27 = vsel %vm1892_vm7, %v26653_v11, %v3944_v22  ;;  %v26654_v51 = vld [vmem:[#allocation111_spill] sm:$0xff]  ;;  %v3974_v24 = vsel %vm1892_vm7, %v26655_v41, %v3946_v0  ;;  %v16303_v22 = vld [vmem:[%s25901_s5 + $0x14] sm:$0xf] }
 0x35f   : > { %16906 = vmatpush1.bf16.msra.mxu1 %v26651_v42  ;;  %v3970_v46 = vsel %vm1892_vm7, %v3946_v0, %v26654_v51  ;;  %3920 = vmatprep.mubr.f32.mxu1 %v26576_v14  ;;  %v3988_v12 = vmul.f32 %v3969_v26, %v26589_v6  ;;  %v3965_v57 = vsel %vm1892_vm7, %v26650_v28, %v3960_v37  ;;  %v26658_v26 = vld [vmem:[#allocation67_spill] sm:$0xff] }
 0x360   : > { %v3992_v61 = vmul.f32 %v3970_v46, %v26589_v6  ;;  %16908 = vmatprep.subr.bf16.mxu1 %v16907_v44  ;;  %v4389_v34 = vsel %vm2404_vm9, %v26641_v48, %v26656_v2  ;;  %v3977_v25 = vsel %vm1892_vm7, %v3960_v37, %v26653_v11  ;;  %v26657_v32 = vpack.c.bf16 %v20029_v1, %v19952_v53  ;;  %v26659_v48 = vld [vmem:[#allocation83_spill] sm:$0xff] }
 0x361   : > { %16902 = vmatpush1.bf16.msra.mxu0 %v16901_v52  ;;  %v16935_v58 = vpack.c.bf16 %v20194_v5, %v20114_v49  ;;  %v4401_v28 = vsel %vm2404_vm9, %v26656_v2, %v26643_v4  ;;  %v4394_v42 = vsel %vm2404_vm9, %v26659_v48, %v26658_v26  ;;  %v3991_v37 = vmul.f32 %v3974_v24, %v26587_v23  ;;  %v3962_v1 = vpop.permute.xlu0 %3961  ;;  %v26662_v11 = vld [vmem:[#allocation43_spill] sm:$0xff]  ;;  %v26666_v2 = vld [vmem:[#allocation84_spill] sm:$0xff] }
 0x362   : > { %16912 = vmatprep.subr.bf16.mxu0 %v26657_v32  ;;  %v4173_v63 = vpop.permute.xlu1 %4172  ;;  %v26660_v53 = vpack.c.bf16 %v20050_v45, %v20059_v38  ;;  %v16915_v52 = vpack.c.bf16 %v3992_v61, %v3988_v12  ;;  %v3987_v49 = vmul.f32 %v3973_v27, %v26587_v23  ;;  %v3989_v5 = vmul.f32 %v3965_v57, %v26608_v54 }
 0x363   : > { %16910 = vmatpush1.bf16.msra.mxu1 %v16909_v17  ;;  %v3966_v4 = vsel %vm1892_vm7, %v26654_v51, %v3962_v1  ;;  %v3978_v17 = vsel %vm1892_vm7, %v3962_v1, %v26655_v41  ;;  %v3990_v0 = vmul.f32 %v3977_v25, %v26609_v15  ;;  %v26661_v44 = vpack.c.bf16 %v20021_v36, %v19934_v16  ;;  %v26663_v51 = vld [vmem:[#allocation66_spill] sm:$0xff]  ;;  %v26664_v41 = vld [vmem:[#allocation117_spill] sm:$0xff] }
 0x364   : > { %16920 = vmatprep.subr.bf16.mxu1 %v26660_v53  ;;  %16426 = vmatmul.mubr.msk.f32.vlgmr.msra.gmra.mrb[8].mxu0 %vm2832_vm10, %v16303_v22  ;;  %v3993_v45 = vmul.f32 %v3966_v4, %v26608_v54  ;;  %v3994_v38 = vmul.f32 %v3978_v17, %v26609_v15  ;;  %v20267_v27 = vmul.f32 %v4389_v34, %v26662_v11  ;;  %v26667_v25 = vld [vmem:[#allocation110_spill] sm:$0xff] }
 0x365   : > { %16914 = vmatpush1.bf16.msra.mxu0 %v26661_v44  ;;  %v4398_v46 = vsel %vm2404_vm9, %v26663_v51, %v26659_v48  ;;  %v4182_v24 = vsel %vm2148_vm8, %v4157_v7, %v26664_v41  ;;  %v26665_v12 = vpack.c.bf16 %v20047_v47, %v20056_v19  ;;  %v16917_v16 = vpack.c.bf16 %v3991_v37, %v3987_v49  ;;  %v4159_v61 = vpop.permute.xlu0 %4158  ;;  %v26668_v47 = vld [vmem:[#allocation119_spill] sm:$0xff]  ;;  %v26669_v48 = vld [vmem:[#allocation118_spill] sm:$0xff]  ;;  %v26670_v49 = vld [vmem:[#allocation41_spill] sm:$0xff] }
 0x366   : > { %16427 = vmatmul.mubr.msk.f32.vlgmr.msra.gmra.mrb[8].mxu1 %vm2832_vm10, %v16303_v22  ;;  %16916 = vmatprep.subr.bf16.mxu0 %v16915_v52  ;;  %v4370_v57 = vpop.permute.xlu1 %4369  ;;  %v16925_v36 = vpack.c.bf16 %v3993_v45, %v3989_v5  ;;  %v16923_v22 = vpack.c.bf16 %v3994_v38, %v3990_v0  ;;  %v4402_v34 = vsel %vm2404_vm9, %v26666_v2, %v26663_v51 }
 0x367   : > { %16922 = vmatpush1.bf16.msra.mxu1 %v26665_v12  ;;  %4062 = vmatprep.mubr.f32.mxu0 %v26576_v14  ;;  %v4186_v32 = vsel %vm2148_vm8, %v26667_v25, %v4157_v7  ;;  %v4183_v19 = vsel %vm2148_vm8, %v4159_v61, %v26668_v47  ;;  %v4187_v37 = vsel %vm2148_vm8, %v26669_v48, %v4159_v61  ;;  %v16304_v7 = vld [vmem:[%s25901_s5 + $0x18] sm:$0xf] }
 0x368   : > { %4133 = vmatprep.mubr.f32.mxu1 %v26576_v14  ;;  %v4201_v53 = vmul.f32 %v4182_v24, %v26618_v30  ;;  %v4178_v1 = vsel %vm2148_vm8, %v26664_v41, %v4173_v63  ;;  %v4205_v52 = vmul.f32 %v4183_v19, %v26618_v30  ;;  %16924 = vmatprep.subr.bf16.mxu1 %v16923_v22 }
 0x369   : > { %16918 = vmatpush1.bf16.msra.mxu0 %v16917_v16  ;;  %v4408_v5 = vmul.f32 %v4401_v28, %v26670_v49  ;;  %v4410_v4 = vmul.f32 %v4394_v42, %v26652_v18  ;;  %v4190_v17 = vsel %vm2148_vm8, %v4173_v63, %v26667_v25  ;;  %v26671_v0 = vpack.c.bf16 %v20082_v10, %v20089_v13  ;;  %v4175_v42 = vpop.permute.xlu0 %4174 }
 0x36a   : > { %v4378_v45 = vpop.permute.xlu1 %4377  ;;  %v4390_v38 = vsel %vm2404_vm9, %v26658_v26, %v26666_v2  ;;  %v4412_v44 = vmul.f32 %v4402_v34, %v26670_v49  ;;  %v4204_v28 = vmul.f32 %v4187_v37, %v26613_v59  ;;  %v16931_v51 = vpack.c.bf16 %v4205_v52, %v4201_v53 }
 0x36b   : > { %16926 = vmatpush1.bf16.msra.mxu1 %v16925_v36  ;;  %16928 = vmatprep.subr.bf16.mxu0 %v26671_v0  ;;  %v4200_v63 = vmul.f32 %v4186_v32, %v26613_v59  ;;  %v4202_v41 = vmul.f32 %v4178_v1, %v26629_v31  ;;  %v4179_v10 = vsel %vm2148_vm8, %v26668_v47, %v4175_v42 }
 0x36c   : > { %16936 = vmatprep.subr.bf16.mxu1 %v16935_v58  ;;  %v4191_v13 = vsel %vm2148_vm8, %v4175_v42, %v26669_v48  ;;  %16428 = vmatmul.mubr.msk.f32.vlgmr.msra.gmra.mrb[8].mxu0 %vm2832_vm10, %v16304_v7  ;;  %v4203_v26 = vmul.f32 %v4190_v17, %v26630_v33  ;;  %v4206_v58 = vmul.f32 %v4179_v10, %v26629_v31 }
 0x36d   : > { %v4207_v24 = vmul.f32 %v4191_v13, %v26630_v33  ;;  %v26672_v12 = vpack.c.bf16 %v20062_v21, %v20086_v55  ;;  %v4409_v16 = vmul.f32 %v4398_v46, %v26649_v3  ;;  %v4395_v36 = vsel %vm2404_vm9, %v4370_v57, %v4378_v45  ;;  %v4372_v32 = vpop.permute.xlu0 %4371  ;;  %4275 = vmatprep.mubr.f32.mxu0 %v26576_v14 }
 0x36e   : > { %16429 = vmatmul.mubr.msk.f32.vlgmr.msra.gmra.mrb[8].mxu1 %vm2832_vm10, %v16304_v7  ;;  %v4386_v61 = vpop.permute.xlu1 %4385  ;;  %v16943_v22 = vpack.c.bf16 %v4410_v4, %v20203_v50  ;;  %v4411_v2 = vmul.f32 %v4390_v38, %v26662_v11  ;;  %v16933_v34 = vpack.c.bf16 %v4204_v28, %v4200_v63  ;;  %v16941_v25 = vpack.c.bf16 %v4206_v58, %v4202_v41 }
 0x36f   : > { %16930 = vmatpush1.bf16.msra.mxu0 %v26672_v12  ;;  %16938 = vmatpush1.bf16.msra.mxu1 %v16937_v39  ;;  %v16939_v21 = vpack.c.bf16 %v4207_v24, %v4203_v26  ;;  %v4399_v55 = vsel %vm2404_vm9, %v19963_v8, %v4370_v57  ;;  %v4396_v62 = vsel %vm2404_vm9, %v4372_v32, %v20067_v60  ;;  %v16305_v57 = vld [vmem:[%s25901_s5 + $0x1c] sm:$0xf]  ;;  %v4579_v28 = vstv %s384_s27 }
 0x370   : > { %16932 = vmatprep.subr.bf16.mxu0 %v16931_v51  ;;  %v4400_v40 = vsel %vm2404_vm9, %v20013_v56, %v4372_v32  ;;  %v16951_v50 = vpack.c.bf16 %v4412_v44, %v4408_v5  ;;  %4346 = vmatprep.mubr.f32.mxu1 %v26576_v14  ;;  %v4414_v39 = vmul.f32 %v4395_v36, %v26652_v18 }
 0x371   : > { %v4391_v46 = vsel %vm2404_vm9, %v4378_v45, %v4386_v61  ;;  %v4418_v47 = vmul.f32 %v4396_v62, %v26652_v18  ;;  %16940 = vmatprep.subr.bf16.mxu1 %v16939_v21  ;;  %v4403_v19 = vsel %vm2404_vm9, %v4386_v61, %v19963_v8  ;;  %v16945_v48 = vpack.c.bf16 %v4409_v16, %v20191_v20  ;;  %v4388_v1 = vpop.permute.xlu0 %4387 }
 0x372   : > { %v16953_v37 = vpack.c.bf16 %v4411_v2, %v20267_v27  ;;  %v4417_v53 = vmul.f32 %v4400_v40, %v26649_v3  ;;  %v4413_v7 = vmul.f32 %v4399_v55, %v26649_v3  ;;  %v4415_v5 = vmul.f32 %v4391_v46, %v26662_v11 }
 0x373   : > { %16934 = vmatpush1.bf16.msra.mxu0 %v16933_v34  ;;  %16942 = vmatpush1.bf16.msra.mxu1 %v16941_v25  ;;  %v16947_v52 = vpack.c.bf16 %v4418_v47, %v4414_v39  ;;  %v4392_v4 = vsel %vm2404_vm9, %v20067_v60, %v4388_v1  ;;  %v4404_v8 = vsel %vm2404_vm9, %v4388_v1, %v20013_v56  ;;  %v16306_v56 = vld [vmem:[%s25901_s5 + $0x20] sm:$0xf]  ;;  %v18071_v34 = vld [vmem:[#allocation2 + $0x8] sm:$0xff]  ;;  %v26678_v1 = vld [vmem:[#allocation7_spill] sm:$0xff] }
 0x374   : > { %16944 = vmatprep.subr.bf16.mxu0 %v16943_v22  ;;  %16952 = vmatprep.subr.bf16.mxu1 %v16951_v50  ;;  %v4416_v20 = vmul.f32 %v4403_v19, %v26670_v49  ;;  %v4419_v27 = vmul.f32 %v4392_v4, %v26662_v11  ;;  %v4420_v17 = vmul.f32 %v4404_v8, %v26670_v49  ;;  %v18070_v22 = vld [vmem:[#allocation2] sm:$0xff]  ;;  %v26676_v50 = vld [vmem:[#allocation6_spill] sm:$0xff] }
 0x375   : > { %v16949_v0 = vpack.c.bf16 %v4417_v53, %v4413_v7 }
 0x376   : > { %16430 = vmatmul.mubr.msk.f32.vlgmr.msra.gmra.mrb[8].mxu0 %vm2832_vm10, %v16305_v57  ;;  %16431 = vmatmul.mubr.msk.f32.vlgmr.msra.gmra.mrb[8].mxu1 %vm2832_vm10, %v16305_v57  ;;  %v16957_v60 = vpack.c.bf16 %v4419_v27, %v4415_v5  ;;  %v16955_v45 = vpack.c.bf16 %v4420_v17, %v4416_v20  ;;  %v26679_v5 = vld [vmem:[#allocation9_spill] sm:$0xff]  ;;  %v18072_v27 = vld [vmem:[%s25899_s3 + $0x20] sm:$0xff]  ;;  %v26680_v17 = vld [vmem:[#allocation10_spill] sm:$0xff] }
 0x377   : > { %16946 = vmatpush1.bf16.msra.mxu0 %v16945_v48  ;;  %16954 = vmatpush1.bf16.msra.mxu1 %v16953_v37  ;;  %v26677_v37 = vld [vmem:[#allocation8_spill] sm:$0xff] }
 0x378   : > { %16948 = vmatprep.subr.bf16.mxu0 %v16947_v52  ;;  %4488 = vmatprep.mubr.f32.mxu0 %v26576_v14 }
 0x379   : > { %4559 = vmatprep.mubr.f32.mxu1 %v26576_v14  ;;  %16956 = vmatprep.subr.bf16.mxu1 %v16955_v45 }
 0x37b   : > { %16950 = vmatpush1.bf16.msra.mxu0 %v16949_v0  ;;  %16958 = vmatpush1.bf16.msra.mxu1 %v16957_v60  ;;  %v20393_v38 = vpop.permute.xlu1 %4572 }
 0x37c   : > { %26673 = vst [vmem:[#allocation69_spill] sm:$0xff] %v20393_v38 }
 0x37e   : > { %16432 = vmatmul.mubr.msk.f32.vlgmr.msra.gmra.mrb[8].mxu0 %vm2832_vm10, %v16306_v56  ;;  %16433 = vmatmul.mubr.msk.f32.vlgmr.msra.gmra.mrb[8].mxu1 %vm2832_vm10, %v16306_v56 }
 0x37f   : > { %4716 = vmatprep.mubr.f32.mxu0 %v26576_v14  ;;  %4805 = vmatprep.mubr.f32.mxu1 %v26576_v14 }
 0x451   : > { %v4490_v44 = vpop.f32.mrb[8].mxu0  ;;  %v4561_v63 = vpop.f32.mrb[8].mxu1 }
 0x452   : > { %v4575_v42 = vadd.f32 %v20393_v38, %v4490_v44  ;;  %v4492_v51 = vpop.f32.mrb[9].mxu0  ;;  %v4577_v10 = vadd.f32 %v20393_v38, %v4561_v63  ;;  %v4563_v13 = vpop.f32.mrb[9].mxu1 }
 0x453   : > { %v4576_v41 = vadd.f32 %v20393_v38, %v4492_v51  ;;  %v4578_v58 = vadd.f32 %v20393_v38, %v4563_v13  ;;  %v26681_v51 = vld [vmem:[#allocation12_spill] sm:$0xff] }
 0x454   : > { %v4580_v26 = vmul.f32 %v4579_v28, %v4575_v42  ;;  %v4582_v12 = vmul.f32 %v4579_v28, %v4577_v10  ;;  %v18073_v42 = vld [vmem:[%s25899_s3 + $0x28] sm:$0xff] }
 0x455   : > { %v4581_v24 = vmul.f32 %v4579_v28, %v4576_v41  ;;  %v4583_v16 = vmul.f32 %v4579_v28, %v4578_v58  ;;  %v26682_v41 = vld [vmem:[#allocation11_spill] sm:$0xff] }
 0x457   : > { %v4588_v36 = vcombine.low %v4580_v26, %v4581_v24  ;;  %v4589_v61 = vcombine.low %v4582_v12, %v4583_v16  ;;  %v26683_v26 = vld [vmem:[#allocation13_spill] sm:$0xff]  ;;  %v18074_v16 = vld [vmem:[%s25899_s3 + $0x30] sm:$0xff] }
 0x459   : > { %v20399_v2 = vadd.f32 %v18070_v22, %v4588_v36  ;;  %v20401_v25 = vadd.f32 %v18071_v34, %v4589_v61  ;;  %v26684_v36 = vld [vmem:[#allocation14_spill] sm:$0xff] }
 0x45b   : > { %26674 = vst [vmem:[#allocation87_spill] sm:$0xff] %v20399_v2  ;;  %26675 = vst [vmem:[#allocation53_spill] sm:$0xff] %v20401_v25  ;;  %4624 = vrot.lane.b32.xlu0 %v20399_v2, %s18246_s18  ;;  %v4596_v32 = vcombine.high %v20399_v2, %v20399_v2  ;;  %v4597_v21 = vcombine.high %v20401_v25, %v20401_v25 }
 0x45c   : > { %4600 = vst [vmem:[%s18323_s13] sm:$0xf] %v20399_v2  ;;  %4602 = vst [vmem:[%s18323_s13 + $0x10] sm:$0xf] %v20401_v25 }
 0x45d   : > { %4626 = vrot.lane.b32.xlu1 %v4596_v32, %s18246_s18  ;;  %4601 = vst [vmem:[%s18323_s13 + $0x8] sm:$0xf] %v4596_v32  ;;  %4603 = vst [vmem:[%s18323_s13 + $0x18] sm:$0xf] %v4597_v21 }
 0x45f   : > { %4628 = vrot.lane.b32.xlu0 %v20401_v25, %s18246_s18 }
 0x461   : > { %4630 = vrot.lane.b32.xlu1 %v4597_v21, %s18246_s18 }
 0x463   : > { %4608 = vrot.lane.b32.xlu0 %v20399_v2, %s18248_s19 }
 0x465   : > { %4610 = vrot.lane.b32.xlu1 %v4596_v32, %s18248_s19 }
 0x467   : > { %4612 = vrot.lane.b32.xlu0 %v20401_v25, %s18248_s19 }
 0x469   : > { %4614 = vrot.lane.b32.xlu1 %v4597_v21, %s18248_s19 }
 0x46b   : > { %5020 = vrot.lane.b32.xlu0 %v20399_v2, %s18249_s20 }
 0x46d   : > { %5022 = vrot.lane.b32.xlu1 %v4596_v32, %s18249_s20 }
 0x46f   : > { %5024 = vrot.lane.b32.xlu0 %v20401_v25, %s18249_s20 }
 0x471   : > { %5026 = vrot.lane.b32.xlu1 %v4597_v21, %s18249_s20 }
 0x473   : > { %5242 = vrot.lane.b32.xlu0 %v20399_v2, %s18250_s21 }
 0x475   : > { %5244 = vrot.lane.b32.xlu1 %v4596_v32, %s18250_s21 }
 0x477   : > { %5246 = vrot.lane.b32.xlu0 %v20401_v25, %s18250_s21 }
 0x479   : > { %5248 = vrot.lane.b32.xlu1 %v4597_v21, %s18250_s21 }
 0x47b   : > { %5672 = vrot.lane.b32.xlu0 %v20399_v2, %s18251_s22 }
 0x47d   : > { %5674 = vrot.lane.b32.xlu1 %v4596_v32, %s18251_s22 }
 0x47f   : > { %5676 = vrot.lane.b32.xlu0 %v20401_v25, %s18251_s22 }
 0x481   : > { %5678 = vrot.lane.b32.xlu1 %v4597_v21, %s18251_s22 }
 0x483   : > { %5894 = vrot.lane.b32.xlu0 %v20399_v2, %s18252_s23 }
 0x485   : > { %5896 = vrot.lane.b32.xlu1 %v4596_v32, %s18252_s23 }
 0x487   : > { %5898 = vrot.lane.b32.xlu0 %v20401_v25, %s18252_s23 }
 0x489   : > { %5900 = vrot.lane.b32.xlu1 %v4597_v21, %s18252_s23 }
 0x48b   : > { %6116 = vrot.lane.b32.xlu0 %v20399_v2, %s18253_s24 }
 0x48d   : > { %6118 = vrot.lane.b32.xlu1 %v4596_v32, %s18253_s24 }
 0x48f   : > { %6120 = vrot.lane.b32.xlu0 %v20401_v25, %s18253_s24 }
 0x491   : > { %6122 = vrot.lane.b32.xlu1 %v4597_v21, %s18253_s24 }
 0x493   : > { %6338 = vrot.lane.b32.xlu0 %v20399_v2, %s18254_s25 }
 0x495   : > { %6340 = vrot.lane.b32.xlu1 %v4596_v32, %s18254_s25 }
 0x497   : > { %6342 = vrot.lane.b32.xlu0 %v20401_v25, %s18254_s25 }
 0x499   : > { %6344 = vrot.lane.b32.xlu1 %v4597_v21, %s18254_s25 }
 0x4cd   : > { %v4625_v55 = vpop.permute.xlu0 %4624 }
 0x4cf   : > { %v4627_v62 = vpop.permute.xlu1 %4626 }
 0x4d0   : > { %v4634_v40 = vsel %vm439_vm0, %v4625_v55, %v4627_v62 }
 0x4d1   : > { %v4637_v39 = vmul.f32 %v4634_v40, %v26676_v50  ;;  %v4629_v46 = vpop.permute.xlu0 %4628  ;;  %v26685_v40 = vld [vmem:[#allocation16_spill] sm:$0xff] }
 0x4d2   : > { %v4633_v47 = vsel %vm439_vm0, %v4627_v62, %v4629_v46 }
 0x4d3   : > { %16434 = vmatprep.subr.msk.mxu0 %vm482_vm2, %v4637_v39  ;;  %v4631_v57 = vpop.permute.xlu1 %4630  ;;  %v4638_v4 = vmul.f32 %v4633_v47, %v26679_v5 }
 0x4d4   : > { %v4632_v19 = vsel %vm439_vm0, %v4629_v46, %v4631_v57  ;;  %v4635_v48 = vsel %vm439_vm0, %v4631_v57, %v4625_v55  ;;  %v18075_v55 = vld [vmem:[%s25899_s3 + $0x38] sm:$0xff] }
 0x4d5   : > { %v4636_v53 = vmul.f32 %v4635_v48, %v26677_v37  ;;  %v4639_v52 = vmul.f32 %v4632_v19, %v26678_v1  ;;  %v4609_v7 = vpop.permute.xlu0 %4608  ;;  %v26686_v46 = vld [vmem:[#allocation15_spill] sm:$0xff]  ;;  %v26687_v48 = vld [vmem:[#allocation17_spill] sm:$0xff] }
 0x4d7   : > { %16435 = vmatpush1.msk.msra.mxu0 %vm482_vm2, %v4636_v53  ;;  %16440 = vmatprep.subr.msk.mxu1 %vm482_vm2, %v4639_v52  ;;  %v4611_v8 = vpop.permute.xlu1 %4610 }
 0x4d8   : > { %v4618_v20 = vsel %vm401_vm1, %v4609_v7, %v4611_v8  ;;  %16436 = vmatmul.mubr.msk.f32.vlgmr.msra.gmra.mrb[10].mxu0 %vm469_vm3, %v18072_v27  ;;  %16441 = vmatpush1.msk.msra.mxu1 %vm482_vm2, %v4638_v4  ;;  %v26688_v4 = vld [vmem:[#allocation18_spill] sm:$0xff] }
 0x4d9   : > { %v4621_v0 = vmul.f32 %v4618_v20, %v26680_v17  ;;  %v4613_v60 = vpop.permute.xlu0 %4612  ;;  %16442 = vmatmul.mubr.msk.f32.vlgmr.msra.gmra.mrb[10].mxu1 %vm469_vm3, %v18072_v27  ;;  %4722 = vmatprep.mubr.f32.mxu0 %v26576_v14 }
 0x4da   : > { %4811 = vmatprep.mubr.f32.mxu1 %v26576_v14  ;;  %v4617_v45 = vsel %vm401_vm1, %v4611_v8, %v4613_v60 }
 0x4db   : > { %16446 = vmatprep.subr.msk.mxu0 %vm482_vm2, %v4621_v0  ;;  %v4615_v56 = vpop.permute.xlu1 %4614  ;;  %v4622_v58 = vmul.f32 %v4617_v45, %v26683_v26  ;;  %v26689_v45 = vld [vmem:[#allocation19_spill] sm:$0xff] }
 0x4dc   : > { %v4616_v44 = vsel %vm401_vm1, %v4613_v60, %v4615_v56  ;;  %v4619_v28 = vsel %vm401_vm1, %v4615_v56, %v4609_v7  ;;  %16437 = vmatmul.mubr.msk.f32.gmra.mrb[12].mxu0 %vm469_vm3, %v18073_v42  ;;  %v18076_v7 = vld [vmem:[%s25899_s3] sm:$0xff]  ;;  %v18077_v60 = vld [vmem:[%s25899_s3 + $0x8] sm:$0xff] }
 0x4dd   : > { %v4620_v63 = vmul.f32 %v4619_v28, %v26681_v51  ;;  %v4623_v10 = vmul.f32 %v4616_v44, %v26682_v41  ;;  %v5021_v13 = vpop.permute.xlu0 %5020  ;;  %16443 = vmatmul.mubr.msk.f32.gmra.mrb[12].mxu1 %vm469_vm3, %v18073_v42  ;;  %4728 = vmatprep.mubr.f32.mxu0 %v26576_v14  ;;  %v18078_v44 = vld [vmem:[%s25899_s3 + $0x10] sm:$0xff]  ;;  %v18079_v42 = vld [vmem:[%s25899_s3 + $0x18] sm:$0xff] }
 0x4de   : > { %4817 = vmatprep.mubr.f32.mxu1 %v26576_v14 }
 0x4df   : > { %16447 = vmatpush1.msk.msra.mxu0 %vm482_vm2, %v4620_v63  ;;  %16452 = vmatprep.subr.msk.mxu1 %vm482_vm2, %v4623_v10  ;;  %v5023_v24 = vpop.permute.xlu1 %5022  ;;  %v26690_v63 = vld [vmem:[#allocation24_spill] sm:$0xff] }
 0x4e0   : > { %v5030_v12 = vsel %vm883_vm4, %v5021_v13, %v5023_v24  ;;  %16438 = vmatmul.mubr.msk.f32.gmra.mrb[14].mxu0 %vm469_vm3, %v18074_v16  ;;  %16453 = vmatpush1.msk.msra.mxu1 %vm482_vm2, %v4622_v58  ;;  %v5464_v10 = vmul.f32 %v20399_v2, %v26690_v63  ;;  %v26691_v58 = vld [vmem:[#allocation25_spill] sm:$0xff] }
 0x4e1   : > { %v5033_v61 = vmul.f32 %v5030_v12, %v26684_v36  ;;  %v5025_v22 = vpop.permute.xlu0 %5024  ;;  %16444 = vmatmul.mubr.msk.f32.gmra.mrb[14].mxu1 %vm469_vm3, %v18074_v16  ;;  %4734 = vmatprep.mubr.f32.mxu0 %v26576_v14  ;;  %v26692_v12 = vld [vmem:[#allocation26_spill] sm:$0xff] }
 0x4e2   : > { %4823 = vmatprep.mubr.f32.mxu1 %v26576_v14  ;;  %v5029_v62 = vsel %vm883_vm4, %v5023_v24, %v5025_v22  ;;  %v5465_v24 = vmul.f32 %v20401_v25, %v26691_v58 }
 0x4e3   : > { %16458 = vmatprep.subr.msk.mxu0 %vm482_vm2, %v5033_v61  ;;  %v5027_v34 = vpop.permute.xlu1 %5026  ;;  %v5034_v53 = vmul.f32 %v5029_v62, %v26687_v48  ;;  %v26693_v61 = vld [vmem:[#allocation27_spill] sm:$0xff]  ;;  %v18081_v62 = vld [vmem:[%s25899_s3 + $0x48] sm:$0xff] }
 0x4e4   : > { %v5028_v32 = vsel %vm883_vm4, %v5025_v22, %v5027_v34  ;;  %v5031_v21 = vsel %vm883_vm4, %v5027_v34, %v5021_v13  ;;  %16439 = vmatmul.mubr.msk.f32.gmra.mrb[16].mxu0 %vm469_vm3, %v18075_v55  ;;  %v18080_v34 = vld [vmem:[%s25899_s3 + $0x40] sm:$0xff] }
 0x4e5   : > { %v5032_v39 = vmul.f32 %v5031_v21, %v26685_v40  ;;  %v5035_v47 = vmul.f32 %v5028_v32, %v26686_v46  ;;  %v5243_v57 = vpop.permute.xlu0 %5242  ;;  %16445 = vmatmul.mubr.msk.f32.gmra.mrb[16].mxu1 %vm469_vm3, %v18075_v55  ;;  %4906 = vmatprep.mubr.f32.mxu0 %v26576_v14  ;;  %v5468_v32 = vcombine.high %v5464_v10, %v5464_v10 }
 0x4e6   : > { %4995 = vmatprep.mubr.f32.mxu1 %v26576_v14  ;;  %v5469_v21 = vcombine.high %v5465_v24, %v5465_v24 }
 0x4e7   : > { %16464 = vmatprep.subr.msk.mxu1 %vm482_vm2, %v5035_v47  ;;  %v5245_v19 = vpop.permute.xlu1 %5244  ;;  %v18082_v47 = vld [vmem:[%s25899_s3 + $0x50] sm:$0xff] }
 0x4e8   : > { %v5252_v52 = vsel %vm1139_vm5, %v5243_v57, %v5245_v19  ;;  %16448 = vmatmul.mubr.msk.f32.vlgmr.msra.gmra.mrb[10].mxu0 %vm469_vm3, %v18076_v7 }
 0x4e9   : > { %v5255_v8 = vmul.f32 %v5252_v52, %v26688_v4  ;;  %16459 = vmatpush1.msk.msra.mxu0 %vm482_vm2, %v5032_v39  ;;  %16454 = vmatmul.mubr.msk.f32.vlgmr.msra.gmra.mrb[10].mxu1 %vm469_vm3, %v18076_v7  ;;  %v5247_v20 = vpop.permute.xlu0 %5246 }
 0x4ea   : > { %16465 = vmatpush1.msk.msra.mxu1 %vm482_vm2, %v5034_v53  ;;  %4912 = vmatprep.mubr.f32.mxu0 %v26576_v14  ;;  %v5251_v13 = vsel %vm1139_vm5, %v5245_v19, %v5247_v20  ;;  %v18083_v53 = vld [vmem:[%s25899_s3 + $0x58] sm:$0xff] }
 0x4eb   : > { %16470 = vmatprep.subr.msk.mxu0 %vm482_vm2, %v5255_v8  ;;  %v5249_v27 = vpop.permute.xlu1 %5248  ;;  %5001 = vmatprep.mubr.f32.mxu1 %v26576_v14  ;;  %v5256_v22 = vmul.f32 %v5251_v13, %v26693_v61  ;;  %v26694_v8 = vld [vmem:[#allocation28_spill] sm:$0xff] }
 0x4ec   : > { %v5250_v0 = vsel %vm1139_vm5, %v5247_v20, %v5249_v27  ;;  %16449 = vmatmul.mubr.msk.f32.gmra.mrb[12].mxu0 %vm469_vm3, %v18077_v60  ;;  %v5253_v28 = vsel %vm1139_vm5, %v5249_v27, %v5243_v57  ;;  %v18084_v27 = vld [vmem:[%s25899_s3 + $0x60] sm:$0xff] }
 0x4ed   : > { %v5257_v56 = vmul.f32 %v5250_v0, %v26689_v45  ;;  %16455 = vmatmul.mubr.msk.f32.gmra.mrb[12].mxu1 %vm469_vm3, %v18077_v60  ;;  %4918 = vmatprep.mubr.f32.mxu0 %v26576_v14  ;;  %v5254_v16 = vmul.f32 %v5253_v28, %v26692_v12  ;;  %v5673_v55 = vpop.permute.xlu0 %5672  ;;  %v18086_v28 = vld [vmem:[%s25899_s3 + $0x70] sm:$0xff] }
 0x4ee   : > { %5007 = vmatprep.mubr.f32.mxu1 %v26576_v14 }
 0x4ef   : > { %16476 = vmatprep.subr.msk.mxu1 %vm482_vm2, %v5257_v56  ;;  %v5675_v39 = vpop.permute.xlu1 %5674  ;;  %v18085_v56 = vld [vmem:[%s25899_s3 + $0x68] sm:$0xff] }
 0x4f0   : > { %16450 = vmatmul.mubr.msk.f32.gmra.mrb[14].mxu0 %vm469_vm3, %v18078_v44  ;;  %v5682_v13 = vsel %vm1636_vm6, %v5673_v55, %v5675_v39 }
 0x4f1   : > { %16456 = vmatmul.mubr.msk.f32.gmra.mrb[14].mxu1 %vm469_vm3, %v18078_v44  ;;  %4924 = vmatprep.mubr.f32.mxu0 %v26576_v14  ;;  %v5677_v57 = vpop.permute.xlu0 %5676 }
 0x4f2   : > { %5013 = vmatprep.mubr.f32.mxu1 %v26576_v14  ;;  %v5681_v52 = vsel %vm1636_vm6, %v5675_v39, %v5677_v57 }
 0x4f3   : > { %v5679_v19 = vpop.permute.xlu1 %5678  ;;  %v5685_v20 = vmul.f32 %v5681_v52, %v26694_v8 }
 0x4f4   : > { %16451 = vmatmul.mubr.msk.f32.gmra.mrb[16].mxu0 %vm469_vm3, %v18079_v42  ;;  %v5683_v7 = vsel %vm1636_vm6, %v5679_v19, %v5673_v55 }
 0x4f5   : > { %16457 = vmatmul.mubr.msk.f32.gmra.mrb[16].mxu1 %vm469_vm3, %v18079_v42  ;;  %5112 = vmatprep.mubr.f32.mxu0 %v26576_v14  ;;  %v5687_v0 = vmul.f32 %v5683_v7, %v26575_v43  ;;  %v5895_v60 = vpop.permute.xlu0 %5894 }
 0x4f6   : > { %5201 = vmatprep.mubr.f32.mxu1 %v26576_v14 }
 0x4f7   : > { %v5897_v44 = vpop.permute.xlu1 %5896 }
 0x4f8   : > { %16460 = vmatmul.mubr.msk.f32.vlgmr.msra.gmra.mrb[10].mxu0 %vm469_vm3, %v18080_v34 }
 0x4f9   : > { %16471 = vmatpush1.msk.msra.mxu0 %vm482_vm2, %v5254_v16  ;;  %16466 = vmatmul.mubr.msk.f32.vlgmr.msra.gmra.mrb[10].mxu1 %vm469_vm3, %v18080_v34  ;;  %v5899_v42 = vpop.permute.xlu0 %5898  ;;  %v5680_v16 = vsel %vm1636_vm6, %v5677_v57, %v5679_v19  ;;  %v18089_v57 = vld [vmem:[%s25899_s3 + $0x88] sm:$0xff] }
 0x4fa   : > { %16477 = vmatpush1.msk.msra.mxu1 %vm482_vm2, %v5256_v22  ;;  %16482 = vmatprep.subr.msk.mxu0 %vm482_vm2, %v5468_v32  ;;  %v5903_v22 = vsel %vm1892_vm7, %v5897_v44, %v5899_v42  ;;  %v5684_v32 = vmul.f32 %v5682_v13, %v26560_v35 }
 0x4fb   : > { %16488 = vmatprep.subr.msk.mxu1 %vm482_vm2, %v5469_v21  ;;  %5118 = vmatprep.mubr.f32.mxu0 %v26576_v14  ;;  %v5686_v21 = vmul.f32 %v5680_v16, %v26574_v29  ;;  %v5907_v55 = vmul.f32 %v5903_v22, %v26589_v6  ;;  %v18093_v16 = vld [vmem:[%s25899_s3 + $0xa8] sm:$0xff] }
 0x4fc   : > { %16461 = vmatmul.mubr.msk.f32.gmra.mrb[12].mxu0 %vm469_vm3, %v18081_v62  ;;  %5207 = vmatprep.mubr.f32.mxu1 %v26576_v14 }
 0x4fd   : > { %16467 = vmatmul.mubr.msk.f32.gmra.mrb[12].mxu1 %vm469_vm3, %v18081_v62  ;;  %5124 = vmatprep.mubr.f32.mxu0 %v26576_v14  ;;  %v18088_v62 = vld [vmem:[%s25899_s3 + $0x80] sm:$0xff] }
 0x4fe   : > { %5213 = vmatprep.mubr.f32.mxu1 %v26576_v14 }
 0x500   : > { %16462 = vmatmul.mubr.msk.f32.gmra.mrb[14].mxu0 %vm469_vm3, %v18082_v47 }
 0x501   : > { %16468 = vmatmul.mubr.msk.f32.gmra.mrb[14].mxu1 %vm469_vm3, %v18082_v47  ;;  %5130 = vmatprep.mubr.f32.mxu0 %v26576_v14  ;;  %v6117_v47 = vpop.permute.xlu0 %6116 }
 0x502   : > { %5219 = vmatprep.mubr.f32.mxu1 %v26576_v14 }
 0x504   : > { %16463 = vmatmul.mubr.msk.f32.gmra.mrb[16].mxu0 %vm469_vm3, %v18083_v53 }
 0x505   : > { %16469 = vmatmul.mubr.msk.f32.gmra.mrb[16].mxu1 %vm469_vm3, %v18083_v53  ;;  %5334 = vmatprep.mubr.f32.mxu0 %v26576_v14  ;;  %v18090_v53 = vld [vmem:[%s25899_s3 + $0x90] sm:$0xff]  ;;  %v6121_v52 = vpop.permute.xlu0 %6120 }
 0x506   : > { %5423 = vmatprep.mubr.f32.mxu1 %v26576_v14 }
 0x508   : > { %16472 = vmatmul.mubr.msk.f32.vlgmr.msra.gmra.mrb[10].mxu0 %vm469_vm3, %v18084_v27 }
 0x509   : > { %16483 = vmatpush1.msk.msra.mxu0 %vm482_vm2, %v5464_v10  ;;  %16478 = vmatmul.mubr.msk.f32.vlgmr.msra.gmra.mrb[10].mxu1 %vm469_vm3, %v18084_v27  ;;  %v5901_v10 = vpop.permute.xlu1 %5900  ;;  %v18091_v27 = vld [vmem:[%s25899_s3 + $0x98] sm:$0xff] }
 0x50a   : > { %16489 = vmatpush1.msk.msra.mxu1 %vm482_vm2, %v5465_v24  ;;  %16494 = vmatprep.subr.msk.mxu0 %vm482_vm2, %v5685_v20  ;;  %v18087_v24 = vld [vmem:[%s25899_s3 + $0x78] sm:$0xff]  ;;  %v5905_v34 = vsel %vm1892_vm7, %v5901_v10, %v5895_v60  ;;  %v5904_v20 = vsel %vm1892_vm7, %v5895_v60, %v5897_v44 }
 0x50b   : > { %16500 = vmatprep.subr.msk.mxu1 %vm482_vm2, %v5687_v0  ;;  %5340 = vmatprep.mubr.f32.mxu0 %v26576_v14  ;;  %v5909_v39 = vmul.f32 %v5905_v34, %v26609_v15  ;;  %v5902_v0 = vsel %vm1892_vm7, %v5899_v42, %v5901_v10  ;;  %v5906_v60 = vmul.f32 %v5904_v20, %v26587_v23  ;;  %v18092_v42 = vld [vmem:[%s25899_s3 + $0xa0] sm:$0xff]  ;;  %v18094_v34 = vld [vmem:[%s25899_s3 + $0xb0] sm:$0xff] }
 0x50c   : > { %16473 = vmatmul.mubr.msk.f32.gmra.mrb[12].mxu0 %vm469_vm3, %v18085_v56  ;;  %5429 = vmatprep.mubr.f32.mxu1 %v26576_v14  ;;  %v5908_v44 = vmul.f32 %v5902_v0, %v26608_v54  ;;  %v18098_v0 = vld [vmem:[%s25899_s3 + $0xd0] sm:$0xff] }
 0x50d   : > { %16479 = vmatmul.mubr.msk.f32.gmra.mrb[12].mxu1 %vm469_vm3, %v18085_v56  ;;  %5346 = vmatprep.mubr.f32.mxu0 %v26576_v14  ;;  %v6119_v19 = vpop.permute.xlu1 %6118 }
 0x50e   : > { %5435 = vmatprep.mubr.f32.mxu1 %v26576_v14  ;;  %v6125_v56 = vsel %vm2148_vm8, %v6119_v19, %v6121_v52 }
 0x50f   : > { %v6129_v13 = vmul.f32 %v6125_v56, %v26618_v30 }
 0x510   : > { %16474 = vmatmul.mubr.msk.f32.gmra.mrb[14].mxu0 %vm469_vm3, %v18086_v28 }
 0x511   : > { %16480 = vmatmul.mubr.msk.f32.gmra.mrb[14].mxu1 %vm469_vm3, %v18086_v28  ;;  %5352 = vmatprep.mubr.f32.mxu0 %v26576_v14  ;;  %v6123_v7 = vpop.permute.xlu1 %6122 }
 0x512   : > { %5441 = vmatprep.mubr.f32.mxu1 %v26576_v14  ;;  %v6127_v28 = vsel %vm2148_vm8, %v6123_v7, %v6117_v47 }
 0x513   : > { %v6131_v10 = vmul.f32 %v6127_v28, %v26630_v33  ;;  %v18099_v28 = vld [vmem:[%s25899_s3 + $0xd8] sm:$0xff] }
 0x514   : > { %16475 = vmatmul.mubr.msk.f32.gmra.mrb[16].mxu0 %vm469_vm3, %v18087_v24 }
 0x515   : > { %16481 = vmatmul.mubr.msk.f32.gmra.mrb[16].mxu1 %vm469_vm3, %v18087_v24  ;;  %5542 = vmatprep.mubr.f32.mxu0 %v26576_v14  ;;  %v6339_v24 = vpop.permute.xlu0 %6338  ;;  %v6341_v22 = vpop.permute.xlu1 %6340 }
 0x516   : > { %5631 = vmatprep.mubr.f32.mxu1 %v26576_v14  ;;  %v6348_v56 = vsel %vm2404_vm9, %v6339_v24, %v6341_v22 }
 0x518   : > { %16484 = vmatmul.mubr.msk.f32.vlgmr.msra.gmra.mrb[10].mxu0 %vm469_vm3, %v18088_v62 }
 0x519   : > { %16495 = vmatpush1.msk.msra.mxu0 %vm482_vm2, %v5684_v32  ;;  %16490 = vmatmul.mubr.msk.f32.vlgmr.msra.gmra.mrb[10].mxu1 %vm469_vm3, %v18088_v62  ;;  %v6343_v32 = vpop.permute.xlu0 %6342  ;;  %v18095_v62 = vld [vmem:[%s25899_s3 + $0xb8] sm:$0xff] }
 0x51a   : > { %16501 = vmatpush1.msk.msra.mxu1 %vm482_vm2, %v5686_v21  ;;  %16506 = vmatprep.subr.msk.mxu0 %vm482_vm2, %v5907_v55  ;;  %v6345_v21 = vpop.permute.xlu1 %6344  ;;  %v6126_v55 = vsel %vm2148_vm8, %v6117_v47, %v6119_v19 }
 0x51b   : > { %16512 = vmatprep.subr.msk.mxu1 %vm482_vm2, %v5909_v39  ;;  %5548 = vmatprep.mubr.f32.mxu0 %v26576_v14  ;;  %v6124_v39 = vsel %vm2148_vm8, %v6121_v52, %v6123_v7  ;;  %v6128_v47 = vmul.f32 %v6126_v55, %v26613_v59  ;;  %v18096_v52 = vld [vmem:[%s25899_s3 + $0xc0] sm:$0xff] }
 0x51c   : > { %16485 = vmatmul.mubr.msk.f32.gmra.mrb[12].mxu0 %vm469_vm3, %v18089_v57  ;;  %5637 = vmatprep.mubr.f32.mxu1 %v26576_v14  ;;  %v6130_v19 = vmul.f32 %v6124_v39, %v26629_v31 }
 0x51d   : > { %16491 = vmatmul.mubr.msk.f32.gmra.mrb[12].mxu1 %vm469_vm3, %v18089_v57  ;;  %5554 = vmatprep.mubr.f32.mxu0 %v26576_v14  ;;  %v6347_v57 = vsel %vm2404_vm9, %v6341_v22, %v6343_v32  ;;  %v18104_v22 = vld [vmem:[%s25899_s3 + $0x100] sm:$0xff] }
 0x51e   : > { %5643 = vmatprep.mubr.f32.mxu1 %v26576_v14  ;;  %v6351_v20 = vmul.f32 %v6347_v57, %v26652_v18 }
 0x520   : > { %16486 = vmatmul.mubr.msk.f32.gmra.mrb[14].mxu0 %vm469_vm3, %v18090_v53 }
 0x521   : > { %16492 = vmatmul.mubr.msk.f32.gmra.mrb[14].mxu1 %vm469_vm3, %v18090_v53  ;;  %5560 = vmatprep.mubr.f32.mxu0 %v26576_v14  ;;  %v6349_v53 = vsel %vm2404_vm9, %v6345_v21, %v6339_v24  ;;  %v18102_v24 = vld [vmem:[%s25899_s3 + $0xf0] sm:$0xff] }
 0x522   : > { %5649 = vmatprep.mubr.f32.mxu1 %v26576_v14  ;;  %v6353_v7 = vmul.f32 %v6349_v53, %v26670_v49 }
 0x524   : > { %16487 = vmatmul.mubr.msk.f32.gmra.mrb[16].mxu0 %vm469_vm3, %v18091_v27 }
 0x525   : > { %16493 = vmatmul.mubr.msk.f32.gmra.mrb[16].mxu1 %vm469_vm3, %v18091_v27  ;;  %5764 = vmatprep.mubr.f32.mxu0 %v26576_v14  ;;  %v18097_v27 = vld [vmem:[%s25899_s3 + $0xc8] sm:$0xff] }
 0x526   : > { %5853 = vmatprep.mubr.f32.mxu1 %v26576_v14 }
 0x528   : > { %16496 = vmatmul.mubr.msk.f32.vlgmr.msra.gmra.mrb[10].mxu0 %vm469_vm3, %v18092_v42 }
 0x529   : > { %16507 = vmatpush1.msk.msra.mxu0 %vm482_vm2, %v5906_v60  ;;  %16502 = vmatmul.mubr.msk.f32.vlgmr.msra.gmra.mrb[10].mxu1 %vm469_vm3, %v18092_v42  ;;  %v6346_v60 = vsel %vm2404_vm9, %v6343_v32, %v6345_v21  ;;  %v18100_v42 = vld [vmem:[%s25899_s3 + $0xe0] sm:$0xff]  ;;  %v18106_v32 = vld [vmem:[%s25899_s3 + $0x110] sm:$0xff]  ;;  %v18107_v21 = vld [vmem:[%s25899_s3 + $0x118] sm:$0xff] }
 0x52a   : > { %16513 = vmatpush1.msk.msra.mxu1 %vm482_vm2, %v5908_v44  ;;  %16518 = vmatprep.subr.msk.mxu0 %vm482_vm2, %v6129_v13  ;;  %v6350_v44 = vmul.f32 %v6348_v56, %v26649_v3  ;;  %v6352_v13 = vmul.f32 %v6346_v60, %v26662_v11 }
 0x52b   : > { %16524 = vmatprep.subr.msk.mxu1 %vm482_vm2, %v6131_v10  ;;  %5770 = vmatprep.mubr.f32.mxu0 %v26576_v14  ;;  %v18101_v10 = vld [vmem:[%s25899_s3 + $0xe8] sm:$0xff] }
 0x52c   : > { %16497 = vmatmul.mubr.msk.f32.gmra.mrb[12].mxu0 %vm469_vm3, %v18093_v16  ;;  %5859 = vmatprep.mubr.f32.mxu1 %v26576_v14 }
 0x52d   : > { %16503 = vmatmul.mubr.msk.f32.gmra.mrb[12].mxu1 %vm469_vm3, %v18093_v16  ;;  %5776 = vmatprep.mubr.f32.mxu0 %v26576_v14  ;;  %v18103_v16 = vld [vmem:[%s25899_s3 + $0xf8] sm:$0xff] }
 0x52e   : > { %5865 = vmatprep.mubr.f32.mxu1 %v26576_v14 }
 0x530   : > { %16498 = vmatmul.mubr.msk.f32.gmra.mrb[14].mxu0 %vm469_vm3, %v18094_v34 }
 0x531   : > { %16504 = vmatmul.mubr.msk.f32.gmra.mrb[14].mxu1 %vm469_vm3, %v18094_v34  ;;  %5782 = vmatprep.mubr.f32.mxu0 %v26576_v14  ;;  %v18105_v34 = vld [vmem:[%s25899_s3 + $0x108] sm:$0xff] }
 0x532   : > { %5871 = vmatprep.mubr.f32.mxu1 %v26576_v14 }
 0x534   : > { %16499 = vmatmul.mubr.msk.f32.gmra.mrb[16].mxu0 %vm469_vm3, %v18095_v62 }
 0x535   : > { %16505 = vmatmul.mubr.msk.f32.gmra.mrb[16].mxu1 %vm469_vm3, %v18095_v62  ;;  %5986 = vmatprep.mubr.f32.mxu0 %v26576_v14  ;;  %v26695_v62 = vld [vmem:[#allocation44_spill] sm:$0xff] }
 0x536   : > { %6075 = vmatprep.mubr.f32.mxu1 %v26576_v14 }
 0x538   : > { %16508 = vmatmul.mubr.msk.f32.vlgmr.msra.gmra.mrb[10].mxu0 %vm469_vm3, %v18096_v52 }
 0x539   : > { %16519 = vmatpush1.msk.msra.mxu0 %vm482_vm2, %v6128_v47  ;;  %16514 = vmatmul.mubr.msk.f32.vlgmr.msra.gmra.mrb[10].mxu1 %vm469_vm3, %v18096_v52 }
 0x53a   : > { %16525 = vmatpush1.msk.msra.mxu1 %vm482_vm2, %v6130_v19  ;;  %16530 = vmatprep.subr.msk.mxu0 %vm482_vm2, %v6351_v20 }
 0x53b   : > { %16536 = vmatprep.subr.msk.mxu1 %vm482_vm2, %v6353_v7  ;;  %5992 = vmatprep.mubr.f32.mxu0 %v26576_v14  ;;  %v26696_v7 = vld [vmem:[#allocation45_spill] sm:$0xff] }
 0x53c   : > { %16509 = vmatmul.mubr.msk.f32.gmra.mrb[12].mxu0 %vm469_vm3, %v18097_v27  ;;  %6081 = vmatprep.mubr.f32.mxu1 %v26576_v14 }
 0x53d   : > { %16515 = vmatmul.mubr.msk.f32.gmra.mrb[12].mxu1 %vm469_vm3, %v18097_v27  ;;  %5998 = vmatprep.mubr.f32.mxu0 %v26576_v14 }
 0x53e   : > { %6087 = vmatprep.mubr.f32.mxu1 %v26576_v14 }
 0x540   : > { %16510 = vmatmul.mubr.msk.f32.gmra.mrb[14].mxu0 %vm469_vm3, %v18098_v0 }
 0x541   : > { %16516 = vmatmul.mubr.msk.f32.gmra.mrb[14].mxu1 %vm469_vm3, %v18098_v0  ;;  %6004 = vmatprep.mubr.f32.mxu0 %v26576_v14 }
 0x542   : > { %6093 = vmatprep.mubr.f32.mxu1 %v26576_v14 }
 0x544   : > { %16511 = vmatmul.mubr.msk.f32.gmra.mrb[16].mxu0 %vm469_vm3, %v18099_v28 }
 0x545   : > { %16517 = vmatmul.mubr.msk.f32.gmra.mrb[16].mxu1 %vm469_vm3, %v18099_v28  ;;  %6208 = vmatprep.mubr.f32.mxu0 %v26576_v14 }
 0x546   : > { %6297 = vmatprep.mubr.f32.mxu1 %v26576_v14 }
 0x548   : > { %16520 = vmatmul.mubr.msk.f32.vlgmr.msra.gmra.mrb[10].mxu0 %vm469_vm3, %v18100_v42 }
 0x549   : > { %16531 = vmatpush1.msk.msra.mxu0 %vm482_vm2, %v6350_v44  ;;  %16526 = vmatmul.mubr.msk.f32.vlgmr.msra.gmra.mrb[10].mxu1 %vm469_vm3, %v18100_v42 }
 0x54a   : > { %16537 = vmatpush1.msk.msra.mxu1 %vm482_vm2, %v6352_v13  ;;  %6214 = vmatprep.mubr.f32.mxu0 %v26576_v14 }
 0x54b   : > { %6303 = vmatprep.mubr.f32.mxu1 %v26576_v14 }
 0x54c   : > { %16521 = vmatmul.mubr.msk.f32.gmra.mrb[12].mxu0 %vm469_vm3, %v18101_v10 }
 0x54d   : > { %16527 = vmatmul.mubr.msk.f32.gmra.mrb[12].mxu1 %vm469_vm3, %v18101_v10  ;;  %6220 = vmatprep.mubr.f32.mxu0 %v26576_v14 }
 0x54e   : > { %6309 = vmatprep.mubr.f32.mxu1 %v26576_v14 }
 0x550   : > { %16522 = vmatmul.mubr.msk.f32.gmra.mrb[14].mxu0 %vm469_vm3, %v18102_v24 }
 0x551   : > { %16528 = vmatmul.mubr.msk.f32.gmra.mrb[14].mxu1 %vm469_vm3, %v18102_v24  ;;  %6226 = vmatprep.mubr.f32.mxu0 %v26576_v14 }
 0x552   : > { %6315 = vmatprep.mubr.f32.mxu1 %v26576_v14 }
 0x554   : > { %16523 = vmatmul.mubr.msk.f32.gmra.mrb[16].mxu0 %vm469_vm3, %v18103_v16 }
 0x555   : > { %16529 = vmatmul.mubr.msk.f32.gmra.mrb[16].mxu1 %vm469_vm3, %v18103_v16  ;;  %6430 = vmatprep.mubr.f32.mxu0 %v26576_v14 }
 0x556   : > { %6519 = vmatprep.mubr.f32.mxu1 %v26576_v14 }
 0x558   : > { %16532 = vmatmul.mubr.msk.f32.vlgmr.msra.gmra.mrb[10].mxu0 %vm469_vm3, %v18104_v22 }
 0x559   : > { %16538 = vmatmul.mubr.msk.f32.vlgmr.msra.gmra.mrb[10].mxu1 %vm469_vm3, %v18104_v22  ;;  %6436 = vmatprep.mubr.f32.mxu0 %v26576_v14  ;;  %v26697_v22 = vld [vmem:[#allocation20_spill] sm:$0xff] }
 0x55a   : > { %6525 = vmatprep.mubr.f32.mxu1 %v26576_v14 }
 0x55c   : > { %16533 = vmatmul.mubr.msk.f32.gmra.mrb[12].mxu0 %vm469_vm3, %v18105_v34 }
 0x55d   : > { %16539 = vmatmul.mubr.msk.f32.gmra.mrb[12].mxu1 %vm469_vm3, %v18105_v34  ;;  %6442 = vmatprep.mubr.f32.mxu0 %v26576_v14 }
 0x55e   : > { %6531 = vmatprep.mubr.f32.mxu1 %v26576_v14 }
 0x560   : > { %16534 = vmatmul.mubr.msk.f32.gmra.mrb[14].mxu0 %vm469_vm3, %v18106_v32 }
 0x561   : > { %16540 = vmatmul.mubr.msk.f32.gmra.mrb[14].mxu1 %vm469_vm3, %v18106_v32  ;;  %6448 = vmatprep.mubr.f32.mxu0 %v26576_v14 }
 0x562   : > { %6537 = vmatprep.mubr.f32.mxu1 %v26576_v14 }
 0x564   : > { %16535 = vmatmul.mubr.msk.f32.gmra.mrb[16].mxu0 %vm469_vm3, %v18107_v21 }
 0x565   : > { %16541 = vmatmul.mubr.msk.f32.gmra.mrb[16].mxu1 %vm469_vm3, %v18107_v21  ;;  %6784 = vmatprep.mubr.f32.mxu0 %v26576_v14 }
 0x566   : > { %6855 = vmatprep.mubr.f32.mxu1 %v26576_v14 }
 0x62b   : > { %v6432_v55 = vpop.f32.mrb[10].mxu0 }
 0x62c   : > { %v6560_v39 = vadd.f32 %v6432_v55, %v26695_v62  ;;  %v6434_v57 = vpop.f32.mrb[11].mxu0  ;;  %v6521_v53 = vpop.f32.mrb[10].mxu1  ;;  %v26700_v55 = vld [vmem:[#allocation22_spill] sm:$0xff] }
 0x62d   : > { %v6562_v47 = vadd.f32 %v6521_v53, %v26695_v62  ;;  %v6523_v19 = vpop.f32.mrb[11].mxu1 }
 0x62e   : > { %v6576_v20 = vmax.f32 %v6560_v39, 0.0  ;;  %v6563_v63 = vadd.f32 %v6523_v19, %v26695_v62 }
 0x62f   : > { %v6438_v52 = vpop.f32.mrb[12].mxu0  ;;  %v6578_v28 = vmax.f32 %v6562_v47, 0.0 }
 0x630   : > { %v6564_v27 = vadd.f32 %v6438_v52, %v26696_v7  ;;  %6656 = vrot.lane.b32.xlu0 %v6576_v20, %s18246_s18  ;;  %v6440_v0 = vpop.f32.mrb[13].mxu0  ;;  %v6527_v56 = vpop.f32.mrb[12].mxu1  ;;  %v20863_v34 = vmul.f32 %v6576_v20, %v26697_v22 }
 0x631   : > { %v6566_v60 = vadd.f32 %v6527_v56, %v26696_v7  ;;  %v6529_v44 = vpop.f32.mrb[13].mxu1  ;;  %v20871_v39 = vmul.f32 %v6578_v28, %v26700_v55  ;;  %v6565_v25 = vadd.f32 %v6440_v0, %v26696_v7 }
 0x632   : > { %v6580_v13 = vmax.f32 %v6564_v27, 0.0  ;;  %26698 = vst [vmem:[#allocation68_spill] sm:$0xff] %v20863_v34  ;;  %v6561_v27 = vadd.f32 %v6434_v57, %v26695_v62  ;;  %v6567_v57 = vadd.f32 %v6529_v44, %v26696_v7  ;;  %v26704_v7 = vld [vmem:[#allocation51_spill] sm:$0xff] }
 0x633   : > { %v6582_v42 = vmax.f32 %v6566_v60, 0.0  ;;  %v20854_v10 = vpop.f32.mrb[14].mxu0  ;;  %26701 = vst [vmem:[#allocation52_spill] sm:$0xff] %v20871_v39  ;;  %v20926_v2 = vmax.f32 %v6565_v25, 0.0 }
 0x634   : > { %6658 = vrot.lane.b32.xlu1 %v6580_v13, %s18246_s18  ;;  %v20857_v24 = vpop.f32.mrb[15].mxu0  ;;  %6672 = vrot.lane.b32.xlu0 %v6578_v28, %s18246_s18  ;;  %v20860_v16 = vpop.f32.mrb[14].mxu1  ;;  %v20866_v32 = vmul.f32 %v6580_v13, %v26697_v22  ;;  %v20917_v47 = vmax.f32 %v6561_v27, 0.0  ;;  %v20933_v19 = vmax.f32 %v6567_v57, 0.0 }
 0x635   : > { %v20868_v21 = vpop.f32.mrb[15].mxu1  ;;  %v20874_v53 = vmul.f32 %v6582_v42, %v26700_v55 }
 0x636   : > { %26699 = vst [vmem:[#allocation85_spill] sm:$0xff] %v20866_v32 }
 0x637   : > { %26702 = vst [vmem:[#allocation86_spill] sm:$0xff] %v20874_v53  ;;  %v20878_v52 = vpop.f32.mrb[16].mxu0 }
 0x638   : > { %v20882_v56 = vpop.f32.mrb[17].mxu0  ;;  %6592 = vrot.lane.b32.xlu0 %v6576_v20, %s18248_s19  ;;  %6674 = vrot.lane.b32.xlu1 %v6582_v42, %s18246_s18  ;;  %v20886_v60 = vpop.f32.mrb[16].mxu1  ;;  %v6572_v62 = vadd.f32 %v20878_v52, %v26704_v7 }
 0x639   : > { %v20888_v58 = vpop.f32.mrb[17].mxu1 }
 0x63c   : > { %6608 = vrot.lane.b32.xlu0 %v6578_v28, %s18248_s19  ;;  %6594 = vrot.lane.b32.xlu1 %v6580_v13, %s18248_s19 }
 0x640   : > { %7004 = vrot.lane.b32.xlu0 %v6576_v20, %s18249_s20  ;;  %6610 = vrot.lane.b32.xlu1 %v6582_v42, %s18248_s19 }
 0x644   : > { %7020 = vrot.lane.b32.xlu0 %v6578_v28, %s18249_s20  ;;  %7006 = vrot.lane.b32.xlu1 %v6580_v13, %s18249_s20 }
 0x648   : > { %7214 = vrot.lane.b32.xlu0 %v6576_v20, %s18250_s21  ;;  %7022 = vrot.lane.b32.xlu1 %v6582_v42, %s18249_s20 }
 0x64c   : > { %7230 = vrot.lane.b32.xlu0 %v6578_v28, %s18250_s21  ;;  %7216 = vrot.lane.b32.xlu1 %v6580_v13, %s18250_s21 }
 0x650   : > { %7586 = vrot.lane.b32.xlu0 %v6576_v20, %s18251_s22  ;;  %7232 = vrot.lane.b32.xlu1 %v6582_v42, %s18250_s21 }
 0x654   : > { %7602 = vrot.lane.b32.xlu0 %v6578_v28, %s18251_s22  ;;  %7588 = vrot.lane.b32.xlu1 %v6580_v13, %s18251_s22 }
 0x658   : > { %7796 = vrot.lane.b32.xlu0 %v6576_v20, %s18252_s23  ;;  %7604 = vrot.lane.b32.xlu1 %v6582_v42, %s18251_s22 }
 0x65c   : > { %7812 = vrot.lane.b32.xlu0 %v6578_v28, %s18252_s23  ;;  %7798 = vrot.lane.b32.xlu1 %v6580_v13, %s18252_s23 }
 0x660   : > { %8006 = vrot.lane.b32.xlu0 %v6576_v20, %s18253_s24  ;;  %7814 = vrot.lane.b32.xlu1 %v6582_v42, %s18252_s23 }
 0x664   : > { %8022 = vrot.lane.b32.xlu0 %v6578_v28, %s18253_s24  ;;  %8008 = vrot.lane.b32.xlu1 %v6580_v13, %s18253_s24 }
 0x668   : > { %8216 = vrot.lane.b32.xlu0 %v6576_v20, %s18254_s25  ;;  %8024 = vrot.lane.b32.xlu1 %v6582_v42, %s18253_s24  ;;  %v20924_v20 = vmax.f32 %v6563_v63, 0.0 }
 0x66c   : > { %8232 = vrot.lane.b32.xlu0 %v6578_v28, %s18254_s25  ;;  %8218 = vrot.lane.b32.xlu1 %v6580_v13, %s18254_s25  ;;  %v26703_v28 = vld [vmem:[#allocation50_spill] sm:$0xff] }
 0x66d   : > { %v6568_v44 = vadd.f32 %v20854_v10, %v26703_v28  ;;  %v6570_v57 = vadd.f32 %v20860_v16, %v26703_v28  ;;  %v6574_v16 = vadd.f32 %v20886_v60, %v26704_v7 }
 0x66f   : > { %v21003_v27 = vmax.f32 %v6568_v44, 0.0  ;;  %v21017_v49 = vmax.f32 %v6570_v57, 0.0  ;;  %v21019_v44 = vmax.f32 %v6572_v62, 0.0  ;;  %v21031_v18 = vmax.f32 %v6574_v16, 0.0 }
 0x670   : > { %6664 = vrot.lane.b32.xlu0 %v20917_v47, %s18246_s18  ;;  %8234 = vrot.lane.b32.xlu1 %v6582_v42, %s18254_s25 }
 0x674   : > { %6680 = vrot.lane.b32.xlu0 %v20924_v20, %s18246_s18  ;;  %6666 = vrot.lane.b32.xlu1 %v20926_v2, %s18246_s18 }
 0x678   : > { %6600 = vrot.lane.b32.xlu0 %v20917_v47, %s18248_s19  ;;  %6682 = vrot.lane.b32.xlu1 %v20933_v19, %s18246_s18 }
 0x67c   : > { %6616 = vrot.lane.b32.xlu0 %v20924_v20, %s18248_s19  ;;  %6602 = vrot.lane.b32.xlu1 %v20926_v2, %s18248_s19 }
 0x680   : > { %7012 = vrot.lane.b32.xlu0 %v20917_v47, %s18249_s20  ;;  %6618 = vrot.lane.b32.xlu1 %v20933_v19, %s18248_s19 }
 0x684   : > { %7028 = vrot.lane.b32.xlu0 %v20924_v20, %s18249_s20  ;;  %7014 = vrot.lane.b32.xlu1 %v20926_v2, %s18249_s20 }
 0x688   : > { %7222 = vrot.lane.b32.xlu0 %v20917_v47, %s18250_s21  ;;  %7030 = vrot.lane.b32.xlu1 %v20933_v19, %s18249_s20 }
 0x68c   : > { %7238 = vrot.lane.b32.xlu0 %v20924_v20, %s18250_s21  ;;  %7224 = vrot.lane.b32.xlu1 %v20926_v2, %s18250_s21 }
 0x690   : > { %7594 = vrot.lane.b32.xlu0 %v20917_v47, %s18251_s22  ;;  %7240 = vrot.lane.b32.xlu1 %v20933_v19, %s18250_s21 }
 0x694   : > { %7610 = vrot.lane.b32.xlu0 %v20924_v20, %s18251_s22  ;;  %7596 = vrot.lane.b32.xlu1 %v20926_v2, %s18251_s22 }
 0x698   : > { %7804 = vrot.lane.b32.xlu0 %v20917_v47, %s18252_s23  ;;  %7612 = vrot.lane.b32.xlu1 %v20933_v19, %s18251_s22 }
 0x69c   : > { %7820 = vrot.lane.b32.xlu0 %v20924_v20, %s18252_s23  ;;  %7806 = vrot.lane.b32.xlu1 %v20926_v2, %s18252_s23 }
 0x6a0   : > { %8014 = vrot.lane.b32.xlu0 %v20917_v47, %s18253_s24  ;;  %7822 = vrot.lane.b32.xlu1 %v20933_v19, %s18252_s23 }
 0x6a2   : > { %v20979_v25 = vpop.permute.xlu0 %6656 }
 0x6a4   : > { %8030 = vrot.lane.b32.xlu0 %v20924_v20, %s18253_s24  ;;  %8016 = vrot.lane.b32.xlu1 %v20926_v2, %s18253_s24 }
 0x6a6   : > { %v20985_v63 = vpop.permute.xlu0 %6672  ;;  %v20987_v0 = vpop.permute.xlu1 %6658 }
 0x6a8   : > { %8224 = vrot.lane.b32.xlu0 %v20917_v47, %s18254_s25  ;;  %8032 = vrot.lane.b32.xlu1 %v20933_v19, %s18253_s24 }
 0x6aa   : > { %v20995_v13 = vpop.permute.xlu0 %6592  ;;  %v20997_v42 = vpop.permute.xlu1 %6674 }
 0x6ac   : > { %8240 = vrot.lane.b32.xlu0 %v20924_v20, %s18254_s25  ;;  %8226 = vrot.lane.b32.xlu1 %v20926_v2, %s18254_s25 }
 0x6ae   : > { %v21009_v38 = vpop.permute.xlu0 %6608  ;;  %v21011_v10 = vpop.permute.xlu1 %6594 }
 0x6b0   : > { %6660 = vrot.lane.b32.xlu0 %v21003_v27, %s18246_s18  ;;  %8242 = vrot.lane.b32.xlu1 %v20933_v19, %s18254_s25 }
 0x6b2   : > { %v21023_v11 = vpop.permute.xlu0 %7004  ;;  %v21025_v52 = vpop.permute.xlu1 %6610 }
 0x6b4   : > { %6662 = vrot.lane.b32.xlu1 %v21019_v44, %s18246_s18  ;;  %6676 = vrot.lane.b32.xlu0 %v21017_v49, %s18246_s18 }
 0x6b6   : > { %v21033_v3 = vpop.permute.xlu0 %7020  ;;  %v21035_v57 = vpop.permute.xlu1 %7006 }
 0x6b8   : > { %6596 = vrot.lane.b32.xlu0 %v21003_v27, %s18248_s19  ;;  %6678 = vrot.lane.b32.xlu1 %v21031_v18, %s18246_s18 }
 0x6ba   : > { %v21041_v62 = vpop.permute.xlu0 %7214  ;;  %v21043_v60 = vpop.permute.xlu1 %7022 }
 0x6bc   : > { %6612 = vrot.lane.b32.xlu0 %v21017_v49, %s18248_s19  ;;  %6598 = vrot.lane.b32.xlu1 %v21019_v44, %s18248_s19 }
 0x6be   : > { %v21049_v16 = vpop.permute.xlu0 %7230  ;;  %v21051_v33 = vpop.permute.xlu1 %7216 }
 0x6c0   : > { %7008 = vrot.lane.b32.xlu0 %v21003_v27, %s18249_s20  ;;  %6614 = vrot.lane.b32.xlu1 %v21031_v18, %s18248_s19 }
 0x6c2   : > { %v21057_v31 = vpop.permute.xlu0 %7586  ;;  %v21059_v39 = vpop.permute.xlu1 %7232 }
 0x6c3   : > { %26705 = vst [vmem:[#allocation89_spill] sm:$0xff] %v21057_v31 }
 0x6c4   : > { %7024 = vrot.lane.b32.xlu0 %v21017_v49, %s18249_s20  ;;  %7010 = vrot.lane.b32.xlu1 %v21019_v44, %s18249_s20 }
 0x6c6   : > { %v21065_v53 = vpop.permute.xlu0 %7602  ;;  %v21067_v34 = vpop.permute.xlu1 %7588 }
 0x6c7   : > { %26706 = vst [vmem:[#allocation88_spill] sm:$0xff] %v21065_v53  ;;  %26707 = vst [vmem:[#allocation91_spill] sm:$0xff] %v21067_v34 }
 0x6c8   : > { %7218 = vrot.lane.b32.xlu0 %v21003_v27, %s18250_s21  ;;  %7026 = vrot.lane.b32.xlu1 %v21031_v18, %s18249_s20 }
 0x6ca   : > { %v21073_v32 = vpop.permute.xlu0 %7796  ;;  %v21075_v30 = vpop.permute.xlu1 %7604 }
 0x6cb   : > { %26708 = vst [vmem:[#allocation70_spill] sm:$0xff] %v21073_v32  ;;  %26709 = vst [vmem:[#allocation71_spill] sm:$0xff] %v21075_v30  ;;  %v6571_v32 = vadd.f32 %v20868_v21, %v26703_v28 }
 0x6cc   : > { %7234 = vrot.lane.b32.xlu0 %v21017_v49, %s18250_s21  ;;  %7220 = vrot.lane.b32.xlu1 %v21019_v44, %s18250_s21 }
 0x6ce   : > { %v21081_v59 = vpop.permute.xlu0 %7812  ;;  %v21083_v15 = vpop.permute.xlu1 %7798 }
 0x6cf   : > { %26710 = vst [vmem:[#allocation54_spill] sm:$0xff] %v21081_v59  ;;  %26711 = vst [vmem:[#allocation90_spill] sm:$0xff] %v21083_v15 }
 0x6d0   : > { %7590 = vrot.lane.b32.xlu0 %v21003_v27, %s18251_s22  ;;  %7236 = vrot.lane.b32.xlu1 %v21031_v18, %s18250_s21 }
 0x6d2   : > { %v21089_v54 = vpop.permute.xlu0 %8006  ;;  %v21091_v6 = vpop.permute.xlu1 %7814 }
 0x6d3   : > { %26712 = vst [vmem:[#allocation56_spill] sm:$0xff] %v21089_v54  ;;  %26713 = vst [vmem:[#allocation92_spill] sm:$0xff] %v21091_v6 }
 0x6d4   : > { %7606 = vrot.lane.b32.xlu0 %v21017_v49, %s18251_s22  ;;  %7592 = vrot.lane.b32.xlu1 %v21019_v44, %s18251_s22 }
 0x6d6   : > { %v21097_v23 = vpop.permute.xlu0 %8022  ;;  %v21099_v59 = vpop.permute.xlu1 %8008 }
 0x6d7   : > { %26714 = vst [vmem:[#allocation72_spill] sm:$0xff] %v21097_v23  ;;  %26715 = vst [vmem:[#allocation55_spill] sm:$0xff] %v21099_v59 }
 0x6d8   : > { %7800 = vrot.lane.b32.xlu0 %v21003_v27, %s18252_s23  ;;  %7608 = vrot.lane.b32.xlu1 %v21031_v18, %s18251_s22 }
 0x6da   : > { %v21105_v15 = vpop.permute.xlu0 %8216  ;;  %v21107_v54 = vpop.permute.xlu1 %8024 }
 0x6db   : > { %26716 = vst [vmem:[#allocation73_spill] sm:$0xff] %v21105_v15  ;;  %26717 = vst [vmem:[#allocation93_spill] sm:$0xff] %v21107_v54  ;;  %v6569_v15 = vadd.f32 %v20857_v24, %v26703_v28 }
 0x6dc   : > { %7816 = vrot.lane.b32.xlu0 %v21017_v49, %s18252_s23  ;;  %7802 = vrot.lane.b32.xlu1 %v21019_v44, %s18252_s23 }
 0x6de   : > { %v21113_v6 = vpop.permute.xlu0 %8232  ;;  %v21115_v23 = vpop.permute.xlu1 %8218 }
 0x6df   : > { %26718 = vst [vmem:[#allocation57_spill] sm:$0xff] %v21113_v6  ;;  %26719 = vst [vmem:[#allocation95_spill] sm:$0xff] %v21115_v23  ;;  %v21132_v6 = vmax.f32 %v6569_v15, 0.0 }
 0x6e0   : > { %8010 = vrot.lane.b32.xlu0 %v21003_v27, %s18253_s24  ;;  %7818 = vrot.lane.b32.xlu1 %v21031_v18, %s18252_s23 }
 0x6e2   : > { %v6665_v54 = vpop.permute.xlu0 %6664  ;;  %v21123_v59 = vpop.permute.xlu1 %8234 }
 0x6e3   : > { %26720 = vst [vmem:[#allocation94_spill] sm:$0xff] %v21123_v59  ;;  %v6696_v23 = vsel %vm439_vm0, %v20979_v25, %v6665_v54  ;;  %v6573_v59 = vadd.f32 %v20882_v56, %v26704_v7  ;;  %v21153_v56 = vmax.f32 %v6571_v32, 0.0 }
 0x6e4   : > { %8026 = vrot.lane.b32.xlu0 %v21017_v49, %s18253_s24  ;;  %8012 = vrot.lane.b32.xlu1 %v21019_v44, %s18253_s24  ;;  %v6705_v29 = vmul.f32 %v6696_v23, %v26676_v50  ;;  %v6575_v23 = vadd.f32 %v20888_v58, %v26704_v7 }
 0x6e5   : > { %v21162_v35 = vmax.f32 %v6573_v59, 0.0 }
 0x6e6   : > { %v6681_v14 = vpop.permute.xlu0 %6680  ;;  %v6667_v24 = vpop.permute.xlu1 %6666 }
 0x6e7   : > { %v6697_v43 = vsel %vm439_vm0, %v20987_v0, %v6667_v24  ;;  %v6688_v15 = vsel %vm439_vm0, %v20985_v63, %v6681_v14  ;;  %v6700_v21 = vsel %vm439_vm0, %v6681_v14, %v20979_v25  ;;  %v6692_v14 = vsel %vm439_vm0, %v6665_v54, %v20985_v63 }
 0x6e8   : > { %v6709_v30 = vmul.f32 %v6697_v43, %v26676_v50  ;;  %6668 = vrot.lane.b32.xlu0 %v21132_v6, %s18246_s18  ;;  %8028 = vrot.lane.b32.xlu1 %v21031_v18, %s18253_s24  ;;  %v6693_v43 = vsel %vm439_vm0, %v6667_v24, %v20997_v42  ;;  %v6704_v25 = vmul.f32 %v6700_v21, %v26677_v37 }
 0x6e9   : > { %v6707_v24 = vmul.f32 %v6688_v15, %v26678_v1  ;;  %v6710_v54 = vmul.f32 %v6693_v43, %v26679_v5  ;;  %v6706_v15 = vmul.f32 %v6692_v14, %v26679_v5 }
 0x6ea   : > { %v21160_v28 = vpop.permute.xlu0 %6600  ;;  %v6683_v34 = vpop.permute.xlu1 %6682  ;;  %v16959_v8 = vpack.c.bf16 %v6709_v30, %v6705_v29 }
 0x6eb   : > { %v6689_v32 = vsel %vm439_vm0, %v20997_v42, %v6683_v34  ;;  %v6701_v58 = vsel %vm439_vm0, %v6683_v34, %v20987_v0  ;;  %v21186_v42 = vmax.f32 %v6575_v23, 0.0  ;;  %v16969_v21 = vpack.c.bf16 %v6710_v54, %v6706_v15 }
 0x6ec   : > { %v6708_v29 = vmul.f32 %v6701_v58, %v26677_v37  ;;  %v6711_v59 = vmul.f32 %v6689_v32, %v26678_v1  ;;  %6684 = vrot.lane.b32.xlu0 %v21153_v56, %s18246_s18  ;;  %6670 = vrot.lane.b32.xlu1 %v21162_v35, %s18246_s18 }
 0x6ed   : > { %16960 = vmatprep.subr.bf16.mxu0 %v16959_v8 }
 0x6ee   : > { %v16961_v30 = vpack.c.bf16 %v6708_v29, %v6704_v25  ;;  %v21182_v63 = vpop.permute.xlu0 %6616  ;;  %v21184_v34 = vpop.permute.xlu1 %6602  ;;  %v16967_v0 = vpack.c.bf16 %v6711_v59, %v6707_v24 }
 0x6f0   : > { %6604 = vrot.lane.b32.xlu0 %v21132_v6, %s18248_s19  ;;  %6686 = vrot.lane.b32.xlu1 %v21186_v42, %s18246_s18 }
 0x6f1   : > { %16962 = vmatpush1.bf16.msra.mxu0 %v16961_v30  ;;  %16968 = vmatprep.subr.bf16.mxu1 %v16967_v0 }
 0x6f2   : > { %v21193_v8 = vpop.permute.xlu0 %7012  ;;  %v21195_v43 = vpop.permute.xlu1 %6618  ;;  %16970 = vmatpush1.bf16.msra.mxu1 %v16969_v21 }
 0x6f4   : > { %6620 = vrot.lane.b32.xlu0 %v21153_v56, %s18248_s19  ;;  %6606 = vrot.lane.b32.xlu1 %v21162_v35, %s18248_s19 }
 0x6f6   : > { %v21201_v23 = vpop.permute.xlu0 %7028  ;;  %v21203_v14 = vpop.permute.xlu1 %7014 }
 0x6f8   : > { %7016 = vrot.lane.b32.xlu0 %v21132_v6, %s18249_s20  ;;  %6622 = vrot.lane.b32.xlu1 %v21186_v42, %s18248_s19 }
 0x6fa   : > { %v21209_v32 = vpop.permute.xlu0 %7222  ;;  %v21211_v58 = vpop.permute.xlu1 %7030 }
 0x6fc   : > { %7032 = vrot.lane.b32.xlu0 %v21153_v56, %s18249_s20  ;;  %7018 = vrot.lane.b32.xlu1 %v21162_v35, %s18249_s20 }
 0x6fe   : > { %v21217_v25 = vpop.permute.xlu0 %7238  ;;  %v21219_v24 = vpop.permute.xlu1 %7224 }
 0x700   : > { %7226 = vrot.lane.b32.xlu0 %v21132_v6, %s18250_s21  ;;  %7034 = vrot.lane.b32.xlu1 %v21186_v42, %s18249_s20 }
 0x702   : > { %v21225_v29 = vpop.permute.xlu0 %7594  ;;  %v21227_v59 = vpop.permute.xlu1 %7240 }
 0x703   : > { %26721 = vst [vmem:[#allocation75_spill] sm:$0xff] %v21225_v29 }
 0x704   : > { %7242 = vrot.lane.b32.xlu0 %v21153_v56, %s18250_s21  ;;  %7228 = vrot.lane.b32.xlu1 %v21162_v35, %s18250_s21 }
 0x706   : > { %v21233_v54 = vpop.permute.xlu0 %7610  ;;  %v21235_v30 = vpop.permute.xlu1 %7596 }
 0x707   : > { %26722 = vst [vmem:[#allocation58_spill] sm:$0xff] %v21233_v54  ;;  %26723 = vst [vmem:[#allocation74_spill] sm:$0xff] %v21235_v30 }
 0x708   : > { %8220 = vrot.lane.b32.xlu0 %v21003_v27, %s18254_s25  ;;  %7244 = vrot.lane.b32.xlu1 %v21186_v42, %s18250_s21 }
 0x70a   : > { %v21241_v0 = vpop.permute.xlu0 %7804  ;;  %v21243_v15 = vpop.permute.xlu1 %7612 }
 0x70b   : > { %26724 = vst [vmem:[#allocation60_spill] sm:$0xff] %v21241_v0  ;;  %26725 = vst [vmem:[#allocation120_spill] sm:$0xff] %v21243_v15 }
 0x70c   : > { %7598 = vrot.lane.b32.xlu0 %v21132_v6, %s18251_s22  ;;  %8222 = vrot.lane.b32.xlu1 %v21019_v44, %s18254_s25 }
 0x70e   : > { %v21249_v21 = vpop.permute.xlu0 %7820  ;;  %v21251_v7 = vpop.permute.xlu1 %7806 }
 0x70f   : > { %26726 = vst [vmem:[#allocation121_spill] sm:$0xff] %v21249_v21  ;;  %26727 = vst [vmem:[#allocation77_spill] sm:$0xff] %v21251_v7 }
 0x710   : > { %7614 = vrot.lane.b32.xlu0 %v21153_v56, %s18251_s22  ;;  %8238 = vrot.lane.b32.xlu1 %v21031_v18, %s18254_s25 }
 0x712   : > { %v21257_v30 = vpop.permute.xlu0 %8014  ;;  %v21259_v0 = vpop.permute.xlu1 %7822 }
 0x713   : > { %26728 = vst [vmem:[#allocation79_spill] sm:$0xff] %v21257_v30  ;;  %26729 = vst [vmem:[#allocation62_spill] sm:$0xff] %v21259_v0 }
 0x714   : > { %7808 = vrot.lane.b32.xlu0 %v21132_v6, %s18252_s23  ;;  %7600 = vrot.lane.b32.xlu1 %v21162_v35, %s18251_s22 }
 0x716   : > { %v21265_v15 = vpop.permute.xlu0 %8030  ;;  %v21267_v21 = vpop.permute.xlu1 %8016 }
 0x717   : > { %26730 = vst [vmem:[#allocation61_spill] sm:$0xff] %v21265_v15  ;;  %26731 = vst [vmem:[#allocation76_spill] sm:$0xff] %v21267_v21 }
 0x718   : > { %7824 = vrot.lane.b32.xlu0 %v21153_v56, %s18252_s23  ;;  %7616 = vrot.lane.b32.xlu1 %v21186_v42, %s18251_s22 }
 0x71a   : > { %v21273_v7 = vpop.permute.xlu0 %8224  ;;  %v21275_v30 = vpop.permute.xlu1 %8032 }
 0x71b   : > { %26732 = vst [vmem:[#allocation64_spill] sm:$0xff] %v21273_v7  ;;  %26733 = vst [vmem:[#allocation59_spill] sm:$0xff] %v21275_v30 }
 0x71c   : > { %8018 = vrot.lane.b32.xlu0 %v21132_v6, %s18253_s24  ;;  %7810 = vrot.lane.b32.xlu1 %v21162_v35, %s18252_s23 }
 0x71e   : > { %v21281_v0 = vpop.permute.xlu0 %8240  ;;  %v21283_v15 = vpop.permute.xlu1 %8226 }
 0x71f   : > { %26734 = vst [vmem:[#allocation101_spill] sm:$0xff] %v21281_v0  ;;  %26735 = vst [vmem:[#allocation105_spill] sm:$0xff] %v21283_v15 }
 0x720   : > { %8034 = vrot.lane.b32.xlu0 %v21153_v56, %s18253_s24  ;;  %7826 = vrot.lane.b32.xlu1 %v21186_v42, %s18252_s23 }
 0x722   : > { %v21289_v21 = vpop.permute.xlu0 %6660  ;;  %v21291_v7 = vpop.permute.xlu1 %8242 }
 0x723   : > { %26736 = vst [vmem:[#allocation102_spill] sm:$0xff] %v21291_v7 }
 0x724   : > { %8228 = vrot.lane.b32.xlu0 %v21132_v6, %s18254_s25  ;;  %8020 = vrot.lane.b32.xlu1 %v21162_v35, %s18253_s24 }
 0x726   : > { %v21297_v30 = vpop.permute.xlu0 %6676  ;;  %v21299_v0 = vpop.permute.xlu1 %6662 }
 0x727   : > { %26737 = vst [vmem:[#allocation106_spill] sm:$0xff] %v21297_v30 }
 0x728   : > { %8236 = vrot.lane.b32.xlu0 %v21017_v49, %s18254_s25  ;;  %8036 = vrot.lane.b32.xlu1 %v21186_v42, %s18253_s24 }
 0x72a   : > { %v21305_v15 = vpop.permute.xlu0 %6596  ;;  %v21307_v54 = vpop.permute.xlu1 %6678 }
 0x72b   : > { %26738 = vst [vmem:[#allocation78_spill] sm:$0xff] %v21305_v15  ;;  %26739 = vst [vmem:[#allocation47_spill] sm:$0xff] %v21307_v54 }
 0x72c   : > { %8244 = vrot.lane.b32.xlu0 %v21153_v56, %s18254_s25  ;;  %8230 = vrot.lane.b32.xlu1 %v21162_v35, %s18254_s25 }
 0x72e   : > { %v21313_v7 = vpop.permute.xlu0 %6612  ;;  %v21315_v1 = vpop.permute.xlu1 %6598 }
 0x72f   : > { %26740 = vst [vmem:[#allocation46_spill] sm:$0xff] %v21313_v7  ;;  %26741 = vst [vmem:[#allocation97_spill] sm:$0xff] %v21315_v1 }
 0x730   : > { %8246 = vrot.lane.b32.xlu1 %v21186_v42, %s18254_s25 }
 0x732   : > { %v21319_v5 = vpop.permute.xlu0 %7008  ;;  %v21321_v37 = vpop.permute.xlu1 %6614 }
 0x733   : > { %26742 = vst [vmem:[#allocation109_spill] sm:$0xff] %v21319_v5  ;;  %26743 = vst [vmem:[#allocation115_spill] sm:$0xff] %v21321_v37 }
 0x736   : > { %v21323_v15 = vpop.permute.xlu0 %7024  ;;  %v21325_v30 = vpop.permute.xlu1 %7010 }
 0x737   : > { %26744 = vst [vmem:[#allocation49_spill] sm:$0xff] %v21323_v15  ;;  %26745 = vst [vmem:[#allocation48_spill] sm:$0xff] %v21325_v30  ;;  %v26755_v30 = vld [vmem:[#allocation21_spill] sm:$0xff] }
 0x73a   : > { %v21327_v31 = vpop.permute.xlu0 %7218  ;;  %v21329_v29 = vpop.permute.xlu1 %7026 }
 0x73b   : > { %26746 = vst [vmem:[#allocation112_spill] sm:$0xff] %v21327_v31  ;;  %26747 = vst [vmem:[#allocation116_spill] sm:$0xff] %v21329_v29  ;;  %v21349_v31 = vmul.f32 %v20926_v2, %v26755_v30  ;;  %v26757_v29 = vld [vmem:[#allocation23_spill] sm:$0xff]  ;;  %v21369_v2 = vmul.f32 %v21162_v35, %v26755_v30  ;;  %v6629_v35 = vsel %vm401_vm1, %v21184_v34, %v21025_v52 }
 0x73d   : > { %26756 = vst [vmem:[#allocation80_spill] sm:$0xff] %v21349_v31  ;;  %26763 = vst [vmem:[#allocation111_spill] sm:$0xff] %v21369_v2  ;;  %v26787_v31 = vld [vmem:[#allocation78_spill] sm:$0xff] }
 0x73e   : > { %v21331_v53 = vpop.permute.xlu0 %7234  ;;  %v21333_v7 = vpop.permute.xlu1 %7220 }
 0x73f   : > { %26748 = vst [vmem:[#allocation81_spill] sm:$0xff] %v21331_v53  ;;  %26749 = vst [vmem:[#allocation100_spill] sm:$0xff] %v21333_v7  ;;  %v21353_v53 = vmul.f32 %v20933_v19, %v26757_v29  ;;  %v21373_v19 = vmul.f32 %v21019_v44, %v26697_v22  ;;  %v21393_v44 = vmul.f32 %v21186_v42, %v26757_v29 }
 0x740   : > { %v21413_v42 = vmul.f32 %v21153_v56, %v26757_v29 }
 0x741   : > { %26758 = vst [vmem:[#allocation63_spill] sm:$0xff] %v21353_v53  ;;  %26764 = vst [vmem:[#allocation104_spill] sm:$0xff] %v21373_v19  ;;  %v26785_v53 = vld [vmem:[#allocation9_spill] sm:$0xff] }
 0x742   : > { %v21335_v1 = vpop.permute.xlu0 %7590  ;;  %v21337_v54 = vpop.permute.xlu1 %7236  ;;  %26767 = vst [vmem:[#allocation83_spill] sm:$0xff] %v21393_v44  ;;  %26771 = vst [vmem:[#allocation110_spill] sm:$0xff] %v21413_v42 }
 0x743   : > { %26750 = vst [vmem:[#allocation98_spill] sm:$0xff] %v21335_v1 }
 0x746   : > { %v21339_v50 = vpop.permute.xlu0 %7606  ;;  %v21341_v5 = vpop.permute.xlu1 %7592 }
 0x747   : > { %26751 = vst [vmem:[#allocation96_spill] sm:$0xff] %v21339_v50  ;;  %26752 = vst [vmem:[#allocation107_spill] sm:$0xff] %v21341_v5  ;;  %v21361_v50 = vmul.f32 %v20917_v47, %v26755_v30  ;;  %v21381_v47 = vmul.f32 %v21031_v18, %v26700_v55  ;;  %v6632_v18 = vsel %vm401_vm1, %v20995_v13, %v21160_v28  ;;  %v26781_v5 = vld [vmem:[#allocation75_spill] sm:$0xff] }
 0x749   : > { %26761 = vst [vmem:[#allocation103_spill] sm:$0xff] %v21361_v50  ;;  %26765 = vst [vmem:[#allocation82_spill] sm:$0xff] %v21381_v47 }
 0x74a   : > { %v21343_v37 = vpop.permute.xlu0 %7800  ;;  %v21345_v15 = vpop.permute.xlu1 %7608 }
 0x74b   : > { %26753 = vst [vmem:[#allocation113_spill] sm:$0xff] %v21343_v37  ;;  %26754 = vst [vmem:[#allocation65_spill] sm:$0xff] %v21345_v15  ;;  %v21365_v37 = vmul.f32 %v20924_v20, %v26757_v29  ;;  %v21389_v20 = vmul.f32 %v21132_v6, %v26755_v30  ;;  %v21440_v29 = vmul.f32 %v6629_v35, %v26683_v26 }
 0x74c   : > { %v7044_v35 = vsel %vm883_vm4, %v21023_v11, %v21193_v8 }
 0x74d   : > { %26762 = vst [vmem:[#allocation99_spill] sm:$0xff] %v21365_v37  ;;  %26766 = vst [vmem:[#allocation67_spill] sm:$0xff] %v21389_v20 }
 0x74e   : > { %v21355_v7 = vpop.permute.xlu0 %7816  ;;  %v21357_v1 = vpop.permute.xlu1 %7802 }
 0x74f   : > { %26759 = vst [vmem:[#allocation108_spill] sm:$0xff] %v21355_v7  ;;  %26760 = vst [vmem:[#allocation114_spill] sm:$0xff] %v21357_v1  ;;  %v21397_v1 = vmul.f32 %v21003_v27, %v26697_v22  ;;  %v6633_v7 = vsel %vm401_vm1, %v21011_v10, %v21184_v34  ;;  %v21417_v27 = vmul.f32 %v21017_v49, %v26700_v55 }
 0x750   : > { %v6628_v22 = vsel %vm401_vm1, %v21160_v28, %v21009_v38  ;;  %v6637_v34 = vsel %vm401_vm1, %v21195_v43, %v21011_v10  ;;  %v6624_v49 = vsel %vm401_vm1, %v21009_v38, %v21182_v63  ;;  %v6636_v28 = vsel %vm401_vm1, %v21182_v63, %v20995_v13 }
 0x751   : > { %26768 = vst [vmem:[#allocation66_spill] sm:$0xff] %v21397_v1  ;;  %26772 = vst [vmem:[#allocation119_spill] sm:$0xff] %v21417_v27  ;;  %v21448_v56 = vmul.f32 %v6633_v7, %v26680_v17  ;;  %v6625_v38 = vsel %vm401_vm1, %v21025_v52, %v21195_v43  ;;  %v21457_v63 = vmul.f32 %v6628_v22, %v26683_v26 }
 0x752   : > { %v21407_v6 = vpop.permute.xlu0 %8010  ;;  %v21409_v30 = vpop.permute.xlu1 %7818  ;;  %v7041_v7 = vsel %vm883_vm4, %v21203_v14, %v21043_v60  ;;  %v21475_v22 = vmul.f32 %v6636_v28, %v26681_v51  ;;  %v21478_v10 = vmul.f32 %v6624_v49, %v26682_v41  ;;  %v7045_v13 = vsel %vm883_vm4, %v21035_v57, %v21203_v14 }
 0x753   : > { %26769 = vst [vmem:[#allocation117_spill] sm:$0xff] %v21407_v6  ;;  %26770 = vst [vmem:[#allocation84_spill] sm:$0xff] %v21409_v30  ;;  %v21445_v6 = vmul.f32 %v6632_v18, %v26680_v17  ;;  %v21464_v18 = vmul.f32 %v6637_v34, %v26681_v51  ;;  %v7040_v34 = vsel %vm883_vm4, %v21193_v8, %v21033_v3 }
 0x754   : > { %v7037_v49 = vsel %vm883_vm4, %v21043_v60, %v21211_v58  ;;  %v7049_v8 = vsel %vm883_vm4, %v21211_v58, %v21035_v57  ;;  %v21502_v28 = vmul.f32 %v7044_v35, %v26684_v36  ;;  %v7048_v14 = vsel %vm883_vm4, %v21201_v23, %v21023_v11 }
 0x755   : > { %v21514_v60 = vmul.f32 %v7040_v34, %v26687_v48  ;;  %v7036_v58 = vsel %vm883_vm4, %v21033_v3, %v21201_v23  ;;  %v21523_v35 = vmul.f32 %v7045_v13, %v26684_v36  ;;  %v21530_v34 = vmul.f32 %v7049_v8, %v26685_v40 }
 0x756   : > { %v21470_v52 = vpop.permute.xlu0 %8026  ;;  %v21472_v43 = vpop.permute.xlu1 %8012  ;;  %v21533_v55 = vmul.f32 %v7037_v49, %v26686_v46  ;;  %v7251_v3 = vsel %vm1139_vm5, %v21219_v24, %v21059_v39  ;;  %v21542_v13 = vmul.f32 %v7048_v14, %v26685_v40  ;;  %v7250_v57 = vsel %vm1139_vm5, %v21209_v32, %v21049_v16 }
 0x757   : > { %26773 = vst [vmem:[#allocation118_spill] sm:$0xff] %v21470_v52  ;;  %26774 = vst [vmem:[#allocation10_spill] sm:$0xff] %v21472_v43  ;;  %v21491_v43 = vmul.f32 %v6625_v38, %v26682_v41  ;;  %v21509_v38 = vmul.f32 %v7041_v7, %v26687_v48  ;;  %v7254_v7 = vsel %vm1139_vm5, %v21041_v62, %v21209_v32 }
 0x758   : > { %v7258_v49 = vsel %vm1139_vm5, %v21217_v25, %v21041_v62  ;;  %v21555_v52 = vmul.f32 %v7036_v58, %v26686_v46  ;;  %v7255_v32 = vsel %vm1139_vm5, %v21051_v33, %v21219_v24  ;;  %v21568_v62 = vmul.f32 %v7254_v7, %v26688_v4 }
 0x759   : > { %v21571_v8 = vmul.f32 %v7251_v3, %v26693_v61  ;;  %v21584_v24 = vmul.f32 %v7258_v49, %v26692_v12  ;;  %v21592_v47 = vmul.f32 %v7255_v32, %v26688_v4 }
 0x75a   : > { %v6669_v11 = vpop.permute.xlu0 %6668  ;;  %v21539_v23 = vpop.permute.xlu1 %8028 }
 0x75b   : > { %26775 = vst [vmem:[#allocation122_spill] sm:$0xff] %v21539_v23  ;;  %v7246_v23 = vsel %vm1139_vm5, %v21049_v16, %v21217_v25  ;;  %26776 = vst [vmem:[#allocation123_spill] sm:$0xff] %v21571_v8  ;;  %v6698_v58 = vsel %vm439_vm0, %v21289_v21, %v6669_v11  ;;  %v21579_v16 = vmul.f32 %v7250_v57, %v26693_v61  ;;  %v26778_v25 = vld [vmem:[#allocation6_spill] sm:$0xff]  ;;  %v26792_v8 = vld [vmem:[#allocation115_spill] sm:$0xff] }
 0x75c   : > { %v21589_v27 = vmul.f32 %v7246_v23, %v26689_v45  ;;  %v7259_v57 = vsel %vm1139_vm5, %v21227_v59, %v21051_v33  ;;  %v6713_v30 = vmul.f32 %v6698_v58, %v26778_v25  ;;  %v26779_v23 = vld [vmem:[#allocation47_spill] sm:$0xff]  ;;  %v26780_v33 = vld [vmem:[#allocation88_spill] sm:$0xff]  ;;  %v26782_v58 = vld [vmem:[#allocation89_spill] sm:$0xff] }
 0x75d   : > { %26777 = vst [vmem:[#allocation124_spill] sm:$0xff] %v21579_v16  ;;  %v7622_v15 = vsel %vm1636_vm6, %v26781_v5, %v26780_v33  ;;  %v7626_v42 = vsel %vm1636_vm6, %v26782_v58, %v26781_v5  ;;  %v21627_v19 = vmul.f32 %v7259_v57, %v26692_v12  ;;  %v26784_v5 = vld [vmem:[#allocation8_spill] sm:$0xff] }
 0x75e   : > { %v6685_v14 = vpop.permute.xlu0 %6684  ;;  %v6671_v7 = vpop.permute.xlu1 %6670 }
 0x75f   : > { %v6699_v49 = vsel %vm439_vm0, %v21299_v0, %v6671_v7  ;;  %v6702_v3 = vsel %vm439_vm0, %v6685_v14, %v21289_v21  ;;  %v6695_v32 = vsel %vm439_vm0, %v6671_v7, %v26779_v23  ;;  %v26783_v21 = vld [vmem:[#allocation106_spill] sm:$0xff] }
 0x760   : > { %v6717_v1 = vmul.f32 %v6699_v49, %v26778_v25  ;;  %v6690_v44 = vsel %vm439_vm0, %v26783_v21, %v6685_v14  ;;  %v7247_v49 = vsel %vm1139_vm5, %v21059_v39, %v21227_v59  ;;  %v6694_v25 = vsel %vm439_vm0, %v6669_v11, %v26783_v21  ;;  %v26786_v59 = vld [vmem:[#allocation7_spill] sm:$0xff] }
 0x761   : > { %v6712_v37 = vmul.f32 %v6702_v3, %v26784_v5  ;;  %v6718_v50 = vmul.f32 %v6695_v32, %v26785_v53  ;;  %v6715_v57 = vmul.f32 %v6690_v44, %v26786_v59  ;;  %v26788_v3 = vld [vmem:[#allocation30_spill] sm:$0xff]  ;;  %v6714_v21 = vmul.f32 %v6694_v25, %v26785_v53  ;;  %v26789_v44 = vld [vmem:[#allocation28_spill] sm:$0xff] }
 0x762   : > { %v6605_v7 = vpop.permute.xlu0 %6604  ;;  %v6687_v20 = vpop.permute.xlu1 %6686  ;;  %v16963_v2 = vpack.c.bf16 %v6717_v1, %v6713_v30  ;;  %v21647_v32 = vmul.f32 %v7626_v42, %v26788_v3  ;;  %v21656_v16 = vmul.f32 %v7622_v15, %v26789_v44  ;;  %v26791_v53 = vld [vmem:[#allocation46_spill] sm:$0xff] }
 0x763   : > { %v6691_v14 = vsel %vm439_vm0, %v26779_v23, %v6687_v20  ;;  %v6703_v39 = vsel %vm439_vm0, %v6687_v20, %v21299_v0  ;;  %v6634_v11 = vsel %vm401_vm1, %v26787_v31, %v6605_v7  ;;  %v21650_v23 = vmul.f32 %v7247_v49, %v26689_v45  ;;  %v26790_v49 = vld [vmem:[#allocation97_spill] sm:$0xff] }
 0x764   : > { %v6716_v1 = vmul.f32 %v6703_v39, %v26784_v5  ;;  %v6719_v30 = vmul.f32 %v6691_v14, %v26786_v59  ;;  %16964 = vmatprep.subr.bf16.mxu0 %v16963_v2  ;;  %v17009_v39 = vpack.c.bf16 %v21627_v19, %v21584_v24  ;;  %v16973_v42 = vpack.c.bf16 %v6718_v50, %v6714_v21  ;;  %v26829_v19 = vld [vmem:[#allocation62_spill] sm:$0xff] }
 0x765   : > { %v6649_v5 = vmul.f32 %v6634_v11, %v26680_v17  ;;  %v17015_v21 = vpack.c.bf16 %v21650_v23, %v21589_v27 }
 0x766   : > { %v6621_v0 = vpop.permute.xlu0 %6620  ;;  %v16965_v14 = vpack.c.bf16 %v6716_v1, %v6712_v37  ;;  %v6607_v2 = vpop.permute.xlu1 %6606  ;;  %v16971_v59 = vpack.c.bf16 %v6719_v30, %v6715_v57  ;;  %v26793_v57 = vld [vmem:[#allocation58_spill] sm:$0xff]  ;;  %v26794_v1 = vpack.c.bf16 %v21448_v56, %v21445_v6 }
 0x767   : > { %v6638_v25 = vsel %vm401_vm1, %v6621_v0, %v26787_v31  ;;  %v6635_v20 = vsel %vm401_vm1, %v26790_v49, %v6607_v2  ;;  %v6626_v15 = vsel %vm401_vm1, %v26791_v53, %v6621_v0  ;;  %v6631_v37 = vsel %vm401_vm1, %v6607_v2, %v26792_v8  ;;  %v26796_v0 = vld [vmem:[#allocation91_spill] sm:$0xff] }
 0x768   : > { %v6653_v50 = vmul.f32 %v6635_v20, %v26680_v17  ;;  %16966 = vmatpush1.bf16.msra.mxu0 %v16965_v14  ;;  %16972 = vmatprep.subr.bf16.mxu1 %v16971_v59  ;;  %v7618_v31 = vsel %vm1636_vm6, %v26780_v33, %v26793_v57  ;;  %v7630_v11 = vsel %vm1636_vm6, %v26793_v57, %v26782_v58  ;;  %v26795_v59 = vld [vmem:[#allocation74_spill] sm:$0xff] }
 0x769   : > { %16974 = vmatpush1.bf16.msra.mxu1 %v16973_v42  ;;  %16976 = vmatprep.subr.bf16.mxu0 %v26794_v1  ;;  %v7627_v20 = vsel %vm1636_vm6, %v26796_v0, %v26795_v59  ;;  %v6630_v33 = vsel %vm401_vm1, %v6605_v7, %v26791_v53  ;;  %v6648_v58 = vmul.f32 %v6638_v25, %v26681_v51  ;;  %v18108_v7 = vld [vmem:[%s25901_s5 + $0x4] sm:$0xf] }
 0x76a   : > { %v7017_v30 = vpop.permute.xlu0 %7016  ;;  %v26797_v14 = vpack.c.bf16 %v21491_v43, %v21478_v10  ;;  %v6623_v6 = vpop.permute.xlu1 %6622  ;;  %v16979_v56 = vpack.c.bf16 %v6653_v50, %v6649_v5  ;;  %v6651_v2 = vmul.f32 %v6626_v15, %v26682_v41  ;;  %v6654_v42 = vmul.f32 %v6631_v37, %v26683_v26  ;;  %v26798_v10 = vld [vmem:[#allocation109_spill] sm:$0xff] }
 0x76b   : > { %v6627_v57 = vsel %vm401_vm1, %v26792_v8, %v6623_v6  ;;  %v6639_v53 = vsel %vm401_vm1, %v6623_v6, %v26790_v49  ;;  %16542 = vmatmul.mubr.msk.f32.vlgmr.msra.gmra.mrb[18].mxu0 %vm2832_vm10, %v18108_v7  ;;  %v7046_v43 = vsel %vm883_vm4, %v26798_v10, %v7017_v30  ;;  %v26799_v8 = vpack.c.bf16 %v21464_v18, %v21475_v22  ;;  %v26800_v49 = vld [vmem:[#allocation71_spill] sm:$0xff]  ;;  %v26803_v18 = vld [vmem:[#allocation29_spill] sm:$0xff] }
 0x76c   : > { %16984 = vmatprep.subr.bf16.mxu1 %v26797_v14  ;;  %v6652_v5 = vmul.f32 %v6639_v53, %v26681_v51  ;;  %v6655_v25 = vmul.f32 %v6627_v57, %v26682_v41  ;;  %16543 = vmatmul.mubr.msk.f32.vlgmr.msra.gmra.mrb[18].mxu1 %vm2832_vm10, %v18108_v7  ;;  %v7623_v15 = vsel %vm1636_vm6, %v26795_v59, %v26800_v49  ;;  %v26802_v6 = vld [vmem:[#allocation31_spill] sm:$0xff]  ;;  %v26871_v41 = vld [vmem:[#allocation73_spill] sm:$0xff] }
 0x76d   : > { %16978 = vmatpush1.bf16.msra.mxu0 %v26799_v8  ;;  %v21724_v37 = vmul.f32 %v7627_v20, %v26788_v3  ;;  %v6650_v50 = vmul.f32 %v6630_v33, %v26683_v26  ;;  %v26801_v1 = vpack.c.bf16 %v21440_v29, %v21457_v63  ;;  %v21731_v57 = vmul.f32 %v7618_v31, %v26802_v6  ;;  %v26805_v63 = vld [vmem:[#allocation48_spill] sm:$0xff] }
 0x76e   : > { %16980 = vmatprep.subr.bf16.mxu0 %v16979_v56  ;;  %v7033_v14 = vpop.permute.xlu0 %7032  ;;  %v21734_v22 = vmul.f32 %v7630_v11, %v26803_v18  ;;  %v16981_v53 = vpack.c.bf16 %v6652_v5, %v6648_v58  ;;  %v7019_v7 = vpop.permute.xlu1 %7018  ;;  %v16987_v59 = vpack.c.bf16 %v6655_v25, %v6651_v2  ;;  %v26804_v8 = vmov 0.0   ;;  %v26806_v11 = vld [vmem:[#allocation49_spill] sm:$0xff]  ;;  %v26807_v56 = vld [vmem:[#allocation116_spill] sm:$0xff]  ;;  %v26809_v25 = vld [vmem:[#allocation70_spill] sm:$0xff] }
 0x76f   : > { %16986 = vmatpush1.bf16.msra.mxu1 %v26801_v1  ;;  %6926 = vmatprep.mubr.f32.mxu0 %v26804_v8  ;;  %v16989_v20 = vpack.c.bf16 %v6654_v42, %v6650_v50  ;;  %v7061_v33 = vmul.f32 %v7046_v43, %v26684_v36  ;;  %v7050_v29 = vsel %vm883_vm4, %v7033_v14, %v26798_v10  ;;  %v26808_v5 = vld [vmem:[#allocation60_spill] sm:$0xff] }
 0x770   : > { %v7047_v31 = vsel %vm883_vm4, %v26805_v63, %v7019_v7  ;;  %6997 = vmatprep.mubr.f32.mxu1 %v26804_v8  ;;  %v7038_v58 = vsel %vm883_vm4, %v26806_v11, %v7033_v14  ;;  %v7043_v2 = vsel %vm883_vm4, %v7019_v7, %v26807_v56  ;;  %16988 = vmatprep.subr.bf16.mxu1 %v16987_v59  ;;  %v26811_v7 = vld [vmem:[#allocation120_spill] sm:$0xff] }
 0x771   : > { %v7065_v42 = vmul.f32 %v7047_v31, %v26684_v36  ;;  %16982 = vmatpush1.bf16.msra.mxu0 %v16981_v53  ;;  %v21753_v10 = vmul.f32 %v7623_v15, %v26789_v44  ;;  %v7836_v50 = vsel %vm1892_vm7, %v26809_v25, %v26808_v5  ;;  %v26810_v1 = vpack.c.bf16 %v21523_v35, %v21502_v28  ;;  %v26869_v36 = vld [vmem:[#allocation57_spill] sm:$0xff]  ;;  %v26870_v26 = vld [vmem:[#allocation64_spill] sm:$0xff] }
 0x772   : > { %v7227_v14 = vpop.permute.xlu0 %7226  ;;  %v7619_v15 = vsel %vm1636_vm6, %v26800_v49, %v26811_v7  ;;  %v7042_v53 = vsel %vm883_vm4, %v7017_v30, %v26806_v11  ;;  %v7060_v59 = vmul.f32 %v7050_v29, %v26685_v40  ;;  %v26812_v31 = vpack.c.bf16 %v21533_v55, %v21555_v52  ;;  %v18109_v29 = vld [vmem:[%s25901_s5] sm:$0xf] }
 0x773   : > { %16990 = vmatpush1.bf16.msra.mxu1 %v16989_v20  ;;  %16992 = vmatprep.subr.bf16.mxu0 %v26810_v1  ;;  %v7035_v20 = vpop.permute.xlu1 %7034  ;;  %v16995_v43 = vpack.c.bf16 %v7065_v42, %v7061_v33  ;;  %v7063_v28 = vmul.f32 %v7038_v58, %v26686_v46  ;;  %v7066_v35 = vmul.f32 %v7043_v2, %v26687_v48  ;;  %v26813_v55 = vld [vmem:[#allocation112_spill] sm:$0xff] }
 0x774   : > { %17000 = vmatprep.subr.bf16.mxu1 %v26812_v31  ;;  %v7039_v49 = vsel %vm883_vm4, %v26807_v56, %v7035_v20  ;;  %v7051_v30 = vsel %vm883_vm4, %v7035_v20, %v26805_v63  ;;  %16544 = vmatmul.mubr.msk.f32.vlgmr.msra.gmra.mrb[18].mxu0 %vm2832_vm10, %v18109_v29  ;;  %v7256_v52 = vsel %vm1139_vm5, %v26813_v55, %v7227_v14  ;;  %v26815_v63 = vld [vmem:[#allocation54_spill] sm:$0xff] }
 0x775   : > { %v7064_v33 = vmul.f32 %v7051_v30, %v26685_v40  ;;  %v7067_v11 = vmul.f32 %v7039_v49, %v26686_v46  ;;  %v26814_v58 = vpack.c.bf16 %v21530_v34, %v21542_v13  ;;  %v7832_v56 = vsel %vm1892_vm7, %v26808_v5, %v26815_v63  ;;  %7132 = vmatprep.mubr.f32.mxu0 %v26804_v8  ;;  %v26818_v30 = vld [vmem:[#allocation100_spill] sm:$0xff]  ;;  %v26854_v31 = vld [vmem:[#allocation86_spill] sm:$0xff] }
 0x776   : > { %16545 = vmatmul.mubr.msk.f32.vlgmr.msra.gmra.mrb[18].mxu1 %vm2832_vm10, %v18109_v29  ;;  %v7062_v2 = vmul.f32 %v7042_v53, %v26687_v48  ;;  %v26816_v42 = vpack.c.bf16 %v21509_v38, %v21514_v60  ;;  %v7243_v1 = vpop.permute.xlu0 %7242  ;;  %v7631_v34 = vsel %vm1636_vm6, %v26811_v7, %v26796_v0  ;;  %v21811_v13 = vmul.f32 %v7619_v15, %v26802_v6  ;;  %v26819_v15 = vld [vmem:[#allocation32_spill] sm:$0xff]  ;;  %v26867_v40 = vld [vmem:[#allocation66_spill] sm:$0xff] }
 0x777   : > { %16994 = vmatpush1.bf16.msra.mxu0 %v26814_v58  ;;  %v16997_v5 = vpack.c.bf16 %v7064_v33, %v7060_v59  ;;  %v7229_v20 = vpop.permute.xlu1 %7228  ;;  %v17003_v53 = vpack.c.bf16 %v7067_v11, %v7063_v28  ;;  %v7271_v49 = vmul.f32 %v7256_v52, %v26688_v4  ;;  %7203 = vmatprep.mubr.f32.mxu1 %v26804_v8  ;;  %v26822_v58 = vld [vmem:[#allocation77_spill] sm:$0xff]  ;;  %v26852_v11 = vld [vmem:[#allocation67_spill] sm:$0xff]  ;;  %v26866_v46 = vld [vmem:[#allocation104_spill] sm:$0xff] }
 0x778   : > { %16996 = vmatprep.subr.bf16.mxu0 %v16995_v43  ;;  %17002 = vmatpush1.bf16.msra.mxu1 %v26816_v42  ;;  %v26817_v43 = vld [vmem:[#allocation34_spill] sm:$0xff]  ;;  %v17005_v60 = vpack.c.bf16 %v7066_v35, %v7062_v2  ;;  %v7257_v29 = vsel %vm1139_vm5, %v26818_v30, %v7229_v20  ;;  %v7260_v0 = vsel %vm1139_vm5, %v7243_v1, %v26813_v55  ;;  %v26820_v35 = vld [vmem:[#allocation81_spill] sm:$0xff] }
 0x779   : > { %v21815_v38 = vmul.f32 %v7836_v50, %v26817_v43  ;;  %v7253_v7 = vsel %vm1139_vm5, %v7229_v20, %v21337_v54  ;;  %v7275_v50 = vmul.f32 %v7257_v29, %v26688_v4  ;;  %17004 = vmatprep.subr.bf16.mxu1 %v17003_v53  ;;  %v21830_v59 = vmul.f32 %v7832_v56, %v26819_v15  ;;  %v26823_v56 = vld [vmem:[#allocation90_spill] sm:$0xff]  ;;  %v26826_v29 = vld [vmem:[#allocation123_spill] sm:$0xff] }
 0x77a   : > { %v21833_v28 = vmul.f32 %v7631_v34, %v26803_v18  ;;  %v7248_v52 = vsel %vm1139_vm5, %v26820_v35, %v7243_v1  ;;  %v26821_v55 = vpack.c.bf16 %v21592_v47, %v21568_v62  ;;  %v21841_v33 = vpop.permute.xlu0 %8220  ;;  %v7837_v2 = vsel %vm1892_vm7, %v26823_v56, %v26822_v58  ;;  %v26859_v4 = vld [vmem:[#allocation83_spill] sm:$0xff] }
 0x77b   : > { %16998 = vmatpush1.bf16.msra.mxu0 %v16997_v5  ;;  %v7252_v42 = vsel %vm1139_vm5, %v7227_v14, %v26820_v35  ;;  %v7245_v47 = vpop.permute.xlu1 %7244  ;;  %v17011_v62 = vpack.c.bf16 %v7275_v50, %v7271_v49  ;;  %v7270_v1 = vmul.f32 %v7260_v0, %v26692_v12  ;;  %v7276_v34 = vmul.f32 %v7253_v7, %v26693_v61  ;;  %v18110_v14 = vld [vmem:[%s25901_s5 + $0x8] sm:$0xf]  ;;  %v26827_v0 = vld [vmem:[#allocation124_spill] sm:$0xff] }
 0x77c   : > { %17006 = vmatpush1.bf16.msra.mxu1 %v17005_v60  ;;  %17008 = vmatprep.subr.bf16.mxu0 %v26821_v55  ;;  %v7249_v5 = vsel %vm1139_vm5, %v21337_v54, %v7245_v47  ;;  %v7261_v20 = vsel %vm1139_vm5, %v7245_v47, %v26818_v30  ;;  %v7273_v27 = vmul.f32 %v7248_v52, %v26689_v45  ;;  %v26824_v54 = vld [vmem:[#allocation121_spill] sm:$0xff]  ;;  %v26825_v60 = vld [vmem:[#allocation92_spill] sm:$0xff]  ;;  %v26831_v47 = vld [vmem:[#allocation55_spill] sm:$0xff] }
 0x77d   : > { %17016 = vmatprep.subr.bf16.mxu1 %v17015_v21  ;;  %v7274_v23 = vmul.f32 %v7261_v20, %v26692_v12  ;;  %v7277_v21 = vmul.f32 %v7249_v5, %v26689_v45  ;;  %v7828_v53 = vsel %vm1892_vm7, %v26815_v63, %v26824_v54  ;;  %v7833_v49 = vsel %vm1892_vm7, %v26822_v58, %v26825_v60  ;;  %v26832_v5 = vld [vmem:[#allocation72_spill] sm:$0xff]  ;;  %v26833_v20 = vld [vmem:[#allocation79_spill] sm:$0xff] }
 0x77e   : > { %16546 = vmatmul.mubr.msk.f32.vlgmr.msra.gmra.mrb[18].mxu0 %vm2832_vm10, %v18110_v14  ;;  %v7272_v30 = vmul.f32 %v7252_v42, %v26693_v61  ;;  %v26828_v7 = vpack.c.bf16 %v26826_v29, %v26827_v0  ;;  %v7599_v50 = vpop.permute.xlu0 %7598  ;;  %v7829_v24 = vsel %vm1892_vm7, %v26825_v60, %v26829_v19  ;;  %v7840_v55 = vsel %vm1892_vm7, %v26824_v54, %v26809_v25  ;;  %v26830_v42 = vld [vmem:[#allocation76_spill] sm:$0xff]  ;;  %v26834_v25 = vld [vmem:[#allocation93_spill] sm:$0xff] }
 0x77f   : > { %16547 = vmatmul.mubr.msk.f32.vlgmr.msra.gmra.mrb[18].mxu1 %vm2832_vm10, %v18110_v14  ;;  %17010 = vmatpush1.bf16.msra.mxu0 %v17009_v39  ;;  %v7841_v39 = vsel %vm1892_vm7, %v26829_v19, %v26823_v56  ;;  %v17013_v63 = vpack.c.bf16 %v7274_v23, %v7270_v1  ;;  %v21894_v35 = vpop.permute.xlu1 %8222  ;;  %v17019_v52 = vpack.c.bf16 %v7277_v21, %v7273_v27  ;;  %v26835_v27 = vld [vmem:[#allocation56_spill] sm:$0xff]  ;;  %v26836_v23 = vld [vmem:[#allocation35_spill] sm:$0xff]  ;;  %v26837_v54 = vld [vmem:[#allocation33_spill] sm:$0xff] }
 0x780   : > { %17012 = vmatprep.subr.bf16.mxu0 %v17011_v62  ;;  %17018 = vmatpush1.bf16.msra.mxu1 %v26828_v7  ;;  %v21902_v58 = vmul.f32 %v7837_v2, %v26817_v43  ;;  %v8047_v62 = vsel %vm2148_vm8, %v26831_v47, %v26830_v42  ;;  %v17021_v56 = vpack.c.bf16 %v7276_v34, %v7272_v30  ;;  %v26839_v30 = vld [vmem:[#allocation103_spill] sm:$0xff] }
 0x781   : > { %7342 = vmatprep.mubr.f32.mxu0 %v26804_v8  ;;  %7413 = vmatprep.mubr.f32.mxu1 %v26804_v8  ;;  %v21910_v1 = vmul.f32 %v7833_v49, %v26819_v15  ;;  %v8042_v14 = vsel %vm2148_vm8, %v26833_v20, %v26832_v5  ;;  %v8043_v2 = vsel %vm2148_vm8, %v26830_v42, %v26834_v25  ;;  %v26838_v49 = vld [vmem:[#allocation80_spill] sm:$0xff]  ;;  %v26843_v42 = vld [vmem:[#allocation99_spill] sm:$0xff] }
 0x782   : > { %17020 = vmatprep.subr.bf16.mxu1 %v17019_v52  ;;  %v8046_v34 = vsel %vm2148_vm8, %v26835_v27, %v26833_v20  ;;  %v21925_v21 = vmul.f32 %v7829_v24, %v26836_v23  ;;  %v21928_v60 = vmul.f32 %v7841_v39, %v26837_v54  ;;  %v26840_v29 = vpack.c.bf16 %v26838_v49, %v26839_v30  ;;  %v7615_v0 = vpop.permute.xlu0 %7614  ;;  %v26842_v24 = vld [vmem:[#allocation63_spill] sm:$0xff]  ;;  %v26846_v30 = vld [vmem:[#allocation36_spill] sm:$0xff] }
 0x783   : > { %17014 = vmatpush1.bf16.msra.mxu0 %v17013_v63  ;;  %v21934_v7 = vmul.f32 %v7828_v53, %v26836_v23  ;;  %v21937_v19 = vmul.f32 %v7840_v55, %v26837_v54  ;;  %v26841_v63 = vld [vmem:[#allocation38_spill] sm:$0xff]  ;;  %v26844_v20 = vpack.c.bf16 %v26842_v24, %v26843_v42  ;;  %v21945_v39 = vpop.permute.xlu1 %8238  ;;  %v26845_v53 = vld [vmem:[#allocation61_spill] sm:$0xff]  ;;  %v21970_v24 = vmul.f32 %v8042_v14, %v26846_v30  ;;  %v26848_v42 = vld [vmem:[#allocation68_spill] sm:$0xff] }
 0x784   : > { %17022 = vmatpush1.bf16.msra.mxu1 %v17021_v56  ;;  %17024 = vmatprep.subr.bf16.mxu0 %v26840_v29  ;;  %v21940_v52 = vmul.f32 %v8047_v62, %v26841_v63  ;;  %v17047_v56 = vpack.c.bf16 %v21833_v28, %v21734_v22  ;;  %v8038_v55 = vsel %vm2148_vm8, %v26832_v5, %v26845_v53  ;;  %v18111_v22 = vld [vmem:[%s25901_s5 + $0xc] sm:$0xf]  ;;  %v26851_v49 = vld [vmem:[#allocation111_spill] sm:$0xff] }
 0x785   : > { %17032 = vmatprep.subr.bf16.mxu1 %v26844_v20  ;;  %v8050_v62 = vsel %vm2148_vm8, %v26845_v53, %v26835_v27  ;;  %v21960_v29 = vmul.f32 %v8043_v2, %v26846_v30  ;;  %v21967_v28 = vmul.f32 %v8046_v34, %v26841_v63  ;;  %v26847_v5 = vld [vmem:[#allocation85_spill] sm:$0xff]  ;;  %v26850_v53 = vld [vmem:[#allocation96_spill] sm:$0xff]  ;;  %v26853_v14 = vpack.c.bf16 %v26851_v49, %v26852_v11  ;;  %v26860_v11 = vld [vmem:[#allocation110_spill] sm:$0xff] }
 0x786   : > { %16548 = vmatmul.mubr.msk.f32.vlgmr.msra.gmra.mrb[18].mxu0 %vm2832_vm10, %v18111_v22  ;;  %v26849_v27 = vpack.c.bf16 %v26847_v5, %v26848_v42  ;;  %v7624_v34 = vsel %vm1636_vm6, %v7599_v50, %v26850_v53  ;;  %v7809_v5 = vpop.permute.xlu0 %7808  ;;  %v26858_v20 = vld [vmem:[#allocation37_spill] sm:$0xff]  ;;  %v26861_v49 = vpack.c.bf16 %v26859_v4, %v26860_v11  ;;  %v26865_v11 = vld [vmem:[#allocation98_spill] sm:$0xff]  ;;  %v8252_v4 = vsel %vm2404_vm9, %v26870_v26, %v26869_v36 }
 0x787   : > { %16549 = vmatmul.mubr.msk.f32.vlgmr.msra.gmra.mrb[18].mxu1 %vm2832_vm10, %v18111_v22  ;;  %v26855_v22 = vld [vmem:[#allocation52_spill] sm:$0xff]  ;;  %v21995_v12 = vmul.f32 %v8050_v62, %v26858_v20  ;;  %7504 = vmatprep.mubr.f32.mxu0 %v26804_v8  ;;  %v7643_v42 = vmul.f32 %v7624_v34, %v26789_v44  ;;  %v26872_v34 = vld [vmem:[#allocation82_spill] sm:$0xff] }
 0x788   : > { %17026 = vmatpush1.bf16.msra.mxu0 %v26849_v27  ;;  %v26856_v61 = vpack.c.bf16 %v26854_v31, %v26855_v22  ;;  %v26857_v27 = vld [vmem:[#allocation39_spill] sm:$0xff]  ;;  %7575 = vmatprep.mubr.f32.mxu1 %v26804_v8 }
 0x789   : > { %17028 = vmatprep.subr.bf16.mxu0 %v26853_v14  ;;  %v21992_v2 = vmul.f32 %v8038_v55, %v26857_v27  ;;  %v7601_v14 = vpop.permute.xlu1 %7600  ;;  %v26863_v55 = vld [vmem:[#allocation65_spill] sm:$0xff]  ;;  %v26864_v22 = vld [vmem:[#allocation107_spill] sm:$0xff] }
 0x78a   : > { %17034 = vmatpush1.bf16.msra.mxu1 %v26856_v61  ;;  %v26862_v61 = vld [vmem:[#allocation59_spill] sm:$0xff]  ;;  %v7625_v62 = vsel %vm1636_vm6, %v7601_v14, %v26863_v55  ;;  %v7629_v45 = vsel %vm1636_vm6, %v26864_v22, %v7601_v14  ;;  %v26868_v14 = vpack.c.bf16 %v26866_v46, %v26867_v40  ;;  %v26875_v40 = vpack.c.bf16 %v21753_v10, %v21656_v16  ;;  %v7825_v46 = vpop.permute.xlu0 %7824 }
 0x78b   : > { %17036 = vmatprep.subr.bf16.mxu1 %v26861_v49  ;;  %v8039_v31 = vsel %vm2148_vm8, %v26834_v25, %v26862_v61  ;;  %v7628_v49 = vsel %vm1636_vm6, %v26865_v11, %v7599_v50  ;;  %v7620_v25 = vsel %vm1636_vm6, %v26850_v53, %v7615_v0  ;;  %v7647_v48 = vmul.f32 %v7625_v62, %v26789_v44  ;;  %v26873_v62 = vld [vmem:[#allocation119_spill] sm:$0xff] }
 0x78c   : > { %17030 = vmatpush1.bf16.msra.mxu0 %v26868_v14  ;;  %v8256_v50 = vsel %vm2404_vm9, %v26871_v41, %v26870_v26  ;;  %v7632_v53 = vsel %vm1636_vm6, %v7615_v0, %v26865_v11  ;;  %v26874_v44 = vpack.c.bf16 %v26872_v34, %v26873_v62  ;;  %v8051_v14 = vsel %vm2148_vm8, %v26862_v61, %v26831_v47  ;;  %v18112_v47 = vld [vmem:[%s25901_s5 + $0x10] sm:$0xf]  ;;  %v26880_v62 = vld [vmem:[#allocation40_spill] sm:$0xff] }
 0x78d   : > { %17040 = vmatprep.subr.bf16.mxu0 %v26875_v40  ;;  %v22049_v26 = vmul.f32 %v8039_v31, %v26857_v27  ;;  %v7646_v51 = vmul.f32 %v7629_v45, %v26788_v3  ;;  %v7617_v0 = vpop.permute.xlu1 %7616  ;;  %v17043_v11 = vpack.c.bf16 %v7647_v48, %v7643_v42  ;;  %v7644_v34 = vmul.f32 %v7620_v25, %v26802_v6  ;;  %v26877_v61 = vld [vmem:[#allocation42_spill] sm:$0xff] }
 0x78e   : > { %17038 = vmatpush1.bf16.msra.mxu1 %v26874_v44  ;;  %v7642_v44 = vmul.f32 %v7628_v49, %v26788_v3  ;;  %v7621_v16 = vsel %vm1636_vm6, %v26863_v55, %v7617_v0  ;;  %v7633_v10 = vsel %vm1636_vm6, %v7617_v0, %v26864_v22  ;;  %v7645_v48 = vmul.f32 %v7632_v53, %v26803_v18  ;;  %v26878_v22 = vld [vmem:[#allocation108_spill] sm:$0xff]  ;;  %v8019_v53 = vpop.permute.xlu0 %8018 }
 0x78f   : > { %17048 = vmatprep.subr.bf16.mxu1 %v17047_v56  ;;  %16550 = vmatmul.mubr.msk.f32.vlgmr.msra.gmra.mrb[18].mxu0 %vm2832_vm10, %v18112_v47  ;;  %v7648_v45 = vmul.f32 %v7621_v16, %v26802_v6  ;;  %v7649_v56 = vmul.f32 %v7633_v10, %v26803_v18  ;;  %v26876_v42 = vpack.c.bf16 %v21724_v37, %v21647_v32  ;;  %v26881_v16 = vld [vmem:[#allocation113_spill] sm:$0xff]  ;;  %v26882_v10 = vld [vmem:[#allocation84_spill] sm:$0xff] }
 0x790   : > { %v22072_v31 = vmul.f32 %v8256_v50, %v26877_v61  ;;  %v22075_v55 = vmul.f32 %v8051_v14, %v26858_v20  ;;  %v7834_v49 = vsel %vm1892_vm7, %v7809_v5, %v26878_v22  ;;  %v26879_v25 = vpack.c.bf16 %v21811_v13, %v21731_v57  ;;  %7714 = vmatprep.mubr.f32.mxu0 %v26804_v8  ;;  %v26883_v13 = vld [vmem:[#allocation114_spill] sm:$0xff] }
 0x791   : > { %16551 = vmatmul.mubr.msk.f32.vlgmr.msra.gmra.mrb[18].mxu1 %vm2832_vm10, %v18112_v47  ;;  %17042 = vmatpush1.bf16.msra.mxu0 %v26876_v42  ;;  %v22084_v40 = vmul.f32 %v8252_v4, %v26880_v62  ;;  %v17045_v32 = vpack.c.bf16 %v7646_v51, %v7642_v44  ;;  %v17053_v37 = vpack.c.bf16 %v7648_v45, %v7644_v34  ;;  %v7811_v50 = vpop.permute.xlu1 %7810 }
 0x792   : > { %17044 = vmatprep.subr.bf16.mxu0 %v17043_v11  ;;  %17050 = vmatpush1.bf16.msra.mxu1 %v26879_v25  ;;  %v17051_v0 = vpack.c.bf16 %v7649_v56, %v7645_v48  ;;  %v17081_v14 = vpack.c.bf16 %v22049_v26, %v21992_v2  ;;  %v7838_v11 = vsel %vm1892_vm7, %v26881_v16, %v7809_v5  ;;  %v26884_v5 = vld [vmem:[#allocation101_spill] sm:$0xff]  ;;  %v8035_v56 = vpop.permute.xlu0 %8034 }
 0x793   : > { %v7835_v57 = vsel %vm1892_vm7, %v7811_v50, %v26882_v10  ;;  %v7839_v51 = vsel %vm1892_vm7, %v26883_v13, %v7811_v50  ;;  %7785 = vmatprep.mubr.f32.mxu1 %v26804_v8  ;;  %v7853_v4 = vmul.f32 %v7834_v49, %v26819_v15  ;;  %v7830_v44 = vsel %vm1892_vm7, %v26878_v22, %v7825_v46  ;;  %v26886_v49 = vld [vmem:[#allocation94_spill] sm:$0xff] }
 0x794   : > { %v7857_v34 = vmul.f32 %v7835_v57, %v26819_v15  ;;  %17052 = vmatprep.subr.bf16.mxu1 %v17051_v0  ;;  %v8248_v47 = vsel %vm2404_vm9, %v26869_v36, %v26884_v5  ;;  %v7842_v48 = vsel %vm1892_vm7, %v7825_v46, %v26881_v16  ;;  %v26885_v45 = vpack.c.bf16 %v21910_v1, %v21830_v59  ;;  %v26887_v36 = vld [vmem:[#allocation105_spill] sm:$0xff]  ;;  %v18113_v50 = vld [vmem:[%s25901_s5 + $0x14] sm:$0xf]  ;;  %v26891_v57 = vld [vmem:[#allocation95_spill] sm:$0xff] }
 0x795   : > { %17046 = vmatpush1.bf16.msra.mxu0 %v17045_v32  ;;  %v17079_v42 = vpack.c.bf16 %v22075_v55, %v21995_v12  ;;  %v8260_v22 = vsel %vm2404_vm9, %v26884_v5, %v26871_v41  ;;  %v8253_v25 = vsel %vm2404_vm9, %v26887_v36, %v26886_v49  ;;  %v7856_v46 = vmul.f32 %v7839_v51, %v26817_v43  ;;  %v7827_v1 = vpop.permute.xlu1 %7826  ;;  %v26892_v51 = vld [vmem:[#allocation118_spill] sm:$0xff] }
 0x796   : > { %17054 = vmatpush1.bf16.msra.mxu1 %v17053_v37  ;;  %17056 = vmatprep.subr.bf16.mxu0 %v26885_v45  ;;  %v26888_v59 = vpack.c.bf16 %v21928_v60, %v21937_v19  ;;  %v17059_v32 = vpack.c.bf16 %v7857_v34, %v7853_v4  ;;  %v7852_v12 = vmul.f32 %v7838_v11, %v26817_v43  ;;  %v26890_v11 = vld [vmem:[#allocation43_spill] sm:$0xff]  ;;  %v8229_v34 = vpop.permute.xlu0 %8228 }
 0x797   : > { %v7854_v55 = vmul.f32 %v7830_v44, %v26836_v23  ;;  %v7831_v41 = vsel %vm1892_vm7, %v26882_v10, %v7827_v1  ;;  %v7843_v37 = vsel %vm1892_vm7, %v7827_v1, %v26883_v13  ;;  %v7855_v60 = vmul.f32 %v7842_v48, %v26837_v54  ;;  %v26894_v48 = vld [vmem:[#allocation102_spill] sm:$0xff] }
 0x798   : > { %17064 = vmatprep.subr.bf16.mxu1 %v26888_v59  ;;  %16552 = vmatmul.mubr.msk.f32.vlgmr.msra.gmra.mrb[18].mxu0 %vm2832_vm10, %v18113_v50  ;;  %v7858_v19 = vmul.f32 %v7831_v41, %v26836_v23  ;;  %v7859_v0 = vmul.f32 %v7843_v37, %v26837_v54  ;;  %v26889_v16 = vpack.c.bf16 %v21902_v58, %v21815_v38  ;;  %v26898_v41 = vld [vmem:[#allocation41_spill] sm:$0xff] }
 0x799   : > { %16553 = vmatmul.mubr.msk.f32.vlgmr.msra.gmra.mrb[18].mxu1 %vm2832_vm10, %v18113_v50  ;;  %v22148_v10 = vmul.f32 %v8248_v47, %v26890_v11  ;;  %v8257_v13 = vsel %vm2404_vm9, %v26891_v57, %v26887_v36  ;;  %v8044_v4 = vsel %vm2148_vm8, %v8019_v53, %v26892_v51  ;;  %v26893_v44 = vpack.c.bf16 %v21925_v21, %v21934_v7  ;;  %v8021_v5 = vpop.permute.xlu1 %8020  ;;  %v26895_v36 = vld [vmem:[#allocation117_spill] sm:$0xff]  ;;  %v26896_v21 = vld [vmem:[#allocation122_spill] sm:$0xff] }
 0x79a   : > { %17058 = vmatpush1.bf16.msra.mxu0 %v26889_v16  ;;  %v17061_v38 = vpack.c.bf16 %v7856_v46, %v7852_v12  ;;  %v17069_v58 = vpack.c.bf16 %v7858_v19, %v7854_v55  ;;  %v17067_v47 = vpack.c.bf16 %v7859_v0, %v7855_v60  ;;  %7924 = vmatprep.mubr.f32.mxu0 %v26804_v8  ;;  %v26897_v46 = vld [vmem:[#allocation10_spill] sm:$0xff]  ;;  %v8237_v19 = vpop.permute.xlu0 %8236 }
 0x79b   : > { %17060 = vmatprep.subr.bf16.mxu0 %v17059_v32  ;;  %17066 = vmatpush1.bf16.msra.mxu1 %v26893_v44  ;;  %v8261_v45 = vsel %vm2404_vm9, %v26894_v48, %v26891_v57  ;;  %v8048_v59 = vsel %vm2148_vm8, %v26895_v36, %v8019_v53  ;;  %v8045_v7 = vsel %vm2148_vm8, %v8021_v5, %v26896_v21 }
 0x79c   : > { %7995 = vmatprep.mubr.f32.mxu1 %v26804_v8  ;;  %v8049_v1 = vsel %vm2148_vm8, %v26897_v46, %v8021_v5  ;;  %v8063_v32 = vmul.f32 %v8044_v4, %v26846_v30  ;;  %v8040_v12 = vsel %vm2148_vm8, %v26892_v51, %v8035_v56  ;;  %v8067_v55 = vmul.f32 %v8045_v7, %v26846_v30 }
 0x79d   : > { %17068 = vmatprep.subr.bf16.mxu1 %v17067_v47  ;;  %v8267_v53 = vmul.f32 %v8260_v22, %v26898_v41  ;;  %v8269_v37 = vmul.f32 %v8253_v25, %v26880_v62  ;;  %v8052_v50 = vsel %vm2148_vm8, %v8035_v56, %v26895_v36  ;;  %v26899_v60 = vpack.c.bf16 %v21960_v29, %v21970_v24  ;;  %v8037_v25 = vpop.permute.xlu1 %8036 }
 0x79e   : > { %17062 = vmatpush1.bf16.msra.mxu0 %v17061_v38  ;;  %v8249_v0 = vsel %vm2404_vm9, %v26886_v49, %v26894_v48  ;;  %v8271_v16 = vmul.f32 %v8261_v45, %v26898_v41  ;;  %v8066_v22 = vmul.f32 %v8049_v1, %v26841_v63  ;;  %v17075_v57 = vpack.c.bf16 %v8067_v55, %v8063_v32  ;;  %v18114_v49 = vld [vmem:[%s25901_s5 + $0x18] sm:$0xf]  ;;  %v8245_v47 = vpop.permute.xlu0 %8244 }
 0x79f   : > { %17070 = vmatpush1.bf16.msra.mxu1 %v17069_v58  ;;  %17072 = vmatprep.subr.bf16.mxu0 %v26899_v60  ;;  %v8062_v56 = vmul.f32 %v8048_v59, %v26841_v63  ;;  %v8064_v51 = vmul.f32 %v8040_v12, %v26857_v27  ;;  %v8041_v29 = vsel %vm2148_vm8, %v26896_v21, %v8037_v25 }
 0x7a0   : > { %17080 = vmatprep.subr.bf16.mxu1 %v17079_v42  ;;  %v8053_v24 = vsel %vm2148_vm8, %v8037_v25, %v26897_v46  ;;  %v8065_v42 = vmul.f32 %v8052_v50, %v26858_v20  ;;  %v8068_v4 = vmul.f32 %v8041_v29, %v26857_v27  ;;  %v26900_v38 = vpack.c.bf16 %v21940_v52, %v21967_v28 }
 0x7a1   : > { %16554 = vmatmul.mubr.msk.f32.vlgmr.msra.gmra.mrb[18].mxu0 %vm2832_vm10, %v18114_v49  ;;  %v8069_v44 = vmul.f32 %v8053_v24, %v26858_v20  ;;  %v8268_v58 = vmul.f32 %v8257_v13, %v26877_v61  ;;  %v8254_v5 = vsel %vm2404_vm9, %v8229_v34, %v8237_v19  ;;  %v17087_v48 = vpack.c.bf16 %v8269_v37, %v22084_v40  ;;  %v8231_v21 = vpop.permute.xlu1 %8230 }
 0x7a2   : > { %16555 = vmatmul.mubr.msk.f32.vlgmr.msra.gmra.mrb[18].mxu1 %vm2832_vm10, %v18114_v49  ;;  %17074 = vmatpush1.bf16.msra.mxu0 %v26900_v38  ;;  %v8270_v45 = vmul.f32 %v8249_v0, %v26890_v11  ;;  %v17077_v36 = vpack.c.bf16 %v8066_v22, %v8062_v56  ;;  %v17085_v59 = vpack.c.bf16 %v8068_v4, %v8064_v51  ;;  %v8430_v25 = vstv %s4607_s10 }
 0x7a3   : > { %17076 = vmatprep.subr.bf16.mxu0 %v17075_v57  ;;  %17082 = vmatpush1.bf16.msra.mxu1 %v17081_v14  ;;  %v17083_v52 = vpack.c.bf16 %v8069_v44, %v8065_v42  ;;  %v8258_v28 = vsel %vm2404_vm9, %v21841_v33, %v8229_v34  ;;  %v8255_v2 = vsel %vm2404_vm9, %v8231_v21, %v21945_v39  ;;  %v26901_v57 = vld [vmem:[#allocation69_spill] sm:$0xff] }
 0x7a4   : > { %8134 = vmatprep.mubr.f32.mxu0 %v26804_v8  ;;  %v8259_v26 = vsel %vm2404_vm9, %v21894_v35, %v8231_v21  ;;  %v17095_v40 = vpack.c.bf16 %v8271_v16, %v8267_v53  ;;  %8205 = vmatprep.mubr.f32.mxu1 %v26804_v8  ;;  %v8273_v14 = vmul.f32 %v8254_v5, %v26880_v62  ;;  %v18116_v16 = vld [vmem:[%s25901_s5 + $0x20] sm:$0xf] }
 0x7a5   : > { %v8250_v13 = vsel %vm2404_vm9, %v8237_v19, %v8245_v47  ;;  %v8277_v7 = vmul.f32 %v8255_v2, %v26880_v62  ;;  %17084 = vmatprep.subr.bf16.mxu1 %v17083_v52  ;;  %v8262_v34 = vsel %vm2404_vm9, %v8245_v47, %v21841_v33  ;;  %v17089_v46 = vpack.c.bf16 %v8268_v58, %v22072_v31  ;;  %v8247_v12 = vpop.permute.xlu1 %8246  ;;  %v18115_v31 = vld [vmem:[%s25901_s5 + $0x1c] sm:$0xf] }
 0x7a6   : > { %17078 = vmatpush1.bf16.msra.mxu0 %v17077_v36  ;;  %v17097_v1 = vpack.c.bf16 %v8270_v45, %v22148_v10  ;;  %v8276_v32 = vmul.f32 %v8259_v26, %v26877_v61  ;;  %v8272_v53 = vmul.f32 %v8258_v28, %v26877_v61  ;;  %v8274_v37 = vmul.f32 %v8250_v13, %v26890_v11  ;;  %v26902_v45 = vld [vmem:[#allocation87_spill] sm:$0xff] }
 0x7a7   : > { %17086 = vmatpush1.bf16.msra.mxu1 %v17085_v59  ;;  %17088 = vmatprep.subr.bf16.mxu0 %v17087_v48  ;;  %v17091_v55 = vpack.c.bf16 %v8277_v7, %v8273_v14  ;;  %v8251_v50 = vsel %vm2404_vm9, %v21945_v39, %v8247_v12  ;;  %v8263_v33 = vsel %vm2404_vm9, %v8247_v12, %v21894_v35  ;;  %v26904_v59 = vld [vmem:[#allocation53_spill] sm:$0xff]  ;;  %v26906_v7 = vld [vmem:[#allocation6_spill] sm:$0xff] }
 0x7a8   : > { %17096 = vmatprep.subr.bf16.mxu1 %v17095_v40  ;;  %v8275_v10 = vmul.f32 %v8262_v34, %v26898_v41  ;;  %v8278_v60 = vmul.f32 %v8251_v50, %v26890_v11  ;;  %v8279_v19 = vmul.f32 %v8263_v33, %v26898_v41  ;;  %v17093_v35 = vpack.c.bf16 %v8276_v32, %v8272_v53  ;;  %v26907_v53 = vld [vmem:[#allocation8_spill] sm:$0xff]  ;;  %v26908_v50 = vld [vmem:[#allocation7_spill] sm:$0xff] }
 0x7a9   : > { %16556 = vmatmul.mubr.msk.f32.vlgmr.msra.gmra.mrb[18].mxu0 %vm2832_vm10, %v18115_v31 }
 0x7aa   : > { %16557 = vmatmul.mubr.msk.f32.vlgmr.msra.gmra.mrb[18].mxu1 %vm2832_vm10, %v18115_v31  ;;  %17090 = vmatpush1.bf16.msra.mxu0 %v17089_v46  ;;  %v17101_v39 = vpack.c.bf16 %v8278_v60, %v8274_v37  ;;  %v17099_v0 = vpack.c.bf16 %v8279_v19, %v8275_v10  ;;  %v26909_v10 = vld [vmem:[#allocation9_spill] sm:$0xff] }
 0x7ab   : > { %17092 = vmatprep.subr.bf16.mxu0 %v17091_v55  ;;  %17098 = vmatpush1.bf16.msra.mxu1 %v17097_v1 }
 0x7ac   : > { %8344 = vmatprep.mubr.f32.mxu0 %v26804_v8  ;;  %8415 = vmatprep.mubr.f32.mxu1 %v26804_v8 }
 0x7ad   : > { %17100 = vmatprep.subr.bf16.mxu1 %v17099_v0 }
 0x7ae   : > { %17094 = vmatpush1.bf16.msra.mxu0 %v17093_v35 }
 0x7af   : > { %17102 = vmatpush1.bf16.msra.mxu1 %v17101_v39  ;;  %v18117_v39 = vld [vmem:[%s25899_s3 + $0x20] sm:$0xff] }
 0x7b1   : > { %16558 = vmatmul.mubr.msk.f32.vlgmr.msra.gmra.mrb[18].mxu0 %vm2832_vm10, %v18116_v16 }
 0x7b2   : > { %16559 = vmatmul.mubr.msk.f32.vlgmr.msra.gmra.mrb[18].mxu1 %vm2832_vm10, %v18116_v16  ;;  %8571 = vmatprep.mubr.f32.mxu0 %v26804_v8 }
 0x7b3   : > { %8660 = vmatprep.mubr.f32.mxu1 %v26804_v8 }
 0x884   : > { %v8346_v22 = vpop.f32.mrb[18].mxu0 }
 0x885   : > { %v8426_v56 = vadd.f32 %v8346_v22, %v26901_v57  ;;  %v8348_v51 = vpop.f32.mrb[19].mxu0  ;;  %v8417_v29 = vpop.f32.mrb[18].mxu1 }
 0x886   : > { %v8427_v24 = vadd.f32 %v8348_v51, %v26901_v57  ;;  %v8428_v49 = vadd.f32 %v8417_v29, %v26901_v57  ;;  %v8419_v42 = vpop.f32.mrb[19].mxu1  ;;  %v18118_v29 = vld [vmem:[%s25899_s3 + $0x28] sm:$0xff] }
 0x887   : > { %v8431_v4 = vmul.f32 %v8430_v25, %v8426_v56  ;;  %v8429_v44 = vadd.f32 %v8419_v42, %v26901_v57  ;;  %v26911_v42 = vld [vmem:[#allocation11_spill] sm:$0xff] }
 0x888   : > { %v8432_v38 = vmul.f32 %v8430_v25, %v8427_v24  ;;  %v8433_v58 = vmul.f32 %v8430_v25, %v8428_v49  ;;  %v26910_v24 = vld [vmem:[#allocation12_spill] sm:$0xff] }
 0x889   : > { %v8434_v5 = vmul.f32 %v8430_v25, %v8429_v44 }
 0x88a   : > { %v8439_v47 = vcombine.low %v8431_v4, %v8432_v38  ;;  %v26912_v38 = vld [vmem:[#allocation13_spill] sm:$0xff] }
 0x88b   : > { %v8440_v48 = vcombine.low %v8433_v58, %v8434_v5 }
 0x88c   : > { %v22277_v36 = vadd.f32 %v8439_v47, %v26902_v45  ;;  %v26913_v45 = vld [vmem:[#allocation14_spill] sm:$0xff] }
 0x88d   : > { %v22280_v21 = vadd.f32 %v8440_v48, %v26904_v59  ;;  %v18119_v48 = vld [vmem:[%s25899_s3 + $0x30] sm:$0xff] }
 0x88e   : > { %26903 = vst [vmem:[#allocation47_spill] sm:$0xff] %v22277_v36  ;;  %8452 = vst [vmem:[%s18323_s13 + $0x8] sm:$0xf0] %v22277_v36  ;;  %8479 = vrot.lane.b32.xlu0 %v22277_v36, %s18246_s18  ;;  %v8459_v52 = vcombine.high %v22277_v36, %v22277_v36  ;;  %v8447_v28 = vcombine.low %v22277_v36, %v22277_v36 }
 0x88f   : > { %26905 = vst [vmem:[#allocation88_spill] sm:$0xff] %v22280_v21  ;;  %8454 = vst [vmem:[%s18323_s13 + $0x18] sm:$0xf0] %v22280_v21  ;;  %v8448_v2 = vcombine.low %v22280_v21, %v22280_v21  ;;  %v8460_v26 = vcombine.high %v22280_v21, %v22280_v21 }
 0x890   : > { %8481 = vrot.lane.b32.xlu1 %v8459_v52, %s18246_s18  ;;  %8451 = vst [vmem:[%s18323_s13] sm:$0xf0] %v8447_v28 }
 0x891   : > { %8453 = vst [vmem:[%s18323_s13 + $0x10] sm:$0xf0] %v8448_v2 }
 0x892   : > { %8483 = vrot.lane.b32.xlu0 %v22280_v21, %s18246_s18 }
 0x894   : > { %8485 = vrot.lane.b32.xlu1 %v8460_v26, %s18246_s18 }
 0x896   : > { %8463 = vrot.lane.b32.xlu0 %v22277_v36, %s18248_s19 }
 0x898   : > { %8465 = vrot.lane.b32.xlu1 %v8459_v52, %s18248_s19 }
 0x89a   : > { %8467 = vrot.lane.b32.xlu0 %v22280_v21, %s18248_s19 }
 0x89c   : > { %8469 = vrot.lane.b32.xlu1 %v8460_v26, %s18248_s19 }
 0x89e   : > { %8875 = vrot.lane.b32.xlu0 %v22277_v36, %s18249_s20 }
 0x8a0   : > { %8877 = vrot.lane.b32.xlu1 %v8459_v52, %s18249_s20 }
 0x8a2   : > { %8879 = vrot.lane.b32.xlu0 %v22280_v21, %s18249_s20 }
 0x8a4   : > { %8881 = vrot.lane.b32.xlu1 %v8460_v26, %s18249_s20 }
 0x8a6   : > { %9097 = vrot.lane.b32.xlu0 %v22277_v36, %s18250_s21 }
 0x8a8   : > { %9099 = vrot.lane.b32.xlu1 %v8459_v52, %s18250_s21 }
 0x8aa   : > { %9101 = vrot.lane.b32.xlu0 %v22280_v21, %s18250_s21 }
 0x8ac   : > { %9103 = vrot.lane.b32.xlu1 %v8460_v26, %s18250_s21 }
 0x8ae   : > { %9527 = vrot.lane.b32.xlu0 %v22277_v36, %s18251_s22 }
 0x8b0   : > { %9529 = vrot.lane.b32.xlu1 %v8459_v52, %s18251_s22 }
 0x8b2   : > { %9531 = vrot.lane.b32.xlu0 %v22280_v21, %s18251_s22 }
 0x8b4   : > { %9533 = vrot.lane.b32.xlu1 %v8460_v26, %s18251_s22 }
 0x8b6   : > { %9749 = vrot.lane.b32.xlu0 %v22277_v36, %s18252_s23 }
 0x8b8   : > { %9751 = vrot.lane.b32.xlu1 %v8459_v52, %s18252_s23 }
 0x8ba   : > { %9753 = vrot.lane.b32.xlu0 %v22280_v21, %s18252_s23 }
 0x8bc   : > { %9755 = vrot.lane.b32.xlu1 %v8460_v26, %s18252_s23 }
 0x8be   : > { %9971 = vrot.lane.b32.xlu0 %v22277_v36, %s18253_s24 }
 0x8c0   : > { %9973 = vrot.lane.b32.xlu1 %v8459_v52, %s18253_s24 }
 0x8c2   : > { %9975 = vrot.lane.b32.xlu0 %v22280_v21, %s18253_s24 }
 0x8c4   : > { %9977 = vrot.lane.b32.xlu1 %v8460_v26, %s18253_s24 }
 0x8c6   : > { %10193 = vrot.lane.b32.xlu0 %v22277_v36, %s18254_s25 }
 0x8c8   : > { %10195 = vrot.lane.b32.xlu1 %v8459_v52, %s18254_s25 }
 0x8ca   : > { %10197 = vrot.lane.b32.xlu0 %v22280_v21, %s18254_s25 }
 0x8cc   : > { %10199 = vrot.lane.b32.xlu1 %v8460_v26, %s18254_s25 }
 0x900   : > { %v8480_v40 = vpop.permute.xlu0 %8479 }
 0x902   : > { %v8482_v14 = vpop.permute.xlu1 %8481 }
 0x903   : > { %v8489_v13 = vsel %vm439_vm0, %v8480_v40, %v8482_v14 }
 0x904   : > { %v8492_v34 = vmul.f32 %v8489_v13, %v26906_v7  ;;  %v8484_v46 = vpop.permute.xlu0 %8483  ;;  %v26914_v13 = vld [vmem:[#allocation16_spill] sm:$0xff] }
 0x905   : > { %v8488_v1 = vsel %vm439_vm0, %v8482_v14, %v8484_v46 }
 0x906   : > { %16560 = vmatprep.subr.msk.mxu0 %vm482_vm2, %v8492_v34  ;;  %v8486_v32 = vpop.permute.xlu1 %8485  ;;  %v8493_v60 = vmul.f32 %v8488_v1, %v26909_v10 }
 0x907   : > { %v8487_v12 = vsel %vm439_vm0, %v8484_v46, %v8486_v32  ;;  %v8490_v55 = vsel %vm439_vm0, %v8486_v32, %v8480_v40  ;;  %v18120_v40 = vld [vmem:[%s25899_s3 + $0x38] sm:$0xff] }
 0x908   : > { %v8491_v37 = vmul.f32 %v8490_v55, %v26907_v53  ;;  %v8494_v33 = vmul.f32 %v8487_v12, %v26908_v50  ;;  %v8464_v31 = vpop.permute.xlu0 %8463  ;;  %v26915_v46 = vld [vmem:[#allocation15_spill] sm:$0xff]  ;;  %v26916_v55 = vld [vmem:[#allocation17_spill] sm:$0xff] }
 0x90a   : > { %16561 = vmatpush1.msk.msra.mxu0 %vm482_vm2, %v8491_v37  ;;  %16566 = vmatprep.subr.msk.mxu1 %vm482_vm2, %v8494_v33  ;;  %v8466_v19 = vpop.permute.xlu1 %8465 }
 0x90b   : > { %v8473_v35 = vsel %vm401_vm1, %v8464_v31, %v8466_v19  ;;  %16562 = vmatmul.mubr.msk.f32.vlgmr.msra.gmra.mrb[20].mxu0 %vm469_vm3, %v18117_v39  ;;  %16567 = vmatpush1.msk.msra.mxu1 %vm482_vm2, %v8493_v60  ;;  %v26917_v60 = vld [vmem:[#allocation18_spill] sm:$0xff] }
 0x90c   : > { %v8476_v0 = vmul.f32 %v8473_v35, %v26680_v17  ;;  %v8468_v16 = vpop.permute.xlu0 %8467  ;;  %16568 = vmatmul.mubr.msk.f32.vlgmr.msra.gmra.mrb[20].mxu1 %vm469_vm3, %v18117_v39  ;;  %8577 = vmatprep.mubr.f32.mxu0 %v26804_v8 }
 0x90d   : > { %8666 = vmatprep.mubr.f32.mxu1 %v26804_v8  ;;  %v8472_v22 = vsel %vm401_vm1, %v8466_v19, %v8468_v16 }
 0x90e   : > { %16572 = vmatprep.subr.msk.mxu0 %vm482_vm2, %v8476_v0  ;;  %v8470_v25 = vpop.permute.xlu1 %8469  ;;  %v8477_v58 = vmul.f32 %v8472_v22, %v26912_v38  ;;  %v26918_v22 = vld [vmem:[#allocation19_spill] sm:$0xff] }
 0x90f   : > { %v8471_v56 = vsel %vm401_vm1, %v8468_v16, %v8470_v25  ;;  %v8474_v51 = vsel %vm401_vm1, %v8470_v25, %v8464_v31  ;;  %16563 = vmatmul.mubr.msk.f32.gmra.mrb[22].mxu0 %vm469_vm3, %v18118_v29  ;;  %v18121_v31 = vld [vmem:[%s25899_s3] sm:$0xff]  ;;  %v18122_v16 = vld [vmem:[%s25899_s3 + $0x8] sm:$0xff] }
 0x910   : > { %v8475_v49 = vmul.f32 %v8474_v51, %v26910_v24  ;;  %v8478_v4 = vmul.f32 %v8471_v56, %v26911_v42  ;;  %v8876_v44 = vpop.permute.xlu0 %8875  ;;  %16569 = vmatmul.mubr.msk.f32.gmra.mrb[22].mxu1 %vm469_vm3, %v18118_v29  ;;  %8583 = vmatprep.mubr.f32.mxu0 %v26804_v8  ;;  %v18123_v56 = vld [vmem:[%s25899_s3 + $0x10] sm:$0xff]  ;;  %v18124_v29 = vld [vmem:[%s25899_s3 + $0x18] sm:$0xff] }
 0x911   : > { %8672 = vmatprep.mubr.f32.mxu1 %v26804_v8 }
 0x912   : > { %16573 = vmatpush1.msk.msra.mxu0 %vm482_vm2, %v8475_v49  ;;  %16578 = vmatprep.subr.msk.mxu1 %vm482_vm2, %v8478_v4  ;;  %v8878_v5 = vpop.permute.xlu1 %8877  ;;  %v26919_v49 = vld [vmem:[#allocation24_spill] sm:$0xff] }
 0x913   : > { %v8885_v47 = vsel %vm883_vm4, %v8876_v44, %v8878_v5  ;;  %16564 = vmatmul.mubr.msk.f32.gmra.mrb[24].mxu0 %vm469_vm3, %v18119_v48  ;;  %16579 = vmatpush1.msk.msra.mxu1 %vm482_vm2, %v8477_v58  ;;  %v9319_v4 = vmul.f32 %v22277_v36, %v26919_v49  ;;  %v26920_v58 = vld [vmem:[#allocation25_spill] sm:$0xff] }
 0x914   : > { %v8888_v59 = vmul.f32 %v8885_v47, %v26913_v45  ;;  %v8880_v52 = vpop.permute.xlu0 %8879  ;;  %16570 = vmatmul.mubr.msk.f32.gmra.mrb[24].mxu1 %vm469_vm3, %v18119_v48  ;;  %8589 = vmatprep.mubr.f32.mxu0 %v26804_v8  ;;  %v26921_v47 = vld [vmem:[#allocation26_spill] sm:$0xff] }
 0x915   : > { %8678 = vmatprep.mubr.f32.mxu1 %v26804_v8  ;;  %v8884_v14 = vsel %vm883_vm4, %v8878_v5, %v8880_v52  ;;  %v9320_v5 = vmul.f32 %v22280_v21, %v26920_v58 }
 0x916   : > { %16584 = vmatprep.subr.msk.mxu0 %vm482_vm2, %v8888_v59  ;;  %v8882_v28 = vpop.permute.xlu1 %8881  ;;  %v8889_v37 = vmul.f32 %v8884_v14, %v26916_v55  ;;  %v26922_v59 = vld [vmem:[#allocation27_spill] sm:$0xff]  ;;  %v18126_v14 = vld [vmem:[%s25899_s3 + $0x48] sm:$0xff] }
 0x917   : > { %v8883_v2 = vsel %vm883_vm4, %v8880_v52, %v8882_v28  ;;  %v8886_v26 = vsel %vm883_vm4, %v8882_v28, %v8876_v44  ;;  %16565 = vmatmul.mubr.msk.f32.gmra.mrb[26].mxu0 %vm469_vm3, %v18120_v40  ;;  %v18125_v28 = vld [vmem:[%s25899_s3 + $0x40] sm:$0xff] }
 0x918   : > { %v8887_v34 = vmul.f32 %v8886_v26, %v26914_v13  ;;  %v8890_v1 = vmul.f32 %v8883_v2, %v26915_v46  ;;  %v9098_v32 = vpop.permute.xlu0 %9097  ;;  %16571 = vmatmul.mubr.msk.f32.gmra.mrb[26].mxu1 %vm469_vm3, %v18120_v40  ;;  %8761 = vmatprep.mubr.f32.mxu0 %v26804_v8  ;;  %v9323_v2 = vcombine.high %v9319_v4, %v9319_v4 }
 0x919   : > { %8850 = vmatprep.mubr.f32.mxu1 %v26804_v8  ;;  %v9324_v26 = vcombine.high %v9320_v5, %v9320_v5 }
 0x91a   : > { %16590 = vmatprep.subr.msk.mxu1 %vm482_vm2, %v8890_v1  ;;  %v9100_v12 = vpop.permute.xlu1 %9099  ;;  %v18127_v1 = vld [vmem:[%s25899_s3 + $0x50] sm:$0xff] }
 0x91b   : > { %v9107_v33 = vsel %vm1139_vm5, %v9098_v32, %v9100_v12  ;;  %16574 = vmatmul.mubr.msk.f32.vlgmr.msra.gmra.mrb[20].mxu0 %vm469_vm3, %v18121_v31 }
 0x91c   : > { %v9110_v19 = vmul.f32 %v9107_v33, %v26917_v60  ;;  %16585 = vmatpush1.msk.msra.mxu0 %vm482_vm2, %v8887_v34  ;;  %16580 = vmatmul.mubr.msk.f32.vlgmr.msra.gmra.mrb[20].mxu1 %vm469_vm3, %v18121_v31  ;;  %v9102_v35 = vpop.permute.xlu0 %9101 }
 0x91d   : > { %16591 = vmatpush1.msk.msra.mxu1 %vm482_vm2, %v8889_v37  ;;  %8767 = vmatprep.mubr.f32.mxu0 %v26804_v8  ;;  %v9106_v44 = vsel %vm1139_vm5, %v9100_v12, %v9102_v35  ;;  %v18128_v37 = vld [vmem:[%s25899_s3 + $0x58] sm:$0xff] }
 0x91e   : > { %16596 = vmatprep.subr.msk.mxu0 %vm482_vm2, %v9110_v19  ;;  %v9104_v39 = vpop.permute.xlu1 %9103  ;;  %8856 = vmatprep.mubr.f32.mxu1 %v26804_v8  ;;  %v9111_v52 = vmul.f32 %v9106_v44, %v26922_v59  ;;  %v26923_v19 = vld [vmem:[#allocation28_spill] sm:$0xff] }
 0x91f   : > { %v9105_v0 = vsel %vm1139_vm5, %v9102_v35, %v9104_v39  ;;  %16575 = vmatmul.mubr.msk.f32.gmra.mrb[22].mxu0 %vm469_vm3, %v18122_v16  ;;  %v9108_v51 = vsel %vm1139_vm5, %v9104_v39, %v9098_v32  ;;  %v18129_v39 = vld [vmem:[%s25899_s3 + $0x60] sm:$0xff] }
 0x920   : > { %v9112_v25 = vmul.f32 %v9105_v0, %v26918_v22  ;;  %16581 = vmatmul.mubr.msk.f32.gmra.mrb[22].mxu1 %vm469_vm3, %v18122_v16  ;;  %8773 = vmatprep.mubr.f32.mxu0 %v26804_v8  ;;  %v9109_v48 = vmul.f32 %v9108_v51, %v26921_v47  ;;  %v9528_v40 = vpop.permute.xlu0 %9527  ;;  %v18131_v51 = vld [vmem:[%s25899_s3 + $0x70] sm:$0xff] }
 0x921   : > { %8862 = vmatprep.mubr.f32.mxu1 %v26804_v8 }
 0x922   : > { %16602 = vmatprep.subr.msk.mxu1 %vm482_vm2, %v9112_v25  ;;  %v9530_v34 = vpop.permute.xlu1 %9529  ;;  %v18130_v25 = vld [vmem:[%s25899_s3 + $0x68] sm:$0xff] }
 0x923   : > { %16576 = vmatmul.mubr.msk.f32.gmra.mrb[24].mxu0 %vm469_vm3, %v18123_v56  ;;  %v9537_v44 = vsel %vm1636_vm6, %v9528_v40, %v9530_v34 }
 0x924   : > { %16582 = vmatmul.mubr.msk.f32.gmra.mrb[24].mxu1 %vm469_vm3, %v18123_v56  ;;  %8779 = vmatprep.mubr.f32.mxu0 %v26804_v8  ;;  %v9532_v32 = vpop.permute.xlu0 %9531 }
 0x925   : > { %8868 = vmatprep.mubr.f32.mxu1 %v26804_v8  ;;  %v9536_v33 = vsel %vm1636_vm6, %v9530_v34, %v9532_v32 }
 0x926   : > { %v9534_v12 = vpop.permute.xlu1 %9533  ;;  %v9540_v35 = vmul.f32 %v9536_v33, %v26923_v19 }
 0x927   : > { %16577 = vmatmul.mubr.msk.f32.gmra.mrb[26].mxu0 %vm469_vm3, %v18124_v29  ;;  %v9538_v31 = vsel %vm1636_vm6, %v9534_v12, %v9528_v40 }
 0x928   : > { %16583 = vmatmul.mubr.msk.f32.gmra.mrb[26].mxu1 %vm469_vm3, %v18124_v29  ;;  %8967 = vmatprep.mubr.f32.mxu0 %v26804_v8  ;;  %v9542_v0 = vmul.f32 %v9538_v31, %v26803_v18  ;;  %v9750_v16 = vpop.permute.xlu0 %9749 }
 0x929   : > { %9056 = vmatprep.mubr.f32.mxu1 %v26804_v8 }
 0x92a   : > { %v9752_v56 = vpop.permute.xlu1 %9751 }
 0x92b   : > { %16586 = vmatmul.mubr.msk.f32.vlgmr.msra.gmra.mrb[20].mxu0 %vm469_vm3, %v18125_v28 }
 0x92c   : > { %16597 = vmatpush1.msk.msra.mxu0 %vm482_vm2, %v9109_v48  ;;  %16592 = vmatmul.mubr.msk.f32.vlgmr.msra.gmra.mrb[20].mxu1 %vm469_vm3, %v18125_v28  ;;  %v9754_v29 = vpop.permute.xlu0 %9753  ;;  %v9535_v48 = vsel %vm1636_vm6, %v9532_v32, %v9534_v12  ;;  %v18134_v32 = vld [vmem:[%s25899_s3 + $0x88] sm:$0xff] }
 0x92d   : > { %16603 = vmatpush1.msk.msra.mxu1 %vm482_vm2, %v9111_v52  ;;  %16608 = vmatprep.subr.msk.mxu0 %vm482_vm2, %v9323_v2  ;;  %v9758_v52 = vsel %vm1892_vm7, %v9752_v56, %v9754_v29  ;;  %v9539_v2 = vmul.f32 %v9537_v44, %v26788_v3 }
 0x92e   : > { %16614 = vmatprep.subr.msk.mxu1 %vm482_vm2, %v9324_v26  ;;  %8973 = vmatprep.mubr.f32.mxu0 %v26804_v8  ;;  %v9541_v26 = vmul.f32 %v9535_v48, %v26802_v6  ;;  %v9762_v40 = vmul.f32 %v9758_v52, %v26819_v15  ;;  %v18138_v48 = vld [vmem:[%s25899_s3 + $0xa8] sm:$0xff] }
 0x92f   : > { %16587 = vmatmul.mubr.msk.f32.gmra.mrb[22].mxu0 %vm469_vm3, %v18126_v14  ;;  %9062 = vmatprep.mubr.f32.mxu1 %v26804_v8 }
 0x930   : > { %16593 = vmatmul.mubr.msk.f32.gmra.mrb[22].mxu1 %vm469_vm3, %v18126_v14  ;;  %8979 = vmatprep.mubr.f32.mxu0 %v26804_v8  ;;  %v18133_v14 = vld [vmem:[%s25899_s3 + $0x80] sm:$0xff] }
 0x931   : > { %9068 = vmatprep.mubr.f32.mxu1 %v26804_v8 }
 0x933   : > { %16588 = vmatmul.mubr.msk.f32.gmra.mrb[24].mxu0 %vm469_vm3, %v18127_v1 }
 0x934   : > { %16594 = vmatmul.mubr.msk.f32.gmra.mrb[24].mxu1 %vm469_vm3, %v18127_v1  ;;  %8985 = vmatprep.mubr.f32.mxu0 %v26804_v8  ;;  %v9972_v1 = vpop.permute.xlu0 %9971 }
 0x935   : > { %9074 = vmatprep.mubr.f32.mxu1 %v26804_v8 }
 0x937   : > { %16589 = vmatmul.mubr.msk.f32.gmra.mrb[26].mxu0 %vm469_vm3, %v18128_v37 }
 0x938   : > { %16595 = vmatmul.mubr.msk.f32.gmra.mrb[26].mxu1 %vm469_vm3, %v18128_v37  ;;  %9189 = vmatprep.mubr.f32.mxu0 %v26804_v8  ;;  %v18135_v37 = vld [vmem:[%s25899_s3 + $0x90] sm:$0xff]  ;;  %v9976_v33 = vpop.permute.xlu0 %9975 }
 0x939   : > { %9278 = vmatprep.mubr.f32.mxu1 %v26804_v8 }
 0x93b   : > { %16598 = vmatmul.mubr.msk.f32.vlgmr.msra.gmra.mrb[20].mxu0 %vm469_vm3, %v18129_v39 }
 0x93c   : > { %16609 = vmatpush1.msk.msra.mxu0 %vm482_vm2, %v9319_v4  ;;  %16604 = vmatmul.mubr.msk.f32.vlgmr.msra.gmra.mrb[20].mxu1 %vm469_vm3, %v18129_v39  ;;  %v9756_v4 = vpop.permute.xlu1 %9755  ;;  %v18136_v39 = vld [vmem:[%s25899_s3 + $0x98] sm:$0xff] }
 0x93d   : > { %16615 = vmatpush1.msk.msra.mxu1 %vm482_vm2, %v9320_v5  ;;  %16620 = vmatprep.subr.msk.mxu0 %vm482_vm2, %v9540_v35  ;;  %v18132_v5 = vld [vmem:[%s25899_s3 + $0x78] sm:$0xff]  ;;  %v9760_v28 = vsel %vm1892_vm7, %v9756_v4, %v9750_v16  ;;  %v9759_v35 = vsel %vm1892_vm7, %v9750_v16, %v9752_v56 }
 0x93e   : > { %16626 = vmatprep.subr.msk.mxu1 %vm482_vm2, %v9542_v0  ;;  %9195 = vmatprep.mubr.f32.mxu0 %v26804_v8  ;;  %v9764_v34 = vmul.f32 %v9760_v28, %v26837_v54  ;;  %v9757_v0 = vsel %vm1892_vm7, %v9754_v29, %v9756_v4  ;;  %v9761_v16 = vmul.f32 %v9759_v35, %v26817_v43  ;;  %v18137_v29 = vld [vmem:[%s25899_s3 + $0xa0] sm:$0xff]  ;;  %v18139_v28 = vld [vmem:[%s25899_s3 + $0xb0] sm:$0xff] }
 0x93f   : > { %16599 = vmatmul.mubr.msk.f32.gmra.mrb[22].mxu0 %vm469_vm3, %v18130_v25  ;;  %9284 = vmatprep.mubr.f32.mxu1 %v26804_v8  ;;  %v9763_v56 = vmul.f32 %v9757_v0, %v26836_v23  ;;  %v18143_v0 = vld [vmem:[%s25899_s3 + $0xd0] sm:$0xff] }
 0x940   : > { %16605 = vmatmul.mubr.msk.f32.gmra.mrb[22].mxu1 %vm469_vm3, %v18130_v25  ;;  %9201 = vmatprep.mubr.f32.mxu0 %v26804_v8  ;;  %v9974_v12 = vpop.permute.xlu1 %9973 }
 0x941   : > { %9290 = vmatprep.mubr.f32.mxu1 %v26804_v8  ;;  %v9980_v25 = vsel %vm2148_vm8, %v9974_v12, %v9976_v33 }
 0x942   : > { %v9984_v44 = vmul.f32 %v9980_v25, %v26846_v30 }
 0x943   : > { %16600 = vmatmul.mubr.msk.f32.gmra.mrb[24].mxu0 %vm469_vm3, %v18131_v51 }
 0x944   : > { %16606 = vmatmul.mubr.msk.f32.gmra.mrb[24].mxu1 %vm469_vm3, %v18131_v51  ;;  %9207 = vmatprep.mubr.f32.mxu0 %v26804_v8  ;;  %v9978_v31 = vpop.permute.xlu1 %9977 }
 0x945   : > { %9296 = vmatprep.mubr.f32.mxu1 %v26804_v8  ;;  %v9982_v51 = vsel %vm2148_vm8, %v9978_v31, %v9972_v1 }
 0x946   : > { %v9986_v4 = vmul.f32 %v9982_v51, %v26858_v20  ;;  %v18144_v51 = vld [vmem:[%s25899_s3 + $0xd8] sm:$0xff] }
 0x947   : > { %16601 = vmatmul.mubr.msk.f32.gmra.mrb[26].mxu0 %vm469_vm3, %v18132_v5 }
 0x948   : > { %16607 = vmatmul.mubr.msk.f32.gmra.mrb[26].mxu1 %vm469_vm3, %v18132_v5  ;;  %9397 = vmatprep.mubr.f32.mxu0 %v26804_v8  ;;  %v10194_v5 = vpop.permute.xlu0 %10193  ;;  %v10196_v52 = vpop.permute.xlu1 %10195 }
 0x949   : > { %9486 = vmatprep.mubr.f32.mxu1 %v26804_v8  ;;  %v10203_v25 = vsel %vm2404_vm9, %v10194_v5, %v10196_v52 }
 0x94b   : > { %16610 = vmatmul.mubr.msk.f32.vlgmr.msra.gmra.mrb[20].mxu0 %vm469_vm3, %v18133_v14 }
 0x94c   : > { %16621 = vmatpush1.msk.msra.mxu0 %vm482_vm2, %v9539_v2  ;;  %16616 = vmatmul.mubr.msk.f32.vlgmr.msra.gmra.mrb[20].mxu1 %vm469_vm3, %v18133_v14  ;;  %v10198_v2 = vpop.permute.xlu0 %10197  ;;  %v18140_v14 = vld [vmem:[%s25899_s3 + $0xb8] sm:$0xff] }
 0x94d   : > { %16627 = vmatpush1.msk.msra.mxu1 %vm482_vm2, %v9541_v26  ;;  %16632 = vmatprep.subr.msk.mxu0 %vm482_vm2, %v9762_v40  ;;  %v10200_v26 = vpop.permute.xlu1 %10199  ;;  %v9981_v40 = vsel %vm2148_vm8, %v9972_v1, %v9974_v12 }
 0x94e   : > { %16638 = vmatprep.subr.msk.mxu1 %vm482_vm2, %v9764_v34  ;;  %9403 = vmatprep.mubr.f32.mxu0 %v26804_v8  ;;  %v9979_v34 = vsel %vm2148_vm8, %v9976_v33, %v9978_v31  ;;  %v9983_v1 = vmul.f32 %v9981_v40, %v26841_v63  ;;  %v18141_v33 = vld [vmem:[%s25899_s3 + $0xc0] sm:$0xff] }
 0x94f   : > { %16611 = vmatmul.mubr.msk.f32.gmra.mrb[22].mxu0 %vm469_vm3, %v18134_v32  ;;  %9492 = vmatprep.mubr.f32.mxu1 %v26804_v8  ;;  %v9985_v12 = vmul.f32 %v9979_v34, %v26857_v27 }
 0x950   : > { %16617 = vmatmul.mubr.msk.f32.gmra.mrb[22].mxu1 %vm469_vm3, %v18134_v32  ;;  %9409 = vmatprep.mubr.f32.mxu0 %v26804_v8  ;;  %v10202_v32 = vsel %vm2404_vm9, %v10196_v52, %v10198_v2  ;;  %v18149_v52 = vld [vmem:[%s25899_s3 + $0x100] sm:$0xff] }
 0x951   : > { %9498 = vmatprep.mubr.f32.mxu1 %v26804_v8  ;;  %v10206_v35 = vmul.f32 %v10202_v32, %v26880_v62 }
 0x953   : > { %16612 = vmatmul.mubr.msk.f32.gmra.mrb[24].mxu0 %vm469_vm3, %v18135_v37 }
 0x954   : > { %16618 = vmatmul.mubr.msk.f32.gmra.mrb[24].mxu1 %vm469_vm3, %v18135_v37  ;;  %9415 = vmatprep.mubr.f32.mxu0 %v26804_v8  ;;  %v10204_v37 = vsel %vm2404_vm9, %v10200_v26, %v10194_v5  ;;  %v18147_v5 = vld [vmem:[%s25899_s3 + $0xf0] sm:$0xff] }
 0x955   : > { %9504 = vmatprep.mubr.f32.mxu1 %v26804_v8  ;;  %v10208_v31 = vmul.f32 %v10204_v37, %v26898_v41 }
 0x957   : > { %16613 = vmatmul.mubr.msk.f32.gmra.mrb[26].mxu0 %vm469_vm3, %v18136_v39 }
 0x958   : > { %16619 = vmatmul.mubr.msk.f32.gmra.mrb[26].mxu1 %vm469_vm3, %v18136_v39  ;;  %9619 = vmatprep.mubr.f32.mxu0 %v26804_v8  ;;  %v18142_v39 = vld [vmem:[%s25899_s3 + $0xc8] sm:$0xff] }
 0x959   : > { %9708 = vmatprep.mubr.f32.mxu1 %v26804_v8 }
 0x95b   : > { %16622 = vmatmul.mubr.msk.f32.vlgmr.msra.gmra.mrb[20].mxu0 %vm469_vm3, %v18137_v29 }
 0x95c   : > { %16633 = vmatpush1.msk.msra.mxu0 %vm482_vm2, %v9761_v16  ;;  %16628 = vmatmul.mubr.msk.f32.vlgmr.msra.gmra.mrb[20].mxu1 %vm469_vm3, %v18137_v29  ;;  %v10201_v16 = vsel %vm2404_vm9, %v10198_v2, %v10200_v26  ;;  %v18145_v29 = vld [vmem:[%s25899_s3 + $0xe0] sm:$0xff]  ;;  %v18151_v2 = vld [vmem:[%s25899_s3 + $0x110] sm:$0xff]  ;;  %v18152_v26 = vld [vmem:[%s25899_s3 + $0x118] sm:$0xff] }
 0x95d   : > { %16639 = vmatpush1.msk.msra.mxu1 %vm482_vm2, %v9763_v56  ;;  %16644 = vmatprep.subr.msk.mxu0 %vm482_vm2, %v9984_v44  ;;  %v10205_v56 = vmul.f32 %v10203_v25, %v26877_v61  ;;  %v10207_v44 = vmul.f32 %v10201_v16, %v26890_v11 }
 0x95e   : > { %16650 = vmatprep.subr.msk.mxu1 %vm482_vm2, %v9986_v4  ;;  %9625 = vmatprep.mubr.f32.mxu0 %v26804_v8  ;;  %v18146_v4 = vld [vmem:[%s25899_s3 + $0xe8] sm:$0xff] }
 0x95f   : > { %16623 = vmatmul.mubr.msk.f32.gmra.mrb[22].mxu0 %vm469_vm3, %v18138_v48  ;;  %9714 = vmatprep.mubr.f32.mxu1 %v26804_v8 }
 0x960   : > { %16629 = vmatmul.mubr.msk.f32.gmra.mrb[22].mxu1 %vm469_vm3, %v18138_v48  ;;  %9631 = vmatprep.mubr.f32.mxu0 %v26804_v8  ;;  %v18148_v48 = vld [vmem:[%s25899_s3 + $0xf8] sm:$0xff] }
 0x961   : > { %9720 = vmatprep.mubr.f32.mxu1 %v26804_v8 }
 0x963   : > { %16624 = vmatmul.mubr.msk.f32.gmra.mrb[24].mxu0 %vm469_vm3, %v18139_v28 }
 0x964   : > { %16630 = vmatmul.mubr.msk.f32.gmra.mrb[24].mxu1 %vm469_vm3, %v18139_v28  ;;  %9637 = vmatprep.mubr.f32.mxu0 %v26804_v8  ;;  %v18150_v28 = vld [vmem:[%s25899_s3 + $0x108] sm:$0xff] }
 0x965   : > { %9726 = vmatprep.mubr.f32.mxu1 %v26804_v8 }
 0x967   : > { %16625 = vmatmul.mubr.msk.f32.gmra.mrb[26].mxu0 %vm469_vm3, %v18140_v14 }
 0x968   : > { %16631 = vmatmul.mubr.msk.f32.gmra.mrb[26].mxu1 %vm469_vm3, %v18140_v14  ;;  %9841 = vmatprep.mubr.f32.mxu0 %v26804_v8  ;;  %v26924_v14 = vld [vmem:[#allocation44_spill] sm:$0xff] }
 0x969   : > { %9930 = vmatprep.mubr.f32.mxu1 %v26804_v8 }
 0x96b   : > { %16634 = vmatmul.mubr.msk.f32.vlgmr.msra.gmra.mrb[20].mxu0 %vm469_vm3, %v18141_v33 }
 0x96c   : > { %16645 = vmatpush1.msk.msra.mxu0 %vm482_vm2, %v9983_v1  ;;  %16640 = vmatmul.mubr.msk.f32.vlgmr.msra.gmra.mrb[20].mxu1 %vm469_vm3, %v18141_v33 }
 0x96d   : > { %16651 = vmatpush1.msk.msra.mxu1 %vm482_vm2, %v9985_v12  ;;  %16656 = vmatprep.subr.msk.mxu0 %vm482_vm2, %v10206_v35 }
 0x96e   : > { %16662 = vmatprep.subr.msk.mxu1 %vm482_vm2, %v10208_v31  ;;  %9847 = vmatprep.mubr.f32.mxu0 %v26804_v8  ;;  %v26925_v31 = vld [vmem:[#allocation45_spill] sm:$0xff] }
 0x96f   : > { %16635 = vmatmul.mubr.msk.f32.gmra.mrb[22].mxu0 %vm469_vm3, %v18142_v39  ;;  %9936 = vmatprep.mubr.f32.mxu1 %v26804_v8 }
 0x970   : > { %16641 = vmatmul.mubr.msk.f32.gmra.mrb[22].mxu1 %vm469_vm3, %v18142_v39  ;;  %9853 = vmatprep.mubr.f32.mxu0 %v26804_v8 }
 0x971   : > { %9942 = vmatprep.mubr.f32.mxu1 %v26804_v8 }
 0x973   : > { %16636 = vmatmul.mubr.msk.f32.gmra.mrb[24].mxu0 %vm469_vm3, %v18143_v0 }
 0x974   : > { %16642 = vmatmul.mubr.msk.f32.gmra.mrb[24].mxu1 %vm469_vm3, %v18143_v0  ;;  %9859 = vmatprep.mubr.f32.mxu0 %v26804_v8 }
 0x975   : > { %9948 = vmatprep.mubr.f32.mxu1 %v26804_v8 }
 0x977   : > { %16637 = vmatmul.mubr.msk.f32.gmra.mrb[26].mxu0 %vm469_vm3, %v18144_v51 }
 0x978   : > { %16643 = vmatmul.mubr.msk.f32.gmra.mrb[26].mxu1 %vm469_vm3, %v18144_v51  ;;  %10063 = vmatprep.mubr.f32.mxu0 %v26804_v8 }
 0x979   : > { %10152 = vmatprep.mubr.f32.mxu1 %v26804_v8 }
 0x97b   : > { %16646 = vmatmul.mubr.msk.f32.vlgmr.msra.gmra.mrb[20].mxu0 %vm469_vm3, %v18145_v29 }
 0x97c   : > { %16657 = vmatpush1.msk.msra.mxu0 %vm482_vm2, %v10205_v56  ;;  %16652 = vmatmul.mubr.msk.f32.vlgmr.msra.gmra.mrb[20].mxu1 %vm469_vm3, %v18145_v29 }
 0x97d   : > { %16663 = vmatpush1.msk.msra.mxu1 %vm482_vm2, %v10207_v44  ;;  %10069 = vmatprep.mubr.f32.mxu0 %v26804_v8 }
 0x97e   : > { %10158 = vmatprep.mubr.f32.mxu1 %v26804_v8 }
 0x97f   : > { %16647 = vmatmul.mubr.msk.f32.gmra.mrb[22].mxu0 %vm469_vm3, %v18146_v4 }
 0x980   : > { %16653 = vmatmul.mubr.msk.f32.gmra.mrb[22].mxu1 %vm469_vm3, %v18146_v4  ;;  %10075 = vmatprep.mubr.f32.mxu0 %v26804_v8 }
 0x981   : > { %10164 = vmatprep.mubr.f32.mxu1 %v26804_v8 }
 0x983   : > { %16648 = vmatmul.mubr.msk.f32.gmra.mrb[24].mxu0 %vm469_vm3, %v18147_v5 }
 0x984   : > { %16654 = vmatmul.mubr.msk.f32.gmra.mrb[24].mxu1 %vm469_vm3, %v18147_v5  ;;  %10081 = vmatprep.mubr.f32.mxu0 %v26804_v8 }
 0x985   : > { %10170 = vmatprep.mubr.f32.mxu1 %v26804_v8 }
 0x987   : > { %16649 = vmatmul.mubr.msk.f32.gmra.mrb[26].mxu0 %vm469_vm3, %v18148_v48 }
 0x988   : > { %16655 = vmatmul.mubr.msk.f32.gmra.mrb[26].mxu1 %vm469_vm3, %v18148_v48  ;;  %10285 = vmatprep.mubr.f32.mxu0 %v26804_v8 }
 0x989   : > { %10374 = vmatprep.mubr.f32.mxu1 %v26804_v8 }
 0x98b   : > { %16658 = vmatmul.mubr.msk.f32.vlgmr.msra.gmra.mrb[20].mxu0 %vm469_vm3, %v18149_v52 }
 0x98c   : > { %16664 = vmatmul.mubr.msk.f32.vlgmr.msra.gmra.mrb[20].mxu1 %vm469_vm3, %v18149_v52  ;;  %10291 = vmatprep.mubr.f32.mxu0 %v26804_v8  ;;  %v26926_v52 = vld [vmem:[#allocation20_spill] sm:$0xff] }
 0x98d   : > { %10380 = vmatprep.mubr.f32.mxu1 %v26804_v8 }
 0x98f   : > { %16659 = vmatmul.mubr.msk.f32.gmra.mrb[22].mxu0 %vm469_vm3, %v18150_v28 }
 0x990   : > { %16665 = vmatmul.mubr.msk.f32.gmra.mrb[22].mxu1 %vm469_vm3, %v18150_v28  ;;  %10297 = vmatprep.mubr.f32.mxu0 %v26804_v8 }
 0x991   : > { %10386 = vmatprep.mubr.f32.mxu1 %v26804_v8 }
 0x993   : > { %16660 = vmatmul.mubr.msk.f32.gmra.mrb[24].mxu0 %vm469_vm3, %v18151_v2 }
 0x994   : > { %16666 = vmatmul.mubr.msk.f32.gmra.mrb[24].mxu1 %vm469_vm3, %v18151_v2  ;;  %10303 = vmatprep.mubr.f32.mxu0 %v26804_v8 }
 0x995   : > { %10392 = vmatprep.mubr.f32.mxu1 %v26804_v8 }
 0x997   : > { %16661 = vmatmul.mubr.msk.f32.gmra.mrb[26].mxu0 %vm469_vm3, %v18152_v26 }
 0x998   : > { %16667 = vmatmul.mubr.msk.f32.gmra.mrb[26].mxu1 %vm469_vm3, %v18152_v26  ;;  %10639 = vmatprep.mubr.f32.mxu0 %v26804_v8 }
 0x999   : > { %10710 = vmatprep.mubr.f32.mxu1 %v26804_v8 }
 0xa5e   : > { %v10287_v40 = vpop.f32.mrb[20].mxu0 }
 0xa5f   : > { %v10415_v34 = vadd.f32 %v10287_v40, %v26924_v14  ;;  %v10289_v32 = vpop.f32.mrb[21].mxu0  ;;  %v10376_v37 = vpop.f32.mrb[20].mxu1  ;;  %v26929_v40 = vld [vmem:[#allocation22_spill] sm:$0xff] }
 0xa60   : > { %v10417_v1 = vadd.f32 %v10376_v37, %v26924_v14  ;;  %v10378_v12 = vpop.f32.mrb[21].mxu1 }
 0xa61   : > { %v10431_v35 = vmax.f32 %v10415_v34, 0.0  ;;  %v10418_v49 = vadd.f32 %v10378_v12, %v26924_v14 }
 0xa62   : > { %v10293_v33 = vpop.f32.mrb[22].mxu0  ;;  %v10433_v51 = vmax.f32 %v10417_v1, 0.0 }
 0xa63   : > { %v10419_v39 = vadd.f32 %v10293_v33, %v26925_v31  ;;  %10511 = vrot.lane.b32.xlu0 %v10431_v35, %s18246_s18  ;;  %v10295_v0 = vpop.f32.mrb[23].mxu0  ;;  %v10382_v25 = vpop.f32.mrb[22].mxu1  ;;  %v22746_v28 = vmul.f32 %v10431_v35, %v26926_v52 }
 0xa64   : > { %v10421_v16 = vadd.f32 %v10382_v25, %v26925_v31  ;;  %v10384_v56 = vpop.f32.mrb[23].mxu1  ;;  %v22754_v34 = vmul.f32 %v10433_v51, %v26929_v40  ;;  %v10420_v21 = vadd.f32 %v10295_v0, %v26925_v31 }
 0xa65   : > { %v10435_v44 = vmax.f32 %v10419_v39, 0.0  ;;  %26927 = vst [vmem:[#allocation75_spill] sm:$0xff] %v22746_v28  ;;  %v10416_v39 = vadd.f32 %v10289_v32, %v26924_v14  ;;  %v10422_v32 = vadd.f32 %v10384_v56, %v26925_v31  ;;  %v26933_v31 = vld [vmem:[#allocation51_spill] sm:$0xff] }
 0xa66   : > { %v10437_v29 = vmax.f32 %v10421_v16, 0.0  ;;  %v22737_v4 = vpop.f32.mrb[24].mxu0  ;;  %26930 = vst [vmem:[#allocation106_spill] sm:$0xff] %v22754_v34  ;;  %v22809_v36 = vmax.f32 %v10420_v21, 0.0 }
 0xa67   : > { %10513 = vrot.lane.b32.xlu1 %v10435_v44, %s18246_s18  ;;  %v22740_v5 = vpop.f32.mrb[25].mxu0  ;;  %10527 = vrot.lane.b32.xlu0 %v10433_v51, %s18246_s18  ;;  %v22743_v48 = vpop.f32.mrb[24].mxu1  ;;  %v22749_v2 = vmul.f32 %v10435_v44, %v26926_v52  ;;  %v22800_v1 = vmax.f32 %v10416_v39, 0.0  ;;  %v22816_v12 = vmax.f32 %v10422_v32, 0.0 }
 0xa68   : > { %v22751_v26 = vpop.f32.mrb[25].mxu1  ;;  %v22757_v37 = vmul.f32 %v10437_v29, %v26929_v40 }
 0xa69   : > { %26928 = vst [vmem:[#allocation89_spill] sm:$0xff] %v22749_v2 }
 0xa6a   : > { %26931 = vst [vmem:[#allocation78_spill] sm:$0xff] %v22757_v37  ;;  %v22761_v33 = vpop.f32.mrb[26].mxu0 }
 0xa6b   : > { %v22765_v25 = vpop.f32.mrb[27].mxu0  ;;  %10447 = vrot.lane.b32.xlu0 %v10431_v35, %s18248_s19  ;;  %10529 = vrot.lane.b32.xlu1 %v10437_v29, %s18246_s18  ;;  %v22769_v16 = vpop.f32.mrb[26].mxu1  ;;  %v10427_v14 = vadd.f32 %v22761_v33, %v26933_v31 }
 0xa6c   : > { %v22771_v58 = vpop.f32.mrb[27].mxu1 }
 0xa6f   : > { %10463 = vrot.lane.b32.xlu0 %v10433_v51, %s18248_s19  ;;  %10449 = vrot.lane.b32.xlu1 %v10435_v44, %s18248_s19 }
 0xa73   : > { %10859 = vrot.lane.b32.xlu0 %v10431_v35, %s18249_s20  ;;  %10465 = vrot.lane.b32.xlu1 %v10437_v29, %s18248_s19 }
 0xa77   : > { %10875 = vrot.lane.b32.xlu0 %v10433_v51, %s18249_s20  ;;  %10861 = vrot.lane.b32.xlu1 %v10435_v44, %s18249_s20 }
 0xa7b   : > { %11069 = vrot.lane.b32.xlu0 %v10431_v35, %s18250_s21  ;;  %10877 = vrot.lane.b32.xlu1 %v10437_v29, %s18249_s20 }
 0xa7f   : > { %11085 = vrot.lane.b32.xlu0 %v10433_v51, %s18250_s21  ;;  %11071 = vrot.lane.b32.xlu1 %v10435_v44, %s18250_s21 }
 0xa83   : > { %11441 = vrot.lane.b32.xlu0 %v10431_v35, %s18251_s22  ;;  %11087 = vrot.lane.b32.xlu1 %v10437_v29, %s18250_s21 }
 0xa87   : > { %11457 = vrot.lane.b32.xlu0 %v10433_v51, %s18251_s22  ;;  %11443 = vrot.lane.b32.xlu1 %v10435_v44, %s18251_s22 }
 0xa8b   : > { %11651 = vrot.lane.b32.xlu0 %v10431_v35, %s18252_s23  ;;  %11459 = vrot.lane.b32.xlu1 %v10437_v29, %s18251_s22 }
 0xa8f   : > { %11667 = vrot.lane.b32.xlu0 %v10433_v51, %s18252_s23  ;;  %11653 = vrot.lane.b32.xlu1 %v10435_v44, %s18252_s23 }
 0xa93   : > { %11861 = vrot.lane.b32.xlu0 %v10431_v35, %s18253_s24  ;;  %11669 = vrot.lane.b32.xlu1 %v10437_v29, %s18252_s23 }
 0xa97   : > { %11877 = vrot.lane.b32.xlu0 %v10433_v51, %s18253_s24  ;;  %11863 = vrot.lane.b32.xlu1 %v10435_v44, %s18253_s24 }
 0xa9b   : > { %12071 = vrot.lane.b32.xlu0 %v10431_v35, %s18254_s25  ;;  %11879 = vrot.lane.b32.xlu1 %v10437_v29, %s18253_s24  ;;  %v22807_v35 = vmax.f32 %v10418_v49, 0.0 }
 0xa9f   : > { %12087 = vrot.lane.b32.xlu0 %v10433_v51, %s18254_s25  ;;  %12073 = vrot.lane.b32.xlu1 %v10435_v44, %s18254_s25  ;;  %v26932_v51 = vld [vmem:[#allocation50_spill] sm:$0xff] }
 0xaa0   : > { %v10423_v56 = vadd.f32 %v22737_v4, %v26932_v51  ;;  %v10425_v32 = vadd.f32 %v22743_v48, %v26932_v51  ;;  %v10429_v48 = vadd.f32 %v22769_v16, %v26933_v31 }
 0xaa2   : > { %v22886_v39 = vmax.f32 %v10423_v56, 0.0  ;;  %v22900_v41 = vmax.f32 %v10425_v32, 0.0  ;;  %v22902_v56 = vmax.f32 %v10427_v14, 0.0  ;;  %v22914_v62 = vmax.f32 %v10429_v48, 0.0 }
 0xaa3   : > { %10519 = vrot.lane.b32.xlu0 %v22800_v1, %s18246_s18  ;;  %12089 = vrot.lane.b32.xlu1 %v10437_v29, %s18254_s25 }
 0xaa7   : > { %10535 = vrot.lane.b32.xlu0 %v22807_v35, %s18246_s18  ;;  %10521 = vrot.lane.b32.xlu1 %v22809_v36, %s18246_s18 }
 0xaab   : > { %10455 = vrot.lane.b32.xlu0 %v22800_v1, %s18248_s19  ;;  %10537 = vrot.lane.b32.xlu1 %v22816_v12, %s18246_s18 }
 0xaaf   : > { %10471 = vrot.lane.b32.xlu0 %v22807_v35, %s18248_s19  ;;  %10457 = vrot.lane.b32.xlu1 %v22809_v36, %s18248_s19 }
 0xab3   : > { %10867 = vrot.lane.b32.xlu0 %v22800_v1, %s18249_s20  ;;  %10473 = vrot.lane.b32.xlu1 %v22816_v12, %s18248_s19 }
 0xab7   : > { %10883 = vrot.lane.b32.xlu0 %v22807_v35, %s18249_s20  ;;  %10869 = vrot.lane.b32.xlu1 %v22809_v36, %s18249_s20 }
 0xabb   : > { %11077 = vrot.lane.b32.xlu0 %v22800_v1, %s18250_s21  ;;  %10885 = vrot.lane.b32.xlu1 %v22816_v12, %s18249_s20 }
 0xabf   : > { %11093 = vrot.lane.b32.xlu0 %v22807_v35, %s18250_s21  ;;  %11079 = vrot.lane.b32.xlu1 %v22809_v36, %s18250_s21 }
 0xac3   : > { %11449 = vrot.lane.b32.xlu0 %v22800_v1, %s18251_s22  ;;  %11095 = vrot.lane.b32.xlu1 %v22816_v12, %s18250_s21 }
 0xac7   : > { %11465 = vrot.lane.b32.xlu0 %v22807_v35, %s18251_s22  ;;  %11451 = vrot.lane.b32.xlu1 %v22809_v36, %s18251_s22 }
 0xacb   : > { %11659 = vrot.lane.b32.xlu0 %v22800_v1, %s18252_s23  ;;  %11467 = vrot.lane.b32.xlu1 %v22816_v12, %s18251_s22 }
 0xacf   : > { %11675 = vrot.lane.b32.xlu0 %v22807_v35, %s18252_s23  ;;  %11661 = vrot.lane.b32.xlu1 %v22809_v36, %s18252_s23 }
 0xad3   : > { %11869 = vrot.lane.b32.xlu0 %v22800_v1, %s18253_s24  ;;  %11677 = vrot.lane.b32.xlu1 %v22816_v12, %s18252_s23 }
 0xad5   : > { %v22862_v21 = vpop.permute.xlu0 %10511 }
 0xad7   : > { %11885 = vrot.lane.b32.xlu0 %v22807_v35, %s18253_s24  ;;  %11871 = vrot.lane.b32.xlu1 %v22809_v36, %s18253_s24 }
 0xad9   : > { %v22868_v49 = vpop.permute.xlu0 %10527  ;;  %v22870_v0 = vpop.permute.xlu1 %10513 }
 0xadb   : > { %12079 = vrot.lane.b32.xlu0 %v22800_v1, %s18254_s25  ;;  %11887 = vrot.lane.b32.xlu1 %v22816_v12, %s18253_s24 }
 0xadd   : > { %v22878_v44 = vpop.permute.xlu0 %10447  ;;  %v22880_v29 = vpop.permute.xlu1 %10529 }
 0xadf   : > { %12095 = vrot.lane.b32.xlu0 %v22807_v35, %s18254_s25  ;;  %12081 = vrot.lane.b32.xlu1 %v22809_v36, %s18254_s25 }
 0xae1   : > { %v22892_v57 = vpop.permute.xlu0 %10463  ;;  %v22894_v4 = vpop.permute.xlu1 %10449 }
 0xae3   : > { %10515 = vrot.lane.b32.xlu0 %v22886_v39, %s18246_s18  ;;  %12097 = vrot.lane.b32.xlu1 %v22816_v12, %s18254_s25 }
 0xae5   : > { %v22906_v11 = vpop.permute.xlu0 %10859  ;;  %v22908_v33 = vpop.permute.xlu1 %10465 }
 0xae7   : > { %10517 = vrot.lane.b32.xlu1 %v22902_v56, %s18246_s18  ;;  %10531 = vrot.lane.b32.xlu0 %v22900_v41, %s18246_s18 }
 0xae9   : > { %v22916_v61 = vpop.permute.xlu0 %10875  ;;  %v22918_v32 = vpop.permute.xlu1 %10861 }
 0xaeb   : > { %10451 = vrot.lane.b32.xlu0 %v22886_v39, %s18248_s19  ;;  %10533 = vrot.lane.b32.xlu1 %v22914_v62, %s18246_s18 }
 0xaed   : > { %v22924_v14 = vpop.permute.xlu0 %11069  ;;  %v22926_v16 = vpop.permute.xlu1 %10877 }
 0xaef   : > { %10467 = vrot.lane.b32.xlu0 %v22900_v41, %s18248_s19  ;;  %10453 = vrot.lane.b32.xlu1 %v22902_v56, %s18248_s19 }
 0xaf1   : > { %v22932_v48 = vpop.permute.xlu0 %11085  ;;  %v22934_v20 = vpop.permute.xlu1 %11071 }
 0xaf3   : > { %10863 = vrot.lane.b32.xlu0 %v22886_v39, %s18249_s20  ;;  %10469 = vrot.lane.b32.xlu1 %v22914_v62, %s18248_s19 }
 0xaf5   : > { %v22940_v27 = vpop.permute.xlu0 %11441  ;;  %v22942_v34 = vpop.permute.xlu1 %11087 }
 0xaf6   : > { %26934 = vst [vmem:[#allocation97_spill] sm:$0xff] %v22940_v27 }
 0xaf7   : > { %10879 = vrot.lane.b32.xlu0 %v22900_v41, %s18249_s20  ;;  %10865 = vrot.lane.b32.xlu1 %v22902_v56, %s18249_s20 }
 0xaf9   : > { %v22948_v37 = vpop.permute.xlu0 %11457  ;;  %v22950_v28 = vpop.permute.xlu1 %11443 }
 0xafa   : > { %26935 = vst [vmem:[#allocation46_spill] sm:$0xff] %v22948_v37  ;;  %26936 = vst [vmem:[#allocation115_spill] sm:$0xff] %v22950_v28 }
 0xafb   : > { %11073 = vrot.lane.b32.xlu0 %v22886_v39, %s18250_s21  ;;  %10881 = vrot.lane.b32.xlu1 %v22914_v62, %s18249_s20 }
 0xafd   : > { %v22956_v2 = vpop.permute.xlu0 %11651  ;;  %v22958_v30 = vpop.permute.xlu1 %11459 }
 0xafe   : > { %26937 = vst [vmem:[#allocation58_spill] sm:$0xff] %v22956_v2  ;;  %26938 = vst [vmem:[#allocation74_spill] sm:$0xff] %v22958_v30  ;;  %v10426_v2 = vadd.f32 %v22751_v26, %v26932_v51 }
 0xaff   : > { %11089 = vrot.lane.b32.xlu0 %v22900_v41, %s18250_s21  ;;  %11075 = vrot.lane.b32.xlu1 %v22902_v56, %s18250_s21 }
 0xb01   : > { %v22964_v63 = vpop.permute.xlu0 %11667  ;;  %v22966_v54 = vpop.permute.xlu1 %11653 }
 0xb02   : > { %26939 = vst [vmem:[#allocation91_spill] sm:$0xff] %v22964_v63  ;;  %26940 = vst [vmem:[#allocation109_spill] sm:$0xff] %v22966_v54 }
 0xb03   : > { %11445 = vrot.lane.b32.xlu0 %v22886_v39, %s18251_s22  ;;  %11091 = vrot.lane.b32.xlu1 %v22914_v62, %s18250_s21 }
 0xb05   : > { %v22972_v23 = vpop.permute.xlu0 %11861  ;;  %v22974_v15 = vpop.permute.xlu1 %11669 }
 0xb06   : > { %26941 = vst [vmem:[#allocation71_spill] sm:$0xff] %v22972_v23  ;;  %26942 = vst [vmem:[#allocation48_spill] sm:$0xff] %v22974_v15 }
 0xb07   : > { %11461 = vrot.lane.b32.xlu0 %v22900_v41, %s18251_s22  ;;  %11447 = vrot.lane.b32.xlu1 %v22902_v56, %s18251_s22 }
 0xb09   : > { %v22980_v43 = vpop.permute.xlu0 %11877  ;;  %v22982_v63 = vpop.permute.xlu1 %11863 }
 0xb0a   : > { %26943 = vst [vmem:[#allocation49_spill] sm:$0xff] %v22980_v43  ;;  %26944 = vst [vmem:[#allocation116_spill] sm:$0xff] %v22982_v63 }
 0xb0b   : > { %11655 = vrot.lane.b32.xlu0 %v22886_v39, %s18252_s23  ;;  %11463 = vrot.lane.b32.xlu1 %v22914_v62, %s18251_s22 }
 0xb0d   : > { %v22988_v54 = vpop.permute.xlu0 %12071  ;;  %v22990_v23 = vpop.permute.xlu1 %11879 }
 0xb0e   : > { %26945 = vst [vmem:[#allocation60_spill] sm:$0xff] %v22988_v54  ;;  %26946 = vst [vmem:[#allocation70_spill] sm:$0xff] %v22990_v23  ;;  %v10424_v54 = vadd.f32 %v22740_v5, %v26932_v51 }
 0xb0f   : > { %11671 = vrot.lane.b32.xlu0 %v22900_v41, %s18252_s23  ;;  %11657 = vrot.lane.b32.xlu1 %v22902_v56, %s18252_s23 }
 0xb11   : > { %v22996_v15 = vpop.permute.xlu0 %12087  ;;  %v22998_v43 = vpop.permute.xlu1 %12073 }
 0xb12   : > { %26947 = vst [vmem:[#allocation120_spill] sm:$0xff] %v22996_v15  ;;  %26948 = vst [vmem:[#allocation112_spill] sm:$0xff] %v22998_v43  ;;  %v23015_v15 = vmax.f32 %v10424_v54, 0.0 }
 0xb13   : > { %11865 = vrot.lane.b32.xlu0 %v22886_v39, %s18253_s24  ;;  %11673 = vrot.lane.b32.xlu1 %v22914_v62, %s18252_s23 }
 0xb15   : > { %v10520_v23 = vpop.permute.xlu0 %10519  ;;  %v23006_v63 = vpop.permute.xlu1 %12089 }
 0xb16   : > { %26949 = vst [vmem:[#allocation54_spill] sm:$0xff] %v23006_v63  ;;  %v10551_v43 = vsel %vm439_vm0, %v22862_v21, %v10520_v23  ;;  %v10428_v63 = vadd.f32 %v22765_v25, %v26933_v31  ;;  %v23036_v25 = vmax.f32 %v10426_v2, 0.0 }
 0xb17   : > { %11881 = vrot.lane.b32.xlu0 %v22900_v41, %s18253_s24  ;;  %11867 = vrot.lane.b32.xlu1 %v22902_v56, %s18253_s24  ;;  %v10560_v6 = vmul.f32 %v10551_v43, %v26906_v7  ;;  %v10430_v43 = vadd.f32 %v22771_v58, %v26933_v31 }
 0xb18   : > { %v23045_v3 = vmax.f32 %v10428_v63, 0.0 }
 0xb19   : > { %v10536_v8 = vpop.permute.xlu0 %10535  ;;  %v10522_v5 = vpop.permute.xlu1 %10521 }
 0xb1a   : > { %v10552_v18 = vsel %vm439_vm0, %v22870_v0, %v10522_v5  ;;  %v10543_v54 = vsel %vm439_vm0, %v22868_v49, %v10536_v8  ;;  %v10555_v26 = vsel %vm439_vm0, %v10536_v8, %v22862_v21  ;;  %v10547_v8 = vsel %vm439_vm0, %v10520_v23, %v22868_v49 }
 0xb1b   : > { %v10564_v30 = vmul.f32 %v10552_v18, %v26906_v7  ;;  %10523 = vrot.lane.b32.xlu0 %v23015_v15, %s18246_s18  ;;  %11883 = vrot.lane.b32.xlu1 %v22914_v62, %s18253_s24  ;;  %v10548_v18 = vsel %vm439_vm0, %v10522_v5, %v22880_v29  ;;  %v10559_v21 = vmul.f32 %v10555_v26, %v26907_v53 }
 0xb1c   : > { %v10562_v5 = vmul.f32 %v10543_v54, %v26908_v50  ;;  %v10565_v23 = vmul.f32 %v10548_v18, %v26909_v10  ;;  %v10561_v54 = vmul.f32 %v10547_v8, %v26909_v10 }
 0xb1d   : > { %v23043_v51 = vpop.permute.xlu0 %10455  ;;  %v10538_v28 = vpop.permute.xlu1 %10537  ;;  %v17103_v19 = vpack.c.bf16 %v10564_v30, %v10560_v6 }
 0xb1e   : > { %v10544_v2 = vsel %vm439_vm0, %v22880_v29, %v10538_v28  ;;  %v10556_v58 = vsel %vm439_vm0, %v10538_v28, %v22870_v0  ;;  %v23069_v29 = vmax.f32 %v10430_v43, 0.0  ;;  %v17113_v26 = vpack.c.bf16 %v10565_v23, %v10561_v54 }
 0xb1f   : > { %v10563_v6 = vmul.f32 %v10556_v58, %v26907_v53  ;;  %v10566_v63 = vmul.f32 %v10544_v2, %v26908_v50  ;;  %10539 = vrot.lane.b32.xlu0 %v23036_v25, %s18246_s18  ;;  %10525 = vrot.lane.b32.xlu1 %v23045_v3, %s18246_s18 }
 0xb20   : > { %17104 = vmatprep.subr.bf16.mxu0 %v17103_v19 }
 0xb21   : > { %v17105_v30 = vpack.c.bf16 %v10563_v6, %v10559_v21  ;;  %v23065_v49 = vpop.permute.xlu0 %10471  ;;  %v23067_v28 = vpop.permute.xlu1 %10457  ;;  %v17111_v0 = vpack.c.bf16 %v10566_v63, %v10562_v5 }
 0xb23   : > { %10459 = vrot.lane.b32.xlu0 %v23015_v15, %s18248_s19  ;;  %10541 = vrot.lane.b32.xlu1 %v23069_v29, %s18246_s18 }
 0xb24   : > { %17106 = vmatpush1.bf16.msra.mxu0 %v17105_v30  ;;  %17112 = vmatprep.subr.bf16.mxu1 %v17111_v0 }
 0xb25   : > { %v23076_v19 = vpop.permute.xlu0 %10867  ;;  %v23078_v18 = vpop.permute.xlu1 %10473  ;;  %17114 = vmatpush1.bf16.msra.mxu1 %v17113_v26 }
 0xb27   : > { %10475 = vrot.lane.b32.xlu0 %v23036_v25, %s18248_s19  ;;  %10461 = vrot.lane.b32.xlu1 %v23045_v3, %s18248_s19 }
 0xb29   : > { %v23084_v43 = vpop.permute.xlu0 %10883  ;;  %v23086_v8 = vpop.permute.xlu1 %10869 }
 0xb2b   : > { %10871 = vrot.lane.b32.xlu0 %v23015_v15, %s18249_s20  ;;  %10477 = vrot.lane.b32.xlu1 %v23069_v29, %s18248_s19 }
 0xb2d   : > { %v23092_v2 = vpop.permute.xlu0 %11077  ;;  %v23094_v58 = vpop.permute.xlu1 %10885 }
 0xb2f   : > { %10887 = vrot.lane.b32.xlu0 %v23036_v25, %s18249_s20  ;;  %10873 = vrot.lane.b32.xlu1 %v23045_v3, %s18249_s20 }
 0xb31   : > { %v23100_v21 = vpop.permute.xlu0 %11093  ;;  %v23102_v5 = vpop.permute.xlu1 %11079 }
 0xb33   : > { %11081 = vrot.lane.b32.xlu0 %v23015_v15, %s18250_s21  ;;  %10889 = vrot.lane.b32.xlu1 %v23069_v29, %s18249_s20 }
 0xb35   : > { %v23108_v6 = vpop.permute.xlu0 %11449  ;;  %v23110_v63 = vpop.permute.xlu1 %11095 }
 0xb36   : > { %26950 = vst [vmem:[#allocation100_spill] sm:$0xff] %v23108_v6 }
 0xb37   : > { %11097 = vrot.lane.b32.xlu0 %v23036_v25, %s18250_s21  ;;  %11083 = vrot.lane.b32.xlu1 %v23045_v3, %s18250_s21 }
 0xb39   : > { %v23116_v23 = vpop.permute.xlu0 %11465  ;;  %v23118_v30 = vpop.permute.xlu1 %11451 }
 0xb3a   : > { %26951 = vst [vmem:[#allocation81_spill] sm:$0xff] %v23116_v23  ;;  %26952 = vst [vmem:[#allocation77_spill] sm:$0xff] %v23118_v30 }
 0xb3b   : > { %12075 = vrot.lane.b32.xlu0 %v22886_v39, %s18254_s25  ;;  %11099 = vrot.lane.b32.xlu1 %v23069_v29, %s18250_s21 }
 0xb3d   : > { %v23124_v0 = vpop.permute.xlu0 %11659  ;;  %v23126_v54 = vpop.permute.xlu1 %11467 }
 0xb3e   : > { %26953 = vst [vmem:[#allocation90_spill] sm:$0xff] %v23124_v0  ;;  %26954 = vst [vmem:[#allocation121_spill] sm:$0xff] %v23126_v54 }
 0xb3f   : > { %11453 = vrot.lane.b32.xlu0 %v23015_v15, %s18251_s22  ;;  %12077 = vrot.lane.b32.xlu1 %v22902_v56, %s18254_s25 }
 0xb41   : > { %v23132_v26 = vpop.permute.xlu0 %11675  ;;  %v23134_v31 = vpop.permute.xlu1 %11661 }
 0xb42   : > { %26955 = vst [vmem:[#allocation92_spill] sm:$0xff] %v23132_v26  ;;  %26956 = vst [vmem:[#allocation123_spill] sm:$0xff] %v23134_v31 }
 0xb43   : > { %11469 = vrot.lane.b32.xlu0 %v23036_v25, %s18251_s22  ;;  %12093 = vrot.lane.b32.xlu1 %v22914_v62, %s18254_s25 }
 0xb45   : > { %v23140_v30 = vpop.permute.xlu0 %11869  ;;  %v23142_v0 = vpop.permute.xlu1 %11677 }
 0xb46   : > { %26957 = vst [vmem:[#allocation124_spill] sm:$0xff] %v23140_v30  ;;  %26958 = vst [vmem:[#allocation62_spill] sm:$0xff] %v23142_v0 }
 0xb47   : > { %11663 = vrot.lane.b32.xlu0 %v23015_v15, %s18252_s23  ;;  %11455 = vrot.lane.b32.xlu1 %v23045_v3, %s18251_s22 }
 0xb49   : > { %v23148_v54 = vpop.permute.xlu0 %11885  ;;  %v23150_v26 = vpop.permute.xlu1 %11871 }
 0xb4a   : > { %26959 = vst [vmem:[#allocation76_spill] sm:$0xff] %v23148_v54  ;;  %26960 = vst [vmem:[#allocation55_spill] sm:$0xff] %v23150_v26 }
 0xb4b   : > { %11679 = vrot.lane.b32.xlu0 %v23036_v25, %s18252_s23  ;;  %11471 = vrot.lane.b32.xlu1 %v23069_v29, %s18251_s22 }
 0xb4d   : > { %v23156_v31 = vpop.permute.xlu0 %12079  ;;  %v23158_v30 = vpop.permute.xlu1 %11887 }
 0xb4e   : > { %26961 = vst [vmem:[#allocation72_spill] sm:$0xff] %v23156_v31  ;;  %26962 = vst [vmem:[#allocation79_spill] sm:$0xff] %v23158_v30 }
 0xb4f   : > { %11873 = vrot.lane.b32.xlu0 %v23015_v15, %s18253_s24  ;;  %11665 = vrot.lane.b32.xlu1 %v23045_v3, %s18252_s23 }
 0xb51   : > { %v23164_v0 = vpop.permute.xlu0 %12095  ;;  %v23166_v54 = vpop.permute.xlu1 %12081 }
 0xb52   : > { %26963 = vst [vmem:[#allocation93_spill] sm:$0xff] %v23164_v0  ;;  %26964 = vst [vmem:[#allocation56_spill] sm:$0xff] %v23166_v54 }
 0xb53   : > { %11889 = vrot.lane.b32.xlu0 %v23036_v25, %s18253_s24  ;;  %11681 = vrot.lane.b32.xlu1 %v23069_v29, %s18252_s23 }
 0xb55   : > { %v23172_v26 = vpop.permute.xlu0 %10515  ;;  %v23174_v31 = vpop.permute.xlu1 %12097 }
 0xb56   : > { %26965 = vst [vmem:[#allocation80_spill] sm:$0xff] %v23174_v31 }
 0xb57   : > { %12083 = vrot.lane.b32.xlu0 %v23015_v15, %s18254_s25  ;;  %11875 = vrot.lane.b32.xlu1 %v23045_v3, %s18253_s24 }
 0xb59   : > { %v23180_v30 = vpop.permute.xlu0 %10531  ;;  %v23182_v0 = vpop.permute.xlu1 %10517 }
 0xb5a   : > { %26966 = vst [vmem:[#allocation103_spill] sm:$0xff] %v23180_v30 }
 0xb5b   : > { %12091 = vrot.lane.b32.xlu0 %v22900_v41, %s18254_s25  ;;  %11891 = vrot.lane.b32.xlu1 %v23069_v29, %s18253_s24 }
 0xb5d   : > { %v23188_v54 = vpop.permute.xlu0 %10451  ;;  %v23190_v23 = vpop.permute.xlu1 %10533 }
 0xb5e   : > { %26967 = vst [vmem:[#allocation63_spill] sm:$0xff] %v23188_v54  ;;  %26968 = vst [vmem:[#allocation99_spill] sm:$0xff] %v23190_v23 }
 0xb5f   : > { %12099 = vrot.lane.b32.xlu0 %v23036_v25, %s18254_s25  ;;  %12085 = vrot.lane.b32.xlu1 %v23045_v3, %s18254_s25 }
 0xb61   : > { %v23196_v31 = vpop.permute.xlu0 %10467  ;;  %v23198_v50 = vpop.permute.xlu1 %10453 }
 0xb62   : > { %26969 = vst [vmem:[#allocation61_spill] sm:$0xff] %v23196_v31  ;;  %26970 = vst [vmem:[#allocation85_spill] sm:$0xff] %v23198_v50 }
 0xb63   : > { %12101 = vrot.lane.b32.xlu1 %v23069_v29, %s18254_s25 }
 0xb65   : > { %v23202_v10 = vpop.permute.xlu0 %10863  ;;  %v23204_v53 = vpop.permute.xlu1 %10469 }
 0xb66   : > { %26971 = vst [vmem:[#allocation68_spill] sm:$0xff] %v23202_v10  ;;  %26972 = vst [vmem:[#allocation96_spill] sm:$0xff] %v23204_v53 }
 0xb69   : > { %v23206_v54 = vpop.permute.xlu0 %10879  ;;  %v23208_v30 = vpop.permute.xlu1 %10865 }
 0xb6a   : > { %26973 = vst [vmem:[#allocation111_spill] sm:$0xff] %v23206_v54  ;;  %26974 = vst [vmem:[#allocation67_spill] sm:$0xff] %v23208_v30  ;;  %v26984_v30 = vld [vmem:[#allocation21_spill] sm:$0xff] }
 0xb6d   : > { %v23210_v27 = vpop.permute.xlu0 %11073  ;;  %v23212_v6 = vpop.permute.xlu1 %10881 }
 0xb6e   : > { %26975 = vst [vmem:[#allocation86_spill] sm:$0xff] %v23210_v27  ;;  %26976 = vst [vmem:[#allocation52_spill] sm:$0xff] %v23212_v6  ;;  %v23232_v27 = vmul.f32 %v22809_v36, %v26984_v30  ;;  %v26986_v6 = vld [vmem:[#allocation23_spill] sm:$0xff]  ;;  %v23252_v36 = vmul.f32 %v23045_v3, %v26984_v30  ;;  %v10484_v3 = vsel %vm401_vm1, %v23067_v28, %v22908_v33 }
 0xb70   : > { %26985 = vst [vmem:[#allocation66_spill] sm:$0xff] %v23232_v27  ;;  %26992 = vst [vmem:[#allocation108_spill] sm:$0xff] %v23252_v36  ;;  %v27016_v27 = vld [vmem:[#allocation63_spill] sm:$0xff] }
 0xb71   : > { %v23214_v37 = vpop.permute.xlu0 %11089  ;;  %v23216_v31 = vpop.permute.xlu1 %11075 }
 0xb72   : > { %26977 = vst [vmem:[#allocation83_spill] sm:$0xff] %v23214_v37  ;;  %26978 = vst [vmem:[#allocation110_spill] sm:$0xff] %v23216_v31  ;;  %v23236_v37 = vmul.f32 %v22816_v12, %v26986_v6  ;;  %v23256_v12 = vmul.f32 %v22902_v56, %v26926_v52  ;;  %v23276_v56 = vmul.f32 %v23069_v29, %v26986_v6 }
 0xb73   : > { %v23296_v29 = vmul.f32 %v23036_v25, %v26986_v6 }
 0xb74   : > { %26987 = vst [vmem:[#allocation57_spill] sm:$0xff] %v23236_v37  ;;  %26993 = vst [vmem:[#allocation113_spill] sm:$0xff] %v23256_v12  ;;  %v27014_v37 = vld [vmem:[#allocation9_spill] sm:$0xff] }
 0xb75   : > { %v23218_v50 = vpop.permute.xlu0 %11445  ;;  %v23220_v23 = vpop.permute.xlu1 %11091  ;;  %26996 = vst [vmem:[#allocation101_spill] sm:$0xff] %v23276_v56  ;;  %27000 = vst [vmem:[#allocation118_spill] sm:$0xff] %v23296_v29 }
 0xb76   : > { %26979 = vst [vmem:[#allocation59_spill] sm:$0xff] %v23218_v50 }
 0xb79   : > { %v23222_v7 = vpop.permute.xlu0 %11461  ;;  %v23224_v10 = vpop.permute.xlu1 %11447 }
 0xb7a   : > { %26980 = vst [vmem:[#allocation65_spill] sm:$0xff] %v23222_v7  ;;  %26981 = vst [vmem:[#allocation107_spill] sm:$0xff] %v23224_v10  ;;  %v23244_v7 = vmul.f32 %v22800_v1, %v26984_v30  ;;  %v23264_v1 = vmul.f32 %v22914_v62, %v26929_v40  ;;  %v10487_v62 = vsel %vm401_vm1, %v22878_v44, %v23043_v51  ;;  %v27010_v10 = vld [vmem:[#allocation100_spill] sm:$0xff] }
 0xb7c   : > { %26990 = vst [vmem:[#allocation82_spill] sm:$0xff] %v23244_v7  ;;  %26994 = vst [vmem:[#allocation84_spill] sm:$0xff] %v23264_v1 }
 0xb7d   : > { %v23226_v53 = vpop.permute.xlu0 %11655  ;;  %v23228_v54 = vpop.permute.xlu1 %11463 }
 0xb7e   : > { %26982 = vst [vmem:[#allocation98_spill] sm:$0xff] %v23226_v53  ;;  %26983 = vst [vmem:[#allocation104_spill] sm:$0xff] %v23228_v54  ;;  %v23248_v53 = vmul.f32 %v22807_v35, %v26986_v6  ;;  %v23272_v35 = vmul.f32 %v23015_v15, %v26984_v30  ;;  %v23323_v6 = vmul.f32 %v10484_v3, %v26912_v38 }
 0xb7f   : > { %v10899_v3 = vsel %vm883_vm4, %v22906_v11, %v23076_v19 }
 0xb80   : > { %26991 = vst [vmem:[#allocation119_spill] sm:$0xff] %v23248_v53  ;;  %26995 = vst [vmem:[#allocation114_spill] sm:$0xff] %v23272_v35 }
 0xb81   : > { %v23238_v31 = vpop.permute.xlu0 %11671  ;;  %v23240_v50 = vpop.permute.xlu1 %11657 }
 0xb82   : > { %26988 = vst [vmem:[#allocation64_spill] sm:$0xff] %v23238_v31  ;;  %26989 = vst [vmem:[#allocation73_spill] sm:$0xff] %v23240_v50  ;;  %v23280_v50 = vmul.f32 %v22886_v39, %v26926_v52  ;;  %v10488_v31 = vsel %vm401_vm1, %v22894_v4, %v23067_v28  ;;  %v23300_v39 = vmul.f32 %v22900_v41, %v26929_v40 }
 0xb83   : > { %v10483_v52 = vsel %vm401_vm1, %v23043_v51, %v22892_v57  ;;  %v10492_v28 = vsel %vm401_vm1, %v23078_v18, %v22894_v4  ;;  %v10479_v41 = vsel %vm401_vm1, %v22892_v57, %v23065_v49  ;;  %v10491_v51 = vsel %vm401_vm1, %v23065_v49, %v22878_v44 }
 0xb84   : > { %26997 = vst [vmem:[#allocation94_spill] sm:$0xff] %v23280_v50  ;;  %27001 = vst [vmem:[#allocation102_spill] sm:$0xff] %v23300_v39  ;;  %v23331_v25 = vmul.f32 %v10488_v31, %v26680_v17  ;;  %v10480_v57 = vsel %vm401_vm1, %v22908_v33, %v23078_v18  ;;  %v23340_v49 = vmul.f32 %v10483_v52, %v26912_v38 }
 0xb85   : > { %v23290_v15 = vpop.permute.xlu0 %11865  ;;  %v23292_v30 = vpop.permute.xlu1 %11673  ;;  %v10896_v31 = vsel %vm883_vm4, %v23086_v8, %v22926_v16  ;;  %v23358_v52 = vmul.f32 %v10491_v51, %v26910_v24  ;;  %v23361_v4 = vmul.f32 %v10479_v41, %v26911_v42  ;;  %v10900_v44 = vsel %vm883_vm4, %v22918_v32, %v23086_v8 }
 0xb86   : > { %26998 = vst [vmem:[#allocation105_spill] sm:$0xff] %v23290_v15  ;;  %26999 = vst [vmem:[#allocation95_spill] sm:$0xff] %v23292_v30  ;;  %v23328_v15 = vmul.f32 %v10487_v62, %v26680_v17  ;;  %v23347_v62 = vmul.f32 %v10492_v28, %v26910_v24  ;;  %v10895_v28 = vsel %vm883_vm4, %v23076_v19, %v22916_v61 }
 0xb87   : > { %v10892_v41 = vsel %vm883_vm4, %v22926_v16, %v23094_v58  ;;  %v10904_v19 = vsel %vm883_vm4, %v23094_v58, %v22918_v32  ;;  %v23385_v51 = vmul.f32 %v10899_v3, %v26913_v45  ;;  %v10903_v8 = vsel %vm883_vm4, %v23084_v43, %v22906_v11 }
 0xb88   : > { %v23397_v16 = vmul.f32 %v10895_v28, %v26916_v55  ;;  %v10891_v58 = vsel %vm883_vm4, %v22916_v61, %v23084_v43  ;;  %v23406_v3 = vmul.f32 %v10900_v44, %v26913_v45  ;;  %v23413_v28 = vmul.f32 %v10904_v19, %v26914_v13 }
 0xb89   : > { %v23353_v33 = vpop.permute.xlu0 %11881  ;;  %v23355_v18 = vpop.permute.xlu1 %11867  ;;  %v23416_v40 = vmul.f32 %v10892_v41, %v26915_v46  ;;  %v11106_v61 = vsel %vm1139_vm5, %v23102_v5, %v22942_v34  ;;  %v23425_v44 = vmul.f32 %v10903_v8, %v26914_v13  ;;  %v11105_v32 = vsel %vm1139_vm5, %v23092_v2, %v22932_v48 }
 0xb8a   : > { %27002 = vst [vmem:[#allocation117_spill] sm:$0xff] %v23353_v33  ;;  %27003 = vst [vmem:[#allocation122_spill] sm:$0xff] %v23355_v18  ;;  %v23374_v18 = vmul.f32 %v10480_v57, %v26911_v42  ;;  %v23392_v57 = vmul.f32 %v10896_v31, %v26916_v55  ;;  %v11109_v31 = vsel %vm1139_vm5, %v22924_v14, %v23092_v2 }
 0xb8b   : > { %v11113_v41 = vsel %vm1139_vm5, %v23100_v21, %v22924_v14  ;;  %v23438_v33 = vmul.f32 %v10891_v58, %v26915_v46  ;;  %v11110_v2 = vsel %vm1139_vm5, %v22934_v20, %v23102_v5  ;;  %v23451_v14 = vmul.f32 %v11109_v31, %v26917_v60 }
 0xb8c   : > { %v23454_v19 = vmul.f32 %v11106_v61, %v26922_v59  ;;  %v23467_v5 = vmul.f32 %v11113_v41, %v26921_v47  ;;  %v23475_v1 = vmul.f32 %v11110_v2, %v26917_v60 }
 0xb8d   : > { %v10524_v11 = vpop.permute.xlu0 %10523  ;;  %v23422_v43 = vpop.permute.xlu1 %11883 }
 0xb8e   : > { %27004 = vst [vmem:[#allocation10_spill] sm:$0xff] %v23422_v43  ;;  %v11101_v43 = vsel %vm1139_vm5, %v22932_v48, %v23100_v21  ;;  %27005 = vst [vmem:[#allocation87_spill] sm:$0xff] %v23454_v19  ;;  %v10553_v58 = vsel %vm439_vm0, %v23172_v26, %v10524_v11  ;;  %v23462_v48 = vmul.f32 %v11105_v32, %v26922_v59  ;;  %v27007_v21 = vld [vmem:[#allocation6_spill] sm:$0xff]  ;;  %v27021_v19 = vld [vmem:[#allocation96_spill] sm:$0xff] }
 0xb8f   : > { %v23472_v39 = vmul.f32 %v11101_v43, %v26918_v22  ;;  %v11114_v32 = vsel %vm1139_vm5, %v23110_v63, %v22934_v20  ;;  %v10568_v30 = vmul.f32 %v10553_v58, %v27007_v21  ;;  %v27008_v43 = vld [vmem:[#allocation99_spill] sm:$0xff]  ;;  %v27009_v20 = vld [vmem:[#allocation46_spill] sm:$0xff]  ;;  %v27011_v58 = vld [vmem:[#allocation97_spill] sm:$0xff] }
 0xb90   : > { %27006 = vst [vmem:[#allocation53_spill] sm:$0xff] %v23462_v48  ;;  %v11477_v54 = vsel %vm1636_vm6, %v27010_v10, %v27009_v20  ;;  %v11481_v29 = vsel %vm1636_vm6, %v27011_v58, %v27010_v10  ;;  %v23510_v12 = vmul.f32 %v11114_v32, %v26921_v47  ;;  %v27013_v10 = vld [vmem:[#allocation8_spill] sm:$0xff] }
 0xb91   : > { %v10540_v8 = vpop.permute.xlu0 %10539  ;;  %v10526_v31 = vpop.permute.xlu1 %10525 }
 0xb92   : > { %v10554_v41 = vsel %vm439_vm0, %v23182_v0, %v10526_v31  ;;  %v10557_v61 = vsel %vm439_vm0, %v10540_v8, %v23172_v26  ;;  %v10550_v2 = vsel %vm439_vm0, %v10526_v31, %v27008_v43  ;;  %v27012_v26 = vld [vmem:[#allocation103_spill] sm:$0xff] }
 0xb93   : > { %v10572_v50 = vmul.f32 %v10554_v41, %v27007_v21  ;;  %v10545_v56 = vsel %vm439_vm0, %v27012_v26, %v10540_v8  ;;  %v11102_v41 = vsel %vm1139_vm5, %v22942_v34, %v23110_v63  ;;  %v10549_v21 = vsel %vm439_vm0, %v10524_v11, %v27012_v26  ;;  %v27015_v63 = vld [vmem:[#allocation7_spill] sm:$0xff] }
 0xb94   : > { %v10567_v53 = vmul.f32 %v10557_v61, %v27013_v10  ;;  %v10573_v7 = vmul.f32 %v10550_v2, %v27014_v37  ;;  %v10570_v32 = vmul.f32 %v10545_v56, %v27015_v63  ;;  %v27017_v61 = vld [vmem:[#allocation30_spill] sm:$0xff]  ;;  %v10569_v26 = vmul.f32 %v10549_v21, %v27014_v37  ;;  %v27018_v56 = vld [vmem:[#allocation28_spill] sm:$0xff]  ;;  %v27020_v37 = vld [vmem:[#allocation61_spill] sm:$0xff] }
 0xb95   : > { %v10460_v31 = vpop.permute.xlu0 %10459  ;;  %v10542_v35 = vpop.permute.xlu1 %10541  ;;  %v17107_v36 = vpack.c.bf16 %v10572_v50, %v10568_v30  ;;  %v23530_v2 = vmul.f32 %v11481_v29, %v27017_v61  ;;  %v23539_v48 = vmul.f32 %v11477_v54, %v27018_v56 }
 0xb96   : > { %v10546_v8 = vsel %vm439_vm0, %v27008_v43, %v10542_v35  ;;  %v10558_v34 = vsel %vm439_vm0, %v10542_v35, %v23182_v0  ;;  %v10489_v11 = vsel %vm401_vm1, %v27016_v27, %v10460_v31  ;;  %v23533_v43 = vmul.f32 %v11102_v41, %v26918_v22  ;;  %v27019_v41 = vld [vmem:[#allocation85_spill] sm:$0xff] }
 0xb97   : > { %v10571_v50 = vmul.f32 %v10558_v34, %v27013_v10  ;;  %v10574_v30 = vmul.f32 %v10546_v8, %v27015_v63  ;;  %17108 = vmatprep.subr.bf16.mxu0 %v17107_v36  ;;  %v17153_v34 = vpack.c.bf16 %v23510_v12, %v23467_v5  ;;  %v17117_v29 = vpack.c.bf16 %v10573_v7, %v10569_v26  ;;  %v27058_v12 = vld [vmem:[#allocation62_spill] sm:$0xff] }
 0xb98   : > { %v10504_v10 = vmul.f32 %v10489_v11, %v26680_v17  ;;  %v17159_v26 = vpack.c.bf16 %v23533_v43, %v23472_v39 }
 0xb99   : > { %v10476_v0 = vpop.permute.xlu0 %10475  ;;  %v17109_v8 = vpack.c.bf16 %v10571_v50, %v10567_v53  ;;  %v10462_v36 = vpop.permute.xlu1 %10461  ;;  %v17115_v63 = vpack.c.bf16 %v10574_v30, %v10570_v32  ;;  %v27022_v32 = vld [vmem:[#allocation81_spill] sm:$0xff]  ;;  %v27023_v50 = vpack.c.bf16 %v23331_v25, %v23328_v15 }
 0xb9a   : > { %v10493_v21 = vsel %vm401_vm1, %v10476_v0, %v27016_v27  ;;  %v10490_v35 = vsel %vm401_vm1, %v27019_v41, %v10462_v36  ;;  %v10481_v54 = vsel %vm401_vm1, %v27020_v37, %v10476_v0  ;;  %v10486_v53 = vsel %vm401_vm1, %v10462_v36, %v27021_v19  ;;  %v27025_v0 = vld [vmem:[#allocation115_spill] sm:$0xff] }
 0xb9b   : > { %v10508_v7 = vmul.f32 %v10490_v35, %v26680_v17  ;;  %17110 = vmatpush1.bf16.msra.mxu0 %v17109_v8  ;;  %17116 = vmatprep.subr.bf16.mxu1 %v17115_v63  ;;  %v11473_v27 = vsel %vm1636_vm6, %v27009_v20, %v27022_v32  ;;  %v11485_v11 = vsel %vm1636_vm6, %v27022_v32, %v27011_v58  ;;  %v27024_v63 = vld [vmem:[#allocation77_spill] sm:$0xff] }
 0xb9c   : > { %17118 = vmatpush1.bf16.msra.mxu1 %v17117_v29  ;;  %17120 = vmatprep.subr.bf16.mxu0 %v27023_v50  ;;  %v11482_v35 = vsel %vm1636_vm6, %v27025_v0, %v27024_v63  ;;  %v10485_v20 = vsel %vm401_vm1, %v10460_v31, %v27020_v37  ;;  %v10503_v58 = vmul.f32 %v10493_v21, %v26910_v24  ;;  %v18153_v31 = vld [vmem:[%s25901_s5 + $0x4] sm:$0xf] }
 0xb9d   : > { %v10872_v30 = vpop.permute.xlu0 %10871  ;;  %v27026_v8 = vpack.c.bf16 %v23374_v18, %v23361_v4  ;;  %v10478_v15 = vpop.permute.xlu1 %10477  ;;  %v17123_v25 = vpack.c.bf16 %v10508_v7, %v10504_v10  ;;  %v10506_v36 = vmul.f32 %v10481_v54, %v26911_v42  ;;  %v10509_v29 = vmul.f32 %v10486_v53, %v26912_v38  ;;  %v27027_v4 = vld [vmem:[#allocation68_spill] sm:$0xff] }
 0xb9e   : > { %v10482_v32 = vsel %vm401_vm1, %v27021_v19, %v10478_v15  ;;  %v10494_v37 = vsel %vm401_vm1, %v10478_v15, %v27019_v41  ;;  %16668 = vmatmul.mubr.msk.f32.vlgmr.msra.gmra.mrb[28].mxu0 %vm2832_vm10, %v18153_v31  ;;  %v10901_v18 = vsel %vm883_vm4, %v27027_v4, %v10872_v30  ;;  %v27028_v19 = vpack.c.bf16 %v23347_v62, %v23358_v52  ;;  %v27029_v41 = vld [vmem:[#allocation74_spill] sm:$0xff]  ;;  %v27031_v15 = vld [vmem:[#allocation31_spill] sm:$0xff]  ;;  %v27032_v62 = vld [vmem:[#allocation29_spill] sm:$0xff] }
 0xb9f   : > { %17128 = vmatprep.subr.bf16.mxu1 %v27026_v8  ;;  %v10507_v10 = vmul.f32 %v10494_v37, %v26910_v24  ;;  %v10510_v21 = vmul.f32 %v10482_v32, %v26911_v42  ;;  %16669 = vmatmul.mubr.msk.f32.vlgmr.msra.gmra.mrb[28].mxu1 %vm2832_vm10, %v18153_v31  ;;  %v11478_v54 = vsel %vm1636_vm6, %v27024_v63, %v27029_v41  ;;  %v27100_v42 = vld [vmem:[#allocation60_spill] sm:$0xff] }
 0xba0   : > { %17122 = vmatpush1.bf16.msra.mxu0 %v27028_v19  ;;  %v23607_v53 = vmul.f32 %v11482_v35, %v27017_v61  ;;  %v10505_v7 = vmul.f32 %v10485_v20, %v26912_v38  ;;  %v27030_v50 = vpack.c.bf16 %v23323_v6, %v23340_v49  ;;  %v23614_v32 = vmul.f32 %v11473_v27, %v27031_v15  ;;  %v27034_v49 = vld [vmem:[#allocation67_spill] sm:$0xff]  ;;  %v27099_v38 = vld [vmem:[#allocation72_spill] sm:$0xff] }
 0xba1   : > { %17124 = vmatprep.subr.bf16.mxu0 %v17123_v25  ;;  %v10888_v8 = vpop.permute.xlu0 %10887  ;;  %v23617_v52 = vmul.f32 %v11485_v11, %v27032_v62  ;;  %v17125_v37 = vpack.c.bf16 %v10507_v10, %v10503_v58  ;;  %v10874_v31 = vpop.permute.xlu1 %10873  ;;  %v17131_v63 = vpack.c.bf16 %v10510_v21, %v10506_v36  ;;  %v27033_v19 = vmov 0.0   ;;  %v27035_v11 = vld [vmem:[#allocation111_spill] sm:$0xff]  ;;  %v27036_v25 = vld [vmem:[#allocation52_spill] sm:$0xff]  ;;  %v27037_v10 = vld [vmem:[#allocation90_spill] sm:$0xff] }
 0xba2   : > { %17130 = vmatpush1.bf16.msra.mxu1 %v27030_v50  ;;  %10781 = vmatprep.mubr.f32.mxu0 %v27033_v19  ;;  %v17133_v35 = vpack.c.bf16 %v10509_v29, %v10505_v7  ;;  %v10916_v20 = vmul.f32 %v10901_v18, %v26913_v45  ;;  %v10905_v6 = vsel %vm883_vm4, %v10888_v8, %v27027_v4  ;;  %v27038_v21 = vld [vmem:[#allocation58_spill] sm:$0xff] }
 0xba3   : > { %v10902_v27 = vsel %vm883_vm4, %v27034_v49, %v10874_v31  ;;  %10852 = vmatprep.mubr.f32.mxu1 %v27033_v19  ;;  %v10893_v58 = vsel %vm883_vm4, %v27035_v11, %v10888_v8  ;;  %v10898_v36 = vsel %vm883_vm4, %v10874_v31, %v27036_v25  ;;  %17132 = vmatprep.subr.bf16.mxu1 %v17131_v63  ;;  %v27040_v31 = vld [vmem:[#allocation121_spill] sm:$0xff] }
 0xba4   : > { %v10920_v29 = vmul.f32 %v10902_v27, %v26913_v45  ;;  %17126 = vmatpush1.bf16.msra.mxu0 %v17125_v37  ;;  %v23636_v4 = vmul.f32 %v11478_v54, %v27018_v56  ;;  %v11691_v7 = vsel %vm1892_vm7, %v27038_v21, %v27037_v10  ;;  %v27039_v50 = vpack.c.bf16 %v23406_v3, %v23385_v51  ;;  %v27098_v45 = vld [vmem:[#allocation120_spill] sm:$0xff] }
 0xba5   : > { %v11082_v8 = vpop.permute.xlu0 %11081  ;;  %v11474_v54 = vsel %vm1636_vm6, %v27029_v41, %v27040_v31  ;;  %v10897_v37 = vsel %vm883_vm4, %v10872_v30, %v27035_v11  ;;  %v10915_v63 = vmul.f32 %v10905_v6, %v26914_v13  ;;  %v27041_v27 = vpack.c.bf16 %v23416_v40, %v23438_v33  ;;  %v18154_v6 = vld [vmem:[%s25901_s5] sm:$0xf]  ;;  %v27042_v40 = vld [vmem:[#allocation86_spill] sm:$0xff] }
 0xba6   : > { %17134 = vmatpush1.bf16.msra.mxu1 %v17133_v35  ;;  %17136 = vmatprep.subr.bf16.mxu0 %v27039_v50  ;;  %v10890_v35 = vpop.permute.xlu1 %10889  ;;  %v17139_v18 = vpack.c.bf16 %v10920_v29, %v10916_v20  ;;  %v10918_v51 = vmul.f32 %v10893_v58, %v26915_v46  ;;  %v10921_v3 = vmul.f32 %v10898_v36, %v26916_v55 }
 0xba7   : > { %17144 = vmatprep.subr.bf16.mxu1 %v27041_v27  ;;  %v10894_v41 = vsel %vm883_vm4, %v27036_v25, %v10890_v35  ;;  %v10906_v30 = vsel %vm883_vm4, %v10890_v35, %v27034_v49  ;;  %16670 = vmatmul.mubr.msk.f32.vlgmr.msra.gmra.mrb[28].mxu0 %vm2832_vm10, %v18154_v6  ;;  %v11111_v33 = vsel %vm1139_vm5, %v27042_v40, %v11082_v8  ;;  %v27044_v49 = vld [vmem:[#allocation91_spill] sm:$0xff]  ;;  %v27083_v27 = vld [vmem:[#allocation78_spill] sm:$0xff] }
 0xba8   : > { %v10919_v20 = vmul.f32 %v10906_v30, %v26914_v13  ;;  %v10922_v11 = vmul.f32 %v10894_v41, %v26915_v46  ;;  %v27043_v58 = vpack.c.bf16 %v23413_v28, %v23425_v44  ;;  %v11687_v25 = vsel %vm1892_vm7, %v27037_v10, %v27044_v49  ;;  %10987 = vmatprep.mubr.f32.mxu0 %v27033_v19  ;;  %v27047_v30 = vld [vmem:[#allocation110_spill] sm:$0xff]  ;;  %v27095_v46 = vld [vmem:[#allocation113_spill] sm:$0xff] }
 0xba9   : > { %16671 = vmatmul.mubr.msk.f32.vlgmr.msra.gmra.mrb[28].mxu1 %vm2832_vm10, %v18154_v6  ;;  %v10917_v36 = vmul.f32 %v10897_v37, %v26916_v55  ;;  %v27045_v29 = vpack.c.bf16 %v23392_v57, %v23397_v16  ;;  %v11098_v50 = vpop.permute.xlu0 %11097  ;;  %v11486_v28 = vsel %vm1636_vm6, %v27040_v31, %v27025_v0  ;;  %v23694_v44 = vmul.f32 %v11474_v54, %v27031_v15  ;;  %v27048_v54 = vld [vmem:[#allocation32_spill] sm:$0xff]  ;;  %v27096_v13 = vld [vmem:[#allocation94_spill] sm:$0xff] }
 0xbaa   : > { %17138 = vmatpush1.bf16.msra.mxu0 %v27043_v58  ;;  %v17141_v10 = vpack.c.bf16 %v10919_v20, %v10915_v63  ;;  %v11084_v35 = vpop.permute.xlu1 %11083  ;;  %v17147_v37 = vpack.c.bf16 %v10922_v11, %v10918_v51  ;;  %v11126_v41 = vmul.f32 %v11111_v33, %v26917_v60  ;;  %11058 = vmatprep.mubr.f32.mxu1 %v27033_v19  ;;  %v27051_v58 = vld [vmem:[#allocation123_spill] sm:$0xff]  ;;  %v27081_v11 = vld [vmem:[#allocation114_spill] sm:$0xff] }
 0xbab   : > { %17140 = vmatprep.subr.bf16.mxu0 %v17139_v18  ;;  %17146 = vmatpush1.bf16.msra.mxu1 %v27045_v29  ;;  %v27046_v18 = vld [vmem:[#allocation34_spill] sm:$0xff]  ;;  %v17149_v16 = vpack.c.bf16 %v10921_v3, %v10917_v36  ;;  %v11112_v6 = vsel %vm1139_vm5, %v27047_v30, %v11084_v35  ;;  %v11115_v0 = vsel %vm1139_vm5, %v11098_v50, %v27042_v40  ;;  %v27049_v3 = vld [vmem:[#allocation83_spill] sm:$0xff] }
 0xbac   : > { %v23698_v57 = vmul.f32 %v11691_v7, %v27046_v18  ;;  %v11108_v31 = vsel %vm1139_vm5, %v11084_v35, %v23220_v23  ;;  %v11130_v7 = vmul.f32 %v11112_v6, %v26917_v60  ;;  %17148 = vmatprep.subr.bf16.mxu1 %v17147_v37  ;;  %v23713_v63 = vmul.f32 %v11687_v25, %v27048_v54  ;;  %v27052_v25 = vld [vmem:[#allocation109_spill] sm:$0xff]  ;;  %v27055_v6 = vld [vmem:[#allocation87_spill] sm:$0xff] }
 0xbad   : > { %v23716_v51 = vmul.f32 %v11486_v28, %v27032_v62  ;;  %v11103_v33 = vsel %vm1139_vm5, %v27049_v3, %v11098_v50  ;;  %v27050_v40 = vpack.c.bf16 %v23475_v1, %v23451_v14  ;;  %v23724_v20 = vpop.permute.xlu0 %12075  ;;  %v11692_v36 = vsel %vm1892_vm7, %v27052_v25, %v27051_v58  ;;  %v27088_v60 = vld [vmem:[#allocation101_spill] sm:$0xff] }
 0xbae   : > { %17142 = vmatpush1.bf16.msra.mxu0 %v17141_v10  ;;  %v11107_v29 = vsel %vm1139_vm5, %v11082_v8, %v27049_v3  ;;  %v11100_v1 = vpop.permute.xlu1 %11099  ;;  %v17155_v14 = vpack.c.bf16 %v11130_v7, %v11126_v41  ;;  %v11125_v50 = vmul.f32 %v11115_v0, %v26921_v47  ;;  %v11131_v28 = vmul.f32 %v11108_v31, %v26922_v59  ;;  %v18155_v8 = vld [vmem:[%s25901_s5 + $0x8] sm:$0xf] }
 0xbaf   : > { %17150 = vmatpush1.bf16.msra.mxu1 %v17149_v16  ;;  %17152 = vmatprep.subr.bf16.mxu0 %v27050_v40  ;;  %v11104_v10 = vsel %vm1139_vm5, %v23220_v23, %v11100_v1  ;;  %v11116_v35 = vsel %vm1139_vm5, %v11100_v1, %v27047_v30  ;;  %v11128_v39 = vmul.f32 %v11103_v33, %v26918_v22  ;;  %v27053_v23 = vld [vmem:[#allocation92_spill] sm:$0xff]  ;;  %v27056_v0 = vld [vmem:[#allocation53_spill] sm:$0xff] }
 0xbb0   : > { %17160 = vmatprep.subr.bf16.mxu1 %v17159_v26  ;;  %v11129_v43 = vmul.f32 %v11116_v35, %v26921_v47  ;;  %v11132_v26 = vmul.f32 %v11104_v10, %v26918_v22  ;;  %v11683_v37 = vsel %vm1892_vm7, %v27044_v49, %v27053_v23  ;;  %v27054_v16 = vld [vmem:[#allocation48_spill] sm:$0xff]  ;;  %v11127_v30 = vmul.f32 %v11107_v29, %v26922_v59  ;;  %v27059_v29 = vld [vmem:[#allocation55_spill] sm:$0xff]  ;;  %v27061_v10 = vld [vmem:[#allocation49_spill] sm:$0xff] }
 0xbb1   : > { %16672 = vmatmul.mubr.msk.f32.vlgmr.msra.gmra.mrb[28].mxu0 %vm2832_vm10, %v18155_v8  ;;  %v11688_v41 = vsel %vm1892_vm7, %v27051_v58, %v27054_v16  ;;  %v27057_v31 = vpack.c.bf16 %v27055_v6, %v27056_v0  ;;  %v11454_v7 = vpop.permute.xlu0 %11453  ;;  %v11684_v5 = vsel %vm1892_vm7, %v27054_v16, %v27058_v12  ;;  %v11695_v40 = vsel %vm1892_vm7, %v27053_v23, %v27038_v21  ;;  %v27060_v1 = vld [vmem:[#allocation116_spill] sm:$0xff]  ;;  %v27063_v21 = vld [vmem:[#allocation70_spill] sm:$0xff]  ;;  %v27066_v23 = vld [vmem:[#allocation33_spill] sm:$0xff] }
 0xbb2   : > { %16673 = vmatmul.mubr.msk.f32.vlgmr.msra.gmra.mrb[28].mxu1 %vm2832_vm10, %v18155_v8  ;;  %17154 = vmatpush1.bf16.msra.mxu0 %v17153_v34  ;;  %v11696_v34 = vsel %vm1892_vm7, %v27058_v12, %v27052_v25  ;;  %v17157_v49 = vpack.c.bf16 %v11129_v43, %v11125_v50  ;;  %v23777_v3 = vpop.permute.xlu1 %12077  ;;  %v17163_v33 = vpack.c.bf16 %v11132_v26, %v11128_v39  ;;  %v27062_v35 = vld [vmem:[#allocation124_spill] sm:$0xff]  ;;  %v27064_v39 = vld [vmem:[#allocation71_spill] sm:$0xff] }
 0xbb3   : > { %17156 = vmatprep.subr.bf16.mxu0 %v17155_v14  ;;  %17162 = vmatpush1.bf16.msra.mxu1 %v27057_v31  ;;  %v23785_v58 = vmul.f32 %v11692_v36, %v27046_v18  ;;  %v11902_v14 = vsel %vm2148_vm8, %v27060_v1, %v27059_v29  ;;  %v17165_v25 = vpack.c.bf16 %v11131_v28, %v11127_v30  ;;  %v27065_v43 = vld [vmem:[#allocation35_spill] sm:$0xff]  ;;  %v27068_v30 = vld [vmem:[#allocation82_spill] sm:$0xff] }
 0xbb4   : > { %11197 = vmatprep.mubr.f32.mxu0 %v27033_v19  ;;  %11268 = vmatprep.mubr.f32.mxu1 %v27033_v19  ;;  %v23793_v50 = vmul.f32 %v11688_v41, %v27048_v54  ;;  %v11897_v8 = vsel %vm2148_vm8, %v27062_v35, %v27061_v10  ;;  %v11898_v36 = vsel %vm2148_vm8, %v27059_v29, %v27063_v21  ;;  %v27067_v41 = vld [vmem:[#allocation66_spill] sm:$0xff]  ;;  %v27072_v29 = vld [vmem:[#allocation119_spill] sm:$0xff] }
 0xbb5   : > { %17164 = vmatprep.subr.bf16.mxu1 %v17163_v33  ;;  %v11901_v28 = vsel %vm2148_vm8, %v27064_v39, %v27062_v35  ;;  %v23808_v26 = vmul.f32 %v11684_v5, %v27065_v43  ;;  %v23811_v16 = vmul.f32 %v11696_v34, %v27066_v23  ;;  %v27069_v6 = vpack.c.bf16 %v27067_v41, %v27068_v30  ;;  %v11470_v0 = vpop.permute.xlu0 %11469  ;;  %v27071_v5 = vld [vmem:[#allocation57_spill] sm:$0xff]  ;;  %v27075_v30 = vld [vmem:[#allocation36_spill] sm:$0xff] }
 0xbb6   : > { %17158 = vmatpush1.bf16.msra.mxu0 %v17157_v49  ;;  %v23817_v31 = vmul.f32 %v11683_v37, %v27065_v43  ;;  %v23820_v12 = vmul.f32 %v11695_v40, %v27066_v23  ;;  %v27070_v49 = vld [vmem:[#allocation38_spill] sm:$0xff]  ;;  %v27073_v35 = vpack.c.bf16 %v27071_v5, %v27072_v29  ;;  %v23828_v34 = vpop.permute.xlu1 %12093  ;;  %v27074_v37 = vld [vmem:[#allocation76_spill] sm:$0xff]  ;;  %v23853_v5 = vmul.f32 %v11897_v8, %v27075_v30  ;;  %v27077_v29 = vld [vmem:[#allocation75_spill] sm:$0xff] }
 0xbb7   : > { %17166 = vmatpush1.bf16.msra.mxu1 %v17165_v25  ;;  %17168 = vmatprep.subr.bf16.mxu0 %v27069_v6  ;;  %v23823_v33 = vmul.f32 %v11902_v14, %v27070_v49  ;;  %v17191_v25 = vpack.c.bf16 %v23716_v51, %v23617_v52  ;;  %v11893_v40 = vsel %vm2148_vm8, %v27061_v10, %v27074_v37  ;;  %v18156_v52 = vld [vmem:[%s25901_s5 + $0xc] sm:$0xf]  ;;  %v27080_v41 = vld [vmem:[#allocation108_spill] sm:$0xff] }
 0xbb8   : > { %17176 = vmatprep.subr.bf16.mxu1 %v27073_v35  ;;  %v11905_v14 = vsel %vm2148_vm8, %v27074_v37, %v27064_v39  ;;  %v23843_v6 = vmul.f32 %v11898_v36, %v27075_v30  ;;  %v23850_v51 = vmul.f32 %v11901_v28, %v27070_v49  ;;  %v27076_v10 = vld [vmem:[#allocation89_spill] sm:$0xff]  ;;  %v27082_v8 = vpack.c.bf16 %v27080_v41, %v27081_v11  ;;  %v27089_v11 = vld [vmem:[#allocation118_spill] sm:$0xff] }
 0xbb9   : > { %16674 = vmatmul.mubr.msk.f32.vlgmr.msra.gmra.mrb[28].mxu0 %vm2832_vm10, %v18156_v52  ;;  %v27078_v39 = vpack.c.bf16 %v27076_v10, %v27077_v29  ;;  %v27079_v37 = vld [vmem:[#allocation65_spill] sm:$0xff]  ;;  %v11664_v10 = vpop.permute.xlu0 %11663  ;;  %v27090_v41 = vpack.c.bf16 %v27088_v60, %v27089_v11  ;;  %v27094_v11 = vld [vmem:[#allocation59_spill] sm:$0xff]  ;;  %v12107_v60 = vsel %vm2404_vm9, %v27099_v38, %v27098_v45 }
 0xbba   : > { %16675 = vmatmul.mubr.msk.f32.vlgmr.msra.gmra.mrb[28].mxu1 %vm2832_vm10, %v18156_v52  ;;  %v11479_v28 = vsel %vm1636_vm6, %v11454_v7, %v27079_v37  ;;  %v27084_v52 = vld [vmem:[#allocation106_spill] sm:$0xff]  ;;  %v27087_v35 = vld [vmem:[#allocation37_spill] sm:$0xff]  ;;  %11359 = vmatprep.mubr.f32.mxu0 %v27033_v19 }
 0xbbb   : > { %17170 = vmatpush1.bf16.msra.mxu0 %v27078_v39  ;;  %v27085_v59 = vpack.c.bf16 %v27083_v27, %v27084_v52  ;;  %v27086_v39 = vld [vmem:[#allocation39_spill] sm:$0xff]  ;;  %v23878_v47 = vmul.f32 %v11905_v14, %v27087_v35  ;;  %11430 = vmatprep.mubr.f32.mxu1 %v27033_v19  ;;  %v11498_v29 = vmul.f32 %v11479_v28, %v27018_v56  ;;  %v27101_v28 = vld [vmem:[#allocation84_spill] sm:$0xff] }
 0xbbc   : > { %17172 = vmatprep.subr.bf16.mxu0 %v27082_v8  ;;  %v23875_v36 = vmul.f32 %v11893_v40, %v27086_v39  ;;  %v11456_v8 = vpop.permute.xlu1 %11455  ;;  %v27092_v40 = vld [vmem:[#allocation104_spill] sm:$0xff]  ;;  %v27093_v52 = vld [vmem:[#allocation107_spill] sm:$0xff] }
 0xbbd   : > { %17178 = vmatpush1.bf16.msra.mxu1 %v27085_v59  ;;  %v27091_v59 = vld [vmem:[#allocation79_spill] sm:$0xff]  ;;  %v11480_v14 = vsel %vm1636_vm6, %v11456_v8, %v27092_v40  ;;  %v11484_v22 = vsel %vm1636_vm6, %v27093_v52, %v11456_v8  ;;  %v27097_v8 = vpack.c.bf16 %v27095_v46, %v27096_v13  ;;  %v27104_v13 = vpack.c.bf16 %v23636_v4, %v23539_v48  ;;  %v11680_v46 = vpop.permute.xlu0 %11679 }
 0xbbe   : > { %17180 = vmatprep.subr.bf16.mxu1 %v27090_v41  ;;  %v11894_v27 = vsel %vm2148_vm8, %v27063_v21, %v27091_v59  ;;  %v11483_v41 = vsel %vm1636_vm6, %v27094_v11, %v11454_v7  ;;  %v11475_v21 = vsel %vm1636_vm6, %v27079_v37, %v11470_v0  ;;  %v11502_v55 = vmul.f32 %v11480_v14, %v27018_v56  ;;  %v27102_v14 = vld [vmem:[#allocation102_spill] sm:$0xff] }
 0xbbf   : > { %17174 = vmatpush1.bf16.msra.mxu0 %v27097_v8  ;;  %v12111_v7 = vsel %vm2404_vm9, %v27100_v42, %v27099_v38  ;;  %v11487_v37 = vsel %vm1636_vm6, %v11470_v0, %v27094_v11  ;;  %v27103_v56 = vpack.c.bf16 %v27101_v28, %v27102_v14  ;;  %v11906_v8 = vsel %vm2148_vm8, %v27091_v59, %v27060_v1  ;;  %v18157_v1 = vld [vmem:[%s25901_s5 + $0x10] sm:$0xf]  ;;  %v27109_v14 = vld [vmem:[#allocation40_spill] sm:$0xff] }
 0xbc0   : > { %17184 = vmatprep.subr.bf16.mxu0 %v27104_v13  ;;  %v23932_v38 = vmul.f32 %v11894_v27, %v27086_v39  ;;  %v11501_v24 = vmul.f32 %v11484_v22, %v27017_v61  ;;  %v11472_v0 = vpop.permute.xlu1 %11471  ;;  %v17187_v11 = vpack.c.bf16 %v11502_v55, %v11498_v29  ;;  %v11499_v28 = vmul.f32 %v11475_v21, %v27031_v15  ;;  %v27106_v59 = vld [vmem:[#allocation42_spill] sm:$0xff] }
 0xbc1   : > { %17182 = vmatpush1.bf16.msra.mxu1 %v27103_v56  ;;  %v11497_v56 = vmul.f32 %v11483_v41, %v27017_v61  ;;  %v11476_v48 = vsel %vm1636_vm6, %v27092_v40, %v11472_v0  ;;  %v11488_v4 = vsel %vm1636_vm6, %v11472_v0, %v27093_v52  ;;  %v11500_v55 = vmul.f32 %v11487_v37, %v27032_v62  ;;  %v27107_v52 = vld [vmem:[#allocation64_spill] sm:$0xff]  ;;  %v11874_v37 = vpop.permute.xlu0 %11873 }
 0xbc2   : > { %17192 = vmatprep.subr.bf16.mxu1 %v17191_v25  ;;  %16676 = vmatmul.mubr.msk.f32.vlgmr.msra.gmra.mrb[28].mxu0 %vm2832_vm10, %v18157_v1  ;;  %v11503_v22 = vmul.f32 %v11476_v48, %v27031_v15  ;;  %v11504_v25 = vmul.f32 %v11488_v4, %v27032_v62  ;;  %v27105_v29 = vpack.c.bf16 %v23607_v53, %v23530_v2  ;;  %v27110_v48 = vld [vmem:[#allocation98_spill] sm:$0xff]  ;;  %v27111_v4 = vld [vmem:[#allocation95_spill] sm:$0xff] }
 0xbc3   : > { %v23955_v27 = vmul.f32 %v12111_v7, %v27106_v59  ;;  %v23958_v40 = vmul.f32 %v11906_v8, %v27087_v35  ;;  %v11689_v41 = vsel %vm1892_vm7, %v11664_v10, %v27107_v52  ;;  %v27108_v21 = vpack.c.bf16 %v23694_v44, %v23614_v32  ;;  %11569 = vmatprep.mubr.f32.mxu0 %v27033_v19  ;;  %v27112_v44 = vld [vmem:[#allocation73_spill] sm:$0xff] }
 0xbc4   : > { %16677 = vmatmul.mubr.msk.f32.vlgmr.msra.gmra.mrb[28].mxu1 %vm2832_vm10, %v18157_v1  ;;  %17186 = vmatpush1.bf16.msra.mxu0 %v27105_v29  ;;  %v23967_v13 = vmul.f32 %v12107_v60, %v27109_v14  ;;  %v17189_v2 = vpack.c.bf16 %v11501_v24, %v11497_v56  ;;  %v17197_v53 = vpack.c.bf16 %v11503_v22, %v11499_v28  ;;  %v11666_v7 = vpop.permute.xlu1 %11665 }
 0xbc5   : > { %17188 = vmatprep.subr.bf16.mxu0 %v17187_v11  ;;  %17194 = vmatpush1.bf16.msra.mxu1 %v27108_v21  ;;  %v17195_v0 = vpack.c.bf16 %v11504_v25, %v11500_v55  ;;  %v17225_v8 = vpack.c.bf16 %v23932_v38, %v23875_v36  ;;  %v11693_v11 = vsel %vm1892_vm7, %v27110_v48, %v11664_v10  ;;  %v27113_v10 = vld [vmem:[#allocation93_spill] sm:$0xff]  ;;  %v11890_v25 = vpop.permute.xlu0 %11889 }
 0xbc6   : > { %v11690_v32 = vsel %vm1892_vm7, %v11666_v7, %v27111_v4  ;;  %v11694_v24 = vsel %vm1892_vm7, %v27112_v44, %v11666_v7  ;;  %11640 = vmatprep.mubr.f32.mxu1 %v27033_v19  ;;  %v11708_v60 = vmul.f32 %v11689_v41, %v27048_v54  ;;  %v11685_v56 = vsel %vm1892_vm7, %v27107_v52, %v11680_v46  ;;  %v27115_v41 = vld [vmem:[#allocation54_spill] sm:$0xff] }
 0xbc7   : > { %v11712_v28 = vmul.f32 %v11690_v32, %v27048_v54  ;;  %17196 = vmatprep.subr.bf16.mxu1 %v17195_v0  ;;  %v12103_v1 = vsel %vm2404_vm9, %v27098_v45, %v27113_v10  ;;  %v11697_v55 = vsel %vm1892_vm7, %v11680_v46, %v27110_v48  ;;  %v27114_v22 = vpack.c.bf16 %v23793_v50, %v23713_v63  ;;  %v27116_v45 = vld [vmem:[#allocation56_spill] sm:$0xff]  ;;  %v18158_v7 = vld [vmem:[%s25901_s5 + $0x14] sm:$0xf] }
 0xbc8   : > { %17190 = vmatpush1.bf16.msra.mxu0 %v17189_v2  ;;  %v17223_v29 = vpack.c.bf16 %v23958_v40, %v23878_v47  ;;  %v12115_v52 = vsel %vm2404_vm9, %v27113_v10, %v27100_v42  ;;  %v12108_v21 = vsel %vm2404_vm9, %v27116_v45, %v27115_v41  ;;  %v11711_v46 = vmul.f32 %v11694_v24, %v27046_v18  ;;  %v11682_v50 = vpop.permute.xlu1 %11681  ;;  %v27120_v32 = vld [vmem:[#allocation112_spill] sm:$0xff]  ;;  %v27121_v24 = vld [vmem:[#allocation117_spill] sm:$0xff] }
 0xbc9   : > { %17198 = vmatpush1.bf16.msra.mxu1 %v17197_v53  ;;  %17200 = vmatprep.subr.bf16.mxu0 %v27114_v22  ;;  %v27117_v63 = vpack.c.bf16 %v23811_v16, %v23820_v12  ;;  %v17203_v2 = vpack.c.bf16 %v11712_v28, %v11708_v60  ;;  %v11707_v47 = vmul.f32 %v11693_v11, %v27046_v18  ;;  %v27119_v11 = vld [vmem:[#allocation43_spill] sm:$0xff]  ;;  %v12084_v28 = vpop.permute.xlu0 %12083 }
 0xbca   : > { %v11709_v40 = vmul.f32 %v11685_v56, %v27065_v43  ;;  %v11686_v42 = vsel %vm1892_vm7, %v27111_v4, %v11682_v50  ;;  %v11698_v53 = vsel %vm1892_vm7, %v11682_v50, %v27112_v44  ;;  %v11710_v16 = vmul.f32 %v11697_v55, %v27066_v23  ;;  %v27123_v55 = vld [vmem:[#allocation80_spill] sm:$0xff] }
 0xbcb   : > { %17208 = vmatprep.subr.bf16.mxu1 %v27117_v63  ;;  %16678 = vmatmul.mubr.msk.f32.vlgmr.msra.gmra.mrb[28].mxu0 %vm2832_vm10, %v18158_v7  ;;  %v11713_v12 = vmul.f32 %v11686_v42, %v27065_v43  ;;  %v11714_v0 = vmul.f32 %v11698_v53, %v27066_v23  ;;  %v27118_v48 = vpack.c.bf16 %v23785_v58, %v23698_v57  ;;  %v27127_v42 = vld [vmem:[#allocation41_spill] sm:$0xff] }
 0xbcc   : > { %16679 = vmatmul.mubr.msk.f32.vlgmr.msra.gmra.mrb[28].mxu1 %vm2832_vm10, %v18158_v7  ;;  %v24031_v4 = vmul.f32 %v12103_v1, %v27119_v11  ;;  %v12112_v44 = vsel %vm2404_vm9, %v27120_v32, %v27116_v45  ;;  %v11899_v60 = vsel %vm2148_vm8, %v11874_v37, %v27121_v24  ;;  %v27122_v56 = vpack.c.bf16 %v23808_v26, %v23817_v31  ;;  %v11876_v10 = vpop.permute.xlu1 %11875  ;;  %v27124_v45 = vld [vmem:[#allocation105_spill] sm:$0xff]  ;;  %v27125_v26 = vld [vmem:[#allocation10_spill] sm:$0xff] }
 0xbcd   : > { %17202 = vmatpush1.bf16.msra.mxu0 %v27118_v48  ;;  %v17205_v57 = vpack.c.bf16 %v11711_v46, %v11707_v47  ;;  %v17213_v58 = vpack.c.bf16 %v11713_v12, %v11709_v40  ;;  %v17211_v1 = vpack.c.bf16 %v11714_v0, %v11710_v16  ;;  %11779 = vmatprep.mubr.f32.mxu0 %v27033_v19  ;;  %v27126_v46 = vld [vmem:[#allocation122_spill] sm:$0xff]  ;;  %v12092_v12 = vpop.permute.xlu0 %12091 }
 0xbce   : > { %17204 = vmatprep.subr.bf16.mxu0 %v17203_v2  ;;  %17210 = vmatpush1.bf16.msra.mxu1 %v27122_v56  ;;  %v12116_v22 = vsel %vm2404_vm9, %v27123_v55, %v27120_v32  ;;  %v11903_v63 = vsel %vm2148_vm8, %v27124_v45, %v11874_v37  ;;  %v11900_v31 = vsel %vm2148_vm8, %v11876_v10, %v27125_v26 }
 0xbcf   : > { %11850 = vmatprep.mubr.f32.mxu1 %v27033_v19  ;;  %v11904_v50 = vsel %vm2148_vm8, %v27126_v46, %v11876_v10  ;;  %v11918_v2 = vmul.f32 %v11899_v60, %v27075_v30  ;;  %v11895_v47 = vsel %vm2148_vm8, %v27121_v24, %v11890_v25  ;;  %v11922_v40 = vmul.f32 %v11900_v31, %v27075_v30 }
 0xbd0   : > { %17212 = vmatprep.subr.bf16.mxu1 %v17211_v1  ;;  %v12122_v37 = vmul.f32 %v12115_v52, %v27127_v42  ;;  %v12124_v53 = vmul.f32 %v12108_v21, %v27109_v14  ;;  %v11907_v7 = vsel %vm2148_vm8, %v11890_v25, %v27124_v45  ;;  %v27128_v16 = vpack.c.bf16 %v23843_v6, %v23853_v5  ;;  %v11892_v21 = vpop.permute.xlu1 %11891 }
 0xbd1   : > { %17206 = vmatpush1.bf16.msra.mxu0 %v17205_v57  ;;  %v12104_v0 = vsel %vm2404_vm9, %v27115_v41, %v27123_v55  ;;  %v12126_v48 = vmul.f32 %v12116_v22, %v27127_v42  ;;  %v11921_v52 = vmul.f32 %v11904_v50, %v27070_v49  ;;  %v17219_v32 = vpack.c.bf16 %v11922_v40, %v11918_v2  ;;  %v18159_v41 = vld [vmem:[%s25901_s5 + $0x18] sm:$0xf]  ;;  %v12100_v1 = vpop.permute.xlu0 %12099 }
 0xbd2   : > { %17214 = vmatpush1.bf16.msra.mxu1 %v17213_v58  ;;  %17216 = vmatprep.subr.bf16.mxu0 %v27128_v16  ;;  %v11917_v25 = vmul.f32 %v11903_v63, %v27070_v49  ;;  %v11919_v24 = vmul.f32 %v11895_v47, %v27086_v39  ;;  %v11896_v6 = vsel %vm2148_vm8, %v27125_v26, %v11892_v21 }
 0xbd3   : > { %17224 = vmatprep.subr.bf16.mxu1 %v17223_v29  ;;  %v11908_v5 = vsel %vm2148_vm8, %v11892_v21, %v27126_v46  ;;  %v11920_v29 = vmul.f32 %v11907_v7, %v27087_v35  ;;  %v11923_v60 = vmul.f32 %v11896_v6, %v27086_v39  ;;  %v27129_v57 = vpack.c.bf16 %v23823_v33, %v23850_v51 }
 0xbd4   : > { %16680 = vmatmul.mubr.msk.f32.vlgmr.msra.gmra.mrb[28].mxu0 %vm2832_vm10, %v18159_v41  ;;  %v11924_v56 = vmul.f32 %v11908_v5, %v27087_v35  ;;  %v12123_v58 = vmul.f32 %v12112_v44, %v27106_v59  ;;  %v12109_v10 = vsel %vm2404_vm9, %v12084_v28, %v12092_v12  ;;  %v17231_v55 = vpack.c.bf16 %v12124_v53, %v23967_v13  ;;  %v12086_v26 = vpop.permute.xlu1 %12085 }
 0xbd5   : > { %16681 = vmatmul.mubr.msk.f32.vlgmr.msra.gmra.mrb[28].mxu1 %vm2832_vm10, %v18159_v41  ;;  %17218 = vmatpush1.bf16.msra.mxu0 %v27129_v57  ;;  %v12125_v22 = vmul.f32 %v12104_v0, %v27119_v11  ;;  %v17221_v45 = vpack.c.bf16 %v11921_v52, %v11917_v25  ;;  %v17229_v63 = vpack.c.bf16 %v11923_v60, %v11919_v24  ;;  %v12285_v21 = vstv %s8458_s14 }
 0xbd6   : > { %17220 = vmatprep.subr.bf16.mxu0 %v17219_v32  ;;  %17226 = vmatpush1.bf16.msra.mxu1 %v17225_v8  ;;  %v17227_v33 = vpack.c.bf16 %v11924_v56, %v11920_v29  ;;  %v12113_v51 = vsel %vm2404_vm9, %v23724_v20, %v12084_v28  ;;  %v12110_v36 = vsel %vm2404_vm9, %v12086_v26, %v23828_v34  ;;  %v27130_v32 = vld [vmem:[#allocation69_spill] sm:$0xff] }
 0xbd7   : > { %11989 = vmatprep.mubr.f32.mxu0 %v27033_v19  ;;  %v12114_v38 = vsel %vm2404_vm9, %v23777_v3, %v12086_v26  ;;  %v17239_v13 = vpack.c.bf16 %v12126_v48, %v12122_v37  ;;  %12060 = vmatprep.mubr.f32.mxu1 %v27033_v19  ;;  %v12128_v8 = vmul.f32 %v12109_v10, %v27109_v14  ;;  %v18161_v48 = vld [vmem:[%s25901_s5 + $0x20] sm:$0xf] }
 0xbd8   : > { %v12105_v44 = vsel %vm2404_vm9, %v12092_v12, %v12100_v1  ;;  %v12132_v31 = vmul.f32 %v12110_v36, %v27109_v14  ;;  %17228 = vmatprep.subr.bf16.mxu1 %v17227_v33  ;;  %v12117_v28 = vsel %vm2404_vm9, %v12100_v1, %v23724_v20  ;;  %v17233_v46 = vpack.c.bf16 %v12123_v58, %v23955_v27  ;;  %v12102_v47 = vpop.permute.xlu1 %12101  ;;  %v18160_v27 = vld [vmem:[%s25901_s5 + $0x1c] sm:$0xf] }
 0xbd9   : > { %17222 = vmatpush1.bf16.msra.mxu0 %v17221_v45  ;;  %v17241_v50 = vpack.c.bf16 %v12125_v22, %v24031_v4  ;;  %v12131_v2 = vmul.f32 %v12114_v38, %v27106_v59  ;;  %v12127_v37 = vmul.f32 %v12113_v51, %v27106_v59  ;;  %v12129_v53 = vmul.f32 %v12105_v44, %v27119_v11  ;;  %v27131_v22 = vld [vmem:[#allocation47_spill] sm:$0xff] }
 0xbda   : > { %17230 = vmatpush1.bf16.msra.mxu1 %v17229_v63  ;;  %17232 = vmatprep.subr.bf16.mxu0 %v17231_v55  ;;  %v17235_v40 = vpack.c.bf16 %v12132_v31, %v12128_v8  ;;  %v12106_v7 = vsel %vm2404_vm9, %v23828_v34, %v12102_v47  ;;  %v12118_v20 = vsel %vm2404_vm9, %v12102_v47, %v23777_v3  ;;  %v27133_v63 = vld [vmem:[#allocation88_spill] sm:$0xff]  ;;  %v27135_v8 = vld [vmem:[#allocation6_spill] sm:$0xff] }
 0xbdb   : > { %17240 = vmatprep.subr.bf16.mxu1 %v17239_v13  ;;  %v12130_v4 = vmul.f32 %v12117_v28, %v27127_v42  ;;  %v12133_v16 = vmul.f32 %v12106_v7, %v27119_v11  ;;  %v12134_v12 = vmul.f32 %v12118_v20, %v27127_v42  ;;  %v17237_v3 = vpack.c.bf16 %v12131_v2, %v12127_v37  ;;  %v27136_v47 = vld [vmem:[#allocation8_spill] sm:$0xff]  ;;  %v27137_v37 = vld [vmem:[#allocation7_spill] sm:$0xff]  ;;  %v27138_v20 = vld [vmem:[#allocation9_spill] sm:$0xff] }
 0xbdc   : > { %16682 = vmatmul.mubr.msk.f32.vlgmr.msra.gmra.mrb[28].mxu0 %vm2832_vm10, %v18160_v27 }
 0xbdd   : > { %16683 = vmatmul.mubr.msk.f32.vlgmr.msra.gmra.mrb[28].mxu1 %vm2832_vm10, %v18160_v27  ;;  %17234 = vmatpush1.bf16.msra.mxu0 %v17233_v46  ;;  %v17245_v34 = vpack.c.bf16 %v12133_v16, %v12129_v53  ;;  %v17243_v0 = vpack.c.bf16 %v12134_v12, %v12130_v4  ;;  %v18162_v12 = vld [vmem:[%s25899_s3 + $0x20] sm:$0xff] }
 0xbde   : > { %17236 = vmatprep.subr.bf16.mxu0 %v17235_v40  ;;  %17242 = vmatpush1.bf16.msra.mxu1 %v17241_v50 }
 0xbdf   : > { %12199 = vmatprep.mubr.f32.mxu0 %v27033_v19  ;;  %12270 = vmatprep.mubr.f32.mxu1 %v27033_v19 }
 0xbe0   : > { %17244 = vmatprep.subr.bf16.mxu1 %v17243_v0 }
 0xbe1   : > { %17238 = vmatpush1.bf16.msra.mxu0 %v17237_v3 }
 0xbe2   : > { %17246 = vmatpush1.bf16.msra.mxu1 %v17245_v34 }
 0xbe4   : > { %16684 = vmatmul.mubr.msk.f32.vlgmr.msra.gmra.mrb[28].mxu0 %vm2832_vm10, %v18161_v48 }
 0xbe5   : > { %16685 = vmatmul.mubr.msk.f32.vlgmr.msra.gmra.mrb[28].mxu1 %vm2832_vm10, %v18161_v48  ;;  %12422 = vmatprep.mubr.f32.mxu0 %v27033_v19 }
 0xbe6   : > { %12511 = vmatprep.mubr.f32.mxu1 %v27033_v19 }
 0xcb7   : > { %v12201_v52 = vpop.f32.mrb[28].mxu0 }
 0xcb8   : > { %v12281_v25 = vadd.f32 %v12201_v52, %v27130_v32  ;;  %v12203_v24 = vpop.f32.mrb[29].mxu0  ;;  %v12272_v6 = vpop.f32.mrb[28].mxu1 }
 0xcb9   : > { %v12282_v5 = vadd.f32 %v12203_v24, %v27130_v32  ;;  %v12283_v41 = vadd.f32 %v12272_v6, %v27130_v32  ;;  %v12274_v29 = vpop.f32.mrb[29].mxu1  ;;  %v27139_v24 = vld [vmem:[#allocation12_spill] sm:$0xff] }
 0xcba   : > { %v12286_v60 = vmul.f32 %v12285_v21, %v12281_v25  ;;  %v12284_v56 = vadd.f32 %v12274_v29, %v27130_v32  ;;  %v18163_v25 = vld [vmem:[%s25899_s3 + $0x28] sm:$0xff] }
 0xcbb   : > { %v12287_v57 = vmul.f32 %v12285_v21, %v12282_v5  ;;  %v12288_v58 = vmul.f32 %v12285_v21, %v12283_v41  ;;  %v27140_v5 = vld [vmem:[#allocation11_spill] sm:$0xff] }
 0xcbc   : > { %v12289_v10 = vmul.f32 %v12285_v21, %v12284_v56 }
 0xcbd   : > { %v12294_v1 = vcombine.low %v12286_v60, %v12287_v57  ;;  %v27141_v60 = vld [vmem:[#allocation13_spill] sm:$0xff] }
 0xcbe   : > { %v12295_v55 = vcombine.low %v12288_v58, %v12289_v10  ;;  %v18164_v10 = vld [vmem:[%s25899_s3 + $0x30] sm:$0xff] }
 0xcbf   : > { %v24160_v45 = vadd.f32 %v12294_v1, %v27131_v22  ;;  %v27142_v1 = vld [vmem:[#allocation14_spill] sm:$0xff] }
 0xcc0   : > { %v24163_v26 = vadd.f32 %v12295_v55, %v27133_v63 }
 0xcc1   : > { %27132 = vst [vmem:[#allocation99_spill] sm:$0xff] %v24160_v45  ;;  %12306 = vst [vmem:[%s18323_s13 + $0x20] sm:$0xf] %v24160_v45  ;;  %12330 = vrot.lane.b32.xlu0 %v24160_v45, %s18246_s18  ;;  %v12302_v33 = vcombine.high %v24160_v45, %v24160_v45 }
 0xcc2   : > { %27134 = vst [vmem:[#allocation46_spill] sm:$0xff] %v24163_v26  ;;  %12308 = vst [vmem:[%s18323_s13 + $0x30] sm:$0xf] %v24163_v26  ;;  %v12303_v51 = vcombine.high %v24163_v26, %v24163_v26 }
 0xcc3   : > { %12332 = vrot.lane.b32.xlu1 %v12302_v33, %s18246_s18  ;;  %12307 = vst [vmem:[%s18323_s13 + $0x28] sm:$0xf] %v12302_v33 }
 0xcc4   : > { %12309 = vst [vmem:[%s18323_s13 + $0x38] sm:$0xf] %v12303_v51 }
 0xcc5   : > { %12334 = vrot.lane.b32.xlu0 %v24163_v26, %s18246_s18 }
 0xcc7   : > { %12336 = vrot.lane.b32.xlu1 %v12303_v51, %s18246_s18 }
 0xcc9   : > { %12314 = vrot.lane.b32.xlu0 %v24160_v45, %s18248_s19 }
 0xccb   : > { %12316 = vrot.lane.b32.xlu1 %v12302_v33, %s18248_s19 }
 0xccd   : > { %12318 = vrot.lane.b32.xlu0 %v24163_v26, %s18248_s19 }
 0xccf   : > { %12320 = vrot.lane.b32.xlu1 %v12303_v51, %s18248_s19 }
 0xcd1   : > { %12726 = vrot.lane.b32.xlu0 %v24160_v45, %s18249_s20 }
 0xcd3   : > { %12728 = vrot.lane.b32.xlu1 %v12302_v33, %s18249_s20 }
 0xcd5   : > { %12730 = vrot.lane.b32.xlu0 %v24163_v26, %s18249_s20 }
 0xcd7   : > { %12732 = vrot.lane.b32.xlu1 %v12303_v51, %s18249_s20 }
 0xcd9   : > { %12948 = vrot.lane.b32.xlu0 %v24160_v45, %s18250_s21 }
 0xcdb   : > { %12950 = vrot.lane.b32.xlu1 %v12302_v33, %s18250_s21 }
 0xcdd   : > { %12952 = vrot.lane.b32.xlu0 %v24163_v26, %s18250_s21 }
 0xcdf   : > { %12954 = vrot.lane.b32.xlu1 %v12303_v51, %s18250_s21 }
 0xce1   : > { %13378 = vrot.lane.b32.xlu0 %v24160_v45, %s18251_s22 }
 0xce3   : > { %13380 = vrot.lane.b32.xlu1 %v12302_v33, %s18251_s22 }
 0xce5   : > { %13382 = vrot.lane.b32.xlu0 %v24163_v26, %s18251_s22 }
 0xce7   : > { %13384 = vrot.lane.b32.xlu1 %v12303_v51, %s18251_s22 }
 0xce9   : > { %13600 = vrot.lane.b32.xlu0 %v24160_v45, %s18252_s23 }
 0xceb   : > { %13602 = vrot.lane.b32.xlu1 %v12302_v33, %s18252_s23 }
 0xced   : > { %13604 = vrot.lane.b32.xlu0 %v24163_v26, %s18252_s23 }
 0xcef   : > { %13606 = vrot.lane.b32.xlu1 %v12303_v51, %s18252_s23 }
 0xcf1   : > { %13822 = vrot.lane.b32.xlu0 %v24160_v45, %s18253_s24 }
 0xcf3   : > { %13824 = vrot.lane.b32.xlu1 %v12302_v33, %s18253_s24 }
 0xcf5   : > { %13826 = vrot.lane.b32.xlu0 %v24163_v26, %s18253_s24 }
 0xcf7   : > { %13828 = vrot.lane.b32.xlu1 %v12303_v51, %s18253_s24 }
 0xcf9   : > { %14044 = vrot.lane.b32.xlu0 %v24160_v45, %s18254_s25 }
 0xcfb   : > { %14046 = vrot.lane.b32.xlu1 %v12302_v33, %s18254_s25 }
 0xcfd   : > { %14048 = vrot.lane.b32.xlu0 %v24163_v26, %s18254_s25 }
 0xcff   : > { %14050 = vrot.lane.b32.xlu1 %v12303_v51, %s18254_s25 }
 0xd33   : > { %v12331_v36 = vpop.permute.xlu0 %12330 }
 0xd35   : > { %v12333_v38 = vpop.permute.xlu1 %12332 }
 0xd36   : > { %v12340_v13 = vsel %vm439_vm0, %v12331_v36, %v12333_v38 }
 0xd37   : > { %v12343_v44 = vmul.f32 %v12340_v13, %v27135_v8  ;;  %v12335_v31 = vpop.permute.xlu0 %12334  ;;  %v27143_v13 = vld [vmem:[#allocation16_spill] sm:$0xff] }
 0xd38   : > { %v12339_v28 = vsel %vm439_vm0, %v12333_v38, %v12335_v31 }
 0xd39   : > { %16686 = vmatprep.subr.msk.mxu0 %vm482_vm2, %v12343_v44  ;;  %v12337_v46 = vpop.permute.xlu1 %12336  ;;  %v12344_v27 = vmul.f32 %v12339_v28, %v27138_v20 }
 0xd3a   : > { %v12338_v50 = vsel %vm439_vm0, %v12335_v31, %v12337_v46  ;;  %v12341_v2 = vsel %vm439_vm0, %v12337_v46, %v12331_v36  ;;  %v18165_v36 = vld [vmem:[%s25899_s3 + $0x38] sm:$0xff] }
 0xd3b   : > { %v12342_v40 = vmul.f32 %v12341_v2, %v27136_v47  ;;  %v12345_v53 = vmul.f32 %v12338_v50, %v27137_v37  ;;  %v12315_v7 = vpop.permute.xlu0 %12314  ;;  %v27144_v31 = vld [vmem:[#allocation15_spill] sm:$0xff]  ;;  %v27145_v2 = vld [vmem:[#allocation17_spill] sm:$0xff] }
 0xd3d   : > { %16687 = vmatpush1.msk.msra.mxu0 %vm482_vm2, %v12342_v40  ;;  %16692 = vmatprep.subr.msk.mxu1 %vm482_vm2, %v12345_v53  ;;  %v12317_v4 = vpop.permute.xlu1 %12316 }
 0xd3e   : > { %v12324_v16 = vsel %vm401_vm1, %v12315_v7, %v12317_v4  ;;  %16688 = vmatmul.mubr.msk.f32.vlgmr.msra.gmra.mrb[30].mxu0 %vm469_vm3, %v18162_v12  ;;  %16693 = vmatpush1.msk.msra.mxu1 %vm482_vm2, %v12344_v27  ;;  %v27146_v27 = vld [vmem:[#allocation18_spill] sm:$0xff] }
 0xd3f   : > { %v12327_v3 = vmul.f32 %v12324_v16, %v26680_v17  ;;  %v12319_v34 = vpop.permute.xlu0 %12318  ;;  %16694 = vmatmul.mubr.msk.f32.vlgmr.msra.gmra.mrb[30].mxu1 %vm469_vm3, %v18162_v12  ;;  %12428 = vmatprep.mubr.f32.mxu0 %v27033_v19 }
 0xd40   : > { %12517 = vmatprep.mubr.f32.mxu1 %v27033_v19  ;;  %v12323_v0 = vsel %vm401_vm1, %v12317_v4, %v12319_v34 }
 0xd41   : > { %16698 = vmatprep.subr.msk.mxu0 %vm482_vm2, %v12327_v3  ;;  %v12321_v48 = vpop.permute.xlu1 %12320  ;;  %v12328_v56 = vmul.f32 %v12323_v0, %v27141_v60  ;;  %v27147_v0 = vld [vmem:[#allocation19_spill] sm:$0xff] }
 0xd42   : > { %v12322_v52 = vsel %vm401_vm1, %v12319_v34, %v12321_v48  ;;  %v12325_v21 = vsel %vm401_vm1, %v12321_v48, %v12315_v7  ;;  %16689 = vmatmul.mubr.msk.f32.gmra.mrb[32].mxu0 %vm469_vm3, %v18163_v25  ;;  %v18166_v7 = vld [vmem:[%s25899_s3] sm:$0xff]  ;;  %v18167_v34 = vld [vmem:[%s25899_s3 + $0x8] sm:$0xff] }
 0xd43   : > { %v12326_v6 = vmul.f32 %v12325_v21, %v27139_v24  ;;  %v12329_v41 = vmul.f32 %v12322_v52, %v27140_v5  ;;  %v12727_v29 = vpop.permute.xlu0 %12726  ;;  %16695 = vmatmul.mubr.msk.f32.gmra.mrb[32].mxu1 %vm469_vm3, %v18163_v25  ;;  %12434 = vmatprep.mubr.f32.mxu0 %v27033_v19  ;;  %v18168_v52 = vld [vmem:[%s25899_s3 + $0x10] sm:$0xff]  ;;  %v18169_v25 = vld [vmem:[%s25899_s3 + $0x18] sm:$0xff] }
 0xd44   : > { %12523 = vmatprep.mubr.f32.mxu1 %v27033_v19 }
 0xd45   : > { %16699 = vmatpush1.msk.msra.mxu0 %vm482_vm2, %v12326_v6  ;;  %16704 = vmatprep.subr.msk.mxu1 %vm482_vm2, %v12329_v41  ;;  %v12729_v57 = vpop.permute.xlu1 %12728  ;;  %v27148_v6 = vld [vmem:[#allocation24_spill] sm:$0xff] }
 0xd46   : > { %v12736_v58 = vsel %vm883_vm4, %v12727_v29, %v12729_v57  ;;  %16690 = vmatmul.mubr.msk.f32.gmra.mrb[34].mxu0 %vm469_vm3, %v18164_v10  ;;  %16705 = vmatpush1.msk.msra.mxu1 %vm482_vm2, %v12328_v56  ;;  %v13170_v41 = vmul.f32 %v24160_v45, %v27148_v6  ;;  %v27149_v56 = vld [vmem:[#allocation25_spill] sm:$0xff] }
 0xd47   : > { %v12739_v55 = vmul.f32 %v12736_v58, %v27142_v1  ;;  %v12731_v22 = vpop.permute.xlu0 %12730  ;;  %16696 = vmatmul.mubr.msk.f32.gmra.mrb[34].mxu1 %vm469_vm3, %v18164_v10  ;;  %12440 = vmatprep.mubr.f32.mxu0 %v27033_v19  ;;  %v27150_v58 = vld [vmem:[#allocation26_spill] sm:$0xff] }
 0xd48   : > { %12529 = vmatprep.mubr.f32.mxu1 %v27033_v19  ;;  %v12735_v38 = vsel %vm883_vm4, %v12729_v57, %v12731_v22  ;;  %v13171_v57 = vmul.f32 %v24163_v26, %v27149_v56 }
 0xd49   : > { %16710 = vmatprep.subr.msk.mxu0 %vm482_vm2, %v12739_v55  ;;  %v12733_v63 = vpop.permute.xlu1 %12732  ;;  %v12740_v40 = vmul.f32 %v12735_v38, %v27145_v2  ;;  %v27151_v55 = vld [vmem:[#allocation27_spill] sm:$0xff]  ;;  %v18171_v38 = vld [vmem:[%s25899_s3 + $0x48] sm:$0xff] }
 0xd4a   : > { %v12734_v33 = vsel %vm883_vm4, %v12731_v22, %v12733_v63  ;;  %v12737_v51 = vsel %vm883_vm4, %v12733_v63, %v12727_v29  ;;  %16691 = vmatmul.mubr.msk.f32.gmra.mrb[36].mxu0 %vm469_vm3, %v18165_v36  ;;  %v18170_v63 = vld [vmem:[%s25899_s3 + $0x40] sm:$0xff] }
 0xd4b   : > { %v12738_v44 = vmul.f32 %v12737_v51, %v27143_v13  ;;  %v12741_v28 = vmul.f32 %v12734_v33, %v27144_v31  ;;  %v12949_v46 = vpop.permute.xlu0 %12948  ;;  %16697 = vmatmul.mubr.msk.f32.gmra.mrb[36].mxu1 %vm469_vm3, %v18165_v36  ;;  %12612 = vmatprep.mubr.f32.mxu0 %v27033_v19  ;;  %v13174_v33 = vcombine.high %v13170_v41, %v13170_v41 }
 0xd4c   : > { %12701 = vmatprep.mubr.f32.mxu1 %v27033_v19  ;;  %v13175_v51 = vcombine.high %v13171_v57, %v13171_v57 }
 0xd4d   : > { %16716 = vmatprep.subr.msk.mxu1 %vm482_vm2, %v12741_v28  ;;  %v12951_v50 = vpop.permute.xlu1 %12950  ;;  %v18172_v28 = vld [vmem:[%s25899_s3 + $0x50] sm:$0xff] }
 0xd4e   : > { %v12958_v53 = vsel %vm1139_vm5, %v12949_v46, %v12951_v50  ;;  %16700 = vmatmul.mubr.msk.f32.vlgmr.msra.gmra.mrb[30].mxu0 %vm469_vm3, %v18166_v7 }
 0xd4f   : > { %v12961_v4 = vmul.f32 %v12958_v53, %v27146_v27  ;;  %16711 = vmatpush1.msk.msra.mxu0 %vm482_vm2, %v12738_v44  ;;  %16706 = vmatmul.mubr.msk.f32.vlgmr.msra.gmra.mrb[30].mxu1 %vm469_vm3, %v18166_v7  ;;  %v12953_v16 = vpop.permute.xlu0 %12952 }
 0xd50   : > { %16717 = vmatpush1.msk.msra.mxu1 %vm482_vm2, %v12740_v40  ;;  %12618 = vmatprep.mubr.f32.mxu0 %v27033_v19  ;;  %v12957_v29 = vsel %vm1139_vm5, %v12951_v50, %v12953_v16  ;;  %v18173_v40 = vld [vmem:[%s25899_s3 + $0x58] sm:$0xff] }
 0xd51   : > { %16722 = vmatprep.subr.msk.mxu0 %vm482_vm2, %v12961_v4  ;;  %v12955_v12 = vpop.permute.xlu1 %12954  ;;  %12707 = vmatprep.mubr.f32.mxu1 %v27033_v19  ;;  %v12962_v22 = vmul.f32 %v12957_v29, %v27151_v55  ;;  %v27152_v4 = vld [vmem:[#allocation28_spill] sm:$0xff]  ;;  %v18177_v29 = vld [vmem:[%s25899_s3 + $0x78] sm:$0xff] }
 0xd52   : > { %v12956_v3 = vsel %vm1139_vm5, %v12953_v16, %v12955_v12  ;;  %16701 = vmatmul.mubr.msk.f32.gmra.mrb[32].mxu0 %vm469_vm3, %v18167_v34  ;;  %v12959_v21 = vsel %vm1139_vm5, %v12955_v12, %v12949_v46  ;;  %v18174_v12 = vld [vmem:[%s25899_s3 + $0x60] sm:$0xff] }
 0xd53   : > { %v12963_v48 = vmul.f32 %v12956_v3, %v27147_v0  ;;  %16707 = vmatmul.mubr.msk.f32.gmra.mrb[32].mxu1 %vm469_vm3, %v18167_v34  ;;  %12624 = vmatprep.mubr.f32.mxu0 %v27033_v19  ;;  %v12960_v10 = vmul.f32 %v12959_v21, %v27150_v58  ;;  %v13379_v36 = vpop.permute.xlu0 %13378  ;;  %v18176_v21 = vld [vmem:[%s25899_s3 + $0x70] sm:$0xff] }
 0xd54   : > { %12713 = vmatprep.mubr.f32.mxu1 %v27033_v19 }
 0xd55   : > { %16728 = vmatprep.subr.msk.mxu1 %vm482_vm2, %v12963_v48  ;;  %v13381_v44 = vpop.permute.xlu1 %13380  ;;  %v18175_v48 = vld [vmem:[%s25899_s3 + $0x68] sm:$0xff] }
 0xd56   : > { %16702 = vmatmul.mubr.msk.f32.gmra.mrb[34].mxu0 %vm469_vm3, %v18168_v52 }
 0xd57   : > { %16708 = vmatmul.mubr.msk.f32.gmra.mrb[34].mxu1 %vm469_vm3, %v18168_v52  ;;  %12630 = vmatprep.mubr.f32.mxu0 %v27033_v19  ;;  %v13383_v46 = vpop.permute.xlu0 %13382 }
 0xd58   : > { %12719 = vmatprep.mubr.f32.mxu1 %v27033_v19  ;;  %v13387_v53 = vsel %vm1636_vm6, %v13381_v44, %v13383_v46 }
 0xd59   : > { %v13385_v50 = vpop.permute.xlu1 %13384  ;;  %v13391_v16 = vmul.f32 %v13387_v53, %v27152_v4 }
 0xd5a   : > { %16703 = vmatmul.mubr.msk.f32.gmra.mrb[36].mxu0 %vm469_vm3, %v18169_v25  ;;  %v13389_v7 = vsel %vm1636_vm6, %v13385_v50, %v13379_v36  ;;  %v13386_v56 = vsel %vm1636_vm6, %v13383_v46, %v13385_v50  ;;  %v18180_v46 = vld [vmem:[%s25899_s3 + $0x90] sm:$0xff] }
 0xd5b   : > { %16709 = vmatmul.mubr.msk.f32.gmra.mrb[36].mxu1 %vm469_vm3, %v18169_v25  ;;  %12818 = vmatprep.mubr.f32.mxu0 %v27033_v19  ;;  %v13393_v3 = vmul.f32 %v13389_v7, %v27032_v62  ;;  %v13601_v34 = vpop.permute.xlu0 %13600  ;;  %v18181_v7 = vld [vmem:[%s25899_s3 + $0x98] sm:$0xff] }
 0xd5c   : > { %12907 = vmatprep.mubr.f32.mxu1 %v27033_v19 }
 0xd5d   : > { %v13603_v52 = vpop.permute.xlu1 %13602 }
 0xd5e   : > { %16712 = vmatmul.mubr.msk.f32.vlgmr.msra.gmra.mrb[30].mxu0 %vm469_vm3, %v18170_v63  ;;  %v13610_v53 = vsel %vm1892_vm7, %v13601_v34, %v13603_v52 }
 0xd5f   : > { %16723 = vmatpush1.msk.msra.mxu0 %vm482_vm2, %v12960_v10  ;;  %16718 = vmatmul.mubr.msk.f32.vlgmr.msra.gmra.mrb[30].mxu1 %vm469_vm3, %v18170_v63  ;;  %v13605_v25 = vpop.permute.xlu0 %13604  ;;  %v13392_v63 = vmul.f32 %v13386_v56, %v27031_v15  ;;  %v18184_v56 = vld [vmem:[%s25899_s3 + $0xb0] sm:$0xff] }
 0xd60   : > { %16729 = vmatpush1.msk.msra.mxu1 %vm482_vm2, %v12962_v22  ;;  %16734 = vmatprep.subr.msk.mxu0 %vm482_vm2, %v13174_v33 }
 0xd61   : > { %16740 = vmatprep.subr.msk.mxu1 %vm482_vm2, %v13175_v51  ;;  %12824 = vmatprep.mubr.f32.mxu0 %v27033_v19  ;;  %v13607_v6 = vpop.permute.xlu1 %13606  ;;  %v18178_v51 = vld [vmem:[%s25899_s3 + $0x80] sm:$0xff] }
 0xd62   : > { %16713 = vmatmul.mubr.msk.f32.gmra.mrb[32].mxu0 %vm469_vm3, %v18171_v38  ;;  %12913 = vmatprep.mubr.f32.mxu1 %v27033_v19  ;;  %v13611_v10 = vsel %vm1892_vm7, %v13607_v6, %v13601_v34  ;;  %v13612_v34 = vmul.f32 %v13610_v53, %v27046_v18  ;;  %v18188_v53 = vld [vmem:[%s25899_s3 + $0xd0] sm:$0xff] }
 0xd63   : > { %16719 = vmatmul.mubr.msk.f32.gmra.mrb[32].mxu1 %vm469_vm3, %v18171_v38  ;;  %12830 = vmatprep.mubr.f32.mxu0 %v27033_v19  ;;  %v13823_v38 = vpop.permute.xlu0 %13822 }
 0xd64   : > { %12919 = vmatprep.mubr.f32.mxu1 %v27033_v19 }
 0xd66   : > { %16714 = vmatmul.mubr.msk.f32.gmra.mrb[34].mxu0 %vm469_vm3, %v18172_v28 }
 0xd67   : > { %16720 = vmatmul.mubr.msk.f32.gmra.mrb[34].mxu1 %vm469_vm3, %v18172_v28  ;;  %12836 = vmatprep.mubr.f32.mxu0 %v27033_v19  ;;  %v13825_v28 = vpop.permute.xlu1 %13824  ;;  %v13827_v50 = vpop.permute.xlu0 %13826 }
 0xd68   : > { %12925 = vmatprep.mubr.f32.mxu1 %v27033_v19 }
 0xd6a   : > { %16715 = vmatmul.mubr.msk.f32.gmra.mrb[36].mxu0 %vm469_vm3, %v18173_v40 }
 0xd6b   : > { %16721 = vmatmul.mubr.msk.f32.gmra.mrb[36].mxu1 %vm469_vm3, %v18173_v40  ;;  %13040 = vmatprep.mubr.f32.mxu0 %v27033_v19  ;;  %v13829_v40 = vpop.permute.xlu1 %13828 }
 0xd6c   : > { %13129 = vmatprep.mubr.f32.mxu1 %v27033_v19 }
 0xd6e   : > { %16724 = vmatmul.mubr.msk.f32.vlgmr.msra.gmra.mrb[30].mxu0 %vm469_vm3, %v18174_v12 }
 0xd6f   : > { %16735 = vmatpush1.msk.msra.mxu0 %vm482_vm2, %v13170_v41  ;;  %16730 = vmatmul.mubr.msk.f32.vlgmr.msra.gmra.mrb[30].mxu1 %vm469_vm3, %v18174_v12  ;;  %v13388_v41 = vsel %vm1636_vm6, %v13379_v36, %v13381_v44  ;;  %v13615_v36 = vmul.f32 %v13611_v10, %v27066_v23  ;;  %v18179_v44 = vld [vmem:[%s25899_s3 + $0x88] sm:$0xff]  ;;  %v13831_v12 = vsel %vm2148_vm8, %v13825_v28, %v13827_v50 }
 0xd70   : > { %16741 = vmatpush1.msk.msra.mxu1 %vm482_vm2, %v13171_v57  ;;  %16746 = vmatprep.subr.msk.mxu0 %vm482_vm2, %v13391_v16  ;;  %v13609_v57 = vsel %vm1892_vm7, %v13603_v52, %v13605_v25  ;;  %v13390_v22 = vmul.f32 %v13388_v41, %v27017_v61  ;;  %v13608_v16 = vsel %vm1892_vm7, %v13605_v25, %v13607_v6  ;;  %v14045_v6 = vpop.permute.xlu0 %14044  ;;  %v18183_v41 = vld [vmem:[%s25899_s3 + $0xa8] sm:$0xff] }
 0xd71   : > { %16752 = vmatprep.subr.msk.mxu1 %vm482_vm2, %v13393_v3  ;;  %13046 = vmatprep.mubr.f32.mxu0 %v27033_v19  ;;  %v13613_v33 = vmul.f32 %v13609_v57, %v27048_v54  ;;  %v13833_v3 = vsel %vm2148_vm8, %v13829_v40, %v13823_v38  ;;  %v13835_v52 = vmul.f32 %v13831_v12, %v27075_v30 }
 0xd72   : > { %16725 = vmatmul.mubr.msk.f32.gmra.mrb[32].mxu0 %vm469_vm3, %v18175_v48  ;;  %13135 = vmatprep.mubr.f32.mxu1 %v27033_v19  ;;  %v13837_v25 = vmul.f32 %v13833_v3, %v27087_v35 }
 0xd73   : > { %16731 = vmatmul.mubr.msk.f32.gmra.mrb[32].mxu1 %vm469_vm3, %v18175_v48  ;;  %13052 = vmatprep.mubr.f32.mxu0 %v27033_v19  ;;  %v13614_v48 = vmul.f32 %v13608_v16, %v27065_v43  ;;  %v18189_v16 = vld [vmem:[%s25899_s3 + $0xd8] sm:$0xff] }
 0xd74   : > { %13141 = vmatprep.mubr.f32.mxu1 %v27033_v19  ;;  %v14049_v57 = vpop.permute.xlu0 %14048 }
 0xd76   : > { %16726 = vmatmul.mubr.msk.f32.gmra.mrb[34].mxu0 %vm469_vm3, %v18176_v21 }
 0xd77   : > { %16732 = vmatmul.mubr.msk.f32.gmra.mrb[34].mxu1 %vm469_vm3, %v18176_v21  ;;  %13058 = vmatprep.mubr.f32.mxu0 %v27033_v19  ;;  %v18182_v21 = vld [vmem:[%s25899_s3 + $0xa0] sm:$0xff] }
 0xd78   : > { %13147 = vmatprep.mubr.f32.mxu1 %v27033_v19 }
 0xd7a   : > { %16727 = vmatmul.mubr.msk.f32.gmra.mrb[36].mxu0 %vm469_vm3, %v18177_v29 }
 0xd7b   : > { %16733 = vmatmul.mubr.msk.f32.gmra.mrb[36].mxu1 %vm469_vm3, %v18177_v29  ;;  %13248 = vmatprep.mubr.f32.mxu0 %v27033_v19  ;;  %v14047_v29 = vpop.permute.xlu1 %14046 }
 0xd7c   : > { %13337 = vmatprep.mubr.f32.mxu1 %v27033_v19 }
 0xd7e   : > { %16736 = vmatmul.mubr.msk.f32.vlgmr.msra.gmra.mrb[30].mxu0 %vm469_vm3, %v18178_v51 }
 0xd7f   : > { %16747 = vmatpush1.msk.msra.mxu0 %vm482_vm2, %v13390_v22  ;;  %16742 = vmatmul.mubr.msk.f32.vlgmr.msra.gmra.mrb[30].mxu1 %vm469_vm3, %v18178_v51  ;;  %v14051_v10 = vpop.permute.xlu1 %14050  ;;  %v13832_v22 = vsel %vm2148_vm8, %v13823_v38, %v13825_v28  ;;  %v14053_v51 = vsel %vm2404_vm9, %v14047_v29, %v14049_v57 }
 0xd80   : > { %16753 = vmatpush1.msk.msra.mxu1 %vm482_vm2, %v13392_v63  ;;  %16758 = vmatprep.subr.msk.mxu0 %vm482_vm2, %v13613_v33  ;;  %v18185_v63 = vld [vmem:[%s25899_s3 + $0xb8] sm:$0xff]  ;;  %v13830_v33 = vsel %vm2148_vm8, %v13827_v50, %v13829_v40  ;;  %v13834_v38 = vmul.f32 %v13832_v22, %v27070_v49  ;;  %v14057_v28 = vmul.f32 %v14053_v51, %v27109_v14  ;;  %v18187_v40 = vld [vmem:[%s25899_s3 + $0xc8] sm:$0xff] }
 0xd81   : > { %16764 = vmatprep.subr.msk.mxu1 %vm482_vm2, %v13615_v36  ;;  %13254 = vmatprep.mubr.f32.mxu0 %v27033_v19  ;;  %v14055_v36 = vsel %vm2404_vm9, %v14051_v10, %v14045_v6  ;;  %v14052_v12 = vsel %vm2404_vm9, %v14049_v57, %v14051_v10  ;;  %v27153_v10 = vld [vmem:[#allocation44_spill] sm:$0xff] }
 0xd82   : > { %16737 = vmatmul.mubr.msk.f32.gmra.mrb[32].mxu0 %vm469_vm3, %v18179_v44  ;;  %13343 = vmatprep.mubr.f32.mxu1 %v27033_v19  ;;  %v14059_v50 = vmul.f32 %v14055_v36, %v27127_v42 }
 0xd83   : > { %16743 = vmatmul.mubr.msk.f32.gmra.mrb[32].mxu1 %vm469_vm3, %v18179_v44  ;;  %13260 = vmatprep.mubr.f32.mxu0 %v27033_v19  ;;  %v13836_v44 = vmul.f32 %v13830_v33, %v27086_v39 }
 0xd84   : > { %13349 = vmatprep.mubr.f32.mxu1 %v27033_v19 }
 0xd86   : > { %16738 = vmatmul.mubr.msk.f32.gmra.mrb[34].mxu0 %vm469_vm3, %v18180_v46 }
 0xd87   : > { %16744 = vmatmul.mubr.msk.f32.gmra.mrb[34].mxu1 %vm469_vm3, %v18180_v46  ;;  %13266 = vmatprep.mubr.f32.mxu0 %v27033_v19  ;;  %v18186_v46 = vld [vmem:[%s25899_s3 + $0xc0] sm:$0xff] }
 0xd88   : > { %13355 = vmatprep.mubr.f32.mxu1 %v27033_v19 }
 0xd8a   : > { %16739 = vmatmul.mubr.msk.f32.gmra.mrb[36].mxu0 %vm469_vm3, %v18181_v7 }
 0xd8b   : > { %16745 = vmatmul.mubr.msk.f32.gmra.mrb[36].mxu1 %vm469_vm3, %v18181_v7  ;;  %13470 = vmatprep.mubr.f32.mxu0 %v27033_v19  ;;  %v14054_v7 = vsel %vm2404_vm9, %v14045_v6, %v14047_v29  ;;  %v18194_v6 = vld [vmem:[%s25899_s3 + $0x100] sm:$0xff]  ;;  %v18196_v29 = vld [vmem:[%s25899_s3 + $0x110] sm:$0xff] }
 0xd8c   : > { %13559 = vmatprep.mubr.f32.mxu1 %v27033_v19  ;;  %v14056_v3 = vmul.f32 %v14054_v7, %v27106_v59 }
 0xd8e   : > { %16748 = vmatmul.mubr.msk.f32.vlgmr.msra.gmra.mrb[30].mxu0 %vm469_vm3, %v18182_v21 }
 0xd8f   : > { %16759 = vmatpush1.msk.msra.mxu0 %vm482_vm2, %v13612_v34  ;;  %16754 = vmatmul.mubr.msk.f32.vlgmr.msra.gmra.mrb[30].mxu1 %vm469_vm3, %v18182_v21  ;;  %v14058_v34 = vmul.f32 %v14052_v12, %v27119_v11  ;;  %v18192_v21 = vld [vmem:[%s25899_s3 + $0xf0] sm:$0xff] }
 0xd90   : > { %16765 = vmatpush1.msk.msra.mxu1 %vm482_vm2, %v13614_v48  ;;  %16770 = vmatprep.subr.msk.mxu0 %vm482_vm2, %v13835_v52  ;;  %v18190_v48 = vld [vmem:[%s25899_s3 + $0xe0] sm:$0xff]  ;;  %v18191_v52 = vld [vmem:[%s25899_s3 + $0xe8] sm:$0xff] }
 0xd91   : > { %16776 = vmatprep.subr.msk.mxu1 %vm482_vm2, %v13837_v25  ;;  %13476 = vmatprep.mubr.f32.mxu0 %v27033_v19  ;;  %v18193_v25 = vld [vmem:[%s25899_s3 + $0xf8] sm:$0xff] }
 0xd92   : > { %16749 = vmatmul.mubr.msk.f32.gmra.mrb[32].mxu0 %vm469_vm3, %v18183_v41  ;;  %13565 = vmatprep.mubr.f32.mxu1 %v27033_v19 }
 0xd93   : > { %16755 = vmatmul.mubr.msk.f32.gmra.mrb[32].mxu1 %vm469_vm3, %v18183_v41  ;;  %13482 = vmatprep.mubr.f32.mxu0 %v27033_v19  ;;  %v18195_v41 = vld [vmem:[%s25899_s3 + $0x108] sm:$0xff] }
 0xd94   : > { %13571 = vmatprep.mubr.f32.mxu1 %v27033_v19 }
 0xd96   : > { %16750 = vmatmul.mubr.msk.f32.gmra.mrb[34].mxu0 %vm469_vm3, %v18184_v56 }
 0xd97   : > { %16756 = vmatmul.mubr.msk.f32.gmra.mrb[34].mxu1 %vm469_vm3, %v18184_v56  ;;  %13488 = vmatprep.mubr.f32.mxu0 %v27033_v19  ;;  %v18197_v56 = vld [vmem:[%s25899_s3 + $0x118] sm:$0xff] }
 0xd98   : > { %13577 = vmatprep.mubr.f32.mxu1 %v27033_v19 }
 0xd9a   : > { %16751 = vmatmul.mubr.msk.f32.gmra.mrb[36].mxu0 %vm469_vm3, %v18185_v63 }
 0xd9b   : > { %16757 = vmatmul.mubr.msk.f32.gmra.mrb[36].mxu1 %vm469_vm3, %v18185_v63  ;;  %13692 = vmatprep.mubr.f32.mxu0 %v27033_v19 }
 0xd9c   : > { %13781 = vmatprep.mubr.f32.mxu1 %v27033_v19 }
 0xd9e   : > { %16760 = vmatmul.mubr.msk.f32.vlgmr.msra.gmra.mrb[30].mxu0 %vm469_vm3, %v18186_v46 }
 0xd9f   : > { %16771 = vmatpush1.msk.msra.mxu0 %vm482_vm2, %v13834_v38  ;;  %16766 = vmatmul.mubr.msk.f32.vlgmr.msra.gmra.mrb[30].mxu1 %vm469_vm3, %v18186_v46 }
 0xda0   : > { %16777 = vmatpush1.msk.msra.mxu1 %vm482_vm2, %v13836_v44  ;;  %16782 = vmatprep.subr.msk.mxu0 %vm482_vm2, %v14057_v28  ;;  %v27154_v28 = vld [vmem:[#allocation45_spill] sm:$0xff] }
 0xda1   : > { %16788 = vmatprep.subr.msk.mxu1 %vm482_vm2, %v14059_v50  ;;  %13698 = vmatprep.mubr.f32.mxu0 %v27033_v19 }
 0xda2   : > { %16761 = vmatmul.mubr.msk.f32.gmra.mrb[32].mxu0 %vm469_vm3, %v18187_v40  ;;  %13787 = vmatprep.mubr.f32.mxu1 %v27033_v19 }
 0xda3   : > { %16767 = vmatmul.mubr.msk.f32.gmra.mrb[32].mxu1 %vm469_vm3, %v18187_v40  ;;  %13704 = vmatprep.mubr.f32.mxu0 %v27033_v19 }
 0xda4   : > { %13793 = vmatprep.mubr.f32.mxu1 %v27033_v19 }
 0xda6   : > { %16762 = vmatmul.mubr.msk.f32.gmra.mrb[34].mxu0 %vm469_vm3, %v18188_v53 }
 0xda7   : > { %16768 = vmatmul.mubr.msk.f32.gmra.mrb[34].mxu1 %vm469_vm3, %v18188_v53  ;;  %13710 = vmatprep.mubr.f32.mxu0 %v27033_v19 }
 0xda8   : > { %13799 = vmatprep.mubr.f32.mxu1 %v27033_v19 }
 0xdaa   : > { %16763 = vmatmul.mubr.msk.f32.gmra.mrb[36].mxu0 %vm469_vm3, %v18189_v16 }
 0xdab   : > { %16769 = vmatmul.mubr.msk.f32.gmra.mrb[36].mxu1 %vm469_vm3, %v18189_v16  ;;  %13914 = vmatprep.mubr.f32.mxu0 %v27033_v19 }
 0xdac   : > { %14003 = vmatprep.mubr.f32.mxu1 %v27033_v19 }
 0xdae   : > { %16772 = vmatmul.mubr.msk.f32.vlgmr.msra.gmra.mrb[30].mxu0 %vm469_vm3, %v18190_v48 }
 0xdaf   : > { %16783 = vmatpush1.msk.msra.mxu0 %vm482_vm2, %v14056_v3  ;;  %16778 = vmatmul.mubr.msk.f32.vlgmr.msra.gmra.mrb[30].mxu1 %vm469_vm3, %v18190_v48 }
 0xdb0   : > { %16789 = vmatpush1.msk.msra.mxu1 %vm482_vm2, %v14058_v34  ;;  %13920 = vmatprep.mubr.f32.mxu0 %v27033_v19 }
 0xdb1   : > { %14009 = vmatprep.mubr.f32.mxu1 %v27033_v19 }
 0xdb2   : > { %16773 = vmatmul.mubr.msk.f32.gmra.mrb[32].mxu0 %vm469_vm3, %v18191_v52 }
 0xdb3   : > { %16779 = vmatmul.mubr.msk.f32.gmra.mrb[32].mxu1 %vm469_vm3, %v18191_v52  ;;  %13926 = vmatprep.mubr.f32.mxu0 %v27033_v19 }
 0xdb4   : > { %14015 = vmatprep.mubr.f32.mxu1 %v27033_v19 }
 0xdb6   : > { %16774 = vmatmul.mubr.msk.f32.gmra.mrb[34].mxu0 %vm469_vm3, %v18192_v21 }
 0xdb7   : > { %16780 = vmatmul.mubr.msk.f32.gmra.mrb[34].mxu1 %vm469_vm3, %v18192_v21  ;;  %13932 = vmatprep.mubr.f32.mxu0 %v27033_v19  ;;  %v27155_v21 = vld [vmem:[#allocation20_spill] sm:$0xff] }
 0xdb8   : > { %14021 = vmatprep.mubr.f32.mxu1 %v27033_v19 }
 0xdba   : > { %16775 = vmatmul.mubr.msk.f32.gmra.mrb[36].mxu0 %vm469_vm3, %v18193_v25 }
 0xdbb   : > { %16781 = vmatmul.mubr.msk.f32.gmra.mrb[36].mxu1 %vm469_vm3, %v18193_v25  ;;  %14136 = vmatprep.mubr.f32.mxu0 %v27033_v19 }
 0xdbc   : > { %14225 = vmatprep.mubr.f32.mxu1 %v27033_v19 }
 0xdbe   : > { %16784 = vmatmul.mubr.msk.f32.vlgmr.msra.gmra.mrb[30].mxu0 %vm469_vm3, %v18194_v6 }
 0xdbf   : > { %16790 = vmatmul.mubr.msk.f32.vlgmr.msra.gmra.mrb[30].mxu1 %vm469_vm3, %v18194_v6  ;;  %14142 = vmatprep.mubr.f32.mxu0 %v27033_v19 }
 0xdc0   : > { %14231 = vmatprep.mubr.f32.mxu1 %v27033_v19 }
 0xdc2   : > { %16785 = vmatmul.mubr.msk.f32.gmra.mrb[32].mxu0 %vm469_vm3, %v18195_v41 }
 0xdc3   : > { %16791 = vmatmul.mubr.msk.f32.gmra.mrb[32].mxu1 %vm469_vm3, %v18195_v41  ;;  %14148 = vmatprep.mubr.f32.mxu0 %v27033_v19 }
 0xdc4   : > { %14237 = vmatprep.mubr.f32.mxu1 %v27033_v19 }
 0xdc6   : > { %16786 = vmatmul.mubr.msk.f32.gmra.mrb[34].mxu0 %vm469_vm3, %v18196_v29 }
 0xdc7   : > { %16792 = vmatmul.mubr.msk.f32.gmra.mrb[34].mxu1 %vm469_vm3, %v18196_v29  ;;  %14154 = vmatprep.mubr.f32.mxu0 %v27033_v19  ;;  %v27158_v29 = vld [vmem:[#allocation22_spill] sm:$0xff] }
 0xdc8   : > { %14243 = vmatprep.mubr.f32.mxu1 %v27033_v19 }
 0xdca   : > { %16787 = vmatmul.mubr.msk.f32.gmra.mrb[36].mxu0 %vm469_vm3, %v18197_v56 }
 0xdcb   : > { %16793 = vmatmul.mubr.msk.f32.gmra.mrb[36].mxu1 %vm469_vm3, %v18197_v56  ;;  %14490 = vmatprep.mubr.f32.mxu0 %v27033_v19 }
 0xdcc   : > { %14561 = vmatprep.mubr.f32.mxu1 %v27033_v19 }
 0xe91   : > { %v14138_v57 = vpop.f32.mrb[30].mxu0 }
 0xe92   : > { %v14266_v22 = vadd.f32 %v14138_v57, %v27153_v10  ;;  %v14140_v63 = vpop.f32.mrb[31].mxu0  ;;  %v14227_v33 = vpop.f32.mrb[30].mxu1 }
 0xe93   : > { %v14268_v51 = vadd.f32 %v14227_v33, %v27153_v10  ;;  %v14229_v36 = vpop.f32.mrb[31].mxu1 }
 0xe94   : > { %v14282_v38 = vmax.f32 %v14266_v22, 0.0  ;;  %v14269_v22 = vadd.f32 %v14229_v36, %v27153_v10 }
 0xe95   : > { %v14144_v44 = vpop.f32.mrb[32].mxu0  ;;  %v14284_v53 = vmax.f32 %v14268_v51, 0.0 }
 0xe96   : > { %v14270_v46 = vadd.f32 %v14144_v44, %v27154_v28  ;;  %14362 = vrot.lane.b32.xlu0 %v14282_v38, %s18246_s18  ;;  %v14146_v50 = vpop.f32.mrb[33].mxu0  ;;  %v14233_v40 = vpop.f32.mrb[32].mxu1  ;;  %v24625_v25 = vmul.f32 %v14282_v38, %v27155_v21 }
 0xe97   : > { %v14272_v7 = vadd.f32 %v14233_v40, %v27154_v28  ;;  %v14235_v16 = vpop.f32.mrb[33].mxu1  ;;  %v24633_v56 = vmul.f32 %v14284_v53, %v27158_v29  ;;  %v14271_v26 = vadd.f32 %v14146_v50, %v27154_v28  ;;  %v27165_v50 = vld [vmem:[#allocation50_spill] sm:$0xff] }
 0xe98   : > { %v14286_v12 = vmax.f32 %v14270_v46, 0.0  ;;  %27156 = vst [vmem:[#allocation100_spill] sm:$0xff] %v24625_v25 }
 0xe99   : > { %v14288_v3 = vmax.f32 %v14272_v7, 0.0  ;;  %v24616_v34 = vpop.f32.mrb[34].mxu0  ;;  %27159 = vst [vmem:[#allocation103_spill] sm:$0xff] %v24633_v56  ;;  %v14267_v7 = vadd.f32 %v14140_v63, %v27153_v10  ;;  %v24688_v45 = vmax.f32 %v14271_v26, 0.0  ;;  %v14273_v63 = vadd.f32 %v14235_v16, %v27154_v28 }
 0xe9a   : > { %14364 = vrot.lane.b32.xlu1 %v14286_v12, %s18246_s18  ;;  %v24619_v48 = vpop.f32.mrb[35].mxu0  ;;  %14378 = vrot.lane.b32.xlu0 %v14284_v53, %s18246_s18  ;;  %v24622_v52 = vpop.f32.mrb[34].mxu1  ;;  %v24628_v6 = vmul.f32 %v14286_v12, %v27155_v21 }
 0xe9b   : > { %v24630_v41 = vpop.f32.mrb[35].mxu1  ;;  %v24636_v57 = vmul.f32 %v14288_v3, %v27158_v29  ;;  %v24679_v51 = vmax.f32 %v14267_v7, 0.0  ;;  %27163 = vst [vmem:[#allocation96_spill] sm:$0xff] %v24688_v45  ;;  %v24695_v10 = vmax.f32 %v14273_v63, 0.0  ;;  %v27167_v7 = vld [vmem:[#allocation51_spill] sm:$0xff] }
 0xe9c   : > { %27157 = vst [vmem:[#allocation97_spill] sm:$0xff] %v24628_v6  ;;  %v14277_v23 = vadd.f32 %v24630_v41, %v27165_v50 }
 0xe9d   : > { %27160 = vst [vmem:[#allocation63_spill] sm:$0xff] %v24636_v57  ;;  %v24640_v33 = vpop.f32.mrb[36].mxu0  ;;  %27161 = vst [vmem:[#allocation85_spill] sm:$0xff] %v24679_v51 }
 0xe9e   : > { %v24644_v44 = vpop.f32.mrb[37].mxu0  ;;  %14298 = vrot.lane.b32.xlu0 %v14282_v38, %s18248_s19  ;;  %14380 = vrot.lane.b32.xlu1 %v14288_v3, %s18246_s18  ;;  %v24648_v46 = vpop.f32.mrb[36].mxu1  ;;  %27164 = vst [vmem:[#allocation81_spill] sm:$0xff] %v24695_v10  ;;  %v14278_v63 = vadd.f32 %v24640_v33, %v27167_v7 }
 0xe9f   : > { %v24650_v40 = vpop.f32.mrb[37].mxu1 }
 0xea2   : > { %14314 = vrot.lane.b32.xlu0 %v14284_v53, %s18248_s19  ;;  %14300 = vrot.lane.b32.xlu1 %v14286_v12, %s18248_s19 }
 0xea6   : > { %14710 = vrot.lane.b32.xlu0 %v14282_v38, %s18249_s20  ;;  %14316 = vrot.lane.b32.xlu1 %v14288_v3, %s18248_s19 }
 0xeaa   : > { %14726 = vrot.lane.b32.xlu0 %v14284_v53, %s18249_s20  ;;  %14712 = vrot.lane.b32.xlu1 %v14286_v12, %s18249_s20 }
 0xeae   : > { %14920 = vrot.lane.b32.xlu0 %v14282_v38, %s18250_s21  ;;  %14728 = vrot.lane.b32.xlu1 %v14288_v3, %s18249_s20 }
 0xeb2   : > { %14936 = vrot.lane.b32.xlu0 %v14284_v53, %s18250_s21  ;;  %14922 = vrot.lane.b32.xlu1 %v14286_v12, %s18250_s21 }
 0xeb6   : > { %15292 = vrot.lane.b32.xlu0 %v14282_v38, %s18251_s22  ;;  %14938 = vrot.lane.b32.xlu1 %v14288_v3, %s18250_s21 }
 0xeba   : > { %15308 = vrot.lane.b32.xlu0 %v14284_v53, %s18251_s22  ;;  %15294 = vrot.lane.b32.xlu1 %v14286_v12, %s18251_s22 }
 0xebe   : > { %15502 = vrot.lane.b32.xlu0 %v14282_v38, %s18252_s23  ;;  %15310 = vrot.lane.b32.xlu1 %v14288_v3, %s18251_s22 }
 0xec2   : > { %15518 = vrot.lane.b32.xlu0 %v14284_v53, %s18252_s23  ;;  %15504 = vrot.lane.b32.xlu1 %v14286_v12, %s18252_s23 }
 0xec6   : > { %15712 = vrot.lane.b32.xlu0 %v14282_v38, %s18253_s24  ;;  %15520 = vrot.lane.b32.xlu1 %v14288_v3, %s18252_s23 }
 0xeca   : > { %15728 = vrot.lane.b32.xlu0 %v14284_v53, %s18253_s24  ;;  %15714 = vrot.lane.b32.xlu1 %v14286_v12, %s18253_s24 }
 0xece   : > { %15922 = vrot.lane.b32.xlu0 %v14282_v38, %s18254_s25  ;;  %15730 = vrot.lane.b32.xlu1 %v14288_v3, %s18253_s24  ;;  %v24686_v38 = vmax.f32 %v14269_v22, 0.0  ;;  %v14276_v22 = vadd.f32 %v24622_v52, %v27165_v50  ;;  %v14280_v52 = vadd.f32 %v24648_v46, %v27167_v7 }
 0xed0   : > { %27162 = vst [vmem:[#allocation61_spill] sm:$0xff] %v24686_v38  ;;  %v24779_v56 = vmax.f32 %v14276_v22, 0.0  ;;  %v24793_v25 = vmax.f32 %v14280_v52, 0.0 }
 0xed2   : > { %15938 = vrot.lane.b32.xlu0 %v14284_v53, %s18254_s25  ;;  %15924 = vrot.lane.b32.xlu1 %v14286_v12, %s18254_s25  ;;  %v14274_v53 = vadd.f32 %v24616_v34, %v27165_v50  ;;  %27168 = vst [vmem:[#allocation115_spill] sm:$0xff] %v24779_v56  ;;  %27170 = vst [vmem:[#allocation74_spill] sm:$0xff] %v24793_v25 }
 0xed6   : > { %14370 = vrot.lane.b32.xlu0 %v24679_v51, %s18246_s18  ;;  %15940 = vrot.lane.b32.xlu1 %v14288_v3, %s18254_s25  ;;  %v24765_v3 = vmax.f32 %v14274_v53, 0.0  ;;  %v24781_v53 = vmax.f32 %v14278_v63, 0.0 }
 0xed8   : > { %27166 = vst [vmem:[#allocation77_spill] sm:$0xff] %v24765_v3  ;;  %27169 = vst [vmem:[#allocation68_spill] sm:$0xff] %v24781_v53 }
 0xeda   : > { %14386 = vrot.lane.b32.xlu0 %v24686_v38, %s18246_s18  ;;  %14372 = vrot.lane.b32.xlu1 %v24688_v45, %s18246_s18 }
 0xede   : > { %14306 = vrot.lane.b32.xlu0 %v24679_v51, %s18248_s19  ;;  %14388 = vrot.lane.b32.xlu1 %v24695_v10, %s18246_s18 }
 0xee2   : > { %14322 = vrot.lane.b32.xlu0 %v24686_v38, %s18248_s19  ;;  %14308 = vrot.lane.b32.xlu1 %v24688_v45, %s18248_s19 }
 0xee6   : > { %14718 = vrot.lane.b32.xlu0 %v24679_v51, %s18249_s20  ;;  %14324 = vrot.lane.b32.xlu1 %v24695_v10, %s18248_s19 }
 0xeea   : > { %14734 = vrot.lane.b32.xlu0 %v24686_v38, %s18249_s20  ;;  %14720 = vrot.lane.b32.xlu1 %v24688_v45, %s18249_s20 }
 0xeee   : > { %14928 = vrot.lane.b32.xlu0 %v24679_v51, %s18250_s21  ;;  %14736 = vrot.lane.b32.xlu1 %v24695_v10, %s18249_s20 }
 0xef2   : > { %14944 = vrot.lane.b32.xlu0 %v24686_v38, %s18250_s21  ;;  %14930 = vrot.lane.b32.xlu1 %v24688_v45, %s18250_s21 }
 0xef6   : > { %15300 = vrot.lane.b32.xlu0 %v24679_v51, %s18251_s22  ;;  %14946 = vrot.lane.b32.xlu1 %v24695_v10, %s18250_s21 }
 0xefa   : > { %15316 = vrot.lane.b32.xlu0 %v24686_v38, %s18251_s22  ;;  %15302 = vrot.lane.b32.xlu1 %v24688_v45, %s18251_s22 }
 0xefe   : > { %15510 = vrot.lane.b32.xlu0 %v24679_v51, %s18252_s23  ;;  %15318 = vrot.lane.b32.xlu1 %v24695_v10, %s18251_s22 }
 0xf02   : > { %15526 = vrot.lane.b32.xlu0 %v24686_v38, %s18252_s23  ;;  %15512 = vrot.lane.b32.xlu1 %v24688_v45, %s18252_s23 }
 0xf06   : > { %15720 = vrot.lane.b32.xlu0 %v24679_v51, %s18253_s24  ;;  %15528 = vrot.lane.b32.xlu1 %v24695_v10, %s18252_s23 }
 0xf08   : > { %v24741_v26 = vpop.permute.xlu0 %14362 }
 0xf0a   : > { %15736 = vrot.lane.b32.xlu0 %v24686_v38, %s18253_s24  ;;  %15722 = vrot.lane.b32.xlu1 %v24688_v45, %s18253_s24 }
 0xf0c   : > { %v24747_v36 = vpop.permute.xlu0 %14378  ;;  %v24749_v28 = vpop.permute.xlu1 %14364 }
 0xf0e   : > { %15930 = vrot.lane.b32.xlu0 %v24679_v51, %s18254_s25  ;;  %15738 = vrot.lane.b32.xlu1 %v24695_v10, %s18253_s24 }
 0xf10   : > { %v24757_v16 = vpop.permute.xlu0 %14298  ;;  %v24759_v12 = vpop.permute.xlu1 %14380 }
 0xf12   : > { %15946 = vrot.lane.b32.xlu0 %v24686_v38, %s18254_s25  ;;  %15932 = vrot.lane.b32.xlu1 %v24688_v45, %s18254_s25 }
 0xf14   : > { %v24771_v32 = vpop.permute.xlu0 %14314  ;;  %v24773_v34 = vpop.permute.xlu1 %14300 }
 0xf16   : > { %14366 = vrot.lane.b32.xlu0 %v24765_v3, %s18246_s18  ;;  %15948 = vrot.lane.b32.xlu1 %v24695_v10, %s18254_s25 }
 0xf18   : > { %v24785_v57 = vpop.permute.xlu0 %14710  ;;  %v24787_v33 = vpop.permute.xlu1 %14316 }
 0xf1a   : > { %14368 = vrot.lane.b32.xlu1 %v24781_v53, %s18246_s18  ;;  %14382 = vrot.lane.b32.xlu0 %v24779_v56, %s18246_s18 }
 0xf1c   : > { %v24795_v6 = vpop.permute.xlu0 %14726  ;;  %v24797_v22 = vpop.permute.xlu1 %14712 }
 0xf1e   : > { %14302 = vrot.lane.b32.xlu0 %v24765_v3, %s18248_s19  ;;  %14384 = vrot.lane.b32.xlu1 %v24793_v25, %s18246_s18 }
 0xf20   : > { %v24803_v46 = vpop.permute.xlu0 %14920  ;;  %v24805_v63 = vpop.permute.xlu1 %14728 }
 0xf22   : > { %14318 = vrot.lane.b32.xlu0 %v24779_v56, %s18248_s19  ;;  %14304 = vrot.lane.b32.xlu1 %v24781_v53, %s18248_s19 }
 0xf24   : > { %v24811_v52 = vpop.permute.xlu0 %14936  ;;  %v24813_v29 = vpop.permute.xlu1 %14922 }
 0xf26   : > { %14714 = vrot.lane.b32.xlu0 %v24765_v3, %s18249_s20  ;;  %14320 = vrot.lane.b32.xlu1 %v24793_v25, %s18248_s19 }
 0xf28   : > { %v24819_v21 = vpop.permute.xlu0 %15292  ;;  %v24821_v38 = vpop.permute.xlu1 %14938 }
 0xf2a   : > { %14730 = vrot.lane.b32.xlu0 %v24779_v56, %s18249_s20  ;;  %14716 = vrot.lane.b32.xlu1 %v24781_v53, %s18249_s20 }
 0xf2c   : > { %v24827_v51 = vpop.permute.xlu0 %15308  ;;  %v24829_v10 = vpop.permute.xlu1 %15294 }
 0xf2e   : > { %14924 = vrot.lane.b32.xlu0 %v24765_v3, %s18250_s21  ;;  %14732 = vrot.lane.b32.xlu1 %v24793_v25, %s18249_s20 }
 0xf30   : > { %v24835_v45 = vpop.permute.xlu0 %15502  ;;  %v24837_v19 = vpop.permute.xlu1 %15310 }
 0xf32   : > { %14940 = vrot.lane.b32.xlu0 %v24779_v56, %s18250_s21  ;;  %14926 = vrot.lane.b32.xlu1 %v24781_v53, %s18250_s21 }
 0xf34   : > { %v24843_v42 = vpop.permute.xlu0 %15518  ;;  %v24845_v11 = vpop.permute.xlu1 %15504 }
 0xf35   : > { %27171 = vst [vmem:[#allocation67_spill] sm:$0xff] %v24845_v11 }
 0xf36   : > { %15296 = vrot.lane.b32.xlu0 %v24765_v3, %s18251_s22  ;;  %14942 = vrot.lane.b32.xlu1 %v24793_v25, %s18250_s21 }
 0xf38   : > { %v24851_v14 = vpop.permute.xlu0 %15712  ;;  %v24853_v59 = vpop.permute.xlu1 %15520 }
 0xf39   : > { %27172 = vst [vmem:[#allocation111_spill] sm:$0xff] %v24851_v14  ;;  %27173 = vst [vmem:[#allocation52_spill] sm:$0xff] %v24853_v59 }
 0xf3a   : > { %15312 = vrot.lane.b32.xlu0 %v24779_v56, %s18251_s22  ;;  %15298 = vrot.lane.b32.xlu1 %v24781_v53, %s18251_s22 }
 0xf3c   : > { %v24859_v35 = vpop.permute.xlu0 %15728  ;;  %v24861_v39 = vpop.permute.xlu1 %15714 }
 0xf3d   : > { %27174 = vst [vmem:[#allocation90_spill] sm:$0xff] %v24859_v35  ;;  %27175 = vst [vmem:[#allocation58_spill] sm:$0xff] %v24861_v39 }
 0xf3e   : > { %15506 = vrot.lane.b32.xlu0 %v24765_v3, %s18252_s23  ;;  %15314 = vrot.lane.b32.xlu1 %v24793_v25, %s18251_s22 }
 0xf40   : > { %v24867_v30 = vpop.permute.xlu0 %15922  ;;  %v24869_v49 = vpop.permute.xlu1 %15730 }
 0xf41   : > { %27176 = vst [vmem:[#allocation121_spill] sm:$0xff] %v24867_v30  ;;  %27177 = vst [vmem:[#allocation86_spill] sm:$0xff] %v24869_v49  ;;  %v14275_v30 = vadd.f32 %v24619_v48, %v27165_v50 }
 0xf42   : > { %15522 = vrot.lane.b32.xlu0 %v24779_v56, %s18252_s23  ;;  %15508 = vrot.lane.b32.xlu1 %v24781_v53, %s18252_s23 }
 0xf44   : > { %v24875_v14 = vpop.permute.xlu0 %15938  ;;  %v24877_v35 = vpop.permute.xlu1 %15924 }
 0xf45   : > { %27178 = vst [vmem:[#allocation91_spill] sm:$0xff] %v24875_v14  ;;  %27179 = vst [vmem:[#allocation110_spill] sm:$0xff] %v24877_v35  ;;  %v24894_v14 = vmax.f32 %v14275_v30, 0.0 }
 0xf46   : > { %15716 = vrot.lane.b32.xlu0 %v24765_v3, %s18253_s24  ;;  %15524 = vrot.lane.b32.xlu1 %v24793_v25, %s18252_s23 }
 0xf47   : > { %27181 = vst [vmem:[#allocation123_spill] sm:$0xff] %v24894_v14 }
 0xf48   : > { %v14371_v39 = vpop.permute.xlu0 %14370  ;;  %v24885_v49 = vpop.permute.xlu1 %15940 }
 0xf49   : > { %27180 = vst [vmem:[#allocation83_spill] sm:$0xff] %v24885_v49  ;;  %v14402_v35 = vsel %vm439_vm0, %v24741_v26, %v14371_v39  ;;  %v14279_v49 = vadd.f32 %v24644_v44, %v27167_v7  ;;  %v24915_v44 = vmax.f32 %v14277_v23, 0.0 }
 0xf4a   : > { %15732 = vrot.lane.b32.xlu0 %v24779_v56, %s18253_s24  ;;  %15718 = vrot.lane.b32.xlu1 %v24781_v53, %s18253_s24  ;;  %v14411_v54 = vmul.f32 %v14402_v35, %v27135_v8  ;;  %v14281_v35 = vadd.f32 %v24650_v40, %v27167_v7 }
 0xf4b   : > { %27182 = vst [vmem:[#allocation109_spill] sm:$0xff] %v24915_v44  ;;  %v24922_v59 = vmax.f32 %v14279_v49, 0.0 }
 0xf4c   : > { %v14387_v43 = vpop.permute.xlu0 %14386  ;;  %v14373_v48 = vpop.permute.xlu1 %14372 }
 0xf4d   : > { %v14403_v56 = vsel %vm439_vm0, %v24749_v28, %v14373_v48  ;;  %v14394_v30 = vsel %vm439_vm0, %v24747_v36, %v14387_v43  ;;  %v14406_v41 = vsel %vm439_vm0, %v14387_v43, %v24741_v26  ;;  %27183 = vst [vmem:[#allocation92_spill] sm:$0xff] %v24922_v59  ;;  %v14398_v43 = vsel %vm439_vm0, %v14371_v39, %v24747_v36 }
 0xf4e   : > { %v14415_v18 = vmul.f32 %v14403_v56, %v27135_v8  ;;  %14374 = vrot.lane.b32.xlu0 %v24894_v14, %s18246_s18  ;;  %15734 = vrot.lane.b32.xlu1 %v24793_v25, %s18253_s24  ;;  %v14399_v56 = vsel %vm439_vm0, %v14373_v48, %v24759_v12  ;;  %v14410_v26 = vmul.f32 %v14406_v41, %v27136_v47 }
 0xf4f   : > { %v14413_v7 = vmul.f32 %v14394_v30, %v27137_v37  ;;  %v14416_v49 = vmul.f32 %v14399_v56, %v27138_v20  ;;  %v24948_v30 = vmax.f32 %v14281_v35, 0.0  ;;  %v14412_v41 = vmul.f32 %v14398_v43, %v27138_v20 }
 0xf50   : > { %v14307_v50 = vpop.permute.xlu0 %14306  ;;  %v14389_v8 = vpop.permute.xlu1 %14388  ;;  %v17247_v11 = vpack.c.bf16 %v14415_v18, %v14411_v54 }
 0xf51   : > { %v14395_v23 = vsel %vm439_vm0, %v24759_v12, %v14389_v8  ;;  %v14407_v40 = vsel %vm439_vm0, %v14389_v8, %v24749_v28  ;;  %v14334_v39 = vsel %vm401_vm1, %v14307_v50, %v24771_v32  ;;  %v14338_v8 = vsel %vm401_vm1, %v24757_v16, %v14307_v50  ;;  %27184 = vst [vmem:[#allocation48_spill] sm:$0xff] %v24948_v30 }
 0xf52   : > { %v14414_v18 = vmul.f32 %v14407_v40, %v27136_v47  ;;  %v14417_v54 = vmul.f32 %v14395_v23, %v27137_v37  ;;  %14390 = vrot.lane.b32.xlu0 %v24915_v44, %s18246_s18  ;;  %14376 = vrot.lane.b32.xlu1 %v24922_v59, %s18246_s18  ;;  %v24958_v23 = vmul.f32 %v14338_v8, %v26680_v17 }
 0xf53   : > { %17248 = vmatprep.subr.bf16.mxu0 %v17247_v11  ;;  %v24961_v11 = vmul.f32 %v14334_v39, %v27141_v60  ;;  %v17257_v43 = vpack.c.bf16 %v14416_v49, %v14412_v41 }
 0xf54   : > { %v17249_v36 = vpack.c.bf16 %v14414_v18, %v14410_v26  ;;  %v14323_v28 = vpop.permute.xlu0 %14322  ;;  %v14309_v12 = vpop.permute.xlu1 %14308  ;;  %v17255_v48 = vpack.c.bf16 %v14417_v54, %v14413_v7 }
 0xf55   : > { %v14335_v56 = vsel %vm401_vm1, %v14309_v12, %v24787_v33  ;;  %v14339_v50 = vsel %vm401_vm1, %v24773_v34, %v14309_v12  ;;  %v14330_v26 = vsel %vm401_vm1, %v24771_v32, %v14323_v28  ;;  %v14342_v7 = vsel %vm401_vm1, %v14323_v28, %v24757_v16 }
 0xf56   : > { %v24964_v40 = vmul.f32 %v14339_v50, %v26680_v17  ;;  %v24967_v35 = vmul.f32 %v14335_v56, %v27141_v60  ;;  %14310 = vrot.lane.b32.xlu0 %v24894_v14, %s18248_s19  ;;  %14392 = vrot.lane.b32.xlu1 %v24948_v30, %s18246_s18  ;;  %v24990_v8 = vmul.f32 %v14342_v7, %v27139_v24  ;;  %s12310_s18 = sadd.s32 4, %s20387_s15 }
 0xf57   : > { %17250 = vmatpush1.bf16.msra.mxu0 %v17249_v36  ;;  %17256 = vmatprep.subr.bf16.mxu1 %v17255_v48  ;;  %v24993_v36 = vmul.f32 %v14330_v26, %v27140_v5 }
 0xf58   : > { %v14719_v54 = vpop.permute.xlu0 %14718  ;;  %v14325_v39 = vpop.permute.xlu1 %14324  ;;  %17258 = vmatpush1.bf16.msra.mxu1 %v17257_v43 }
 0xf59   : > { %v14331_v32 = vsel %vm401_vm1, %v24787_v33, %v14325_v39  ;;  %v14343_v16 = vsel %vm401_vm1, %v14325_v39, %v24773_v34  ;;  %v14746_v33 = vsel %vm883_vm4, %v14719_v54, %v24795_v6  ;;  %v14750_v34 = vsel %vm883_vm4, %v24785_v57, %v14719_v54 }
 0xf5a   : > { %v24996_v28 = vmul.f32 %v14343_v16, %v27139_v24  ;;  %v24999_v12 = vmul.f32 %v14331_v32, %v27140_v5  ;;  %14326 = vrot.lane.b32.xlu0 %v24915_v44, %s18248_s19  ;;  %14312 = vrot.lane.b32.xlu1 %v24922_v59, %s18248_s19  ;;  %v25022_v7 = vmul.f32 %v14750_v34, %v27142_v1 }
 0xf5b   : > { %v25025_v54 = vmul.f32 %v14746_v33, %v27145_v2 }
 0xf5c   : > { %v14735_v41 = vpop.permute.xlu0 %14734  ;;  %v14721_v56 = vpop.permute.xlu1 %14720 }
 0xf5d   : > { %v14747_v43 = vsel %vm883_vm4, %v14721_v56, %v24805_v63  ;;  %v14751_v26 = vsel %vm883_vm4, %v24797_v22, %v14721_v56  ;;  %v14742_v16 = vsel %vm883_vm4, %v24795_v6, %v14735_v41  ;;  %v14754_v34 = vsel %vm883_vm4, %v14735_v41, %v24785_v57 }
 0xf5e   : > { %v25028_v39 = vmul.f32 %v14751_v26, %v27142_v1  ;;  %v25031_v32 = vmul.f32 %v14747_v43, %v27145_v2  ;;  %14722 = vrot.lane.b32.xlu0 %v24894_v14, %s18249_s20  ;;  %14328 = vrot.lane.b32.xlu1 %v24948_v30, %s18248_s19  ;;  %v25054_v57 = vmul.f32 %v14754_v34, %v27143_v13  ;;  %s12311_s19 = sld [smem:[#allocation4 + %s12310_s18]] }
 0xf5f   : > { %v25057_v41 = vmul.f32 %v14742_v16, %v27144_v31 }
 0xf60   : > { %v14929_v56 = vpop.permute.xlu0 %14928  ;;  %v14737_v43 = vpop.permute.xlu1 %14736 }
 0xf61   : > { %v14743_v18 = vsel %vm883_vm4, %v24805_v63, %v14737_v43  ;;  %v14755_v6 = vsel %vm883_vm4, %v14737_v43, %v24797_v22  ;;  %v14956_v63 = vsel %vm1139_vm5, %v14929_v56, %v24811_v52  ;;  %v14960_v22 = vsel %vm1139_vm5, %v24803_v46, %v14929_v56 }
 0xf62   : > { %v25060_v33 = vmul.f32 %v14755_v6, %v27143_v13  ;;  %v25063_v48 = vmul.f32 %v14743_v18, %v27144_v31  ;;  %14738 = vrot.lane.b32.xlu0 %v24915_v44, %s18249_s20  ;;  %14724 = vrot.lane.b32.xlu1 %v24922_v59, %s18249_s20  ;;  %v25086_v56 = vmul.f32 %v14960_v22, %v27146_v27 }
 0xf63   : > { %v25089_v50 = vmul.f32 %v14956_v63, %v27151_v55 }
 0xf64   : > { %v14945_v34 = vpop.permute.xlu0 %14944  ;;  %v14931_v18 = vpop.permute.xlu1 %14930 }
 0xf65   : > { %v14957_v6 = vsel %vm1139_vm5, %v14931_v18, %v24821_v38  ;;  %v14961_v26 = vsel %vm1139_vm5, %v24813_v29, %v14931_v18  ;;  %27185 = vst [vmem:[#allocation87_spill] sm:$0xff] %v25089_v50  ;;  %v14952_v43 = vsel %vm1139_vm5, %v24811_v52, %v14945_v34  ;;  %v14964_v22 = vsel %vm1139_vm5, %v14945_v34, %v24803_v46 }
 0xf66   : > { %v25092_v16 = vmul.f32 %v14961_v26, %v27146_v27  ;;  %v25095_v49 = vmul.f32 %v14957_v6, %v27151_v55  ;;  %14932 = vrot.lane.b32.xlu0 %v24894_v14, %s18250_s21  ;;  %14740 = vrot.lane.b32.xlu1 %v24948_v30, %s18249_s20  ;;  %v25118_v46 = vmul.f32 %v14964_v22, %v27150_v58  ;;  %s12312_s20 = sld [smem:[#allocation4 + %s8455_s16]] }
 0xf67   : > { %v25121_v34 = vmul.f32 %v14952_v43, %v27147_v0 }
 0xf68   : > { %27186 = vst [vmem:[#allocation53_spill] sm:$0xff] %v25095_v49  ;;  %v15301_v63 = vpop.permute.xlu0 %15300  ;;  %v14947_v18 = vpop.permute.xlu1 %14946  ;;  %27187 = vst [vmem:[#allocation62_spill] sm:$0xff] %v25118_v46 }
 0xf69   : > { %v14953_v55 = vsel %vm1139_vm5, %v24821_v38, %v14947_v18  ;;  %v14965_v52 = vsel %vm1139_vm5, %v14947_v18, %v24813_v29  ;;  %27188 = vst [vmem:[#allocation55_spill] sm:$0xff] %v25121_v34  ;;  %v15328_v38 = vsel %vm1636_vm6, %v15301_v63, %v24827_v51  ;;  %v15332_v29 = vsel %vm1636_vm6, %v24819_v21, %v15301_v63 }
 0xf6a   : > { %v25124_v26 = vmul.f32 %v14965_v52, %v27150_v58  ;;  %v25127_v50 = vmul.f32 %v14953_v55, %v27147_v0  ;;  %14948 = vrot.lane.b32.xlu0 %v24915_v44, %s18250_s21  ;;  %14934 = vrot.lane.b32.xlu1 %v24922_v59, %s18250_s21  ;;  %v25150_v63 = vmul.f32 %v15332_v29, %v27017_v61 }
 0xf6b   : > { %v25153_v49 = vmul.f32 %v15328_v38, %v27152_v4 }
 0xf6c   : > { %27189 = vst [vmem:[#allocation116_spill] sm:$0xff] %v25124_v26  ;;  %27190 = vst [vmem:[#allocation49_spill] sm:$0xff] %v25127_v50  ;;  %v15317_v22 = vpop.permute.xlu0 %15316  ;;  %v15303_v55 = vpop.permute.xlu1 %15302 }
 0xf6d   : > { %v15329_v52 = vsel %vm1636_vm6, %v15303_v55, %v24837_v19  ;;  %v15333_v6 = vsel %vm1636_vm6, %v24829_v10, %v15303_v55  ;;  %27191 = vst [vmem:[#allocation124_spill] sm:$0xff] %v25150_v63  ;;  %27192 = vst [vmem:[#allocation70_spill] sm:$0xff] %v25153_v49  ;;  %v15324_v18 = vsel %vm1636_vm6, %v24827_v51, %v15317_v22  ;;  %v27203_v49 = vld [vmem:[#allocation32_spill] sm:$0xff] }
 0xf6e   : > { %v25156_v43 = vmul.f32 %v15333_v6, %v27017_v61  ;;  %v25159_v46 = vmul.f32 %v15329_v52, %v27152_v4  ;;  %15926 = vrot.lane.b32.xlu0 %v24765_v3, %s18254_s25  ;;  %v15336_v29 = vsel %vm1636_vm6, %v15317_v22, %v24819_v21  ;;  %14950 = vrot.lane.b32.xlu1 %v24948_v30, %s18250_s21  ;;  %s12313_s21 = ssub.f32 %s12311_s19, %s12312_s20 }
 0xf6f   : > { %v25182_v21 = vmul.f32 %v15324_v18, %v27031_v15  ;;  %v25185_v22 = vmul.f32 %v15336_v29, %v27032_v62 }
 0xf70   : > { %27193 = vst [vmem:[#allocation71_spill] sm:$0xff] %v25156_v43  ;;  %27194 = vst [vmem:[#allocation66_spill] sm:$0xff] %v25159_v46  ;;  %v15511_v38 = vpop.permute.xlu0 %15510  ;;  %v15319_v55 = vpop.permute.xlu1 %15318  ;;  %v27200_v43 = vld [vmem:[#allocation67_spill] sm:$0xff] }
 0xf71   : > { %v15325_v61 = vsel %vm1636_vm6, %v24837_v19, %v15319_v55  ;;  %v15337_v51 = vsel %vm1636_vm6, %v15319_v55, %v24829_v10  ;;  %27195 = vst [vmem:[#allocation82_spill] sm:$0xff] %v25182_v21  ;;  %27196 = vst [vmem:[#allocation57_spill] sm:$0xff] %v25185_v22  ;;  %v15538_v19 = vsel %vm1892_vm7, %v15511_v38, %v24843_v42  ;;  %v27219_v22 = vld [vmem:[#allocation36_spill] sm:$0xff] }
 0xf72   : > { %v25188_v6 = vmul.f32 %v15325_v61, %v27031_v15  ;;  %v25191_v63 = vmul.f32 %v15337_v51, %v27032_v62  ;;  %15304 = vrot.lane.b32.xlu0 %v24894_v14, %s18251_s22  ;;  %v15542_v10 = vsel %vm1892_vm7, %v24835_v45, %v15511_v38  ;;  %15928 = vrot.lane.b32.xlu1 %v24781_v53, %s18254_s25  ;;  %v27199_v51 = vld [vmem:[#allocation52_spill] sm:$0xff]  ;;  %v27201_v38 = vld [vmem:[#allocation34_spill] sm:$0xff] }
 0xf73   : > { %v25214_v15 = vmul.f32 %v15542_v10, %v27201_v38  ;;  %v25217_v46 = vmul.f32 %v15538_v19, %v27203_v49 }
 0xf74   : > { %27197 = vst [vmem:[#allocation119_spill] sm:$0xff] %v25188_v6  ;;  %27198 = vst [vmem:[#allocation76_spill] sm:$0xff] %v25191_v63  ;;  %v15527_v18 = vpop.permute.xlu0 %15526  ;;  %v15513_v29 = vpop.permute.xlu1 %15512 }
 0xf75   : > { %v15539_v52 = vsel %vm1892_vm7, %v15513_v29, %v27199_v51  ;;  %v15543_v62 = vsel %vm1892_vm7, %v27200_v43, %v15513_v29  ;;  %27202 = vst [vmem:[#allocation89_spill] sm:$0xff] %v25214_v15  ;;  %27204 = vst [vmem:[#allocation75_spill] sm:$0xff] %v25217_v46  ;;  %v15534_v55 = vsel %vm1892_vm7, %v24843_v42, %v15527_v18 }
 0xf76   : > { %v25220_v61 = vmul.f32 %v15543_v62, %v27201_v38  ;;  %v25223_v21 = vmul.f32 %v15539_v52, %v27203_v49  ;;  %15320 = vrot.lane.b32.xlu0 %v24915_v44, %s18251_s22  ;;  %v15546_v10 = vsel %vm1892_vm7, %v15527_v18, %v24835_v45  ;;  %15944 = vrot.lane.b32.xlu1 %v24793_v25, %s18254_s25  ;;  %v27207_v45 = vld [vmem:[#allocation35_spill] sm:$0xff]  ;;  %v27209_v49 = vld [vmem:[#allocation33_spill] sm:$0xff] }
 0xf77   : > { %v25246_v18 = vmul.f32 %v15534_v55, %v27207_v45  ;;  %v25249_v6 = vmul.f32 %v15546_v10, %v27209_v49 }
 0xf78   : > { %27205 = vst [vmem:[#allocation65_spill] sm:$0xff] %v25220_v61  ;;  %27206 = vst [vmem:[#allocation108_spill] sm:$0xff] %v25223_v21  ;;  %v15721_v19 = vpop.permute.xlu0 %15720  ;;  %v15529_v52 = vpop.permute.xlu1 %15528  ;;  %v27215_v61 = vld [vmem:[#allocation86_spill] sm:$0xff] }
 0xf79   : > { %v15535_v38 = vsel %vm1892_vm7, %v27199_v51, %v15529_v52  ;;  %v15547_v42 = vsel %vm1892_vm7, %v15529_v52, %v27200_v43  ;;  %27208 = vst [vmem:[#allocation114_spill] sm:$0xff] %v25246_v18  ;;  %27210 = vst [vmem:[#allocation78_spill] sm:$0xff] %v25249_v6  ;;  %v27213_v51 = vld [vmem:[#allocation90_spill] sm:$0xff]  ;;  %v27214_v43 = vld [vmem:[#allocation111_spill] sm:$0xff] }
 0xf7a   : > { %v25252_v62 = vmul.f32 %v15535_v38, %v27207_v45  ;;  %v25255_v15 = vmul.f32 %v15547_v42, %v27209_v49  ;;  %15514 = vrot.lane.b32.xlu0 %v24894_v14, %s18252_s23  ;;  %v15748_v29 = vsel %vm2148_vm8, %v15721_v19, %v27213_v51  ;;  %v15752_v55 = vsel %vm2148_vm8, %v27214_v43, %v15721_v19  ;;  %v27216_v45 = vld [vmem:[#allocation58_spill] sm:$0xff] }
 0xf7b   : > { %15306 = vrot.lane.b32.xlu1 %v24922_v59, %s18251_s22  ;;  %v27217_v19 = vld [vmem:[#allocation38_spill] sm:$0xff]  ;;  %v25281_v63 = vmul.f32 %v15748_v29, %v27219_v22 }
 0xf7c   : > { %27211 = vst [vmem:[#allocation106_spill] sm:$0xff] %v25252_v62  ;;  %27212 = vst [vmem:[#allocation101_spill] sm:$0xff] %v25255_v15  ;;  %v15737_v10 = vpop.permute.xlu0 %15736  ;;  %v15723_v52 = vpop.permute.xlu1 %15722  ;;  %v25278_v21 = vmul.f32 %v15752_v55, %v27217_v19 }
 0xf7d   : > { %v15749_v49 = vsel %vm2148_vm8, %v15723_v52, %v27215_v61  ;;  %v15753_v46 = vsel %vm2148_vm8, %v27216_v45, %v15723_v52  ;;  %27220 = vst [vmem:[#allocation79_spill] sm:$0xff] %v25281_v63  ;;  %v15744_v42 = vsel %vm2148_vm8, %v27213_v51, %v15737_v10  ;;  %v15756_v55 = vsel %vm2148_vm8, %v15737_v10, %v27214_v43  ;;  %v27224_v10 = vld [vmem:[#allocation39_spill] sm:$0xff] }
 0xf7e   : > { %27218 = vst [vmem:[#allocation118_spill] sm:$0xff] %v25278_v21  ;;  %v25284_v38 = vmul.f32 %v15753_v46, %v27217_v19  ;;  %v25287_v18 = vmul.f32 %v15749_v49, %v27219_v22  ;;  %15530 = vrot.lane.b32.xlu0 %v24915_v44, %s18252_s23  ;;  %v27223_v19 = vld [vmem:[#allocation91_spill] sm:$0xff]  ;;  %v25313_v62 = vmul.f32 %v15744_v42, %v27224_v10  ;;  %v27226_v46 = vld [vmem:[#allocation37_spill] sm:$0xff] }
 0xf7f   : > { %15322 = vrot.lane.b32.xlu1 %v24948_v30, %s18251_s22  ;;  %v25316_v21 = vmul.f32 %v15756_v55, %v27226_v46 }
 0xf80   : > { %27221 = vst [vmem:[#allocation104_spill] sm:$0xff] %v25284_v38  ;;  %27222 = vst [vmem:[#allocation107_spill] sm:$0xff] %v25287_v18  ;;  %v15931_v29 = vpop.permute.xlu0 %15930  ;;  %v15739_v49 = vpop.permute.xlu1 %15738  ;;  %v27233_v18 = vld [vmem:[#allocation42_spill] sm:$0xff] }
 0xf81   : > { %v15958_v22 = vsel %vm2404_vm9, %v15931_v29, %v27223_v19  ;;  %v15745_v51 = vsel %vm2148_vm8, %v27215_v61, %v15739_v49  ;;  %v15757_v43 = vsel %vm2148_vm8, %v15739_v49, %v27216_v45  ;;  %27225 = vst [vmem:[#allocation59_spill] sm:$0xff] %v25313_v62  ;;  %27227 = vst [vmem:[#allocation113_spill] sm:$0xff] %v25316_v21  ;;  %v27230_v61 = vld [vmem:[#allocation121_spill] sm:$0xff]  ;;  %v27235_v45 = vld [vmem:[#allocation40_spill] sm:$0xff] }
 0xf82   : > { %v25319_v52 = vmul.f32 %v15745_v51, %v27224_v10  ;;  %v25322_v38 = vmul.f32 %v15757_v43, %v27226_v46  ;;  %15724 = vrot.lane.b32.xlu0 %v24894_v14, %s18253_s24  ;;  %v15962_v63 = vsel %vm2404_vm9, %v27230_v61, %v15931_v29  ;;  %v27231_v43 = vld [vmem:[#allocation83_spill] sm:$0xff]  ;;  %v27232_v29 = vld [vmem:[#allocation110_spill] sm:$0xff]  ;;  %v25348_v62 = vmul.f32 %v15958_v22, %v27235_v45 }
 0xf83   : > { %15516 = vrot.lane.b32.xlu1 %v24922_v59, %s18252_s23  ;;  %v25345_v6 = vmul.f32 %v15962_v63, %v27233_v18 }
 0xf84   : > { %27228 = vst [vmem:[#allocation94_spill] sm:$0xff] %v25319_v52  ;;  %27229 = vst [vmem:[#allocation120_spill] sm:$0xff] %v25322_v38  ;;  %v15947_v42 = vpop.permute.xlu0 %15946  ;;  %v15933_v55 = vpop.permute.xlu1 %15932 }
 0xf85   : > { %v15954_v51 = vsel %vm2404_vm9, %v27223_v19, %v15947_v42  ;;  %v15959_v46 = vsel %vm2404_vm9, %v15933_v55, %v27231_v43  ;;  %v15963_v10 = vsel %vm2404_vm9, %v27232_v29, %v15933_v55  ;;  %27234 = vst [vmem:[#allocation72_spill] sm:$0xff] %v25345_v6  ;;  %27236 = vst [vmem:[#allocation60_spill] sm:$0xff] %v25348_v62 }
 0xf86   : > { %v25351_v49 = vmul.f32 %v15963_v10, %v27233_v18  ;;  %v25354_v52 = vmul.f32 %v15959_v46, %v27235_v45  ;;  %15740 = vrot.lane.b32.xlu0 %v24915_v44, %s18253_s24  ;;  %v15966_v19 = vsel %vm2404_vm9, %v15947_v42, %v27230_v61  ;;  %v27239_v61 = vld [vmem:[#allocation43_spill] sm:$0xff]  ;;  %v27241_v45 = vld [vmem:[#allocation41_spill] sm:$0xff] }
 0xf87   : > { %15532 = vrot.lane.b32.xlu1 %v24948_v30, %s18252_s23  ;;  %v25374_v42 = vmul.f32 %v15954_v51, %v27239_v61  ;;  %v25377_v21 = vmul.f32 %v15966_v19, %v27241_v45 }
 0xf88   : > { %27237 = vst [vmem:[#allocation84_spill] sm:$0xff] %v25351_v49  ;;  %27238 = vst [vmem:[#allocation102_spill] sm:$0xff] %v25354_v52  ;;  %v14367_v22 = vpop.permute.xlu0 %14366  ;;  %v15949_v55 = vpop.permute.xlu1 %15948 }
 0xf89   : > { %v15955_v46 = vsel %vm2404_vm9, %v27231_v43, %v15949_v55  ;;  %v15967_v18 = vsel %vm2404_vm9, %v15949_v55, %v27232_v29  ;;  %27240 = vst [vmem:[#allocation64_spill] sm:$0xff] %v25374_v42  ;;  %27242 = vst [vmem:[#allocation98_spill] sm:$0xff] %v25377_v21  ;;  %v27245_v55 = vld [vmem:[#allocation115_spill] sm:$0xff] }
 0xf8a   : > { %v25380_v63 = vmul.f32 %v15955_v46, %v27239_v61  ;;  %v25383_v6 = vmul.f32 %v15967_v18, %v27241_v45  ;;  %15934 = vrot.lane.b32.xlu0 %v24894_v14, %s18254_s25 }
 0xf8b   : > { %15726 = vrot.lane.b32.xlu1 %v24922_v59, %s18253_s24 }
 0xf8c   : > { %27243 = vst [vmem:[#allocation95_spill] sm:$0xff] %v25380_v63  ;;  %27244 = vst [vmem:[#allocation73_spill] sm:$0xff] %v25383_v6  ;;  %v14383_v51 = vpop.permute.xlu0 %14382  ;;  %v14369_v29 = vpop.permute.xlu1 %14368 }
 0xf8e   : > { %15942 = vrot.lane.b32.xlu0 %v27245_v55, %s18254_s25 }
 0xf8f   : > { %15742 = vrot.lane.b32.xlu1 %v24948_v30, %s18253_s24 }
 0xf90   : > { %v14303_v18 = vpop.permute.xlu0 %14302  ;;  %v14385_v46 = vpop.permute.xlu1 %14384 }
 0xf92   : > { %15950 = vrot.lane.b32.xlu0 %v24915_v44, %s18254_s25 }
 0xf93   : > { %15936 = vrot.lane.b32.xlu1 %v24922_v59, %s18254_s25  ;;  %v27376_v9 = vld [vmem:[#allocation95_spill] sm:$0xff] }
 0xf94   : > { %v25401_v43 = vpop.permute.xlu0 %14318  ;;  %v25403_v10 = vpop.permute.xlu1 %14304 }
 0xf97   : > { %15952 = vrot.lane.b32.xlu1 %v24948_v30, %s18254_s25 }
 0xf98   : > { %v25407_v19 = vpop.permute.xlu0 %14714  ;;  %v25409_v42 = vpop.permute.xlu1 %14320 }
 0xf9c   : > { %v25411_v63 = vpop.permute.xlu0 %14730  ;;  %v25413_v49 = vpop.permute.xlu1 %14716 }
 0xfa0   : > { %v25415_v45 = vpop.permute.xlu0 %14924  ;;  %v25417_v61 = vpop.permute.xlu1 %14732 }
 0xfa4   : > { %v25419_v21 = vpop.permute.xlu0 %14940  ;;  %v25421_v6 = vpop.permute.xlu1 %14926 }
 0xfa8   : > { %v25423_v62 = vpop.permute.xlu0 %15296  ;;  %v25425_v52 = vpop.permute.xlu1 %14942 }
 0xfa9   : > { %27246 = vst [vmem:[#allocation93_spill] sm:$0xff] %v25423_v62 }
 0xfac   : > { %v25427_v38 = vpop.permute.xlu0 %15312  ;;  %v25429_v15 = vpop.permute.xlu1 %15298 }
 0xfad   : > { %27247 = vst [vmem:[#allocation54_spill] sm:$0xff] %v25427_v38  ;;  %27248 = vst [vmem:[#allocation56_spill] sm:$0xff] %v25429_v15 }
 0xfb0   : > { %v25431_v4 = vpop.permute.xlu0 %15506  ;;  %v25433_v55 = vpop.permute.xlu1 %15314 }
 0xfb1   : > { %27249 = vst [vmem:[#allocation112_spill] sm:$0xff] %v25431_v4  ;;  %27250 = vst [vmem:[#allocation117_spill] sm:$0xff] %v25433_v55 }
 0xfb4   : > { %v25435_v3 = vpop.permute.xlu0 %15522  ;;  %v25437_v25 = vpop.permute.xlu1 %15508 }
 0xfb5   : > { %27251 = vst [vmem:[#allocation80_spill] sm:$0xff] %v25435_v3  ;;  %27252 = vst [vmem:[#allocation105_spill] sm:$0xff] %v25437_v25  ;;  %v27258_v25 = vld [vmem:[#allocation6_spill] sm:$0xff] }
 0xfb8   : > { %v25439_v53 = vpop.permute.xlu0 %15716  ;;  %v25441_v44 = vpop.permute.xlu1 %15524 }
 0xfb9   : > { %27253 = vst [vmem:[#allocation10_spill] sm:$0xff] %v25439_v53  ;;  %27254 = vst [vmem:[#allocation122_spill] sm:$0xff] %v25441_v44 }
 0xfbc   : > { %v25443_v14 = vpop.permute.xlu0 %15732  ;;  %v25445_v62 = vpop.permute.xlu1 %15718 }
 0xfbd   : > { %27255 = vst [vmem:[#allocation47_spill] sm:$0xff] %v25443_v14  ;;  %27256 = vst [vmem:[#allocation88_spill] sm:$0xff] %v25445_v62 }
 0xfc0   : > { %v14375_v30 = vpop.permute.xlu0 %14374  ;;  %v25447_v38 = vpop.permute.xlu1 %15734 }
 0xfc1   : > { %27257 = vst [vmem:[#allocation8_spill] sm:$0xff] %v25447_v38  ;;  %v14404_v4 = vsel %vm439_vm0, %v14367_v22, %v14375_v30  ;;  %v14400_v26 = vsel %vm439_vm0, %v14375_v30, %v14383_v51 }
 0xfc2   : > { %v14419_v59 = vmul.f32 %v14404_v4, %v27258_v25 }
 0xfc4   : > { %v14391_v15 = vpop.permute.xlu0 %14390  ;;  %v14377_v55 = vpop.permute.xlu1 %14376 }
 0xfc5   : > { %v14405_v3 = vsel %vm439_vm0, %v14369_v29, %v14377_v55  ;;  %v14408_v53 = vsel %vm439_vm0, %v14391_v15, %v14367_v22  ;;  %v14401_v14 = vsel %vm439_vm0, %v14377_v55, %v14385_v46  ;;  %v14396_v38 = vsel %vm439_vm0, %v14383_v51, %v14391_v15 }
 0xfc6   : > { %v14423_v62 = vmul.f32 %v14405_v3, %v27258_v25  ;;  %v14418_v34 = vmul.f32 %v14408_v53, %v27136_v47  ;;  %v14424_v4 = vmul.f32 %v14401_v14, %v27138_v20  ;;  %v14421_v25 = vmul.f32 %v14396_v38, %v27137_v37 }
 0xfc8   : > { %v14311_v44 = vpop.permute.xlu0 %14310  ;;  %v14393_v0 = vpop.permute.xlu1 %14392  ;;  %v17251_v58 = vpack.c.bf16 %v14423_v62, %v14419_v59  ;;  %v14420_v59 = vmul.f32 %v14400_v26, %v27138_v20 }
 0xfc9   : > { %v14397_v22 = vsel %vm439_vm0, %v14385_v46, %v14393_v0  ;;  %v14409_v55 = vsel %vm439_vm0, %v14393_v0, %v14369_v29  ;;  %v14340_v15 = vsel %vm401_vm1, %v14303_v18, %v14311_v44 }
 0xfca   : > { %v14422_v3 = vmul.f32 %v14409_v55, %v27136_v47  ;;  %v14425_v30 = vmul.f32 %v14397_v22, %v27137_v37  ;;  %17252 = vmatprep.subr.bf16.mxu0 %v17251_v58  ;;  %v17261_v46 = vpack.c.bf16 %v14424_v4, %v14420_v59  ;;  %v14355_v50 = vmul.f32 %v14340_v15, %v26680_v17 }
 0xfcb   : > { %v27259_v58 = vpack.c.bf16 %v24964_v40, %v24958_v23  ;;  %v18198_v40 = vld [vmem:[%s25901_s5 + $0x4] sm:$0xf] }
 0xfcc   : > { %v14327_v53 = vpop.permute.xlu0 %14326  ;;  %v17253_v14 = vpack.c.bf16 %v14422_v3, %v14418_v34  ;;  %v14313_v62 = vpop.permute.xlu1 %14312  ;;  %v17259_v51 = vpack.c.bf16 %v14425_v30, %v14421_v25  ;;  %v14336_v34 = vsel %vm401_vm1, %v14311_v44, %v25401_v43 }
 0xfcd   : > { %v14344_v0 = vsel %vm401_vm1, %v14327_v53, %v14303_v18  ;;  %v14341_v38 = vsel %vm401_vm1, %v25403_v10, %v14313_v62  ;;  %v14332_v47 = vsel %vm401_vm1, %v25401_v43, %v14327_v53  ;;  %v14337_v37 = vsel %vm401_vm1, %v14313_v62, %v25409_v42 }
 0xfce   : > { %v14359_v20 = vmul.f32 %v14341_v38, %v26680_v17  ;;  %17254 = vmatpush1.bf16.msra.mxu0 %v17253_v14  ;;  %17260 = vmatprep.subr.bf16.mxu1 %v17259_v51  ;;  %v14354_v29 = vmul.f32 %v14344_v0, %v27139_v24  ;;  %v27260_v18 = vpack.c.bf16 %v24999_v12, %v24993_v36 }
 0xfcf   : > { %17262 = vmatpush1.bf16.msra.mxu1 %v17261_v46  ;;  %17264 = vmatprep.subr.bf16.mxu0 %v27259_v58  ;;  %v14357_v22 = vmul.f32 %v14332_v47, %v27140_v5  ;;  %v14360_v55 = vmul.f32 %v14337_v37, %v27141_v60  ;;  %v27262_v43 = vpack.c.bf16 %v24967_v35, %v24961_v11 }
 0xfd0   : > { %v14723_v26 = vpop.permute.xlu0 %14722  ;;  %17272 = vmatprep.subr.bf16.mxu1 %v27260_v18  ;;  %v14329_v4 = vpop.permute.xlu1 %14328  ;;  %v17267_v17 = vpack.c.bf16 %v14359_v20, %v14355_v50  ;;  %v27265_v51 = vpack.c.bf16 %v25063_v48, %v25057_v41  ;;  %v27267_v37 = vpack.c.bf16 %v25031_v32, %v25025_v54 }
 0xfd1   : > { %v14333_v23 = vsel %vm401_vm1, %v25409_v42, %v14329_v4  ;;  %v14345_v44 = vsel %vm401_vm1, %v14329_v4, %v25403_v10  ;;  %16794 = vmatmul.mubr.msk.f32.vlgmr.msra.gmra.mrb[38].mxu0 %vm2832_vm10, %v18198_v40  ;;  %v14752_v36 = vsel %vm883_vm4, %v25407_v19, %v14723_v26  ;;  %v27261_v42 = vpack.c.bf16 %v24996_v28, %v24990_v8  ;;  %v27269_v4 = vld [vmem:[#allocation49_spill] sm:$0xff] }
 0xfd2   : > { %v14358_v12 = vmul.f32 %v14345_v44, %v27139_v24  ;;  %v14361_v50 = vmul.f32 %v14333_v23, %v27140_v5  ;;  %16795 = vmatmul.mubr.msk.f32.vlgmr.msra.gmra.mrb[38].mxu1 %vm2832_vm10, %v18198_v40  ;;  %v14356_v10 = vmul.f32 %v14336_v34, %v27141_v60  ;;  %v27263_v24 = vmov 0.0   ;;  %v27272_v23 = vld [vmem:[#allocation21_spill] sm:$0xff]  ;;  %v27273_v44 = vld [vmem:[#allocation96_spill] sm:$0xff] }
 0xfd3   : > { %17266 = vmatpush1.bf16.msra.mxu0 %v27261_v42  ;;  %17274 = vmatpush1.bf16.msra.mxu1 %v27262_v43  ;;  %v14767_v59 = vmul.f32 %v14752_v36, %v27142_v1  ;;  %v14748_v14 = vsel %vm883_vm4, %v14723_v26, %v25411_v63  ;;  %v15135_v40 = vmul.f32 %v27273_v44, %v27272_v23  ;;  %v27274_v36 = vld [vmem:[#allocation23_spill] sm:$0xff] }
 0xfd4   : > { %17268 = vmatprep.subr.bf16.mxu0 %v17267_v17  ;;  %v14739_v25 = vpop.permute.xlu0 %14738  ;;  %v17269_v15 = vpack.c.bf16 %v14358_v12, %v14354_v29  ;;  %v14725_v3 = vpop.permute.xlu1 %14724  ;;  %v17275_v30 = vpack.c.bf16 %v14361_v50, %v14357_v22  ;;  %14632 = vmatprep.mubr.f32.mxu0 %v27263_v24  ;;  %v17277_v5 = vpack.c.bf16 %v14360_v55, %v14356_v10  ;;  %v27270_v17 = vld [vmem:[#allocation55_spill] sm:$0xff]  ;;  %v27275_v12 = vld [vmem:[#allocation81_spill] sm:$0xff] }
 0xfd5   : > { %v14756_v8 = vsel %vm883_vm4, %v14739_v25, %v25407_v19  ;;  %v14753_v60 = vsel %vm883_vm4, %v25413_v49, %v14725_v3  ;;  %14703 = vmatprep.mubr.f32.mxu1 %v27263_v24  ;;  %v14744_v11 = vsel %vm883_vm4, %v25411_v63, %v14739_v25  ;;  %v14749_v35 = vsel %vm883_vm4, %v14725_v3, %v25417_v61  ;;  %v18199_v63 = vld [vmem:[%s25901_s5] sm:$0xf]  ;;  %v27277_v42 = vld [vmem:[#allocation27_spill] sm:$0xff]  ;;  %v18200_v25 = vld [vmem:[%s25901_s5 + $0x8] sm:$0xf] }
 0xfd6   : > { %v14771_v28 = vmul.f32 %v14753_v60, %v27142_v1  ;;  %17276 = vmatprep.subr.bf16.mxu1 %v17275_v30  ;;  %v27264_v19 = vpack.c.bf16 %v25028_v39, %v25022_v7  ;;  %v14766_v62 = vmul.f32 %v14756_v8, %v27143_v13  ;;  %v14769_v0 = vmul.f32 %v14744_v11, %v27144_v31  ;;  %v27282_v60 = vld [vmem:[#allocation53_spill] sm:$0xff]  ;;  %v27283_v11 = vld [vmem:[#allocation87_spill] sm:$0xff] }
 0xfd7   : > { %17270 = vmatpush1.bf16.msra.mxu0 %v17269_v15  ;;  %17278 = vmatpush1.bf16.msra.mxu1 %v17277_v5  ;;  %v14772_v38 = vmul.f32 %v14749_v35, %v27145_v2  ;;  %v27268_v29 = vpack.c.bf16 %v25092_v16, %v25086_v56  ;;  %v15137_v50 = vmul.f32 %v27275_v12, %v27274_v36  ;;  %v27276_v16 = vld [vmem:[#allocation26_spill] sm:$0xff]  ;;  %v27278_v15 = vld [vmem:[#allocation19_spill] sm:$0xff] }
 0xfd8   : > { %17280 = vmatprep.subr.bf16.mxu0 %v27264_v19  ;;  %v14933_v53 = vpop.permute.xlu0 %14932  ;;  %17288 = vmatprep.subr.bf16.mxu1 %v27265_v51  ;;  %v14741_v46 = vpop.permute.xlu1 %14740  ;;  %v17283_v1 = vpack.c.bf16 %v14771_v28, %v14767_v59  ;;  %v27279_v59 = vld [vmem:[#allocation116_spill] sm:$0xff]  ;;  %v27284_v35 = vpack.c.bf16 %v27282_v60, %v27283_v11  ;;  %v27285_v19 = vld [vmem:[#allocation85_spill] sm:$0xff]  ;;  %v27301_v44 = vld [vmem:[#allocation103_spill] sm:$0xff] }
 0xfd9   : > { %v14745_v7 = vsel %vm883_vm4, %v25417_v61, %v14741_v46  ;;  %v14757_v39 = vsel %vm883_vm4, %v14741_v46, %v25413_v49  ;;  %v14962_v48 = vsel %vm1139_vm5, %v25415_v45, %v14933_v53  ;;  %v27266_v61 = vpack.c.bf16 %v25060_v33, %v25054_v57  ;;  %v27286_v46 = vld [vmem:[#allocation61_spill] sm:$0xff]  ;;  %v27303_v12 = vld [vmem:[#allocation115_spill] sm:$0xff]  ;;  %v27309_v60 = vld [vmem:[#allocation70_spill] sm:$0xff] }
 0xfda   : > { %16796 = vmatmul.mubr.msk.f32.vlgmr.msra.gmra.mrb[38].mxu0 %vm2832_vm10, %v18199_v63  ;;  %v14770_v41 = vmul.f32 %v14757_v39, %v27143_v13  ;;  %v14773_v47 = vmul.f32 %v14745_v7, %v27144_v31  ;;  %16797 = vmatmul.mubr.msk.f32.vlgmr.msra.gmra.mrb[38].mxu1 %vm2832_vm10, %v18199_v63  ;;  %v14768_v49 = vmul.f32 %v14748_v14, %v27145_v2  ;;  %v27287_v7 = vld [vmem:[#allocation92_spill] sm:$0xff] }
 0xfdb   : > { %17282 = vmatpush1.bf16.msra.mxu0 %v27266_v61  ;;  %17290 = vmatpush1.bf16.msra.mxu1 %v27267_v37  ;;  %v14977_v31 = vmul.f32 %v14962_v48, %v27146_v27  ;;  %v15143_v39 = vmul.f32 %v27287_v7, %v27272_v23  ;;  %v27288_v48 = vld [vmem:[#allocation48_spill] sm:$0xff]  ;;  %v27289_v61 = vld [vmem:[#allocation123_spill] sm:$0xff] }
 0xfdc   : > { %17284 = vmatprep.subr.bf16.mxu0 %v17283_v1  ;;  %v14949_v20 = vpop.permute.xlu0 %14948  ;;  %v17285_v58 = vpack.c.bf16 %v14770_v41, %v14766_v62  ;;  %v14935_v26 = vpop.permute.xlu1 %14934  ;;  %v17291_v34 = vpack.c.bf16 %v14773_v47, %v14769_v0  ;;  %14838 = vmatprep.mubr.f32.mxu0 %v27263_v24  ;;  %v17293_v13 = vpack.c.bf16 %v14772_v38, %v14768_v49 }
 0xfdd   : > { %v14963_v33 = vsel %vm1139_vm5, %v25421_v6, %v14935_v26  ;;  %14909 = vmatprep.mubr.f32.mxu1 %v27263_v24  ;;  %v14966_v2 = vsel %vm1139_vm5, %v14949_v20, %v25415_v45  ;;  %v14959_v54 = vsel %vm1139_vm5, %v14935_v26, %v25425_v52  ;;  %v14954_v57 = vsel %vm1139_vm5, %v25419_v21, %v14949_v20  ;;  %v27290_v20 = vld [vmem:[#allocation109_spill] sm:$0xff]  ;;  %v27291_v26 = vld [vmem:[#allocation20_spill] sm:$0xff] }
 0xfde   : > { %v14981_v32 = vmul.f32 %v14963_v33, %v27146_v27  ;;  %17292 = vmatprep.subr.bf16.mxu1 %v17291_v34  ;;  %v14958_v45 = vsel %vm1139_vm5, %v14933_v53, %v25419_v21  ;;  %v27271_v27 = vpack.c.bf16 %v27269_v4, %v27270_v17  ;;  %v14976_v56 = vmul.f32 %v14966_v2, %v27276_v16  ;;  %v27292_v34 = vld [vmem:[#allocation68_spill] sm:$0xff]  ;;  %v27293_v2 = vld [vmem:[#allocation22_spill] sm:$0xff]  ;;  %v27298_v17 = vld [vmem:[#allocation77_spill] sm:$0xff] }
 0xfdf   : > { %17286 = vmatpush1.bf16.msra.mxu0 %v17285_v58  ;;  %17294 = vmatpush1.bf16.msra.mxu1 %v17293_v13  ;;  %v14982_v10 = vmul.f32 %v14959_v54, %v27277_v42  ;;  %v14979_v3 = vmul.f32 %v14954_v57, %v27278_v15  ;;  %v15131_v53 = vmul.f32 %v27285_v19, %v27272_v23  ;;  %v27294_v54 = vld [vmem:[#allocation74_spill] sm:$0xff]  ;;  %v27295_v57 = vld [vmem:[#allocation97_spill] sm:$0xff] }
 0xfe0   : > { %17296 = vmatprep.subr.bf16.mxu0 %v27268_v29  ;;  %v25593_v18 = vpop.permute.xlu0 %15926  ;;  %17304 = vmatprep.subr.bf16.mxu1 %v27271_v27  ;;  %v14951_v22 = vpop.permute.xlu1 %14950  ;;  %v17299_v55 = vpack.c.bf16 %v14981_v32, %v14977_v31  ;;  %v15133_v1 = vmul.f32 %v27286_v46, %v27274_v36  ;;  %v15145_v41 = vmul.f32 %v27288_v48, %v27274_v36  ;;  %v18201_v31 = vld [vmem:[%s25901_s5 + $0xc] sm:$0xf]  ;;  %v27296_v29 = vld [vmem:[#allocation100_spill] sm:$0xff]  ;;  %v18202_v48 = vld [vmem:[%s25901_s5 + $0x10] sm:$0xf] }
 0xfe1   : > { %v14955_v21 = vsel %vm1139_vm5, %v25425_v52, %v14951_v22  ;;  %v14967_v43 = vsel %vm1139_vm5, %v14951_v22, %v25421_v6  ;;  %v27280_v52 = vld [vmem:[#allocation62_spill] sm:$0xff]  ;;  %v14978_v6 = vmul.f32 %v14958_v45, %v27277_v42  ;;  %v17311_v38 = vpack.c.bf16 %v15135_v40, %v15131_v53  ;;  %v27304_v42 = vld [vmem:[#allocation117_spill] sm:$0xff]  ;;  %v27312_v53 = vld [vmem:[#allocation76_spill] sm:$0xff] }
 0xfe2   : > { %16798 = vmatmul.mubr.msk.f32.vlgmr.msra.gmra.mrb[38].mxu0 %vm2832_vm10, %v18200_v25  ;;  %v14980_v30 = vmul.f32 %v14967_v43, %v27276_v16  ;;  %v14983_v5 = vmul.f32 %v14955_v21, %v27278_v15  ;;  %16799 = vmatmul.mubr.msk.f32.vlgmr.msra.gmra.mrb[38].mxu1 %vm2832_vm10, %v18200_v25  ;;  %v27281_v8 = vpack.c.bf16 %v27279_v59, %v27280_v52  ;;  %v27299_v22 = vld [vmem:[#allocation54_spill] sm:$0xff]  ;;  %v27305_v21 = vld [vmem:[#allocation56_spill] sm:$0xff]  ;;  %v27306_v15 = vld [vmem:[#allocation93_spill] sm:$0xff] }
 0xfe3   : > { %17306 = vmatpush1.bf16.msra.mxu1 %v27284_v35  ;;  %15048 = vmatprep.mubr.f32.mxu0 %v27263_v24  ;;  %v17309_v0 = vpack.c.bf16 %v14982_v10, %v14978_v6  ;;  %v17319_v63 = vpack.c.bf16 %v15137_v50, %v15133_v1  ;;  %v15139_v49 = vmul.f32 %v27289_v61, %v27272_v23  ;;  %v27300_v23 = vld [vmem:[#allocation63_spill] sm:$0xff]  ;;  %v27308_v6 = vld [vmem:[#allocation66_spill] sm:$0xff] }
 0xfe4   : > { %17298 = vmatpush1.bf16.msra.mxu0 %v27281_v8  ;;  %v15305_v28 = vpop.permute.xlu0 %15304  ;;  %v17301_v14 = vpack.c.bf16 %v14980_v30, %v14976_v56  ;;  %v25630_v62 = vpop.permute.xlu1 %15928  ;;  %v17307_v51 = vpack.c.bf16 %v14983_v5, %v14979_v3  ;;  %15119 = vmatprep.mubr.f32.mxu1 %v27263_v24  ;;  %v15141_v58 = vmul.f32 %v27290_v20, %v27274_v36  ;;  %v27307_v30 = vld [vmem:[#allocation28_spill] sm:$0xff]  ;;  %v27317_v20 = vld [vmem:[#allocation71_spill] sm:$0xff] }
 0xfe5   : > { %17300 = vmatprep.subr.bf16.mxu0 %v17299_v55  ;;  %v15142_v13 = vmul.f32 %v27292_v34, %v27291_v26  ;;  %v17315_v33 = vpack.c.bf16 %v15143_v39, %v15139_v49  ;;  %v15144_v32 = vmul.f32 %v27294_v54, %v27293_v2  ;;  %v27297_v45 = vpack.c.bf16 %v27295_v57, %v27296_v29  ;;  %v27320_v34 = vld [vmem:[#allocation80_spill] sm:$0xff] }
 0xfe6   : > { %17308 = vmatprep.subr.bf16.mxu1 %v17307_v51  ;;  %v17323_v4 = vpack.c.bf16 %v15145_v41, %v15141_v58  ;;  %v15138_v27 = vmul.f32 %v27298_v17, %v27291_v26  ;;  %v15330_v55 = vsel %vm1636_vm6, %v15305_v28, %v27299_v22  ;;  %v27302_v40 = vpack.c.bf16 %v27300_v23, %v27301_v44  ;;  %v27316_v41 = vld [vmem:[#allocation29_spill] sm:$0xff]  ;;  %v27318_v58 = vld [vmem:[#allocation124_spill] sm:$0xff] }
 0xfe7   : > { %17310 = vmatpush1.bf16.msra.mxu1 %v17309_v0  ;;  %v15140_v50 = vmul.f32 %v27303_v12, %v27293_v2  ;;  %v15334_v3 = vsel %vm1636_vm6, %v27306_v15, %v15305_v28  ;;  %v15349_v5 = vmul.f32 %v15330_v55, %v27307_v30  ;;  %v27310_v11 = vpack.c.bf16 %v27308_v6, %v27309_v60  ;;  %v27311_v28 = vld [vmem:[#allocation30_spill] sm:$0xff]  ;;  %v27326_v55 = vld [vmem:[#allocation105_spill] sm:$0xff]  ;;  %v27327_v44 = vld [vmem:[#allocation32_spill] sm:$0xff] }
 0xfe8   : > { %17302 = vmatpush1.bf16.msra.mxu0 %v17301_v14  ;;  %v15321_v47 = vpop.permute.xlu0 %15320  ;;  %17320 = vmatprep.subr.bf16.mxu1 %v17319_v63  ;;  %v25642_v37 = vpop.permute.xlu1 %15944  ;;  %v17317_v56 = vpack.c.bf16 %v15142_v13, %v15138_v27  ;;  %v27313_v14 = vld [vmem:[#allocation57_spill] sm:$0xff]  ;;  %v15348_v0 = vmul.f32 %v15334_v3, %v27311_v28  ;;  %v27319_v26 = vpack.c.bf16 %v27317_v20, %v27318_v58  ;;  %v27325_v27 = vld [vmem:[#allocation122_spill] sm:$0xff]  ;;  %v27345_v58 = vld [vmem:[#allocation8_spill] sm:$0xff] }
 0xfe9   : > { %17312 = vmatprep.subr.bf16.mxu0 %v17311_v38  ;;  %v17325_v25 = vpack.c.bf16 %v15144_v32, %v15140_v50  ;;  %v15326_v59 = vsel %vm1636_vm6, %v27299_v22, %v15321_v47  ;;  %v15338_v8 = vsel %vm1636_vm6, %v15321_v47, %v27306_v15  ;;  %v27314_v51 = vpack.c.bf16 %v27312_v53, %v27313_v14  ;;  %v27315_v38 = vld [vmem:[#allocation31_spill] sm:$0xff]  ;;  %v27333_v15 = vld [vmem:[#allocation78_spill] sm:$0xff]  ;;  %v27337_v14 = vld [vmem:[#allocation65_spill] sm:$0xff] }
 0xfea   : > { %16801 = vmatmul.mubr.msk.f32.vlgmr.msra.gmra.mrb[38].mxu1 %vm2832_vm10, %v18201_v31  ;;  %v15350_v7 = vmul.f32 %v15326_v59, %v27315_v38  ;;  %v15351_v47 = vmul.f32 %v15338_v8, %v27316_v41 }
 0xfeb   : > { %16800 = vmatmul.mubr.msk.f32.vlgmr.msra.gmra.mrb[38].mxu0 %vm2832_vm10, %v18201_v31  ;;  %17322 = vmatpush1.bf16.msra.mxu1 %v27302_v40  ;;  %v27321_v31 = vld [vmem:[#allocation119_spill] sm:$0xff] }
 0xfec   : > { %17314 = vmatpush1.bf16.msra.mxu0 %v27297_v45  ;;  %v15515_v36 = vpop.permute.xlu0 %15514  ;;  %17324 = vmatprep.subr.bf16.mxu1 %v17323_v4  ;;  %v27324_v4 = vld [vmem:[#allocation112_spill] sm:$0xff] }
 0xfed   : > { %17316 = vmatprep.subr.bf16.mxu0 %v17315_v33  ;;  %v15307_v16 = vpop.permute.xlu1 %15306  ;;  %15210 = vmatprep.mubr.f32.mxu0 %v27263_v24  ;;  %v15540_v13 = vsel %vm1892_vm7, %v15515_v36, %v27320_v34  ;;  %v27322_v33 = vld [vmem:[#allocation82_spill] sm:$0xff]  ;;  %v15544_v17 = vsel %vm1892_vm7, %v27324_v4, %v15515_v36 }
 0xfee   : > { %v15331_v10 = vsel %vm1636_vm6, %v15307_v16, %v27304_v42  ;;  %v15335_v43 = vsel %vm1636_vm6, %v27305_v21, %v15307_v16  ;;  %15281 = vmatprep.mubr.f32.mxu1 %v27263_v24  ;;  %v27323_v2 = vpack.c.bf16 %v27321_v31, %v27322_v33  ;;  %v15559_v40 = vmul.f32 %v15540_v13, %v27327_v44  ;;  %v27328_v16 = vld [vmem:[#allocation108_spill] sm:$0xff] }
 0xfef   : > { %v15353_v52 = vmul.f32 %v15331_v10, %v27307_v30  ;;  %17326 = vmatpush1.bf16.msra.mxu1 %v17325_v25  ;;  %v15352_v19 = vmul.f32 %v15335_v43, %v27311_v28  ;;  %v27332_v25 = vld [vmem:[#allocation101_spill] sm:$0xff]  ;;  %v27347_v31 = vld [vmem:[#allocation36_spill] sm:$0xff] }
 0xff0   : > { %17318 = vmatpush1.bf16.msra.mxu0 %v17317_v56  ;;  %v15531_v35 = vpop.permute.xlu0 %15530  ;;  %17336 = vmatprep.subr.bf16.mxu1 %v27314_v51  ;;  %v27329_v56 = vld [vmem:[#allocation75_spill] sm:$0xff]  ;;  %v27334_v3 = vpack.c.bf16 %v27332_v25, %v27333_v15  ;;  %v27338_v51 = vld [vmem:[#allocation89_spill] sm:$0xff]  ;;  %v27357_v15 = vld [vmem:[#allocation104_spill] sm:$0xff] }
 0xff1   : > { %17328 = vmatprep.subr.bf16.mxu0 %v27310_v11  ;;  %v15323_v46 = vpop.permute.xlu1 %15322  ;;  %v17331_v1 = vpack.c.bf16 %v15353_v52, %v15349_v5  ;;  %v17333_v32 = vpack.c.bf16 %v15352_v19, %v15348_v0  ;;  %v15536_v12 = vsel %vm1892_vm7, %v27320_v34, %v15531_v35  ;;  %v15548_v36 = vsel %vm1892_vm7, %v15531_v35, %v27324_v4  ;;  %v27335_v52 = vld [vmem:[#allocation35_spill] sm:$0xff]  ;;  %v18203_v11 = vld [vmem:[%s25901_s5 + $0x14] sm:$0xf]  ;;  %v27336_v35 = vld [vmem:[#allocation33_spill] sm:$0xff] }
 0xff2   : > { %v15327_v39 = vsel %vm1636_vm6, %v27304_v42, %v15323_v46  ;;  %v15339_v63 = vsel %vm1636_vm6, %v15323_v46, %v27305_v21  ;;  %16803 = vmatmul.mubr.msk.f32.vlgmr.msra.gmra.mrb[38].mxu1 %vm2832_vm10, %v18202_v48  ;;  %v27330_v42 = vpack.c.bf16 %v27328_v16, %v27329_v56  ;;  %v27331_v21 = vld [vmem:[#allocation34_spill] sm:$0xff]  ;;  %v15560_v8 = vmul.f32 %v15536_v12, %v27335_v52  ;;  %v27346_v34 = vld [vmem:[#allocation88_spill] sm:$0xff] }
 0xff3   : > { %16802 = vmatmul.mubr.msk.f32.vlgmr.msra.gmra.mrb[38].mxu0 %vm2832_vm10, %v18202_v48  ;;  %v15354_v61 = vmul.f32 %v15327_v39, %v27315_v38  ;;  %v15355_v49 = vmul.f32 %v15339_v63, %v27316_v41  ;;  %17338 = vmatpush1.bf16.msra.mxu1 %v27323_v2  ;;  %v15558_v59 = vmul.f32 %v15544_v17, %v27331_v21  ;;  %v27341_v38 = vld [vmem:[#allocation106_spill] sm:$0xff] }
 0xff4   : > { %17330 = vmatpush1.bf16.msra.mxu0 %v27319_v26  ;;  %v15725_v54 = vpop.permute.xlu0 %15724  ;;  %15420 = vmatprep.mubr.f32.mxu0 %v27263_v24  ;;  %v15561_v28 = vmul.f32 %v15548_v36, %v27336_v35  ;;  %v27339_v46 = vpack.c.bf16 %v27337_v14, %v27338_v51  ;;  %v27351_v17 = vld [vmem:[#allocation38_spill] sm:$0xff]  ;;  %v27363_v51 = vld [vmem:[#allocation40_spill] sm:$0xff] }
 0xff5   : > { %17332 = vmatprep.subr.bf16.mxu0 %v17331_v1  ;;  %v17341_v57 = vpack.c.bf16 %v15354_v61, %v15350_v7  ;;  %v15517_v29 = vpop.permute.xlu1 %15516  ;;  %v17339_v45 = vpack.c.bf16 %v15355_v49, %v15351_v47  ;;  %15491 = vmatprep.mubr.f32.mxu1 %v27263_v24  ;;  %v27340_v1 = vld [vmem:[#allocation47_spill] sm:$0xff]  ;;  %v27342_v7 = vld [vmem:[#allocation114_spill] sm:$0xff] }
 0xff6   : > { %v15541_v22 = vsel %vm1892_vm7, %v15517_v29, %v27325_v27  ;;  %v15545_v23 = vsel %vm1892_vm7, %v27326_v55, %v15517_v29  ;;  %v15750_v0 = vsel %vm2148_vm8, %v15725_v54, %v27340_v1  ;;  %v27343_v39 = vpack.c.bf16 %v27341_v38, %v27342_v7  ;;  %v27344_v49 = vld [vmem:[#allocation10_spill] sm:$0xff]  ;;  %v27349_v29 = vld [vmem:[#allocation79_spill] sm:$0xff] }
 0xff7   : > { %v15563_v50 = vmul.f32 %v15541_v22, %v27327_v44  ;;  %17340 = vmatprep.subr.bf16.mxu1 %v17339_v45  ;;  %v15562_v43 = vmul.f32 %v15545_v23, %v27331_v21  ;;  %v15754_v20 = vsel %vm2148_vm8, %v27344_v49, %v15725_v54  ;;  %v15769_v33 = vmul.f32 %v15750_v0, %v27347_v31  ;;  %v27352_v22 = vld [vmem:[#allocation120_spill] sm:$0xff]  ;;  %v27364_v7 = vld [vmem:[#allocation102_spill] sm:$0xff] }
 0xff8   : > { %17334 = vmatpush1.bf16.msra.mxu0 %v17333_v32  ;;  %17342 = vmatpush1.bf16.msra.mxu1 %v17341_v57  ;;  %v15741_v10 = vpop.permute.xlu0 %15740  ;;  %v27348_v57 = vld [vmem:[#allocation107_spill] sm:$0xff]  ;;  %v15768_v12 = vmul.f32 %v15754_v20, %v27351_v17 }
 0xff9   : > { %17344 = vmatprep.subr.bf16.mxu0 %v27330_v42  ;;  %17352 = vmatprep.subr.bf16.mxu1 %v27334_v3  ;;  %v15533_v30 = vpop.permute.xlu1 %15532  ;;  %v17347_v5 = vpack.c.bf16 %v15563_v50, %v15559_v40  ;;  %v17349_v48 = vpack.c.bf16 %v15562_v43, %v15558_v59  ;;  %v15746_v2 = vsel %vm2148_vm8, %v27340_v1, %v15741_v10  ;;  %v27355_v50 = vld [vmem:[#allocation39_spill] sm:$0xff]  ;;  %v27358_v3 = vld [vmem:[#allocation118_spill] sm:$0xff] }
 0xffa   : > { %v15537_v6 = vsel %vm1892_vm7, %v27325_v27, %v15533_v30  ;;  %v15549_v60 = vsel %vm1892_vm7, %v15533_v30, %v27326_v55  ;;  %v15758_v54 = vsel %vm2148_vm8, %v15741_v10, %v27344_v49  ;;  %v27350_v45 = vpack.c.bf16 %v27348_v57, %v27349_v29  ;;  %v27353_v55 = vld [vmem:[#allocation113_spill] sm:$0xff]  ;;  %v18204_v42 = vld [vmem:[%s25901_s5 + $0x18] sm:$0xf]  ;;  %v27360_v59 = vld [vmem:[#allocation94_spill] sm:$0xff] }
 0xffb   : > { %16804 = vmatmul.mubr.msk.f32.vlgmr.msra.gmra.mrb[38].mxu0 %vm2832_vm10, %v18203_v11  ;;  %v15564_v19 = vmul.f32 %v15537_v6, %v27335_v52  ;;  %v15565_v53 = vmul.f32 %v15549_v60, %v27336_v35  ;;  %16805 = vmatmul.mubr.msk.f32.vlgmr.msra.gmra.mrb[38].mxu1 %vm2832_vm10, %v18203_v11  ;;  %v27354_v23 = vpack.c.bf16 %v27352_v22, %v27353_v55  ;;  %v27356_v10 = vld [vmem:[#allocation37_spill] sm:$0xff]  ;;  %v27361_v52 = vld [vmem:[#allocation59_spill] sm:$0xff]  ;;  %v27374_v29 = vld [vmem:[#allocation72_spill] sm:$0xff] }
 0xffc   : > { %17346 = vmatpush1.bf16.msra.mxu0 %v27339_v46  ;;  %17354 = vmatpush1.bf16.msra.mxu1 %v27343_v39  ;;  %v15935_v63 = vpop.permute.xlu0 %15934  ;;  %v15770_v36 = vmul.f32 %v15746_v2, %v27355_v50  ;;  %v15771_v21 = vmul.f32 %v15758_v54, %v27356_v10  ;;  %v27359_v30 = vpack.c.bf16 %v27357_v15, %v27358_v3  ;;  %v27365_v39 = vld [vmem:[#allocation60_spill] sm:$0xff]  ;;  %v27372_v2 = vld [vmem:[#allocation41_spill] sm:$0xff] }
 0xffd   : > { %17348 = vmatprep.subr.bf16.mxu0 %v17347_v5  ;;  %v17357_v41 = vpack.c.bf16 %v15564_v19, %v15560_v8  ;;  %v15727_v47 = vpop.permute.xlu1 %15726  ;;  %v17355_v61 = vpack.c.bf16 %v15565_v53, %v15561_v28  ;;  %15630 = vmatprep.mubr.f32.mxu0 %v27263_v24  ;;  %v27362_v8 = vpack.c.bf16 %v27360_v59, %v27361_v52  ;;  %v18206_v55 = vld [vmem:[%s25901_s5 + $0x20] sm:$0xf]  ;;  %v27381_v59 = vld [vmem:[#allocation46_spill] sm:$0xff] }
 0xffe   : > { %15701 = vmatprep.mubr.f32.mxu1 %v27263_v24  ;;  %v15751_v26 = vsel %vm2148_vm8, %v15727_v47, %v27345_v58  ;;  %v15755_v13 = vsel %vm2148_vm8, %v27346_v34, %v15727_v47  ;;  %v15964_v19 = vsel %vm2404_vm9, %v25593_v18, %v15935_v63  ;;  %v27368_v47 = vld [vmem:[#allocation73_spill] sm:$0xff] }
 0xfff   : > { %v15773_v32 = vmul.f32 %v15751_v26, %v27347_v31  ;;  %17356 = vmatprep.subr.bf16.mxu1 %v17355_v61  ;;  %v15772_v27 = vmul.f32 %v15755_v13, %v27351_v17  ;;  %v27369_v61 = vld [vmem:[#allocation98_spill] sm:$0xff] }
0x1000   : > { %17350 = vmatpush1.bf16.msra.mxu0 %v17349_v48  ;;  %17358 = vmatpush1.bf16.msra.mxu1 %v17357_v41  ;;  %v15943_v4 = vpop.permute.xlu0 %15942  ;;  %v27367_v48 = vld [vmem:[#allocation42_spill] sm:$0xff]  ;;  %v27370_v49 = vpack.c.bf16 %v27368_v47, %v27369_v61 }
0x1001   : > { %17360 = vmatprep.subr.bf16.mxu0 %v27350_v45  ;;  %17368 = vmatprep.subr.bf16.mxu1 %v27354_v23  ;;  %v15743_v44 = vpop.permute.xlu1 %15742  ;;  %v17363_v40 = vpack.c.bf16 %v15773_v32, %v15769_v33  ;;  %v15960_v5 = vsel %vm2404_vm9, %v15935_v63, %v15943_v4  ;;  %v17365_v60 = vpack.c.bf16 %v15772_v27, %v15768_v12  ;;  %v18205_v33 = vld [vmem:[%s25901_s5 + $0x1c] sm:$0xf] }
0x1002   : > { %v15747_v16 = vsel %vm2148_vm8, %v27345_v58, %v15743_v44  ;;  %v15759_v56 = vsel %vm2148_vm8, %v15743_v44, %v27346_v34  ;;  %v15979_v46 = vmul.f32 %v15960_v5, %v27363_v51  ;;  %v27366_v63 = vpack.c.bf16 %v27364_v7, %v27365_v39  ;;  %v27371_v34 = vld [vmem:[#allocation43_spill] sm:$0xff] }
0x1003   : > { %16806 = vmatmul.mubr.msk.f32.vlgmr.msra.gmra.mrb[38].mxu0 %vm2832_vm10, %v18204_v42  ;;  %v15774_v43 = vmul.f32 %v15747_v16, %v27355_v50  ;;  %v15775_v25 = vmul.f32 %v15759_v56, %v27356_v10  ;;  %16807 = vmatmul.mubr.msk.f32.vlgmr.msra.gmra.mrb[38].mxu1 %vm2832_vm10, %v18204_v42  ;;  %v15978_v26 = vmul.f32 %v15964_v19, %v27367_v48  ;;  %v16136_v44 = vstv %s12313_s21 }
0x1004   : > { %17362 = vmatpush1.bf16.msra.mxu0 %v27359_v30  ;;  %17370 = vmatpush1.bf16.msra.mxu1 %v27362_v8  ;;  %v15951_v6 = vpop.permute.xlu0 %15950  ;;  %v27380_v30 = vld [vmem:[#allocation99_spill] sm:$0xff] }
0x1005   : > { %17364 = vmatprep.subr.bf16.mxu0 %v17363_v40  ;;  %v17373_v11 = vpack.c.bf16 %v15774_v43, %v15770_v36  ;;  %v15937_v35 = vpop.permute.xlu1 %15936  ;;  %v17371_v28 = vpack.c.bf16 %v15775_v25, %v15771_v21  ;;  %15840 = vmatprep.mubr.f32.mxu0 %v27263_v24  ;;  %v15956_v1 = vsel %vm2404_vm9, %v15943_v4, %v15951_v6  ;;  %v27379_v40 = vld [vmem:[#allocation69_spill] sm:$0xff] }
0x1006   : > { %v15961_v53 = vsel %vm2404_vm9, %v15937_v35, %v25642_v37  ;;  %v15965_v14 = vsel %vm2404_vm9, %v25630_v62, %v15937_v35  ;;  %15911 = vmatprep.mubr.f32.mxu1 %v27263_v24  ;;  %v15968_v38 = vsel %vm2404_vm9, %v15951_v6, %v25593_v18  ;;  %v15980_v13 = vmul.f32 %v15956_v1, %v27371_v34 }
0x1007   : > { %v15983_v0 = vmul.f32 %v15961_v53, %v27363_v51  ;;  %17372 = vmatprep.subr.bf16.mxu1 %v17371_v28  ;;  %v15982_v41 = vmul.f32 %v15965_v14, %v27367_v48  ;;  %v15981_v32 = vmul.f32 %v15968_v38, %v27372_v2 }
0x1008   : > { %17366 = vmatpush1.bf16.msra.mxu0 %v17365_v60  ;;  %17374 = vmatpush1.bf16.msra.mxu1 %v17373_v11 }
0x1009   : > { %17376 = vmatprep.subr.bf16.mxu0 %v27366_v63  ;;  %17384 = vmatprep.subr.bf16.mxu1 %v27370_v49  ;;  %v15953_v20 = vpop.permute.xlu1 %15952  ;;  %v17379_v58 = vpack.c.bf16 %v15983_v0, %v15979_v46  ;;  %v17381_v17 = vpack.c.bf16 %v15982_v41, %v15978_v26 }
0x100a   : > { %v15957_v18 = vsel %vm2404_vm9, %v25642_v37, %v15953_v20  ;;  %v15969_v31 = vsel %vm2404_vm9, %v15953_v20, %v25630_v62  ;;  %v27373_v37 = vld [vmem:[#allocation84_spill] sm:$0xff] }
0x100b   : > { %16808 = vmatmul.mubr.msk.f32.vlgmr.msra.gmra.mrb[38].mxu0 %vm2832_vm10, %v18205_v33  ;;  %v15984_v54 = vmul.f32 %v15957_v18, %v27371_v34  ;;  %v15985_v57 = vmul.f32 %v15969_v31, %v27372_v2  ;;  %16809 = vmatmul.mubr.msk.f32.vlgmr.msra.gmra.mrb[38].mxu1 %vm2832_vm10, %v18205_v33  ;;  %v27375_v45 = vpack.c.bf16 %v27373_v37, %v27374_v29  ;;  %v27377_v62 = vld [vmem:[#allocation64_spill] sm:$0xff] }
0x100c   : > { %v27378_v4 = vpack.c.bf16 %v27376_v9, %v27377_v62  ;;  %16050 = vmatprep.mubr.f32.mxu0 %v27263_v24  ;;  %16121 = vmatprep.mubr.f32.mxu1 %v27263_v24 }
0x100d   : > { %17378 = vmatpush1.bf16.msra.mxu0 %v27375_v45  ;;  %v17389_v27 = vpack.c.bf16 %v15984_v54, %v15980_v13  ;;  %v17387_v22 = vpack.c.bf16 %v15985_v57, %v15981_v32 }
0x100e   : > { %17380 = vmatprep.subr.bf16.mxu0 %v17379_v58  ;;  %17386 = vmatpush1.bf16.msra.mxu1 %v27378_v4 }
0x100f   : > { %17388 = vmatprep.subr.bf16.mxu1 %v17387_v22 }
0x1011   : > { %17382 = vmatpush1.bf16.msra.mxu0 %v17381_v17 }
0x1012   : > { %17390 = vmatpush1.bf16.msra.mxu1 %v17389_v27 }
0x1014   : > { %16810 = vmatmul.mubr.msk.f32.vlgmr.msra.gmra.mrb[38].mxu0 %vm2832_vm10, %v18206_v55 }
0x1015   : > { %16811 = vmatmul.mubr.msk.f32.vlgmr.msra.gmra.mrb[38].mxu1 %vm2832_vm10, %v18206_v55 }
0x10e7   : > { %v16052_v23 = vpop.f32.mrb[38].mxu0 }
0x10e8   : > { %v16132_v24 = vadd.f32 %v16052_v23, %v27379_v40  ;;  %v16054_v12 = vpop.f32.mrb[39].mxu0  ;;  %v16123_v50 = vpop.f32.mrb[38].mxu1 }
0x10e9   : > { %v16133_v36 = vadd.f32 %v16054_v12, %v27379_v40  ;;  %v16134_v16 = vadd.f32 %v16123_v50, %v27379_v40  ;;  %v16125_v56 = vpop.f32.mrb[39].mxu1 }
0x10ea   : > { %v16137_v42 = vmul.f32 %v16136_v44, %v16132_v24  ;;  %v16135_v10 = vadd.f32 %v16125_v56, %v27379_v40 }
0x10eb   : > { %v16138_v21 = vmul.f32 %v16136_v44, %v16133_v36  ;;  %v16139_v43 = vmul.f32 %v16136_v44, %v16134_v16 }
0x10ec   : > { %v16140_v25 = vmul.f32 %v16136_v44, %v16135_v10 }
0x10ed   : > { %v16145_v15 = vcombine.low %v16137_v42, %v16138_v21 }
0x10ee   : > { %v16146_v3 = vcombine.low %v16139_v43, %v16140_v25 }
0x10ef   : > { %v16149_v5 = vadd.f32 %v16145_v15, %v27380_v30 }
0x10f0   : > { %v16150_v52 = vadd.f32 %v16146_v3, %v27381_v59 }
0x10f1   : > { %v16153_v8 = vcombine.low %v16149_v5, %v16149_v5  ;;  %16158 = vst [vmem:[%s18323_s13 + $0x28] sm:$0xf0] %v16149_v5  ;;  %16161 = vst [vmem:[#allocation2] sm:$0xff] %v16149_v5 }
0x10f2   : > { %v16154_v6 = vcombine.low %v16150_v52, %v16150_v52  ;;  %16160 = vst [vmem:[%s18323_s13 + $0x38] sm:$0xf0] %v16150_v52  ;;  %16162 = vst [vmem:[#allocation2 + $0x8] sm:$0xff] %v16150_v52 }
0x10f3   : > { %16157 = vst [vmem:[%s18323_s13 + $0x20] sm:$0xf0] %v16153_v8 }
0x10f4   : > { %16159 = vst [vmem:[%s18323_s13 + $0x30] sm:$0xf0] %v16154_v6 }
0x10f5 PF: > { %s23_s8 = sadd.s32 1, %s18243_s8   ;;  %s27382_s29 = smov %s18239_s30 }
0x10f6   : > { %p20_p11 = scmp.ge.s32.totalorder %s23_s8, 4   ;;  %s27383_s30 = smov %s27385_s0 }
0x10f8   :  { %22 = sbr.rel (!%p20_p11) target bundleno = 17 (0x11), region = 102 }

</bundles_post_ra>
